<compile_context>
chip_gen: v6e
topology: v6e:2x2x1
jax: 0.10.0
libtpu: 0.0.40
codegen_flags: <defaults>
</compile_context>

<pallas_src>
import jax
import jax.numpy as jnp
from jax.experimental import pallas as pl
from jax.experimental.pallas import tpu as pltpu


def _conv_stats_kernel(x_ref, wm_ref, conv_ref, stats_ref, xpad_ref):
    """Pass 1: 3x3 same-padded conv of Nb images as one K=9*Cin MXU matmul,
    plus per-block partial BatchNorm statistics.

    x_ref    : (Nb, H, W, Cin)      bf16 input block
    wm_ref   : (9*Cin, Cout)        bf16 im2col-ordered weights
    conv_ref : (Nb, H, W, Cout)     bf16 staged conv activations (output)
    stats_ref: (1, 2, Cout)         f32  partial [sum, sum_sq] (output)
    xpad_ref : (Nb, H+2, W+2, Cin)  bf16 halo scratch (rebuilt every step)
    """
    Nb, H, W, Cin = x_ref.shape
    Cout = conv_ref.shape[-1]

    # Halo: re-zero only the 1-pixel border, then write the interior.  Fully
    # rewritten every grid step -> no cross-step scratch state, safe under
    # 'parallel' / megacore sharding.
    zrow = jnp.zeros((Nb, 1, W + 2, Cin), xpad_ref.dtype)
    zcol = jnp.zeros((Nb, H, 1, Cin), xpad_ref.dtype)
    xpad_ref[:, 0:1, :, :] = zrow
    xpad_ref[:, H + 1:H + 2, :, :] = zrow
    xpad_ref[:, 1:H + 1, 0:1, :] = zcol
    xpad_ref[:, 1:H + 1, W + 1:W + 2, :] = zcol
    xpad_ref[:, 1:H + 1, 1:W + 1, :] = x_ref[...]

    # im2col assembled in registers: tap-major / channel-minor columns, matching
    # the (kh, kw, Cin, Cout) -> (9*Cin, Cout) weight reshape in the wrapper.
    # Single concatenate -> no masked partial stores into a VMEM col scratch.
    taps = []
    for kh in range(3):
        for kw in range(3):
            taps.append(
                xpad_ref[:, kh:kh + H, kw:kw + W, :].reshape(Nb * H * W, Cin))
    col = jnp.concatenate(taps, axis=1)                    # (Nb*H*W, 9*Cin) bf16

    # One bf16 MXU matmul, f32 accumulation.  (Conv bias omitted on purpose:
    # BatchNorm's batch statistics cancel a per-channel constant exactly.)
    acc = jnp.dot(col, wm_ref[...], preferred_element_type=jnp.float32)

    acc_bf = acc.astype(conv_ref.dtype)                    # bf16 activation storage
    conv_ref[...] = acc_bf.reshape(Nb, H, W, Cout)

    # Partial BatchNorm statistics, computed from the same bf16-rounded values
    # that pass 2 will normalize (keeps the two passes mutually consistent).
    s = acc_bf.astype(jnp.float32)
    ssum = jnp.sum(s, axis=0, keepdims=True)               # (1, Cout)
    ssq = jnp.sum(s * s, axis=0, keepdims=True)            # (1, Cout)
    stats_ref[...] = jnp.concatenate([ssum, ssq], axis=0).reshape(1, 2, Cout)


def _bn_act_pool_kernel(conv_ref, scale_ref, shift_ref, o_ref):
    """Pass 2: y = conv*scale + shift (BN + affine folded) -> ReLU -> 2x2 pool."""
    Nb, H, W, Cout = conv_ref.shape
    Ho, Wo = H // 2, W // 2

    y = conv_ref[...].astype(jnp.float32) * scale_ref[...] + shift_ref[...]
    y = jnp.maximum(y, 0.0)                                # ReLU

    # 2x2 max-pool (stride 2); reshapes keep Cout minor (proven-safe pattern).
    y = jnp.max(y.reshape(Nb, H, Wo, 2, Cout), axis=3)     # pool along W
    y = jnp.max(y.reshape(Nb, Ho, 2, Wo, Cout), axis=2)    # pool along H
    o_ref[...] = y.astype(o_ref.dtype)                     # (Nb, Ho, Wo, Cout)


def conv_block_aff(x_nchw, w_oihw, conv_bias, r, b, *, block_images=8):
    """Forward pass of conv_block_aff.  Returns NCHW output like PyTorch."""
    N, Cin, H, W = x_nchw.shape
    Cout = w_oihw.shape[0]
    assert H % 2 == 0 and W % 2 == 0, "MaxPool2d(2) path assumes even H, W"
    Ho, Wo = H // 2, W // 2
    del conv_bias  # cancels exactly through training-mode BatchNorm batch stats

    # Largest divisor of N that is <= block_images (images per grid step).
    Nb = 1
    for d in range(min(N, block_images), 0, -1):
        if N % d == 0:
            Nb = d
            break
    nblk = N // Nb

    # Layout / dtype plumbing (glue only): NCHW -> NHWC bf16 activations,
    # OIHW -> (9*Cin, Cout) bf16 im2col weight matrix (tap-major, channel-minor).
    x = jnp.transpose(x_nchw, (0, 2, 3, 1)).astype(jnp.bfloat16)
    wm = jnp.transpose(w_oihw, (2, 3, 1, 0)).reshape(9 * Cin, Cout)
    wm = wm.astype(jnp.bfloat16)

    x_spec = pl.BlockSpec((Nb, H, W, Cin), lambda n: (n, 0, 0, 0))
    wm_spec = pl.BlockSpec((9 * Cin, Cout), lambda n: (0, 0))

    # --- Pass 1: conv + per-block partial BN stats (fully parallel grid) ---
    conv_bf, stats_part = pl.pallas_call(
        _conv_stats_kernel,
        out_shape=(jax.ShapeDtypeStruct((N, H, W, Cout), jnp.bfloat16),
                   jax.ShapeDtypeStruct((nblk, 2, Cout), jnp.float32)),
        grid=(nblk,),
        in_specs=[x_spec, wm_spec],
        out_specs=(pl.BlockSpec((Nb, H, W, Cout), lambda n: (n, 0, 0, 0)),
                   pl.BlockSpec((1, 2, Cout), lambda n: (n, 0, 0))),
        scratch_shapes=[pltpu.VMEM((Nb, H + 2, W + 2, Cin), jnp.bfloat16)],
        compiler_params=pltpu.CompilerParams(
            dimension_semantics=("parallel",),
            vmem_limit_bytes=32 * 1024 * 1024),
    )(x, wm)

    # --- Tiny global reduction + BN/affine folding (wrapper, f32, ~free) ---
    stats = jnp.sum(stats_part, axis=0)                    # (2, Cout) global sums
    count = float(N * H * W)
    mean = stats[0] / count
    var = jnp.maximum(stats[1] / count - mean * mean, 0.0)  # biased training var
    scale = jax.lax.rsqrt(var + 1e-5) * r.astype(jnp.float32)
    shift = b.astype(jnp.float32) - mean * scale
    scale = scale.reshape(1, Cout)
    shift = shift.reshape(1, Cout)

    # --- Pass 2: scale/shift + ReLU + 2x2 max-pool (no conv recompute) ---
    vec_spec = pl.BlockSpec((1, Cout), lambda n: (0, 0))
    out_nhwc = pl.pallas_call(
        _bn_act_pool_kernel,
        out_shape=jax.ShapeDtypeStruct((N, Ho, Wo, Cout), jnp.float32),
        grid=(nblk,),
        in_specs=[pl.BlockSpec((Nb, H, W, Cout), lambda n: (n, 0, 0, 0)),
                  vec_spec, vec_spec],
        out_specs=pl.BlockSpec((Nb, Ho, Wo, Cout), lambda n: (n, 0, 0, 0)),
        compiler_params=pltpu.CompilerParams(
            dimension_semantics=("parallel",),
            vmem_limit_bytes=32 * 1024 * 1024),
    )(conv_bf, scale, shift)

    return jnp.transpose(out_nhwc, (0, 3, 1, 2))           # NCHW


# ----------------------------- references ---------------------------------
def _conv2d_nchw(x, w):
    return jax.lax.conv_general_dilated(
        x, w, window_strides=(1, 1), padding="SAME",
        dimension_numbers=("NCHW", "OIHW", "NCHW"))


def _bn_aff_relu_pool(out, r, b):
    mean = out.mean(axis=(0, 2, 3), keepdims=True)
    var = ((out - mean) ** 2).mean(axis=(0, 2, 3), keepdims=True)
    out = (out - mean) * jax.lax.rsqrt(var + 1e-5)
    out = out * r.reshape(1, -1, 1, 1) + b.reshape(1, -1, 1, 1)
    out = jnp.maximum(out, 0.0)
    N, C, H, W = out.shape
    return out.reshape(N, C, H // 2, 2, W // 2, 2).max(axis=(3, 5))


def _reference_f32(x, w, cb, r, b):
    """Full-f32 PyTorch module semantics (conv bias included; BN cancels it)."""
    return _bn_aff_relu_pool(_conv2d_nchw(x, w) + cb.reshape(1, -1, 1, 1), r, b)


def _reference_mixed(x, w, r, b):
    """Reference matching the kernel's deliberate mixed precision: bf16 conv
    inputs, f32 accumulation, bf16 activation storage, f32 BN/affine math."""
    xb = x.astype(jnp.bfloat16).astype(jnp.float32)
    wb = w.astype(jnp.bfloat16).astype(jnp.float32)
    conv = _conv2d_nchw(xb, wb).astype(jnp.bfloat16).astype(jnp.float32)
    return _bn_aff_relu_pool(conv, r, b)


if __name__ == "__main__":
    N, Cin, Cout, H, W = 2, 4, 8, 16, 16

    key = jax.random.PRNGKey(0)
    kx, kw, kb, kr, kbeta = jax.random.split(key, 5)

    x = jax.random.normal(kx, (N, Cin, H, W), jnp.float32)            # ii[0]
    r = jax.random.normal(kr, (Cout,), jnp.float32)                   # ii[1]
    b = jax.random.normal(kbeta, (Cout,), jnp.float32)                # ii[2]

    # Deterministic synthetic Conv2d params (shapes match nn.Conv2d(Cin,Cout,3)).
    bound = 1.0 / (Cin * 3 * 3) ** 0.5
    w_conv = jax.random.uniform(kw, (Cout, Cin, 3, 3), jnp.float32, -bound, bound)
    b_conv = jax.random.uniform(kb, (Cout,), jnp.float32, -bound, bound)

    out = jax.block_until_ready(conv_block_aff(x, w_conv, b_conv, r, b))
    assert out.shape == (N, Cout, H // 2, W // 2), out.shape

    # Check against a reference with the same mixed-precision choices (isolates
    # the deliberate bf16 casts from kernel correctness; BN math is f32).
    ref_m = jax.block_until_ready(_reference_mixed(x, w_conv, r, b))
    assert jnp.allclose(out, ref_m, rtol=5e-2, atol=5e-2), float(
        jnp.max(jnp.abs(out - ref_m)))

    # Loose sanity check against the full-f32 module semantics.
    ref_f = jax.block_until_ready(_reference_f32(x, w_conv, b_conv, r, b))
    assert jnp.allclose(out, ref_f, rtol=1e-1, atol=1e-1), float(
        jnp.max(jnp.abs(out - ref_f)))

    print("KERNEL_OK")
</pallas_src>

<mosaic_0001>
module attributes {stable_mosaic.version = 11 : i64} {
  func.func @_conv_stats_kernel(%arg0: i32, %arg1: memref<2x16x16x4xbf16, #tpu.memory_space<vmem>>, %arg2: memref<36x8xbf16, #tpu.memory_space<vmem>>, %arg3: memref<2x16x16x8xbf16, #tpu.memory_space<vmem>>, %arg4: memref<1x2x8xf32, #tpu.memory_space<vmem>>, %arg5: memref<2x18x18x4xbf16, #tpu.memory_space<vmem>>) attributes {dimension_semantics = [#tpu.dimension_semantics<parallel>], iteration_bounds = array<i64: 1>, scalar_prefetch = 0 : i64, scratch_operands = 1 : i64, tpu.core_type = #tpu.core_type<tc>, window_params = [{transform_indices = @transform_0, window_bounds = array<i64: 2, 16, 16, 4>}, {pipeline_mode = #tpu.pipeline_mode<synchronous>, transform_indices = @transform_1, window_bounds = array<i64: 36, 8>}, {transform_indices = @transform_2, window_bounds = array<i64: 2, 16, 16, 8>}, {transform_indices = @transform_3, window_bounds = array<i64: 1, 2, 8>}]} {
    %cst = arith.constant 0.000000e+00 : bf16
    %0 = vector.broadcast %cst : bf16 to vector<2x1x18x4xbf16>
    %cst_0 = arith.constant 0.000000e+00 : bf16
    %1 = vector.broadcast %cst_0 : bf16 to vector<2x16x1x4xbf16>
    %c0 = arith.constant 0 : index
    %c0_1 = arith.constant 0 : index
    %c0_2 = arith.constant 0 : index
    %c0_3 = arith.constant 0 : index
    %2 = vector.load %arg5[%c0, %c0_1, %c0_2, %c0_3] : memref<2x18x18x4xbf16, #tpu.memory_space<vmem>>, vector<2x1x18x4xbf16>
    tpu.vector_store %arg5[%c0, %c0_1, %c0_2, %c0_3], %0 {strides = array<i32>} : memref<2x18x18x4xbf16, #tpu.memory_space<vmem>>, vector<2x1x18x4xbf16>,
    %c0_4 = arith.constant 0 : index
    %c17 = arith.constant 17 : index
    %c0_5 = arith.constant 0 : index
    %c0_6 = arith.constant 0 : index
    %3 = vector.load %arg5[%c0_4, %c17, %c0_5, %c0_6] : memref<2x18x18x4xbf16, #tpu.memory_space<vmem>>, vector<2x1x18x4xbf16>
    tpu.vector_store %arg5[%c0_4, %c17, %c0_5, %c0_6], %0 {strides = array<i32>} : memref<2x18x18x4xbf16, #tpu.memory_space<vmem>>, vector<2x1x18x4xbf16>,
    %c0_7 = arith.constant 0 : index
    %c1 = arith.constant 1 : index
    %c0_8 = arith.constant 0 : index
    %c0_9 = arith.constant 0 : index
    %4 = vector.load %arg5[%c0_7, %c1, %c0_8, %c0_9] : memref<2x18x18x4xbf16, #tpu.memory_space<vmem>>, vector<2x16x1x4xbf16>
    tpu.vector_store %arg5[%c0_7, %c1, %c0_8, %c0_9], %1 {strides = array<i32>} : memref<2x18x18x4xbf16, #tpu.memory_space<vmem>>, vector<2x16x1x4xbf16>,
    %c0_10 = arith.constant 0 : index
    %c1_11 = arith.constant 1 : index
    %c17_12 = arith.constant 17 : index
    %c0_13 = arith.constant 0 : index
    %5 = vector.load %arg5[%c0_10, %c1_11, %c17_12, %c0_13] : memref<2x18x18x4xbf16, #tpu.memory_space<vmem>>, vector<2x16x1x4xbf16>
    tpu.vector_store %arg5[%c0_10, %c1_11, %c17_12, %c0_13], %1 {strides = array<i32>} : memref<2x18x18x4xbf16, #tpu.memory_space<vmem>>, vector<2x16x1x4xbf16>,
    %c0_14 = arith.constant 0 : index
    %c0_15 = arith.constant 0 : index
    %c0_16 = arith.constant 0 : index
    %c0_17 = arith.constant 0 : index
    %6 = vector.load %arg1[%c0_14, %c0_15, %c0_16, %c0_17] : memref<2x16x16x4xbf16, #tpu.memory_space<vmem>>, vector<2x16x16x4xbf16>
    %c0_18 = arith.constant 0 : index
    %c1_19 = arith.constant 1 : index
    %c1_20 = arith.constant 1 : index
    %c0_21 = arith.constant 0 : index
    %7 = vector.load %arg5[%c0_18, %c1_19, %c1_20, %c0_21] : memref<2x18x18x4xbf16, #tpu.memory_space<vmem>>, vector<2x16x16x4xbf16>
    tpu.vector_store %arg5[%c0_18, %c1_19, %c1_20, %c0_21], %6 {strides = array<i32>} : memref<2x18x18x4xbf16, #tpu.memory_space<vmem>>, vector<2x16x16x4xbf16>,
    %c0_22 = arith.constant 0 : index
    %c0_23 = arith.constant 0 : index
    %c0_24 = arith.constant 0 : index
    %c0_25 = arith.constant 0 : index
    %8 = vector.load %arg5[%c0_22, %c0_23, %c0_24, %c0_25] : memref<2x18x18x4xbf16, #tpu.memory_space<vmem>>, vector<2x16x16x4xbf16>
    %9 = vector.shape_cast %8 : vector<2x16x16x4xbf16> to vector<512x4xbf16>
    %c0_26 = arith.constant 0 : index
    %c0_27 = arith.constant 0 : index
    %c1_28 = arith.constant 1 : index
    %c0_29 = arith.constant 0 : index
    %10 = vector.load %arg5[%c0_26, %c0_27, %c1_28, %c0_29] : memref<2x18x18x4xbf16, #tpu.memory_space<vmem>>, vector<2x16x16x4xbf16>
    %11 = vector.shape_cast %10 : vector<2x16x16x4xbf16> to vector<512x4xbf16>
    %c0_30 = arith.constant 0 : index
    %c0_31 = arith.constant 0 : index
    %c2 = arith.constant 2 : index
    %c0_32 = arith.constant 0 : index
    %12 = vector.load %arg5[%c0_30, %c0_31, %c2, %c0_32] : memref<2x18x18x4xbf16, #tpu.memory_space<vmem>>, vector<2x16x16x4xbf16>
    %13 = vector.shape_cast %12 : vector<2x16x16x4xbf16> to vector<512x4xbf16>
    %c0_33 = arith.constant 0 : index
    %c1_34 = arith.constant 1 : index
    %c0_35 = arith.constant 0 : index
    %c0_36 = arith.constant 0 : index
    %14 = vector.load %arg5[%c0_33, %c1_34, %c0_35, %c0_36] : memref<2x18x18x4xbf16, #tpu.memory_space<vmem>>, vector<2x16x16x4xbf16>
    %15 = vector.shape_cast %14 : vector<2x16x16x4xbf16> to vector<512x4xbf16>
    %c0_37 = arith.constant 0 : index
    %c1_38 = arith.constant 1 : index
    %c1_39 = arith.constant 1 : index
    %c0_40 = arith.constant 0 : index
    %16 = vector.load %arg5[%c0_37, %c1_38, %c1_39, %c0_40] : memref<2x18x18x4xbf16, #tpu.memory_space<vmem>>, vector<2x16x16x4xbf16>
    %17 = vector.shape_cast %16 : vector<2x16x16x4xbf16> to vector<512x4xbf16>
    %c0_41 = arith.constant 0 : index
    %c1_42 = arith.constant 1 : index
    %c2_43 = arith.constant 2 : index
    %c0_44 = arith.constant 0 : index
    %18 = vector.load %arg5[%c0_41, %c1_42, %c2_43, %c0_44] : memref<2x18x18x4xbf16, #tpu.memory_space<vmem>>, vector<2x16x16x4xbf16>
    %19 = vector.shape_cast %18 : vector<2x16x16x4xbf16> to vector<512x4xbf16>
    %c0_45 = arith.constant 0 : index
    %c2_46 = arith.constant 2 : index
    %c0_47 = arith.constant 0 : index
    %c0_48 = arith.constant 0 : index
    %20 = vector.load %arg5[%c0_45, %c2_46, %c0_47, %c0_48] : memref<2x18x18x4xbf16, #tpu.memory_space<vmem>>, vector<2x16x16x4xbf16>
    %21 = vector.shape_cast %20 : vector<2x16x16x4xbf16> to vector<512x4xbf16>
    %c0_49 = arith.constant 0 : index
    %c2_50 = arith.constant 2 : index
    %c1_51 = arith.constant 1 : index
    %c0_52 = arith.constant 0 : index
    %22 = vector.load %arg5[%c0_49, %c2_50, %c1_51, %c0_52] : memref<2x18x18x4xbf16, #tpu.memory_space<vmem>>, vector<2x16x16x4xbf16>
    %23 = vector.shape_cast %22 : vector<2x16x16x4xbf16> to vector<512x4xbf16>
    %c0_53 = arith.constant 0 : index
    %c2_54 = arith.constant 2 : index
    %c2_55 = arith.constant 2 : index
    %c0_56 = arith.constant 0 : index
    %24 = vector.load %arg5[%c0_53, %c2_54, %c2_55, %c0_56] : memref<2x18x18x4xbf16, #tpu.memory_space<vmem>>, vector<2x16x16x4xbf16>
    %25 = vector.shape_cast %24 : vector<2x16x16x4xbf16> to vector<512x4xbf16>
    %26 = tpu.concatenate %9, %11, %13, %15, %17, %19, %21, %23, %25 in 1 : vector<512x4xbf16>, vector<512x4xbf16>, vector<512x4xbf16>, vector<512x4xbf16>, vector<512x4xbf16>, vector<512x4xbf16>, vector<512x4xbf16>, vector<512x4xbf16>, vector<512x4xbf16> -> vector<512x36xbf16>
    %c0_57 = arith.constant 0 : index
    %c0_58 = arith.constant 0 : index
    %27 = vector.load %arg2[%c0_57, %c0_58] : memref<36x8xbf16, #tpu.memory_space<vmem>>, vector<36x8xbf16>
    %cst_59 = arith.constant dense<0.000000e+00> : vector<512x8xf32>
    %28 = tpu.matmul %26, %27, %cst_59 {dimension_numbers = #tpu.dot_dimension_numbers<[1], [0], [0], [1], [0, 0, 1, 1], [], []>} : vector<512x36xbf16>, vector<36x8xbf16>, vector<512x8xf32> -> vector<512x8xf32>
    %29 = arith.truncf %28 : vector<512x8xf32> to vector<512x8xbf16>
    %30 = vector.shape_cast %29 : vector<512x8xbf16> to vector<2x16x16x8xbf16>
    %c0_60 = arith.constant 0 : index
    %c0_61 = arith.constant 0 : index
    %c0_62 = arith.constant 0 : index
    %c0_63 = arith.constant 0 : index
    %31 = vector.load %arg3[%c0_60, %c0_61, %c0_62, %c0_63] : memref<2x16x16x8xbf16, #tpu.memory_space<vmem>>, vector<2x16x16x8xbf16>
    tpu.vector_store %arg3[%c0_60, %c0_61, %c0_62, %c0_63], %30 {strides = array<i32>} : memref<2x16x16x8xbf16, #tpu.memory_space<vmem>>, vector<2x16x16x8xbf16>,
    %32 = arith.extf %29 : vector<512x8xbf16> to vector<512x8xf32>
    %cst_64 = arith.constant dense<0.000000e+00> : vector<8xf32>
    %33 = vector.multi_reduction <add>, %32, %cst_64 [0] : vector<512x8xf32> to vector<8xf32>
    %34 = vector.shape_cast %33 : vector<8xf32> to vector<1x8xf32>
    %35 = arith.mulf %32, %32 : vector<512x8xf32>
    %cst_65 = arith.constant dense<0.000000e+00> : vector<8xf32>
    %36 = vector.multi_reduction <add>, %35, %cst_65 [0] : vector<512x8xf32> to vector<8xf32>
    %37 = vector.shape_cast %36 : vector<8xf32> to vector<1x8xf32>
    %38 = tpu.concatenate %34, %37 in 0 : vector<1x8xf32>, vector<1x8xf32> -> vector<2x8xf32>
    %39 = vector.shape_cast %38 : vector<2x8xf32> to vector<1x2x8xf32>
    %c0_66 = arith.constant 0 : index
    %c0_67 = arith.constant 0 : index
    %c0_68 = arith.constant 0 : index
    %40 = vector.load %arg4[%c0_66, %c0_67, %c0_68] : memref<1x2x8xf32, #tpu.memory_space<vmem>>, vector<1x2x8xf32>
    tpu.vector_store %arg4[%c0_66, %c0_67, %c0_68], %39 {strides = array<i32>} : memref<1x2x8xf32, #tpu.memory_space<vmem>>, vector<1x2x8xf32>,
    return
  }
  func.func @transform_0(%arg0: i32) -> (i32, i32, i32, i32) {
    %c0_i32 = arith.constant 0 : i32
    %c0_i32_0 = arith.constant 0 : i32
    %c0_i32_1 = arith.constant 0 : i32
    %c0_i32_2 = arith.constant 0 : i32
    return %arg0, %c0_i32, %c0_i32_0, %c0_i32_1 : i32, i32, i32, i32
  }
  func.func @transform_1(%arg0: i32) -> (i32, i32) {
    %c0_i32 = arith.constant 0 : i32
    %c0_i32_0 = arith.constant 0 : i32
    %c0_i32_1 = arith.constant 0 : i32
    return %c0_i32, %c0_i32_0 : i32, i32
  }
  func.func @transform_2(%arg0: i32) -> (i32, i32, i32, i32) {
    %c0_i32 = arith.constant 0 : i32
    %c0_i32_0 = arith.constant 0 : i32
    %c0_i32_1 = arith.constant 0 : i32
    %c0_i32_2 = arith.constant 0 : i32
    return %arg0, %c0_i32, %c0_i32_0, %c0_i32_1 : i32, i32, i32, i32
  }
  func.func @transform_3(%arg0: i32) -> (i32, i32, i32) {
    %c0_i32 = arith.constant 0 : i32
    %c0_i32_0 = arith.constant 0 : i32
    %c0_i32_1 = arith.constant 0 : i32
    return %arg0, %c0_i32, %c0_i32_0 : i32, i32, i32
  }
}

</mosaic_0001>

<bundles_post_ra>
// kernel: tpu_custom_call.1
= control target key start
LH: loop header
LB: loop body
LE: loop exit
PB: predicated region body
PF: predicated region fallthrough
CT: control target
= control target key end

     0   :  { %vm12943_vm0 = vcmask 27648   ;;  %vm18_vm1 = vcmask 24576   ;;  %vm32_vm2 = vsmask.f32 256  ;;  %v8810_v0 = vmov 0   ;;  %s8811_s26 = smov 4   ;;  %s12912_s0 = inlined_call_operand.vmem [shape: bf16[2,16,16,4], index: 0, kind: input, shape index: {}]   ;;  %s12913_s1 = inlined_call_operand.vmem [shape: bf16[36,8], index: 1, kind: input, shape index: {}]   ;;  %s12914_s2 = inlined_call_operand.vmem [shape: bf16[2,16,16,8], index: 2, kind: output, shape index: {0}]   ;;  %s12915_s3 = inlined_call_operand.hbm [shape: f32[1,2,8], index: 3, kind: output, shape index: {1}]  }
   0x1   :  { %16 = vst.msk [vmem:[#allocation2] sm:$0xf] %vm12943_vm0, %v8810_v0  ;;  %17 = vst.msk [vmem:[#allocation2 + $0x4] sm:$0xf] %vm12943_vm0, %v8810_v0  ;;  %v12944_v1 = vmov 0  ;;  %v12947_v2 = vmov 0 }
   0x2   :  { %19 = vst.msk [vmem:[#allocation2 + $0x8] sm:$0x1] %vm18_vm1, %v8810_v0  ;;  %vm8845_vm3 = vmand %vm18_vm1, %vm32_vm2  ;;  %vm130_vm4 = vsmask.f32 7938  ;;  %v37_v3 = vld [vmem:[#allocation2 + $0x18] sm:$0x1] }
   0x3   :  { %v12945_v1 = vsel %vm8845_vm3, 4294967295, %v12944_v1  ;;  %20 = vst.msk [vmem:[#allocation2 + $0xd8] sm:$0xf] %vm12943_vm0, %v8810_v0  ;;  %21 = vst.msk [vmem:[#allocation2 + $0xdc] sm:$0xf] %vm12943_vm0, %v8810_v0  ;;  %v38_v5 = vsel %vm8845_vm3, 0, %v37_v3 }
   0x4   :  { %12946 = vst [vmem:[#allocation6_spill] sm:$0xff] %v12945_v1  ;;  %22 = vst.msk [vmem:[#allocation2 + $0xe0] sm:$0x1] %vm18_vm1, %v8810_v0  ;;  %v135_v4 = vld [vmem:[#allocation2 + $0x20] sm:$0x1]  ;;  %v12950_v22 = vmov 0 }
   0x5   :  { %24 = vst.msk [vmem:[#allocation2 + $0xcc] sm:$0xf] %vm12943_vm0, %v8810_v0  ;;  %25 = vst.msk [vmem:[#allocation2 + $0xd0] sm:$0xf] %vm12943_vm0, %v8810_v0  ;;  %vm292_vm6 = vsmask.f32 4368 }
   0x6   :  { %26 = vst.msk [vmem:[#allocation2 + $0xd4] sm:$0x1] %vm18_vm1, %v8810_v0  ;;  %29 = vst.msk [vmem:[#allocation2 + $0x1ac] sm:$0x1] %vm18_vm1, %v8810_v0  ;;  %vm1256_vm7 = vsmask.f32 3328 }
   0x7   :  { %27 = vst.msk [vmem:[#allocation2 + $0x1a4] sm:$0xf] %vm12943_vm0, %v8810_v0  ;;  %28 = vst.msk [vmem:[#allocation2 + $0x1a8] sm:$0xf] %vm12943_vm0, %v8810_v0  ;;  %v230_v7 = vld [vmem:[%s12912_s0 + $0x8] sm:$0xf] }
   0x8   :  { %vm8860_vm5 = vmand %vm18_vm1, %vm130_vm4  ;;  %v231_v8 = vld [vmem:[%s12912_s0 + $0xc] sm:$0xf]  ;;  %39 = vst [vmem:[#allocation2 + $0x18] sm:$0x1] %v38_v5  ;;  %v312_v9 = vshrl.u32 %v230_v7, 16  ;;  %v315_v10 = vshll.u32 %v230_v7, 16 }
   0x9   :  { %v12948_v2 = vsel %vm8860_vm5, 4294967295, %v12947_v2  ;;  %v136_v6 = vsel %vm8860_vm5, 0, %v135_v4  ;;  %v320_v11 = vshrl.u32 %v231_v8, 16  ;;  %v323_v12 = vshll.u32 %v231_v8, 16  ;;  %v34_v13 = vld [vmem:[#allocation2 + $0xc] sm:$0x1]  ;;  %vm8886_vm9 = vmor %vm32_vm2, %vm292_vm6 }
   0xa   :  { %12949 = vst [vmem:[#allocation7_spill] sm:$0xff] %v12948_v2  ;;  %137 = vst [vmem:[#allocation2 + $0x20] sm:$0x1] %v136_v6  ;;  %v35_v14 = vsel %vm8845_vm3, 0, %v34_v13  ;;  %v132_v15 = vld [vmem:[#allocation2 + $0x14] sm:$0x1] }
   0xb   :  { %v228_v16 = vld [vmem:[%s12912_s0] sm:$0xf]  ;;  %v314_v17 = vrot.slane %v312_v9, 7  ;;  %v322_v18 = vrot.slane %v320_v11, 7  ;;  %36 = vst [vmem:[#allocation2 + $0xc] sm:$0x1] %v35_v14  ;;  %vm8892_vm10 = vmand %vm12943_vm0, %vm130_vm4 }
   0xc   :  { %v133_v19 = vsel %vm8860_vm5, 0, %v132_v15  ;;  %v229_v20 = vld [vmem:[%s12912_s0 + $0x4] sm:$0xf]  ;;  %v295_v21 = vshrl.u32 %v228_v16, 16  ;;  %vm1257_vm8 = vsmask.f32 7440 }
   0xd   :  { %v12951_v22 = vsel %vm8886_vm9, 4294967295, %v12950_v22  ;;  %134 = vst [vmem:[#allocation2 + $0x14] sm:$0x1] %v133_v19  ;;  %v298_v23 = vshll.u32 %v228_v16, 16  ;;  %v303_v24 = vshrl.u32 %v229_v20, 16  ;;  %v306_v25 = vshll.u32 %v229_v20, 16  ;;  %vm8911_vm11 = vmor %vm1256_vm7, %vm1257_vm8 }
   0xe   :  { %12952 = vst [vmem:[#allocation8_spill] sm:$0xff] %v12951_v22  ;;  %v1160_v26 = vld [vmem:[#allocation2] sm:$0xf]  ;;  %v1161_v27 = vld [vmem:[#allocation2 + $0x4] sm:$0xf]  ;;  %v317_v29 = vor.u32 %v315_v10, %v314_v17  ;;  %v325_v30 = vor.u32 %v323_v12, %v322_v18  ;;  %v12953_v35 = vmov 0 }
   0xf   :  { %v1224_v28 = vld [vmem:[#allocation2 + $0x8] sm:$0x1]  ;;  %v1260_v31 = vshrl.u32 %v1160_v26, 16  ;;  %v1263_v32 = vshll.u32 %v1160_v26, 16  ;;  %v1269_v33 = vshll.u32 %v1161_v27, 16  ;;  %v1273_v34 = vshrl.u32 %v1161_v27, 16 }
  0x10   :  { %v12954_v35 = vsel %vm8892_vm10, 4294967295, %v12953_v35  ;;  %v40_v36 = vld [vmem:[#allocation2 + $0x24] sm:$0x1]  ;;  %v138_v37 = vld [vmem:[#allocation2 + $0x2c] sm:$0x1]  ;;  %v1279_v38 = vshll.u32 %v1224_v28, 16 }
  0x11   :  { %12955 = vst [vmem:[#allocation9_spill] sm:$0xff] %v12954_v35  ;;  %v318_v39 = vrot.slane %v314_v17, 4  ;;  %v327_v40 = vrot.slane %v322_v18, 4  ;;  %v297_v41 = vrot.slane %v295_v21, 7  ;;  %v232_v42 = vld [vmem:[%s12912_s0 + $0x10] sm:$0xf] }
  0x12   :  { %v1262_v43 = vrot.slane %v1260_v31, 4  ;;  %v1265_v44 = vrot.slane %v1263_v32, 5  ;;  %v1271_v45 = vrot.slane %v1269_v33, 5  ;;  %v1275_v46 = vrot.slane %v1273_v34, 4  ;;  %v943_v47 = vld [vmem:[#allocation2 + $0x18] sm:$0xf] }
  0x13   :  { %v1281_v48 = vrot.slane %v1279_v38, 5  ;;  %v326_v49 = vsel %vm8886_vm9, %v318_v39, %v325_v30  ;;  %v944_v50 = vsel %vm8892_vm10, %v317_v29, %v943_v47  ;;  %v947_v51 = vld [vmem:[#allocation2 + $0x20] sm:$0x1]  ;;  %v300_v52 = vor.u32 %v298_v23, %v297_v41  ;;  %v233_v53 = vld [vmem:[%s12912_s0 + $0x14] sm:$0xf] }
  0x14   :  { %v1266_v54 = vor.u32 %v1265_v44, %v1262_v43  ;;  %v1276_v55 = vor.u32 %v1275_v46, %v1271_v45  ;;  %945 = vst [vmem:[#allocation2 + $0x18] sm:$0xf] %v944_v50  ;;  %946 = vst.msk [vmem:[#allocation2 + $0x1c] sm:$0xf] %vm12943_vm0, %v326_v49  ;;  %v948_v56 = vsel %vm8845_vm3, %v327_v40, %v947_v51  ;;  %v301_v57 = vrot.slane %v297_v41, 4 }
  0x15   :  { %v936_v58 = vld [vmem:[#allocation2 + $0xc] sm:$0xf]  ;;  %v43_v59 = vld [vmem:[#allocation2 + $0x30] sm:$0x1]  ;;  %949 = vst [vmem:[#allocation2 + $0x20] sm:$0x1] %v948_v56 }
  0x16   :  { %v305_v61 = vrot.slane %v303_v24, 7  ;;  %v937_v62 = vsel %vm8892_vm10, %v300_v52, %v936_v58  ;;  %v940_v63 = vld [vmem:[#allocation2 + $0x14] sm:$0x1]  ;;  %v41_v0 = vsel %vm8845_vm3, 0, %v40_v36  ;;  %v139_v3 = vsel %vm8860_vm5, 0, %v138_v37 }
  0x17   :  { %v1267_v4 = vrot.slane %v1266_v54, 4  ;;  %v1277_v5 = vrot.slane %v1276_v55, 4  ;;  %938 = vst [vmem:[#allocation2 + $0xc] sm:$0xf] %v937_v62  ;;  %42 = vst [vmem:[#allocation2 + $0x24] sm:$0x1] %v41_v0 }
  0x18   :  { %140 = vst [vmem:[#allocation2 + $0x2c] sm:$0x1] %v139_v3  ;;  %v329_v6 = vshrl.u32 %v232_v42, 16  ;;  %v332_v7 = vshll.u32 %v232_v42, 16  ;;  %v141_v8 = vld [vmem:[#allocation2 + $0x38] sm:$0x1]  ;;  %v308_v9 = vor.u32 %v306_v25, %v305_v61 }
  0x19   :  { %v310_v10 = vrot.slane %v305_v61, 4  ;;  %v337_v11 = vshrl.u32 %v233_v53, 16  ;;  %v340_v12 = vshll.u32 %v233_v53, 16  ;;  %v234_v13 = vld [vmem:[%s12912_s0 + $0x18] sm:$0xf]  ;;  %v1272_v14 = vsel %vm8911_vm11, %v1267_v4, %v1271_v45 }
  0x1a   :  { %v1282_v15 = vsel %vm8911_vm11, %v1277_v5, %v1281_v48  ;;  %v331_v16 = vrot.slane %v329_v6, 7  ;;  %v44_v17 = vsel %vm8845_vm3, 0, %v43_v59  ;;  %v309_v19 = vsel %vm8886_vm9, %v301_v57, %v308_v9  ;;  %v235_v55 = vld [vmem:[%s12912_s0 + $0x1c] sm:$0xf] }
  0x1b   :  { %v8082_v18 = vcombine.low %v1272_v14, %v1282_v15  ;;  %v941_v20 = vsel %vm8845_vm3, %v310_v10, %v940_v63  ;;  %v339_v21 = vrot.slane %v337_v11, 7  ;;  %45 = vst [vmem:[#allocation2 + $0x30] sm:$0x1] %v44_v17  ;;  %939 = vst.msk [vmem:[#allocation2 + $0x10] sm:$0xf] %vm12943_vm0, %v309_v19  ;;  %v142_v24 = vsel %vm8860_vm5, 0, %v141_v8 }
  0x1c   :  { %942 = vst [vmem:[#allocation2 + $0x14] sm:$0x1] %v941_v20  ;;  %v335_v23 = vrot.slane %v331_v16, 4  ;;  %v346_v25 = vshrl.u32 %v234_v13, 16  ;;  %v1164_v26 = vld [vmem:[#allocation2 + $0x18] sm:$0xf]  ;;  %v334_v28 = vor.u32 %v332_v7, %v331_v16 }
  0x1d   :  { %5039 = vrot.lane.b32.xlu0 %v8082_v18, %s8811_s26  ;;  %v1165_v27 = vld [vmem:[#allocation2 + $0x1c] sm:$0xf]  ;;  %v342_v29 = vor.u32 %v340_v12, %v339_v21  ;;  %v344_v30 = vrot.slane %v339_v21, 4  ;;  %143 = vst [vmem:[#allocation2 + $0x38] sm:$0x1] %v142_v24  ;;  %v349_v31 = vshll.u32 %v234_v13, 16 }
  0x1e   :  { %v1226_v32 = vld [vmem:[#allocation2 + $0x20] sm:$0x1]  ;;  %v1308_v33 = vshrl.u32 %v1164_v26, 16  ;;  %v1311_v34 = vshll.u32 %v1164_v26, 16  ;;  %v1317_v36 = vshll.u32 %v1165_v27, 16  ;;  %v1321_v37 = vshrl.u32 %v1165_v27, 16 }
  0x1f   :  { %v1327_v38 = vshll.u32 %v1226_v32, 16  ;;  %v1162_v39 = vld [vmem:[#allocation2 + $0xc] sm:$0xf]  ;;  %v343_v40 = vsel %vm8886_vm9, %v335_v23, %v342_v29  ;;  %v950_v41 = vld [vmem:[#allocation2 + $0x24] sm:$0xf]  ;;  %v8940_v42 = vrot.slane %v346_v25, 7 }
  0x20   :  { %v1310_v43 = vrot.slane %v1308_v33, 4  ;;  %v1313_v44 = vrot.slane %v1311_v34, 5  ;;  %v1319_v45 = vrot.slane %v1317_v36, 5  ;;  %v1323_v46 = vrot.slane %v1321_v37, 4  ;;  %953 = vst.msk [vmem:[#allocation2 + $0x28] sm:$0xf] %vm12943_vm0, %v343_v40 }
  0x21   :  { %v954_v47 = vld [vmem:[#allocation2 + $0x2c] sm:$0x1]  ;;  %v1284_v48 = vshrl.u32 %v1162_v39, 16  ;;  %v1287_v49 = vshll.u32 %v1162_v39, 16  ;;  %v951_v50 = vsel %vm8892_vm10, %v334_v28, %v950_v41  ;;  %v1329_v53 = vrot.slane %v1327_v38, 5 }
  0x22   :  { %v1314_v51 = vor.u32 %v1313_v44, %v1310_v43  ;;  %v1324_v52 = vor.u32 %v1323_v46, %v1319_v45  ;;  %952 = vst [vmem:[#allocation2 + $0x24] sm:$0xf] %v951_v50  ;;  %v955_v54 = vsel %vm8845_vm3, %v344_v30, %v954_v47  ;;  %v1163_v56 = vld [vmem:[#allocation2 + $0x10] sm:$0xf]  ;;  %v351_v61 = vor.u32 %v349_v31, %v8940_v42  ;;  %v46_v13 = vld [vmem:[#allocation2 + $0x3c] sm:$0x1] }
  0x23   :  { %v1225_v57 = vld [vmem:[#allocation2 + $0x14] sm:$0x1]  ;;  %v1286_v58 = vrot.slane %v1284_v48, 4  ;;  %v1289_v59 = vrot.slane %v1287_v49, 5  ;;  %956 = vst [vmem:[#allocation2 + $0x2c] sm:$0x1] %v955_v54 }
  0x24   :  { %v1315_v62 = vrot.slane %v1314_v51, 4  ;;  %v1325_v63 = vrot.slane %v1324_v52, 4  ;;  %v1293_v0 = vshll.u32 %v1163_v56, 16  ;;  %v1297_v3 = vshrl.u32 %v1163_v56, 16  ;;  %v957_v12 = vld [vmem:[#allocation2 + $0x30] sm:$0xf] }
  0x25   :  { %v1290_v4 = vor.u32 %v1289_v59, %v1286_v58  ;;  %v1303_v5 = vshll.u32 %v1225_v57, 16  ;;  %v352_v6 = vrot.slane %v8940_v42, 4  ;;  %v354_v7 = vshrl.u32 %v235_v55, 16  ;;  %v144_v19 = vld [vmem:[#allocation2 + $0x44] sm:$0x1] }
  0x26   :  { %v1320_v8 = vsel %vm8911_vm11, %v1315_v62, %v1319_v45  ;;  %v1330_v9 = vsel %vm8911_vm11, %v1325_v63, %v1329_v53  ;;  %v1295_v10 = vrot.slane %v1293_v0, 5  ;;  %v1299_v11 = vrot.slane %v1297_v3, 4  ;;  %v961_v25 = vld [vmem:[#allocation2 + $0x38] sm:$0x1]  ;;  %v236_v31 = vld [vmem:[%s12912_s0 + $0x20] sm:$0xf] }
  0x27   :  { %v8084_v14 = vcombine.low %v1320_v8, %v1330_v9  ;;  %v1291_v15 = vrot.slane %v1290_v4, 4  ;;  %v1305_v16 = vrot.slane %v1303_v5, 5  ;;  %v1167_v17 = vld [vmem:[#allocation2 + $0x28] sm:$0xf]  ;;  %v356_v18 = vrot.slane %v354_v7, 7 }
  0x28   :  { %v1300_v20 = vor.u32 %v1299_v11, %v1295_v10  ;;  %v1341_v21 = vshll.u32 %v1167_v17, 16  ;;  %v1345_v23 = vshrl.u32 %v1167_v17, 16  ;;  %v357_v24 = vshll.u32 %v235_v55, 16  ;;  %v237_v42 = vld [vmem:[%s12912_s0 + $0x24] sm:$0xf] }
  0x29   :  { %5043 = vrot.lane.b32.xlu1 %v8084_v14, %s8811_s26  ;;  %v1296_v26 = vsel %vm8911_vm11, %v1291_v15, %v1295_v10  ;;  %v1166_v27 = vld [vmem:[#allocation2 + $0x24] sm:$0xf]  ;;  %v361_v28 = vrot.slane %v356_v18, 4  ;;  %v958_v29 = vsel %vm8892_vm10, %v351_v61, %v957_v12  ;;  %v47_v30 = vsel %vm8845_vm3, 0, %v46_v13  ;;  %v49_v43 = vld [vmem:[#allocation2 + $0x48] sm:$0x1] }
  0x2a   :  { %v1301_v32 = vrot.slane %v1300_v20, 4  ;;  %v1227_v33 = vld [vmem:[#allocation2 + $0x2c] sm:$0x1]  ;;  %v1332_v34 = vshrl.u32 %v1166_v27, 16  ;;  %v1335_v36 = vshll.u32 %v1166_v27, 16  ;;  %v1343_v37 = vrot.slane %v1341_v21, 5 }
  0x2b   :  { %959 = vst [vmem:[#allocation2 + $0x30] sm:$0xf] %v958_v29  ;;  %48 = vst [vmem:[#allocation2 + $0x3c] sm:$0x1] %v47_v30  ;;  %v1347_v38 = vrot.slane %v1345_v23, 4  ;;  %v1351_v39 = vshll.u32 %v1227_v33, 16  ;;  %v359_v40 = vor.u32 %v357_v24, %v356_v18  ;;  %v962_v41 = vsel %vm8845_vm3, %v361_v28, %v961_v25 }
  0x2c   :  { %v1306_v44 = vsel %vm8911_vm11, %v1301_v32, %v1305_v16  ;;  %v1334_v45 = vrot.slane %v1332_v34, 4  ;;  %v1337_v46 = vrot.slane %v1335_v36, 5  ;;  %963 = vst [vmem:[#allocation2 + $0x38] sm:$0x1] %v962_v41  ;;  %v145_v47 = vsel %vm8860_vm5, 0, %v144_v19 }
  0x2d   :  { %v147_v48 = vld [vmem:[#allocation2 + $0x50] sm:$0x1]  ;;  %v8083_v49 = vcombine.low %v1296_v26, %v1306_v44  ;;  %v1348_v50 = vor.u32 %v1347_v38, %v1343_v37  ;;  %v1353_v51 = vrot.slane %v1351_v39, 5  ;;  %v360_v52 = vsel %vm8886_vm9, %v352_v6, %v359_v40  ;;  %146 = vst [vmem:[#allocation2 + $0x44] sm:$0x1] %v145_v47 }
  0x2e   :  { %v238_v53 = vld [vmem:[%s12912_s0 + $0x28] sm:$0xf]  ;;  %v1338_v54 = vor.u32 %v1337_v46, %v1334_v45  ;;  %960 = vst.msk [vmem:[#allocation2 + $0x34] sm:$0xf] %vm12943_vm0, %v360_v52  ;;  %v363_v55 = vshrl.u32 %v236_v31, 16  ;;  %v366_v56 = vshll.u32 %v236_v31, 16 }
  0x2f   :  { %v371_v57 = vshrl.u32 %v237_v42, 16  ;;  %v239_v58 = vld [vmem:[%s12912_s0 + $0x2c] sm:$0xf]  ;;  %5041 = vrot.lane.b32.xlu0 %v8083_v49, %s8811_s26  ;;  %v1349_v59 = vrot.slane %v1348_v50, 4  ;;  %v374_v61 = vshll.u32 %v237_v42, 16  ;;  %v50_v62 = vsel %vm8845_vm3, 0, %v49_v43 }
  0x30   :  { %v148_v63 = vsel %vm8860_vm5, 0, %v147_v48  ;;  %v1339_v0 = vrot.slane %v1338_v54, 4  ;;  %v365_v3 = vrot.slane %v363_v55, 7  ;;  %51 = vst [vmem:[#allocation2 + $0x48] sm:$0x1] %v50_v62  ;;  %v380_v5 = vshrl.u32 %v238_v53, 16 }
  0x31   :  { %v373_v4 = vrot.slane %v371_v57, 7  ;;  %149 = vst [vmem:[#allocation2 + $0x50] sm:$0x1] %v148_v63  ;;  %v1354_v6 = vsel %vm8911_vm11, %v1349_v59, %v1353_v51  ;;  %v383_v9 = vshll.u32 %v238_v53, 16  ;;  %v388_v10 = vshrl.u32 %v239_v58, 16 }
  0x32   :  { %v1168_v7 = vld [vmem:[#allocation2 + $0x30] sm:$0xf]  ;;  %v964_v8 = vld [vmem:[#allocation2 + $0x3c] sm:$0xf]  ;;  %v1344_v11 = vsel %vm8911_vm11, %v1339_v0, %v1343_v37  ;;  %v368_v14 = vor.u32 %v366_v56, %v365_v3  ;;  %v369_v17 = vrot.slane %v365_v3, 4  ;;  %v382_v31 = vrot.slane %v380_v5, 7 }
  0x33   :  { %v1356_v12 = vshrl.u32 %v1168_v7, 16  ;;  %v1359_v13 = vshll.u32 %v1168_v7, 16  ;;  %v8085_v15 = vcombine.low %v1344_v11, %v1354_v6  ;;  %v1228_v16 = vld [vmem:[#allocation2 + $0x38] sm:$0x1]  ;;  %v376_v18 = vor.u32 %v374_v61, %v373_v4  ;;  %v52_v20 = vld [vmem:[#allocation2 + $0x54] sm:$0x1] }
  0x34   :  { %v378_v19 = vrot.slane %v373_v4, 4  ;;  %v1375_v24 = vshll.u32 %v1228_v16, 16  ;;  %v965_v25 = vsel %vm8892_vm10, %v368_v14, %v964_v8  ;;  %v968_v26 = vld [vmem:[#allocation2 + $0x44] sm:$0x1]  ;;  %v150_v27 = vld [vmem:[#allocation2 + $0x5c] sm:$0x1]  ;;  %v385_v41 = vor.u32 %v383_v9, %v382_v31 }
  0x35   :  { %v1358_v21 = vrot.slane %v1356_v12, 4  ;;  %v1361_v23 = vrot.slane %v1359_v13, 5  ;;  %5045 = vrot.lane.b32.xlu1 %v8085_v15, %s8811_s26  ;;  %v1169_v28 = vld [vmem:[#allocation2 + $0x34] sm:$0xf]  ;;  %v377_v29 = vsel %vm8886_vm9, %v369_v17, %v376_v18  ;;  %966 = vst [vmem:[#allocation2 + $0x3c] sm:$0xf] %v965_v25 }
  0x36   :  { %v969_v30 = vsel %vm8845_vm3, %v378_v19, %v968_v26  ;;  %v390_v32 = vrot.slane %v388_v10, 7  ;;  %v240_v33 = vld [vmem:[%s12912_s0 + $0x30] sm:$0xf]  ;;  %v1365_v36 = vshll.u32 %v1169_v28, 16  ;;  %v1369_v37 = vshrl.u32 %v1169_v28, 16 }
  0x37   :  { %v1362_v34 = vor.u32 %v1361_v23, %v1358_v21  ;;  %v1377_v38 = vrot.slane %v1375_v24, 5  ;;  %967 = vst.msk [vmem:[#allocation2 + $0x40] sm:$0xf] %vm12943_vm0, %v377_v29  ;;  %970 = vst [vmem:[#allocation2 + $0x44] sm:$0x1] %v969_v30  ;;  %v386_v42 = vrot.slane %v382_v31, 4 }
  0x38   :  { %v9007_v39 = vld [vmem:[%s12912_s0 + $0x34] sm:$0xf]  ;;  %v55_v40 = vld [vmem:[#allocation2 + $0x60] sm:$0x1]  ;;  %v391_v43 = vshll.u32 %v239_v58, 16  ;;  %v395_v44 = vrot.slane %v390_v32, 4 }
  0x39   :  { %v971_v45 = vld [vmem:[#allocation2 + $0x48] sm:$0xf]  ;;  %v1363_v46 = vrot.slane %v1362_v34, 4  ;;  %v1367_v47 = vrot.slane %v1365_v36, 5  ;;  %v1371_v48 = vrot.slane %v1369_v37, 4  ;;  %v53_v50 = vsel %vm8845_vm3, 0, %v52_v20 }
  0x3a   :  { %v975_v49 = vld [vmem:[#allocation2 + $0x50] sm:$0x1]  ;;  %v393_v51 = vor.u32 %v391_v43, %v390_v32  ;;  %v972_v52 = vsel %vm8892_vm10, %v385_v41, %v971_v45  ;;  %54 = vst [vmem:[#allocation2 + $0x54] sm:$0x1] %v53_v50  ;;  %v151_v54 = vsel %vm8860_vm5, 0, %v150_v27  ;;  %v397_v59 = vshrl.u32 %v240_v33, 16 }
  0x3b   :  { %v976_v53 = vsel %vm8845_vm3, %v395_v44, %v975_v49  ;;  %v153_v55 = vld [vmem:[#allocation2 + $0x68] sm:$0x1]  ;;  %v9020_v56 = vld [vmem:[%s12912_s0 + $0x38] sm:$0xf]  ;;  %v1368_v57 = vsel %vm8911_vm11, %v1363_v46, %v1367_v47  ;;  %v1372_v58 = vor.u32 %v1371_v48, %v1367_v47  ;;  %973 = vst [vmem:[#allocation2 + $0x48] sm:$0xf] %v972_v52 }
  0x3c   :  { %977 = vst [vmem:[#allocation2 + $0x50] sm:$0x1] %v976_v53  ;;  %152 = vst [vmem:[#allocation2 + $0x5c] sm:$0x1] %v151_v54  ;;  %v400_v61 = vshll.u32 %v240_v33, 16  ;;  %v394_v62 = vsel %vm8886_vm9, %v386_v42, %v393_v51  ;;  %v405_v63 = vshrl.u32 %v9007_v39, 16 }
  0x3d   :  { %v408_v0 = vshll.u32 %v9007_v39, 16  ;;  %v56_v3 = vsel %vm8845_vm3, 0, %v55_v40  ;;  %v1373_v4 = vrot.slane %v1372_v58, 4  ;;  %v1170_v5 = vld [vmem:[#allocation2 + $0x3c] sm:$0xf]  ;;  %v399_v6 = vrot.slane %v397_v59, 7 }
  0x3e   :  { %974 = vst.msk [vmem:[#allocation2 + $0x4c] sm:$0xf] %vm12943_vm0, %v394_v62  ;;  %57 = vst [vmem:[#allocation2 + $0x60] sm:$0x1] %v56_v3  ;;  %v154_v7 = vsel %vm8860_vm5, 0, %v153_v55  ;;  %v414_v8 = vshrl.u32 %v9020_v56, 16 }
  0x3f   :  { %v1171_v9 = vld [vmem:[#allocation2 + $0x40] sm:$0xf]  ;;  %v1229_v10 = vld [vmem:[#allocation2 + $0x44] sm:$0x1]  ;;  %v1380_v11 = vshrl.u32 %v1170_v5, 16  ;;  %v1383_v12 = vshll.u32 %v1170_v5, 16  ;;  %v1378_v13 = vsel %vm8911_vm11, %v1373_v4, %v1377_v38  ;;  %v402_v20 = vor.u32 %v400_v61, %v399_v6 }
  0x40   :  { %155 = vst [vmem:[#allocation2 + $0x68] sm:$0x1] %v154_v7  ;;  %v1389_v14 = vshll.u32 %v1171_v9, 16  ;;  %v1393_v15 = vshrl.u32 %v1171_v9, 16  ;;  %v1399_v16 = vshll.u32 %v1229_v10, 16  ;;  %v8086_v17 = vcombine.low %v1368_v57, %v1378_v13 }
  0x41   :  { %v1382_v18 = vrot.slane %v1380_v11, 4  ;;  %v1385_v19 = vrot.slane %v1383_v12, 5  ;;  %v403_v25 = vrot.slane %v399_v6, 4  ;;  %v978_v26 = vld [vmem:[#allocation2 + $0x54] sm:$0xf]  ;;  %v407_v30 = vrot.slane %v405_v63, 7 }
  0x42   :  { %v1391_v21 = vrot.slane %v1389_v14, 5  ;;  %v1395_v23 = vrot.slane %v1393_v15, 4  ;;  %v1401_v24 = vrot.slane %v1399_v16, 5  ;;  %5047 = vrot.lane.b32.xlu0 %v8086_v17, %s8811_s26  ;;  %v1172_v28 = vld [vmem:[#allocation2 + $0x48] sm:$0xf]  ;;  %v979_v31 = vsel %vm8892_vm10, %v402_v20, %v978_v26 }
  0x43   :  { %v1386_v27 = vor.u32 %v1385_v19, %v1382_v18  ;;  %v1230_v29 = vld [vmem:[#allocation2 + $0x50] sm:$0x1]  ;;  %v9039_v32 = vrot.slane %v414_v8, 7  ;;  %v1404_v34 = vshrl.u32 %v1172_v28, 16  ;;  %v1407_v36 = vshll.u32 %v1172_v28, 16 }
  0x44   :  { %v1396_v33 = vor.u32 %v1395_v23, %v1391_v21  ;;  %v1423_v37 = vshll.u32 %v1230_v29, 16  ;;  %980 = vst [vmem:[#allocation2 + $0x54] sm:$0xf] %v979_v31  ;;  %v982_v38 = vld [vmem:[#allocation2 + $0x5c] sm:$0x1]  ;;  %v410_v41 = vor.u32 %v408_v0, %v407_v30  ;;  %v412_v42 = vrot.slane %v407_v30, 4 }
  0x45   :  { %v1387_v39 = vrot.slane %v1386_v27, 4  ;;  %v1173_v40 = vld [vmem:[#allocation2 + $0x4c] sm:$0xf]  ;;  %v417_v43 = vshll.u32 %v9020_v56, 16  ;;  %v1406_v45 = vrot.slane %v1404_v34, 4  ;;  %v1409_v46 = vrot.slane %v1407_v36, 5 }
  0x46   :  { %v1397_v44 = vrot.slane %v1396_v33, 4  ;;  %v1413_v47 = vshll.u32 %v1173_v40, 16  ;;  %v243_v48 = vld [vmem:[%s12912_s0 + $0x3c] sm:$0xf]  ;;  %v1417_v50 = vshrl.u32 %v1173_v40, 16  ;;  %v1425_v51 = vrot.slane %v1423_v37, 5 }
  0x47   :  { %v1392_v49 = vsel %vm8911_vm11, %v1387_v39, %v1391_v21  ;;  %v411_v52 = vsel %vm8886_vm9, %v403_v25, %v410_v41  ;;  %v58_v53 = vld [vmem:[#allocation2 + $0x6c] sm:$0x1]  ;;  %v156_v54 = vld [vmem:[#allocation2 + $0x74] sm:$0x1]  ;;  %v1410_v56 = vor.u32 %v1409_v46, %v1406_v45  ;;  %v983_v58 = vsel %vm8845_vm3, %v412_v42, %v982_v38  ;;  %v985_v59 = vld [vmem:[#allocation2 + $0x60] sm:$0xf] }
  0x48   :  { %v1402_v55 = vsel %vm8911_vm11, %v1397_v44, %v1401_v24  ;;  %v1415_v57 = vrot.slane %v1413_v47, 5  ;;  %981 = vst.msk [vmem:[#allocation2 + $0x58] sm:$0xf] %vm12943_vm0, %v411_v52  ;;  %v244_v61 = vld [vmem:[%s12912_s0 + $0x40] sm:$0xf]  ;;  %v1419_v63 = vrot.slane %v1417_v50, 4  ;;  %v419_v0 = vor.u32 %v417_v43, %v9039_v32 }
  0x49   :  { %v8087_v62 = vcombine.low %v1392_v49, %v1402_v55  ;;  %984 = vst [vmem:[#allocation2 + $0x5c] sm:$0x1] %v983_v58  ;;  %v420_v3 = vrot.slane %v9039_v32, 4  ;;  %v1411_v4 = vrot.slane %v1410_v56, 4  ;;  %v422_v5 = vshrl.u32 %v243_v48, 16 }
  0x4a   :  { %v425_v6 = vshll.u32 %v243_v48, 16  ;;  %v59_v7 = vsel %vm8845_vm3, 0, %v58_v53  ;;  %v245_v8 = vld [vmem:[%s12912_s0 + $0x44] sm:$0xf]  ;;  %v1420_v9 = vor.u32 %v1419_v63, %v1415_v57  ;;  %v986_v11 = vsel %vm8892_vm10, %v419_v0, %v985_v59  ;;  %v989_v27 = vld [vmem:[#allocation2 + $0x68] sm:$0x1] }
  0x4b   :  { %5049 = vrot.lane.b32.xlu1 %v8087_v62, %s8811_s26  ;;  %v1174_v10 = vld [vmem:[#allocation2 + $0x54] sm:$0xf]  ;;  %60 = vst [vmem:[#allocation2 + $0x6c] sm:$0x1] %v59_v7  ;;  %v157_v12 = vsel %vm8860_vm5, 0, %v156_v54  ;;  %v431_v13 = vshrl.u32 %v244_v61, 16  ;;  %v1416_v14 = vsel %vm8911_vm11, %v1411_v4, %v1415_v57 }
  0x4c   :  { %v1428_v15 = vshrl.u32 %v1174_v10, 16  ;;  %v1431_v16 = vshll.u32 %v1174_v10, 16  ;;  %v424_v17 = vrot.slane %v422_v5, 7  ;;  %987 = vst [vmem:[#allocation2 + $0x60] sm:$0xf] %v986_v11  ;;  %v1421_v18 = vrot.slane %v1420_v9, 4 }
  0x4d   :  { %158 = vst [vmem:[#allocation2 + $0x74] sm:$0x1] %v157_v12  ;;  %v433_v19 = vrot.slane %v431_v13, 7  ;;  %v434_v20 = vshll.u32 %v244_v61, 16  ;;  %v439_v21 = vshrl.u32 %v245_v8, 16  ;;  %v442_v43 = vshll.u32 %v245_v8, 16 }
  0x4e   :  { %v1430_v23 = vrot.slane %v1428_v15, 4  ;;  %v1433_v24 = vrot.slane %v1431_v16, 5  ;;  %v427_v25 = vor.u32 %v425_v6, %v424_v17  ;;  %v429_v26 = vrot.slane %v424_v17, 4  ;;  %v61_v39 = vld [vmem:[#allocation2 + $0x78] sm:$0x1] }
  0x4f   :  { %v1426_v28 = vsel %vm8911_vm11, %v1421_v18, %v1425_v51  ;;  %v1175_v29 = vld [vmem:[#allocation2 + $0x58] sm:$0xf]  ;;  %v436_v30 = vor.u32 %v434_v20, %v433_v19  ;;  %v437_v31 = vrot.slane %v433_v19, 4  ;;  %v441_v32 = vrot.slane %v439_v21, 7  ;;  %v159_v44 = vld [vmem:[#allocation2 + $0x80] sm:$0x1] }
  0x50   :  { %v8088_v33 = vcombine.low %v1416_v14, %v1426_v28  ;;  %v1231_v34 = vld [vmem:[#allocation2 + $0x5c] sm:$0x1]  ;;  %v1434_v36 = vor.u32 %v1433_v24, %v1430_v23  ;;  %v1437_v37 = vshll.u32 %v1175_v29, 16  ;;  %v1441_v38 = vshrl.u32 %v1175_v29, 16  ;;  %v246_v45 = vld [vmem:[%s12912_s0 + $0x48] sm:$0xf] }
  0x51   :  { %v1447_v40 = vshll.u32 %v1231_v34, 16  ;;  %v428_v41 = vsel %vm8886_vm9, %v420_v3, %v427_v25  ;;  %v990_v42 = vsel %vm8845_vm3, %v429_v26, %v989_v27  ;;  %v446_v49 = vrot.slane %v441_v32, 4  ;;  %v247_v62 = vld [vmem:[%s12912_s0 + $0x4c] sm:$0xf]  ;;  %v64_v63 = vld [vmem:[#allocation2 + $0x84] sm:$0x1] }
  0x52   :  { %5051 = vrot.lane.b32.xlu0 %v8088_v33, %s8811_s26  ;;  %v1435_v46 = vrot.slane %v1434_v36, 4  ;;  %v1439_v47 = vrot.slane %v1437_v37, 5  ;;  %v1443_v48 = vrot.slane %v1441_v38, 4  ;;  %988 = vst.msk [vmem:[#allocation2 + $0x64] sm:$0xf] %vm12943_vm0, %v428_v41  ;;  %v444_v53 = vor.u32 %v442_v43, %v441_v32 }
  0x53   :  { %991 = vst [vmem:[#allocation2 + $0x68] sm:$0x1] %v990_v42  ;;  %v992_v50 = vld [vmem:[#allocation2 + $0x6c] sm:$0xf]  ;;  %v1449_v51 = vrot.slane %v1447_v40, 5  ;;  %v62_v56 = vsel %vm8845_vm3, 0, %v61_v39 }
  0x54   :  { %v1176_v52 = vld [vmem:[#allocation2 + $0x60] sm:$0xf]  ;;  %v993_v54 = vsel %vm8892_vm10, %v436_v30, %v992_v50  ;;  %v996_v55 = vld [vmem:[#allocation2 + $0x74] sm:$0x1]  ;;  %v1440_v57 = vsel %vm8911_vm11, %v1435_v46, %v1439_v47  ;;  %v1444_v58 = vor.u32 %v1443_v48, %v1439_v47  ;;  %63 = vst [vmem:[#allocation2 + $0x78] sm:$0x1] %v62_v56  ;;  %v445_v0 = vsel %vm8886_vm9, %v437_v31, %v444_v53 }
  0x55   :  { %v1452_v59 = vshrl.u32 %v1176_v52, 16  ;;  %v1455_v61 = vshll.u32 %v1176_v52, 16  ;;  %994 = vst [vmem:[#allocation2 + $0x6c] sm:$0xf] %v993_v54  ;;  %v997_v3 = vsel %vm8845_vm3, %v446_v49, %v996_v55  ;;  %v160_v4 = vsel %vm8860_vm5, 0, %v159_v44 }
  0x56   :  { %v448_v5 = vshrl.u32 %v246_v45, 16  ;;  %v162_v6 = vld [vmem:[#allocation2 + $0x8c] sm:$0x1]  ;;  %v9100_v7 = vld [vmem:[%s12912_s0 + $0x50] sm:$0xf]  ;;  %v1445_v8 = vrot.slane %v1444_v58, 4 }
  0x57   :  { %v1454_v9 = vrot.slane %v1452_v59, 4  ;;  %v1457_v10 = vrot.slane %v1455_v61, 5  ;;  %995 = vst.msk [vmem:[#allocation2 + $0x70] sm:$0xf] %vm12943_vm0, %v445_v0  ;;  %998 = vst [vmem:[#allocation2 + $0x74] sm:$0x1] %v997_v3 }
  0x58   :  { %161 = vst [vmem:[#allocation2 + $0x80] sm:$0x1] %v160_v4  ;;  %v451_v11 = vshll.u32 %v246_v45, 16  ;;  %v450_v12 = vrot.slane %v448_v5, 7  ;;  %v456_v13 = vshrl.u32 %v247_v62, 16  ;;  %v459_v14 = vshll.u32 %v247_v62, 16 }
  0x59   :  { %v65_v15 = vsel %vm8845_vm3, 0, %v64_v63  ;;  %v1450_v16 = vsel %vm8911_vm11, %v1445_v8, %v1449_v51  ;;  %v1458_v17 = vor.u32 %v1457_v10, %v1454_v9  ;;  %v163_v18 = vsel %vm8860_vm5, 0, %v162_v6  ;;  %v1177_v21 = vld [vmem:[#allocation2 + $0x64] sm:$0xf]  ;;  %v249_v41 = vld [vmem:[%s12912_s0 + $0x54] sm:$0xf] }
  0x5a   :  { %66 = vst [vmem:[#allocation2 + $0x84] sm:$0x1] %v65_v15  ;;  %v465_v19 = vshrl.u32 %v9100_v7, 16  ;;  %v8089_v20 = vcombine.low %v1440_v57, %v1450_v16  ;;  %v1232_v23 = vld [vmem:[#allocation2 + $0x68] sm:$0x1]  ;;  %v453_v24 = vor.u32 %v451_v11, %v450_v12  ;;  %v454_v25 = vrot.slane %v450_v12, 4 }
  0x5b   :  { %v458_v26 = vrot.slane %v456_v13, 7  ;;  %164 = vst [vmem:[#allocation2 + $0x8c] sm:$0x1] %v163_v18  ;;  %v1459_v27 = vrot.slane %v1458_v17, 4  ;;  %v1461_v28 = vshll.u32 %v1177_v21, 16  ;;  %v1465_v29 = vshrl.u32 %v1177_v21, 16 }
  0x5c   :  { %v1471_v30 = vshll.u32 %v1232_v23, 16  ;;  %5053 = vrot.lane.b32.xlu1 %v8089_v20, %s8811_s26  ;;  %v1178_v31 = vld [vmem:[#allocation2 + $0x6c] sm:$0xf]  ;;  %v999_v34 = vld [vmem:[#allocation2 + $0x78] sm:$0xf]  ;;  %v9111_v36 = vrot.slane %v465_v19, 7 }
  0x5d   :  { %v461_v32 = vor.u32 %v459_v14, %v458_v26  ;;  %v463_v33 = vrot.slane %v458_v26, 4  ;;  %v1463_v37 = vrot.slane %v1461_v28, 5  ;;  %v1467_v38 = vrot.slane %v1465_v29, 4  ;;  %v67_v53 = vld [vmem:[#allocation2 + $0x90] sm:$0x1] }
  0x5e   :  { %v1473_v39 = vrot.slane %v1471_v30, 5  ;;  %v1476_v40 = vshrl.u32 %v1178_v31, 16  ;;  %v1179_v42 = vld [vmem:[#allocation2 + $0x70] sm:$0xf]  ;;  %v1233_v43 = vld [vmem:[#allocation2 + $0x74] sm:$0x1]  ;;  %v1000_v46 = vsel %vm8892_vm10, %v453_v24, %v999_v34 }
  0x5f   :  { %v1479_v44 = vshll.u32 %v1178_v31, 16  ;;  %v462_v45 = vsel %vm8886_vm9, %v454_v25, %v461_v32  ;;  %v468_v47 = vshll.u32 %v9100_v7, 16  ;;  %v1464_v48 = vsel %vm8911_vm11, %v1459_v27, %v1463_v37  ;;  %1001 = vst [vmem:[#allocation2 + $0x78] sm:$0xf] %v1000_v46  ;;  %v1003_v52 = vld [vmem:[#allocation2 + $0x80] sm:$0x1] }
  0x60   :  { %v1468_v49 = vor.u32 %v1467_v38, %v1463_v37  ;;  %v1478_v50 = vrot.slane %v1476_v40, 4  ;;  %v1485_v51 = vshll.u32 %v1179_v42, 16  ;;  %1002 = vst.msk [vmem:[#allocation2 + $0x7c] sm:$0xf] %vm12943_vm0, %v462_v45  ;;  %v1489_v55 = vshrl.u32 %v1179_v42, 16 }
  0x61   :  { %v1481_v54 = vrot.slane %v1479_v44, 5  ;;  %v1495_v56 = vshll.u32 %v1233_v43, 16  ;;  %v1004_v57 = vsel %vm8845_vm3, %v463_v33, %v1003_v52  ;;  %v1006_v58 = vld [vmem:[#allocation2 + $0x84] sm:$0xf]  ;;  %v165_v59 = vld [vmem:[#allocation2 + $0x98] sm:$0x1]  ;;  %v470_v63 = vor.u32 %v468_v47, %v9111_v36 }
  0x62   :  { %v1469_v61 = vrot.slane %v1468_v49, 4  ;;  %v1487_v62 = vrot.slane %v1485_v51, 5  ;;  %1005 = vst [vmem:[#allocation2 + $0x80] sm:$0x1] %v1004_v57  ;;  %v471_v0 = vrot.slane %v9111_v36, 4  ;;  %v1491_v5 = vrot.slane %v1489_v55, 4 }
  0x63   :  { %v250_v3 = vld [vmem:[%s12912_s0 + $0x58] sm:$0xf]  ;;  %v1482_v4 = vor.u32 %v1481_v54, %v1478_v50  ;;  %v1497_v6 = vrot.slane %v1495_v56, 5  ;;  %v473_v7 = vshrl.u32 %v249_v41, 16  ;;  %v251_v8 = vld [vmem:[%s12912_s0 + $0x5c] sm:$0xf]  ;;  %v1007_v11 = vsel %vm8892_vm10, %v470_v63, %v1006_v58 }
  0x64   :  { %v1474_v9 = vsel %vm8911_vm11, %v1469_v61, %v1473_v39  ;;  %v476_v10 = vshll.u32 %v249_v41, 16  ;;  %v68_v12 = vsel %vm8845_vm3, 0, %v67_v53  ;;  %v1492_v15 = vor.u32 %v1491_v5, %v1487_v62  ;;  %1008 = vst [vmem:[#allocation2 + $0x84] sm:$0xf] %v1007_v11  ;;  %v1010_v17 = vld [vmem:[#allocation2 + $0x8c] sm:$0x1] }
  0x65   :  { %v8090_v13 = vcombine.low %v1464_v48, %v1474_v9  ;;  %v1483_v14 = vrot.slane %v1482_v4, 4  ;;  %v475_v16 = vrot.slane %v473_v7, 7  ;;  %69 = vst [vmem:[#allocation2 + $0x90] sm:$0x1] %v68_v12  ;;  %v166_v18 = vsel %vm8860_vm5, 0, %v165_v59 }
  0x66   :  { %v482_v19 = vshrl.u32 %v250_v3, 16  ;;  %v485_v20 = vshll.u32 %v250_v3, 16  ;;  %v490_v21 = vshrl.u32 %v251_v8, 16  ;;  %v1493_v24 = vrot.slane %v1492_v15, 4  ;;  %v1180_v25 = vld [vmem:[#allocation2 + $0x78] sm:$0xf] }
  0x67   :  { %5055 = vrot.lane.b32.xlu0 %v8090_v13, %s8811_s26  ;;  %v1488_v23 = vsel %vm8911_vm11, %v1483_v14, %v1487_v62  ;;  %v1181_v26 = vld [vmem:[#allocation2 + $0x7c] sm:$0xf]  ;;  %v478_v27 = vor.u32 %v476_v10, %v475_v16  ;;  %v480_v28 = vrot.slane %v475_v16, 4  ;;  %167 = vst [vmem:[#allocation2 + $0x98] sm:$0x1] %v166_v18  ;;  %v1500_v29 = vshrl.u32 %v1180_v25, 16 }
  0x68   :  { %v1503_v30 = vshll.u32 %v1180_v25, 16  ;;  %v1509_v31 = vshll.u32 %v1181_v26, 16  ;;  %v1513_v32 = vshrl.u32 %v1181_v26, 16  ;;  %v1498_v33 = vsel %vm8911_vm11, %v1493_v24, %v1497_v6  ;;  %v70_v47 = vld [vmem:[#allocation2 + $0x9c] sm:$0x1] }
  0x69   :  { %v1234_v34 = vld [vmem:[#allocation2 + $0x80] sm:$0x1]  ;;  %v479_v36 = vsel %vm8886_vm9, %v471_v0, %v478_v27  ;;  %v1011_v37 = vsel %vm8845_vm3, %v480_v28, %v1010_v17  ;;  %v484_v38 = vrot.slane %v482_v19, 7  ;;  %v8091_v39 = vcombine.low %v1488_v23, %v1498_v33  ;;  %v168_v57 = vld [vmem:[#allocation2 + $0xa4] sm:$0x1] }
  0x6a   :  { %v1502_v40 = vrot.slane %v1500_v29, 4  ;;  %v1505_v41 = vrot.slane %v1503_v30, 5  ;;  %v1511_v42 = vrot.slane %v1509_v31, 5  ;;  %1009 = vst.msk [vmem:[#allocation2 + $0x88] sm:$0xf] %vm12943_vm0, %v479_v36  ;;  %v1515_v43 = vrot.slane %v1513_v32, 4 }
  0x6b   :  { %1012 = vst [vmem:[#allocation2 + $0x8c] sm:$0x1] %v1011_v37  ;;  %v1519_v44 = vshll.u32 %v1234_v34, 16  ;;  %v487_v45 = vor.u32 %v485_v20, %v484_v38  ;;  %v488_v46 = vrot.slane %v484_v38, 4  ;;  %5057 = vrot.lane.b32.xlu1 %v8091_v39, %s8811_s26  ;;  %v1182_v49 = vld [vmem:[#allocation2 + $0x84] sm:$0xf] }
  0x6c   :  { %v1506_v48 = vor.u32 %v1505_v41, %v1502_v40  ;;  %v492_v50 = vrot.slane %v490_v21, 7  ;;  %v493_v51 = vshll.u32 %v251_v8, 16  ;;  %v1013_v52 = vld [vmem:[#allocation2 + $0x90] sm:$0xf]  ;;  %v1516_v53 = vor.u32 %v1515_v43, %v1511_v42  ;;  %v252_v0 = vld [vmem:[%s12912_s0 + $0x60] sm:$0xf] }
  0x6d   :  { %v1521_v54 = vrot.slane %v1519_v44, 5  ;;  %v1524_v55 = vshrl.u32 %v1182_v49, 16  ;;  %v1527_v56 = vshll.u32 %v1182_v49, 16  ;;  %v1014_v62 = vsel %vm8892_vm10, %v487_v45, %v1013_v52  ;;  %v253_v11 = vld [vmem:[%s12912_s0 + $0x64] sm:$0xf] }
  0x6e   :  { %v1507_v58 = vrot.slane %v1506_v48, 4  ;;  %v495_v59 = vor.u32 %v493_v51, %v492_v50  ;;  %v497_v61 = vrot.slane %v492_v50, 4  ;;  %v1017_v63 = vld [vmem:[#allocation2 + $0x98] sm:$0x1]  ;;  %v1517_v3 = vrot.slane %v1516_v53, 4 }
  0x6f   :  { %v1526_v4 = vrot.slane %v1524_v55, 4  ;;  %v1529_v5 = vrot.slane %v1527_v56, 5  ;;  %1015 = vst [vmem:[#allocation2 + $0x90] sm:$0xf] %v1014_v62  ;;  %v71_v6 = vsel %vm8845_vm3, 0, %v70_v47  ;;  %v169_v10 = vsel %vm8860_vm5, 0, %v168_v57 }
  0x70   :  { %v1512_v7 = vsel %vm8911_vm11, %v1507_v58, %v1511_v42  ;;  %v496_v8 = vsel %vm8886_vm9, %v488_v46, %v495_v59  ;;  %v1018_v9 = vsel %vm8845_vm3, %v497_v61, %v1017_v63  ;;  %72 = vst [vmem:[#allocation2 + $0x9c] sm:$0x1] %v71_v6  ;;  %v73_v12 = vld [vmem:[#allocation2 + $0xa8] sm:$0x1]  ;;  %v1522_v13 = vsel %vm8911_vm11, %v1517_v3, %v1521_v54  ;;  %v171_v24 = vld [vmem:[#allocation2 + $0xb0] sm:$0x1] }
  0x71   :  { %v1183_v14 = vld [vmem:[#allocation2 + $0x88] sm:$0xf]  ;;  %v1530_v16 = vor.u32 %v1529_v5, %v1526_v4  ;;  %1016 = vst.msk [vmem:[#allocation2 + $0x94] sm:$0xf] %vm12943_vm0, %v496_v8  ;;  %1019 = vst [vmem:[#allocation2 + $0x98] sm:$0x1] %v1018_v9  ;;  %v8092_v19 = vcombine.low %v1512_v7, %v1522_v13 }
  0x72   :  { %v1235_v15 = vld [vmem:[#allocation2 + $0x8c] sm:$0x1]  ;;  %170 = vst [vmem:[#allocation2 + $0xa4] sm:$0x1] %v169_v10  ;;  %v499_v17 = vshrl.u32 %v252_v0, 16  ;;  %v502_v18 = vshll.u32 %v252_v0, 16 }
  0x73   :  { %v1533_v20 = vshll.u32 %v1183_v14, 16  ;;  %v1537_v21 = vshrl.u32 %v1183_v14, 16  ;;  %v1543_v23 = vshll.u32 %v1235_v15, 16  ;;  %v507_v26 = vshrl.u32 %v253_v11, 16  ;;  %v254_v28 = vld [vmem:[%s12912_s0 + $0x68] sm:$0xf]  ;;  %5059 = vrot.lane.b32.xlu0 %v8092_v19, %s8811_s26 }
  0x74   :  { %v501_v25 = vrot.slane %v499_v17, 7  ;;  %v510_v27 = vshll.u32 %v253_v11, 16  ;;  %v1531_v29 = vrot.slane %v1530_v16, 4  ;;  %v74_v32 = vsel %vm8845_vm3, 0, %v73_v12  ;;  %v255_v48 = vld [vmem:[%s12912_s0 + $0x6c] sm:$0xf] }
  0x75   :  { %v1535_v30 = vrot.slane %v1533_v20, 5  ;;  %v1539_v31 = vrot.slane %v1537_v21, 4  ;;  %v1545_v33 = vrot.slane %v1543_v23, 5  ;;  %v509_v36 = vrot.slane %v507_v26, 7  ;;  %75 = vst [vmem:[#allocation2 + $0xa8] sm:$0x1] %v74_v32 }
  0x76   :  { %v504_v34 = vor.u32 %v502_v18, %v501_v25  ;;  %v172_v37 = vsel %vm8860_vm5, 0, %v171_v24  ;;  %v1184_v39 = vld [vmem:[#allocation2 + $0x90] sm:$0xf]  ;;  %v505_v40 = vrot.slane %v501_v25, 4  ;;  %v516_v41 = vshrl.u32 %v254_v28, 16 }
  0x77   :  { %v1540_v38 = vor.u32 %v1539_v31, %v1535_v30  ;;  %173 = vst [vmem:[#allocation2 + $0xb0] sm:$0x1] %v172_v37  ;;  %v519_v42 = vshll.u32 %v254_v28, 16  ;;  %v1548_v43 = vshrl.u32 %v1184_v39, 16  ;;  %v1551_v44 = vshll.u32 %v1184_v39, 16 }
  0x78   :  { %v512_v45 = vor.u32 %v510_v27, %v509_v36  ;;  %v514_v46 = vrot.slane %v509_v36, 4  ;;  %v1020_v47 = vld [vmem:[#allocation2 + $0x9c] sm:$0xf]  ;;  %v1536_v49 = vsel %vm8911_vm11, %v1531_v29, %v1535_v30  ;;  %v1185_v51 = vld [vmem:[#allocation2 + $0x94] sm:$0xf]  ;;  %v518_v54 = vrot.slane %v516_v41, 7 }
  0x79   :  { %v1541_v50 = vrot.slane %v1540_v38, 4  ;;  %v1236_v52 = vld [vmem:[#allocation2 + $0x98] sm:$0x1]  ;;  %v1021_v53 = vsel %vm8892_vm10, %v504_v34, %v1020_v47  ;;  %v1550_v55 = vrot.slane %v1548_v43, 4  ;;  %v1553_v56 = vrot.slane %v1551_v44, 5 }
  0x7a   :  { %v1557_v57 = vshll.u32 %v1185_v51, 16  ;;  %v1561_v58 = vshrl.u32 %v1185_v51, 16  ;;  %1022 = vst [vmem:[#allocation2 + $0x9c] sm:$0xf] %v1021_v53  ;;  %v1024_v59 = vld [vmem:[#allocation2 + $0xa4] sm:$0x1]  ;;  %v513_v63 = vsel %vm8886_vm9, %v505_v40, %v512_v45  ;;  %v521_v12 = vor.u32 %v519_v42, %v518_v54 }
  0x7b   :  { %v1546_v61 = vsel %vm8911_vm11, %v1541_v50, %v1545_v33  ;;  %v1567_v62 = vshll.u32 %v1236_v52, 16  ;;  %v1025_v0 = vsel %vm8845_vm3, %v514_v46, %v1024_v59  ;;  %v76_v3 = vld [vmem:[#allocation2 + $0xb4] sm:$0x1]  ;;  %v174_v4 = vld [vmem:[#allocation2 + $0xbc] sm:$0x1]  ;;  %v1554_v6 = vor.u32 %v1553_v56, %v1550_v55 }
  0x7c   :  { %v8093_v5 = vcombine.low %v1536_v49, %v1546_v61  ;;  %v1559_v7 = vrot.slane %v1557_v57, 5  ;;  %v1563_v8 = vrot.slane %v1561_v58, 4  ;;  %1023 = vst.msk [vmem:[#allocation2 + $0xa0] sm:$0xf] %vm12943_vm0, %v513_v63  ;;  %1026 = vst [vmem:[#allocation2 + $0xa4] sm:$0x1] %v1025_v0 }
  0x7d   :  { %v256_v9 = vld [vmem:[%s12912_s0 + $0x70] sm:$0xf]  ;;  %v257_v10 = vld [vmem:[%s12912_s0 + $0x74] sm:$0xf]  ;;  %v1569_v11 = vrot.slane %v1567_v62, 5  ;;  %v522_v13 = vrot.slane %v518_v54, 4 }
  0x7e   :  { %v524_v14 = vshrl.u32 %v255_v48, 16  ;;  %v1027_v15 = vld [vmem:[#allocation2 + $0xa8] sm:$0xf]  ;;  %5061 = vrot.lane.b32.xlu1 %v8093_v5, %s8811_s26  ;;  %v1555_v16 = vrot.slane %v1554_v6, 4  ;;  %v1564_v17 = vor.u32 %v1563_v8, %v1559_v7  ;;  %v527_v18 = vshll.u32 %v255_v48, 16 }
  0x7f   :  { %v77_v19 = vsel %vm8845_vm3, 0, %v76_v3  ;;  %v1028_v21 = vsel %vm8892_vm10, %v521_v12, %v1027_v15  ;;  %v175_v23 = vsel %vm8860_vm5, 0, %v174_v4  ;;  %v533_v24 = vshrl.u32 %v256_v9, 16  ;;  %v1031_v27 = vld [vmem:[#allocation2 + $0xb0] sm:$0x1] }
  0x80   :  { %v526_v20 = vrot.slane %v524_v14, 7  ;;  %78 = vst [vmem:[#allocation2 + $0xb4] sm:$0x1] %v77_v19  ;;  %v1560_v25 = vsel %vm8911_vm11, %v1555_v16, %v1559_v7  ;;  %v1565_v26 = vrot.slane %v1564_v17, 4  ;;  %1029 = vst [vmem:[#allocation2 + $0xa8] sm:$0xf] %v1028_v21 }
  0x81   :  { %176 = vst [vmem:[#allocation2 + $0xbc] sm:$0x1] %v175_v23  ;;  %v536_v28 = vshll.u32 %v256_v9, 16  ;;  %v541_v29 = vshrl.u32 %v257_v10, 16  ;;  %v1186_v30 = vld [vmem:[#allocation2 + $0x9c] sm:$0xf] }
  0x82   :  { %v529_v31 = vor.u32 %v527_v18, %v526_v20  ;;  %v531_v32 = vrot.slane %v526_v20, 4  ;;  %v535_v33 = vrot.slane %v533_v24, 7  ;;  %v544_v34 = vshll.u32 %v257_v10, 16  ;;  %v1192_v46 = vld [vmem:[#allocation2 + $0xd8] sm:$0xf] }
  0x83   :  { %v1570_v36 = vsel %vm8911_vm11, %v1565_v26, %v1569_v11  ;;  %v1572_v37 = vshrl.u32 %v1186_v30, 16  ;;  %v1575_v38 = vshll.u32 %v1186_v30, 16  ;;  %v543_v39 = vrot.slane %v541_v29, 7  ;;  %v1187_v41 = vld [vmem:[#allocation2 + $0xa0] sm:$0xf] }
  0x84   :  { %v8094_v40 = vcombine.low %v1560_v25, %v1570_v36  ;;  %v1237_v42 = vld [vmem:[#allocation2 + $0xa4] sm:$0x1]  ;;  %v530_v43 = vsel %vm8886_vm9, %v522_v13, %v529_v31  ;;  %v1032_v44 = vsel %vm8845_vm3, %v531_v32, %v1031_v27  ;;  %v538_v45 = vor.u32 %v536_v28, %v535_v33  ;;  %v1193_v55 = vld [vmem:[#allocation2 + $0xdc] sm:$0xf]  ;;  %v1240_v18 = vld [vmem:[#allocation2 + $0xe0] sm:$0x1] }
  0x85   :  { %v1574_v47 = vrot.slane %v1572_v37, 4  ;;  %v1577_v48 = vrot.slane %v1575_v38, 5  ;;  %v1581_v49 = vshll.u32 %v1187_v41, 16  ;;  %v1585_v50 = vshrl.u32 %v1187_v41, 16  ;;  %1030 = vst.msk [vmem:[#allocation2 + $0xac] sm:$0xf] %vm12943_vm0, %v530_v43 }
  0x86   :  { %1033 = vst [vmem:[#allocation2 + $0xb0] sm:$0x1] %v1032_v44  ;;  %5063 = vrot.lane.b32.xlu0 %v8094_v40, %s8811_s26  ;;  %v1591_v51 = vshll.u32 %v1237_v42, 16  ;;  %v539_v52 = vrot.slane %v535_v33, 4  ;;  %v546_v53 = vor.u32 %v544_v34, %v543_v39  ;;  %v548_v54 = vrot.slane %v543_v39, 4 }
  0x87   :  { %v1578_v56 = vor.u32 %v1577_v48, %v1574_v47  ;;  %v1583_v57 = vrot.slane %v1581_v49, 5  ;;  %v1587_v58 = vrot.slane %v1585_v50, 4  ;;  %v1034_v59 = vld [vmem:[#allocation2 + $0xb4] sm:$0xf]  ;;  %v1644_v61 = vshrl.u32 %v1192_v46, 16 }
  0x88   :  { %v1593_v62 = vrot.slane %v1591_v51, 5  ;;  %v1188_v63 = vld [vmem:[#allocation2 + $0xa8] sm:$0xf]  ;;  %v547_v0 = vsel %vm8886_vm9, %v539_v52, %v546_v53  ;;  %v1035_v3 = vsel %vm8892_vm10, %v538_v45, %v1034_v59  ;;  %v1038_v4 = vld [vmem:[#allocation2 + $0xbc] sm:$0x1]  ;;  %v1647_v5 = vshll.u32 %v1192_v46, 16 }
  0x89   :  { %v1579_v6 = vrot.slane %v1578_v56, 4  ;;  %v1588_v7 = vor.u32 %v1587_v58, %v1583_v57  ;;  %v1596_v8 = vshrl.u32 %v1188_v63, 16  ;;  %v1599_v9 = vshll.u32 %v1188_v63, 16  ;;  %1036 = vst [vmem:[#allocation2 + $0xb4] sm:$0xf] %v1035_v3 }
  0x8a   :  { %1037 = vst.msk [vmem:[#allocation2 + $0xb8] sm:$0xf] %vm12943_vm0, %v547_v0  ;;  %v1039_v10 = vsel %vm8845_vm3, %v548_v54, %v1038_v4  ;;  %v1646_v11 = vrot.slane %v1644_v61, 4  ;;  %v1649_v12 = vrot.slane %v1647_v5, 5  ;;  %v1653_v13 = vshll.u32 %v1193_v55, 16 }
  0x8b   :  { %v1584_v14 = vsel %vm8911_vm11, %v1579_v6, %v1583_v57  ;;  %v1589_v15 = vrot.slane %v1588_v7, 4  ;;  %v1598_v16 = vrot.slane %v1596_v8, 4  ;;  %v1601_v17 = vrot.slane %v1599_v9, 5  ;;  %1040 = vst [vmem:[#allocation2 + $0xbc] sm:$0x1] %v1039_v10 }
  0x8c   :  { %v1189_v19 = vld [vmem:[#allocation2 + $0xac] sm:$0xf]  ;;  %v1650_v21 = vor.u32 %v1649_v12, %v1646_v11  ;;  %v1655_v23 = vrot.slane %v1653_v13, 5  ;;  %v1657_v24 = vshrl.u32 %v1193_v55, 16  ;;  %v82_v29 = vld [vmem:[#allocation2 + $0xe4] sm:$0x1] }
  0x8d   :  { %v1238_v20 = vld [vmem:[#allocation2 + $0xb0] sm:$0x1]  ;;  %v1594_v25 = vsel %vm8911_vm11, %v1589_v15, %v1593_v62  ;;  %v1602_v26 = vor.u32 %v1601_v17, %v1598_v16  ;;  %v1605_v27 = vshll.u32 %v1189_v19, 16  ;;  %v1609_v28 = vshrl.u32 %v1189_v19, 16  ;;  %v180_v49 = vld [vmem:[#allocation2 + $0xec] sm:$0x1] }
  0x8e   :  { %v8095_v30 = vcombine.low %v1584_v14, %v1594_v25  ;;  %v1615_v31 = vshll.u32 %v1238_v20, 16  ;;  %v1651_v32 = vrot.slane %v1650_v21, 4  ;;  %v1659_v33 = vrot.slane %v1657_v24, 4  ;;  %v260_v50 = vld [vmem:[%s12912_s0 + $0x80] sm:$0xf] }
  0x8f   :  { %v1603_v34 = vrot.slane %v1602_v26, 4  ;;  %v1607_v36 = vrot.slane %v1605_v27, 5  ;;  %v1611_v37 = vrot.slane %v1609_v28, 4  ;;  %v1663_v38 = vshll.u32 %v1240_v18, 16  ;;  %v261_v61 = vld [vmem:[%s12912_s0 + $0x84] sm:$0xf] }
  0x90   :  { %5065 = vrot.lane.b32.xlu1 %v8095_v30, %s8811_s26  ;;  %v1617_v39 = vrot.slane %v1615_v31, 5  ;;  %v1190_v40 = vld [vmem:[#allocation2 + $0xb4] sm:$0xf]  ;;  %v1656_v42 = vsel %vm8911_vm11, %v1651_v32, %v1655_v23  ;;  %v1660_v43 = vor.u32 %v1659_v33, %v1655_v23  ;;  %v83_v44 = vsel %vm8845_vm3, 0, %v82_v29  ;;  %v85_v4 = vld [vmem:[#allocation2 + $0xf0] sm:$0x1] }
  0x91   :  { %v1191_v41 = vld [vmem:[#allocation2 + $0xb8] sm:$0xf]  ;;  %v1608_v45 = vsel %vm8911_vm11, %v1603_v34, %v1607_v36  ;;  %v1612_v46 = vor.u32 %v1611_v37, %v1607_v36  ;;  %v1620_v47 = vshrl.u32 %v1190_v40, 16  ;;  %v1623_v48 = vshll.u32 %v1190_v40, 16  ;;  %84 = vst [vmem:[#allocation2 + $0xe4] sm:$0x1] %v83_v44 }
  0x92   :  { %v1239_v51 = vld [vmem:[#allocation2 + $0xbc] sm:$0x1]  ;;  %v1629_v52 = vshll.u32 %v1191_v41, 16  ;;  %v1633_v53 = vshrl.u32 %v1191_v41, 16  ;;  %v1661_v54 = vrot.slane %v1660_v43, 4  ;;  %v1665_v55 = vrot.slane %v1663_v38, 5 }
  0x93   :  { %v1613_v56 = vrot.slane %v1612_v46, 4  ;;  %v1622_v57 = vrot.slane %v1620_v47, 4  ;;  %v1625_v58 = vrot.slane %v1623_v48, 5  ;;  %v1639_v59 = vshll.u32 %v1239_v51, 16  ;;  %v183_v9 = vld [vmem:[#allocation2 + $0xf8] sm:$0x1] }
  0x94   :  { %v1631_v62 = vrot.slane %v1629_v52, 5  ;;  %v1635_v63 = vrot.slane %v1633_v53, 4  ;;  %v1666_v0 = vsel %vm8911_vm11, %v1661_v54, %v1665_v55  ;;  %v181_v3 = vsel %vm8860_vm5, 0, %v180_v49  ;;  %v262_v10 = vld [vmem:[%s12912_s0 + $0x88] sm:$0xf] }
  0x95   :  { %v1618_v5 = vsel %vm8911_vm11, %v1613_v56, %v1617_v39  ;;  %v1626_v6 = vor.u32 %v1625_v58, %v1622_v57  ;;  %v1641_v7 = vrot.slane %v1639_v59, 5  ;;  %v8098_v8 = vcombine.low %v1656_v42, %v1666_v0  ;;  %182 = vst [vmem:[#allocation2 + $0xec] sm:$0x1] %v181_v3  ;;  %v263_v15 = vld [vmem:[%s12912_s0 + $0x8c] sm:$0xf] }
  0x96   :  { %v8096_v11 = vcombine.low %v1608_v45, %v1618_v5  ;;  %v1636_v12 = vor.u32 %v1635_v63, %v1631_v62  ;;  %v567_v13 = vshrl.u32 %v260_v50, 16  ;;  %v570_v14 = vshll.u32 %v260_v50, 16  ;;  %v88_v25 = vld [vmem:[#allocation2 + $0xfc] sm:$0x1]  ;;  %v186_v31 = vld [vmem:[#allocation2 + $0x104] sm:$0x1] }
  0x97   :  { %v1627_v16 = vrot.slane %v1626_v6, 4  ;;  %v575_v17 = vshrl.u32 %v261_v61, 16  ;;  %v578_v18 = vshll.u32 %v261_v61, 16  ;;  %v86_v19 = vsel %vm8845_vm3, 0, %v85_v4  ;;  %v264_v32 = vld [vmem:[%s12912_s0 + $0x90] sm:$0xf] }
  0x98   :  { %5067 = vrot.lane.b32.xlu0 %v8096_v11, %s8811_s26  ;;  %v1637_v20 = vrot.slane %v1636_v12, 4  ;;  %v569_v21 = vrot.slane %v567_v13, 7  ;;  %87 = vst [vmem:[#allocation2 + $0xf0] sm:$0x1] %v86_v19  ;;  %v184_v23 = vsel %vm8860_vm5, 0, %v183_v9  ;;  %v584_v24 = vshrl.u32 %v262_v10, 16 }
  0x99   :  { %v1632_v26 = vsel %vm8911_vm11, %v1627_v16, %v1631_v62  ;;  %v577_v27 = vrot.slane %v575_v17, 7  ;;  %v1048_v28 = vld [vmem:[#allocation2 + $0xe4] sm:$0xf]  ;;  %185 = vst [vmem:[#allocation2 + $0xf8] sm:$0x1] %v184_v23  ;;  %v587_v29 = vshll.u32 %v262_v10, 16 }
  0x9a   :  { %v592_v30 = vshrl.u32 %v263_v15, 16  ;;  %v1642_v33 = vsel %vm8911_vm11, %v1637_v20, %v1641_v7  ;;  %v572_v34 = vor.u32 %v570_v14, %v569_v21  ;;  %v573_v36 = vrot.slane %v569_v21, 4  ;;  %v265_v38 = vld [vmem:[%s12912_s0 + $0x94] sm:$0xf]  ;;  %v91_v39 = vld [vmem:[#allocation2 + $0x108] sm:$0x1] }
  0x9b   :  { %v586_v37 = vrot.slane %v584_v24, 7  ;;  %v189_v40 = vld [vmem:[#allocation2 + $0x110] sm:$0x1]  ;;  %v8097_v41 = vcombine.low %v1632_v26, %v1642_v33  ;;  %v580_v42 = vor.u32 %v578_v18, %v577_v27  ;;  %v582_v43 = vrot.slane %v577_v27, 4  ;;  %v266_v45 = vld [vmem:[%s12912_s0 + $0x98] sm:$0xf] }
  0x9c   :  { %v594_v44 = vrot.slane %v592_v30, 7  ;;  %5071 = vrot.lane.b32.xlu0 %v8098_v8, %s8811_s26  ;;  %v1049_v46 = vsel %vm8892_vm10, %v572_v34, %v1048_v28  ;;  %v1052_v47 = vld [vmem:[#allocation2 + $0xec] sm:$0x1]  ;;  %v595_v50 = vshll.u32 %v263_v15, 16  ;;  %v89_v54 = vsel %vm8845_vm3, 0, %v88_v25 }
  0x9d   :  { %v589_v48 = vor.u32 %v587_v29, %v586_v37  ;;  %v590_v49 = vrot.slane %v586_v37, 4  ;;  %5069 = vrot.lane.b32.xlu1 %v8097_v41, %s8811_s26  ;;  %v581_v51 = vsel %vm8886_vm9, %v573_v36, %v580_v42  ;;  %1050 = vst [vmem:[#allocation2 + $0xe4] sm:$0xf] %v1049_v46  ;;  %v1053_v52 = vsel %vm8845_vm3, %v582_v43, %v1052_v47  ;;  %v267_v55 = vld [vmem:[%s12912_s0 + $0x9c] sm:$0xf] }
  0x9e   :  { %v599_v53 = vrot.slane %v594_v44, 4  ;;  %1051 = vst.msk [vmem:[#allocation2 + $0xe8] sm:$0xf] %vm12943_vm0, %v581_v51  ;;  %1054 = vst [vmem:[#allocation2 + $0xec] sm:$0x1] %v1053_v52  ;;  %v597_v56 = vor.u32 %v595_v50, %v594_v44  ;;  %v187_v57 = vsel %vm8860_vm5, 0, %v186_v31 }
  0x9f   :  { %90 = vst [vmem:[#allocation2 + $0xfc] sm:$0x1] %v89_v54  ;;  %v601_v58 = vshrl.u32 %v264_v32, 16  ;;  %v604_v59 = vshll.u32 %v264_v32, 16  ;;  %v94_v61 = vld [vmem:[#allocation2 + $0x114] sm:$0x1] }
  0xa0   :  { %v1055_v62 = vld [vmem:[#allocation2 + $0xf0] sm:$0xf]  ;;  %188 = vst [vmem:[#allocation2 + $0x104] sm:$0x1] %v187_v57  ;;  %v609_v63 = vshrl.u32 %v265_v38, 16  ;;  %v612_v0 = vshll.u32 %v265_v38, 16  ;;  %v598_v5 = vsel %vm8886_vm9, %v590_v49, %v597_v56 }
  0xa1   :  { %v92_v3 = vsel %vm8845_vm3, 0, %v91_v39  ;;  %v190_v4 = vsel %vm8860_vm5, 0, %v189_v40  ;;  %v1056_v6 = vsel %vm8892_vm10, %v589_v48, %v1055_v62  ;;  %v1059_v7 = vld [vmem:[#allocation2 + $0xf8] sm:$0x1]  ;;  %v603_v8 = vrot.slane %v601_v58, 7 }
  0xa2   :  { %93 = vst [vmem:[#allocation2 + $0x108] sm:$0x1] %v92_v3  ;;  %191 = vst [vmem:[#allocation2 + $0x110] sm:$0x1] %v190_v4  ;;  %v618_v9 = vshrl.u32 %v266_v45, 16 }
  0xa3   :  { %9 = vsyncpa [#allocation4], 0  ;;  %1057 = vst [vmem:[#allocation2 + $0xf0] sm:$0xf] %v1056_v6  ;;  %v1060_v10 = vsel %vm8845_vm3, %v599_v53, %v1059_v7  ;;  %v611_v11 = vrot.slane %v609_v63, 7  ;;  %v621_v12 = vshll.u32 %v266_v45, 16  ;;  %v606_v18 = vor.u32 %v604_v59, %v603_v8  ;;  %v9810_v35 = vpop.permute.xlu0 %5039 }
  0xa4   :  { %1058 = vst.msk [vmem:[#allocation2 + $0xf4] sm:$0xf] %vm12943_vm0, %v598_v5  ;;  %v626_v13 = vshrl.u32 %v267_v55, 16  ;;  %v192_v14 = vld [vmem:[#allocation2 + $0x11c] sm:$0x1]  ;;  %v607_v15 = vrot.slane %v603_v8, 4 }
  0xa5   :  { %1061 = vst [vmem:[#allocation2 + $0xf8] sm:$0x1] %v1060_v10  ;;  %v620_v16 = vrot.slane %v618_v9, 7  ;;  %v629_v17 = vshll.u32 %v267_v55, 16  ;;  %v614_v19 = vor.u32 %v612_v0, %v611_v11  ;;  %v95_v21 = vsel %vm8845_vm3, 0, %v94_v61  ;;  %s8812_s29 = smov 8  }
  0xa6   :  { %v628_v20 = vrot.slane %v626_v13, 7  ;;  %v1194_v23 = vld [vmem:[#allocation2 + $0xe4] sm:$0xf]  ;;  %v616_v24 = vrot.slane %v611_v11, 4  ;;  %96 = vst [vmem:[#allocation2 + $0x114] sm:$0x1] %v95_v21 }
  0xa7   :  { %v623_v25 = vor.u32 %v621_v12, %v620_v16  ;;  %v624_v26 = vrot.slane %v620_v16, 4  ;;  %v193_v27 = vsel %vm8860_vm5, 0, %v192_v14  ;;  %v1195_v28 = vld [vmem:[#allocation2 + $0xe8] sm:$0xf]  ;;  %v1241_v29 = vld [vmem:[#allocation2 + $0xec] sm:$0x1]  ;;  %v615_v32 = vsel %vm8886_vm9, %v607_v15, %v614_v19 }
  0xa8   :  { %v1668_v30 = vshrl.u32 %v1194_v23, 16  ;;  %v1671_v31 = vshll.u32 %v1194_v23, 16  ;;  %v631_v33 = vor.u32 %v629_v17, %v628_v20  ;;  %194 = vst [vmem:[#allocation2 + $0x11c] sm:$0x1] %v193_v27  ;;  %v1677_v34 = vshll.u32 %v1195_v28, 16  ;;  %s8814_s30 = smov 16  }
  0xa9   :  { %v1681_v36 = vshrl.u32 %v1195_v28, 16  ;;  %v1687_v37 = vshll.u32 %v1241_v29, 16  ;;  %v1062_v38 = vld [vmem:[#allocation2 + $0xfc] sm:$0xf]  ;;  %1065 = vst.msk [vmem:[#allocation2 + $0x100] sm:$0xf] %vm12943_vm0, %v615_v32 }
  0xaa   :  { %v633_v39 = vrot.slane %v628_v20, 4  ;;  %v9310_v40 = vld [vmem:[%s12912_s0 + $0xa0] sm:$0xf]  ;;  %v1670_v41 = vrot.slane %v1668_v30, 4  ;;  %v1673_v42 = vrot.slane %v1671_v31, 5  ;;  %v1063_v43 = vsel %vm8892_vm10, %v606_v18, %v1062_v38  ;;  %s8815_s4 = smov 20  }
  0xab   :  { %v1066_v44 = vld [vmem:[#allocation2 + $0x104] sm:$0x1]  ;;  %v632_v45 = vsel %vm8886_vm9, %v624_v26, %v631_v33  ;;  %v1069_v46 = vld [vmem:[#allocation2 + $0x108] sm:$0xf]  ;;  %v1679_v47 = vrot.slane %v1677_v34, 5  ;;  %v1683_v48 = vrot.slane %v1681_v36, 4 }
  0xac   :  { %v1689_v49 = vrot.slane %v1687_v37, 5  ;;  %v1196_v50 = vld [vmem:[#allocation2 + $0xf0] sm:$0xf]  ;;  %1064 = vst [vmem:[#allocation2 + $0xfc] sm:$0xf] %v1063_v43  ;;  %v1067_v51 = vsel %vm8845_vm3, %v616_v24, %v1066_v44  ;;  %v1674_v52 = vor.u32 %v1673_v42, %v1670_v41  ;;  %v1070_v57 = vsel %vm8892_vm10, %v623_v25, %v1069_v46  ;;  %s8816_s5 = smov 24  }
  0xad   :  { %1072 = vst.msk [vmem:[#allocation2 + $0x10c] sm:$0xf] %vm12943_vm0, %v632_v45  ;;  %v1197_v53 = vld [vmem:[#allocation2 + $0xf4] sm:$0xf]  ;;  %v9319_v54 = vld [vmem:[#allocation2 + $0xf8] sm:$0x1]  ;;  %v1684_v58 = vor.u32 %v1683_v48, %v1679_v47 }
  0xae   :  { %12958 = vst [vmem:[#allocation10_spill] sm:$0xff] %v9319_v54  ;;  %v1692_v55 = vshrl.u32 %v1196_v50, 16  ;;  %v1695_v56 = vshll.u32 %v1196_v50, 16  ;;  %1068 = vst [vmem:[#allocation2 + $0x104] sm:$0x1] %v1067_v51  ;;  %v1701_v59 = vshll.u32 %v1197_v53, 16 }
  0xaf   :  { %v1705_v61 = vshrl.u32 %v1197_v53, 16  ;;  %v1711_v62 = vshll.u32 %v9319_v54, 16  ;;  %1071 = vst [vmem:[#allocation2 + $0x108] sm:$0xf] %v1070_v57  ;;  %v1073_v63 = vld [vmem:[#allocation2 + $0x110] sm:$0x1] }
  0xb0   :  { %v1675_v0 = vrot.slane %v1674_v52, 4  ;;  %v1694_v3 = vrot.slane %v1692_v55, 4  ;;  %v1697_v4 = vrot.slane %v1695_v56, 5  ;;  %v635_v5 = vshrl.u32 %v9310_v40, 16  ;;  %v1199_v12 = vld [vmem:[#allocation2 + $0x100] sm:$0xf] }
  0xb1   :  { %v1685_v6 = vrot.slane %v1684_v58, 4  ;;  %v1703_v7 = vrot.slane %v1701_v59, 5  ;;  %v1707_v8 = vrot.slane %v1705_v61, 4  ;;  %v1713_v11 = vrot.slane %v1711_v62, 5  ;;  %v269_v48 = vld [vmem:[%s12912_s0 + $0xa4] sm:$0xf] }
  0xb2   :  { %v1680_v9 = vsel %vm8911_vm11, %v1675_v0, %v1679_v47  ;;  %v1698_v10 = vor.u32 %v1697_v4, %v1694_v3  ;;  %v1074_v13 = vsel %vm8845_vm3, %v633_v39, %v1073_v63  ;;  %v1725_v16 = vshll.u32 %v1199_v12, 16  ;;  %v97_v52 = vld [vmem:[#allocation2 + $0x120] sm:$0x1]  ;;  %v1076_v58 = vld [vmem:[#allocation2 + $0x114] sm:$0xf]  ;;  %s8817_s6 = smov 28  }
  0xb3   :  { %v1690_v14 = vsel %vm8911_vm11, %v1685_v6, %v1689_v49  ;;  %v1708_v15 = vor.u32 %v1707_v8, %v1703_v7  ;;  %v1729_v17 = vshrl.u32 %v1199_v12, 16  ;;  %1075 = vst [vmem:[#allocation2 + $0x110] sm:$0x1] %v1074_v13  ;;  %v1198_v20 = vld [vmem:[#allocation2 + $0xfc] sm:$0xf]  ;;  %v9331_v23 = vrot.slane %v635_v5, 7 }
  0xb4   :  { %v8099_v18 = vcombine.low %v1680_v9, %v1690_v14  ;;  %v1699_v19 = vrot.slane %v1698_v10, 4  ;;  %v1201_v21 = vld [vmem:[#allocation2 + $0x10c] sm:$0xf]  ;;  %v1716_v26 = vshrl.u32 %v1198_v20, 16  ;;  %v1719_v27 = vshll.u32 %v1198_v20, 16  ;;  %s8818_s7 = smov 32  }
  0xb5   :  { %v1709_v24 = vrot.slane %v1708_v15, 4  ;;  %v9333_v25 = vld [vmem:[#allocation2 + $0x104] sm:$0x1]  ;;  %v1727_v28 = vrot.slane %v1725_v16, 5  ;;  %v1731_v30 = vrot.slane %v1729_v17, 4  ;;  %v638_v33 = vshll.u32 %v9310_v40, 16 }
  0xb6   :  { %12959 = vst [vmem:[#allocation11_spill] sm:$0xff] %v9333_v25  ;;  %5073 = vrot.lane.b32.xlu1 %v8099_v18, %s8811_s26  ;;  %v1704_v29 = vsel %vm8911_vm11, %v1699_v19, %v1703_v7  ;;  %v1735_v31 = vshll.u32 %v9333_v25, 16  ;;  %v1200_v32 = vld [vmem:[#allocation2 + $0x108] sm:$0xf]  ;;  %v1718_v36 = vrot.slane %v1716_v26, 4  ;;  %v1721_v37 = vrot.slane %v1719_v27, 5 }
  0xb7   :  { %v1714_v34 = vsel %vm8911_vm11, %v1709_v24, %v1713_v11  ;;  %v1740_v38 = vshrl.u32 %v1200_v32, 16  ;;  %v1732_v41 = vor.u32 %v1731_v30, %v1727_v28  ;;  %v1743_v43 = vshll.u32 %v1200_v32, 16  ;;  %v195_v0 = vld [vmem:[#allocation2 + $0x128] sm:$0x1]  ;;  %v271_v12 = vld [vmem:[%s12912_s0 + $0xac] sm:$0xf] }
  0xb8   :  { %v8100_v39 = vcombine.low %v1704_v29, %v1714_v34  ;;  %v1737_v42 = vrot.slane %v1735_v31, 5  ;;  %v1722_v44 = vor.u32 %v1721_v37, %v1718_v36  ;;  %v1749_v46 = vshll.u32 %v1201_v21, 16  ;;  %v270_v3 = vld [vmem:[%s12912_s0 + $0xa8] sm:$0xf]  ;;  %v100_v13 = vld [vmem:[#allocation2 + $0x12c] sm:$0x1] }
  0xb9   :  { %v1742_v45 = vrot.slane %v1740_v38, 4  ;;  %v1753_v47 = vshrl.u32 %v1201_v21, 16  ;;  %v1733_v40 = vrot.slane %v1732_v41, 4  ;;  %v1745_v50 = vrot.slane %v1743_v43, 5  ;;  %v1080_v15 = vld [vmem:[#allocation2 + $0x11c] sm:$0x1] }
  0xba   :  { %5075 = vrot.lane.b32.xlu0 %v8100_v39, %s8811_s26  ;;  %v9346_v49 = vld [vmem:[#allocation2 + $0x110] sm:$0x1]  ;;  %v640_v51 = vor.u32 %v638_v33, %v9331_v23  ;;  %v1723_v53 = vrot.slane %v1722_v44, 4  ;;  %v1751_v55 = vrot.slane %v1749_v46, 5  ;;  %v641_v62 = vrot.slane %v9331_v23, 4 }
  0xbb   :  { %12960 = vst [vmem:[#allocation12_spill] sm:$0xff] %v9346_v49  ;;  %v1755_v56 = vrot.slane %v1753_v47, 4  ;;  %v1759_v57 = vshll.u32 %v9346_v49, 16  ;;  %v1738_v59 = vsel %vm8911_vm11, %v1733_v40, %v1737_v42  ;;  %v1746_v61 = vor.u32 %v1745_v50, %v1742_v45  ;;  %v198_v24 = vld [vmem:[#allocation2 + $0x134] sm:$0x1] }
  0xbc   :  { %v643_v63 = vshrl.u32 %v269_v48, 16  ;;  %v1728_v4 = vsel %vm8911_vm11, %v1723_v53, %v1727_v28  ;;  %v646_v7 = vshll.u32 %v269_v48, 16  ;;  %v1077_v11 = vsel %vm8892_vm10, %v640_v51, %v1076_v58  ;;  %v272_v26 = vld [vmem:[%s12912_s0 + $0xb0] sm:$0xf]  ;;  %v273_v31 = vld [vmem:[%s12912_s0 + $0xb4] sm:$0xf] }
  0xbd   :  { %v1756_v5 = vor.u32 %v1755_v56, %v1751_v55  ;;  %v1761_v6 = vrot.slane %v1759_v57, 5  ;;  %v8101_v8 = vcombine.low %v1728_v4, %v1738_v59  ;;  %v1747_v9 = vrot.slane %v1746_v61, 4  ;;  %1078 = vst [vmem:[#allocation2 + $0x114] sm:$0xf] %v1077_v11  ;;  %v103_v37 = vld [vmem:[#allocation2 + $0x138] sm:$0x1] }
  0xbe   :  { %v645_v10 = vrot.slane %v643_v63, 7  ;;  %v98_v16 = vsel %vm8845_vm3, 0, %v97_v52  ;;  %v196_v17 = vsel %vm8860_vm5, 0, %v195_v0  ;;  %v652_v18 = vshrl.u32 %v270_v3, 16  ;;  %v201_v38 = vld [vmem:[#allocation2 + $0x140] sm:$0x1] }
  0xbf   :  { %v1757_v14 = vrot.slane %v1756_v5, 4  ;;  %5077 = vrot.lane.b32.xlu1 %v8101_v8, %s8811_s26  ;;  %v1752_v19 = vsel %vm8911_vm11, %v1747_v9, %v1751_v55  ;;  %99 = vst [vmem:[#allocation2 + $0x120] sm:$0x1] %v98_v16  ;;  %197 = vst [vmem:[#allocation2 + $0x128] sm:$0x1] %v196_v17  ;;  %v655_v23 = vshll.u32 %v270_v3, 16 }
  0xc0   :  { %v648_v20 = vor.u32 %v646_v7, %v645_v10  ;;  %v650_v21 = vrot.slane %v645_v10, 4  ;;  %v654_v28 = vrot.slane %v652_v18, 7  ;;  %v660_v29 = vshrl.u32 %v271_v12, 16  ;;  %v9390_v44 = vld [vmem:[%s12912_s0 + $0xb8] sm:$0xf] }
  0xc1   :  { %v1762_v27 = vsel %vm8911_vm11, %v1757_v14, %v1761_v6  ;;  %v663_v30 = vshll.u32 %v271_v12, 16  ;;  %v101_v36 = vsel %vm8845_vm3, 0, %v100_v13  ;;  %v199_v43 = vsel %vm8860_vm5, 0, %v198_v24  ;;  %v106_v10 = vld [vmem:[#allocation2 + $0x144] sm:$0x1] }
  0xc2   :  { %v8102_v32 = vcombine.low %v1752_v19, %v1762_v27  ;;  %v649_v33 = vsel %vm8886_vm9, %v641_v62, %v648_v20  ;;  %v1081_v34 = vsel %vm8845_vm3, %v650_v21, %v1080_v15  ;;  %v657_v39 = vor.u32 %v655_v23, %v654_v28  ;;  %102 = vst [vmem:[#allocation2 + $0x12c] sm:$0x1] %v101_v36  ;;  %v9417_v23 = vld [vmem:[%s12912_s0 + $0xbc] sm:$0xf]  ;;  %v8721_v49 = vld [vmem:[#allocation2 + $0xa4] sm:$0x1] }
  0xc3   :  { %1079 = vst.msk [vmem:[#allocation2 + $0x118] sm:$0xf] %vm12943_vm0, %v649_v33  ;;  %1082 = vst [vmem:[#allocation2 + $0x11c] sm:$0x1] %v1081_v34  ;;  %v658_v41 = vrot.slane %v654_v28, 4  ;;  %v662_v42 = vrot.slane %v660_v29, 7 }
  0xc4   :  { %5079 = vrot.lane.b32.xlu0 %v8102_v32, %s8811_s26  ;;  %200 = vst [vmem:[#allocation2 + $0x134] sm:$0x1] %v199_v43  ;;  %v669_v45 = vshrl.u32 %v272_v26, 16  ;;  %v672_v46 = vshll.u32 %v272_v26, 16  ;;  %v677_v47 = vshrl.u32 %v273_v31, 16  ;;  %v680_v48 = vshll.u32 %v273_v31, 16 }
  0xc5   :  { %v665_v40 = vor.u32 %v663_v30, %v662_v42  ;;  %v667_v50 = vrot.slane %v662_v42, 4  ;;  %v104_v51 = vsel %vm8845_vm3, 0, %v103_v37  ;;  %v202_v52 = vsel %vm8860_vm5, 0, %v201_v38  ;;  %v1202_v53 = vld [vmem:[#allocation2 + $0x114] sm:$0xf] }
  0xc6   :  { %v671_v55 = vrot.slane %v669_v45, 7  ;;  %v679_v56 = vrot.slane %v677_v47, 7  ;;  %105 = vst [vmem:[#allocation2 + $0x138] sm:$0x1] %v104_v51  ;;  %203 = vst [vmem:[#allocation2 + $0x140] sm:$0x1] %v202_v52 }
  0xc7   :  { %v686_v57 = vshrl.u32 %v9390_v44, 16  ;;  %v1764_v58 = vshrl.u32 %v1202_v53, 16  ;;  %v1767_v59 = vshll.u32 %v1202_v53, 16  ;;  %v666_v61 = vsel %vm8886_vm9, %v658_v41, %v665_v40  ;;  %v1083_v62 = vld [vmem:[#allocation2 + $0x120] sm:$0xf] }
  0xc8   :  { %v1087_v63 = vld [vmem:[#allocation2 + $0x128] sm:$0x1]  ;;  %v1084_v0 = vsel %vm8892_vm10, %v657_v39, %v1083_v62  ;;  %1086 = vst.msk [vmem:[#allocation2 + $0x124] sm:$0xf] %vm12943_vm0, %v666_v61  ;;  %v674_v4 = vor.u32 %v672_v46, %v671_v55  ;;  %v675_v5 = vrot.slane %v671_v55, 4  ;;  %v682_v8 = vor.u32 %v680_v48, %v679_v56 }
  0xc9   :  { %v1088_v3 = vsel %vm8845_vm3, %v667_v50, %v1087_v63  ;;  %v1766_v6 = vrot.slane %v1764_v58, 4  ;;  %v1769_v7 = vrot.slane %v1767_v59, 5  ;;  %1085 = vst [vmem:[#allocation2 + $0x120] sm:$0xf] %v1084_v0  ;;  %v684_v9 = vrot.slane %v679_v56, 4 }
  0xca   :  { %1089 = vst [vmem:[#allocation2 + $0x128] sm:$0x1] %v1088_v3  ;;  %v1203_v11 = vld [vmem:[#allocation2 + $0x118] sm:$0xf]  ;;  %v9405_v12 = vld [vmem:[#allocation2 + $0x11c] sm:$0x1]  ;;  %v683_v19 = vsel %vm8886_vm9, %v675_v5, %v682_v8 }
  0xcb   :  { %12961 = vst [vmem:[#allocation13_spill] sm:$0xff] %v9405_v12  ;;  %v1090_v13 = vld [vmem:[#allocation2 + $0x12c] sm:$0xf]  ;;  %v1770_v14 = vor.u32 %v1769_v7, %v1766_v6  ;;  %v1773_v15 = vshll.u32 %v1203_v11, 16  ;;  %v1777_v16 = vshrl.u32 %v1203_v11, 16  ;;  %v1783_v17 = vshll.u32 %v9405_v12, 16 }
  0xcc   :  { %v1094_v18 = vld [vmem:[#allocation2 + $0x134] sm:$0x1]  ;;  %v1091_v20 = vsel %vm8892_vm10, %v674_v4, %v1090_v13  ;;  %v689_v24 = vshll.u32 %v9390_v44, 16  ;;  %v204_v26 = vld [vmem:[#allocation2 + $0x14c] sm:$0x1]  ;;  %v9421_v30 = vrot.slane %v686_v57, 7 }
  0xcd   :  { %v1095_v21 = vsel %vm8845_vm3, %v684_v9, %v1094_v18  ;;  %v1771_v27 = vrot.slane %v1770_v14, 4  ;;  %v1775_v28 = vrot.slane %v1773_v15, 5  ;;  %v1779_v29 = vrot.slane %v1777_v16, 4  ;;  %1092 = vst [vmem:[#allocation2 + $0x12c] sm:$0xf] %v1091_v20 }
  0xce   :  { %1093 = vst.msk [vmem:[#allocation2 + $0x130] sm:$0xf] %vm12943_vm0, %v683_v19  ;;  %1096 = vst [vmem:[#allocation2 + $0x134] sm:$0x1] %v1095_v21  ;;  %v107_v31 = vsel %vm8845_vm3, 0, %v106_v10  ;;  %v1785_v34 = vrot.slane %v1783_v17, 5  ;;  %v691_v45 = vor.u32 %v689_v24, %v9421_v30 }
  0xcf   :  { %v9428_v32 = vld [vmem:[%s12912_s0 + $0xc0] sm:$0xf]  ;;  %v1780_v33 = vor.u32 %v1779_v29, %v1775_v28  ;;  %v1205_v36 = vld [vmem:[#allocation2 + $0x124] sm:$0xf]  ;;  %v694_v37 = vshrl.u32 %v9417_v23, 16  ;;  %v205_v38 = vsel %vm8860_vm5, 0, %v204_v26  ;;  %v1776_v39 = vsel %vm8911_vm11, %v1771_v27, %v1775_v28 }
  0xd0   :  { %108 = vst [vmem:[#allocation2 + $0x144] sm:$0x1] %v107_v31  ;;  %v1204_v41 = vld [vmem:[#allocation2 + $0x120] sm:$0xf]  ;;  %v1797_v43 = vshll.u32 %v1205_v36, 16  ;;  %v1801_v44 = vshrl.u32 %v1205_v36, 16 }
  0xd1   :  { %v9435_v42 = vld [vmem:[#allocation2 + $0x128] sm:$0x1]  ;;  %206 = vst [vmem:[#allocation2 + $0x14c] sm:$0x1] %v205_v38  ;;  %v1781_v46 = vrot.slane %v1780_v33, 4  ;;  %v1788_v47 = vshrl.u32 %v1204_v41, 16 }
  0xd2   :  { %12962 = vst [vmem:[#allocation14_spill] sm:$0xff] %v9435_v42  ;;  %v1791_v48 = vshll.u32 %v1204_v41, 16  ;;  %v1807_v40 = vshll.u32 %v9435_v42, 16  ;;  %v1097_v50 = vld [vmem:[#allocation2 + $0x138] sm:$0xf]  ;;  %v1799_v51 = vrot.slane %v1797_v43, 5 }
  0xd3   :  { %v1803_v52 = vrot.slane %v1801_v44, 4  ;;  %v697_v53 = vshll.u32 %v9417_v23, 16  ;;  %v703_v55 = vshrl.u32 %v9428_v32, 16  ;;  %v1786_v56 = vsel %vm8911_vm11, %v1781_v46, %v1785_v34  ;;  %v277_v23 = vld [vmem:[%s12912_s0 + $0xc4] sm:$0xf] }
  0xd4   :  { %v1790_v57 = vrot.slane %v1788_v47, 4  ;;  %v1793_v58 = vrot.slane %v1791_v48, 5  ;;  %v1809_v59 = vrot.slane %v1807_v40, 5  ;;  %v8103_v61 = vcombine.low %v1776_v39, %v1786_v56  ;;  %v1206_v63 = vld [vmem:[#allocation2 + $0x12c] sm:$0xf] }
  0xd5   :  { %v1804_v62 = vor.u32 %v1803_v52, %v1799_v51  ;;  %v1207_v0 = vld [vmem:[#allocation2 + $0x130] sm:$0xf]  ;;  %v9443_v3 = vld [vmem:[#allocation2 + $0x134] sm:$0x1]  ;;  %v1098_v4 = vsel %vm8892_vm10, %v691_v45, %v1097_v50  ;;  %v1812_v6 = vshrl.u32 %v1206_v63, 16  ;;  %v1815_v7 = vshll.u32 %v1206_v63, 16 }
  0xd6   :  { %12963 = vst [vmem:[#allocation15_spill] sm:$0xff] %v9443_v3  ;;  %v1794_v5 = vor.u32 %v1793_v58, %v1790_v57  ;;  %v1821_v8 = vshll.u32 %v1207_v0, 16  ;;  %1099 = vst [vmem:[#allocation2 + $0x138] sm:$0xf] %v1098_v4  ;;  %5081 = vrot.lane.b32.xlu1 %v8103_v61, %s8811_s26  ;;  %v1825_v10 = vshrl.u32 %v1207_v0, 16  ;;  %v1831_v11 = vshll.u32 %v9443_v3, 16 }
  0xd7   :  { %v1805_v9 = vrot.slane %v1804_v62, 4  ;;  %v692_v13 = vrot.slane %v9421_v30, 4  ;;  %v1814_v15 = vrot.slane %v1812_v6, 4  ;;  %v1817_v16 = vrot.slane %v1815_v7, 5  ;;  %v1101_v27 = vld [vmem:[#allocation2 + $0x140] sm:$0x1] }
  0xd8   :  { %v1795_v14 = vrot.slane %v1794_v5, 4  ;;  %v1823_v17 = vrot.slane %v1821_v8, 5  ;;  %v1827_v19 = vrot.slane %v1825_v10, 4  ;;  %v1833_v20 = vrot.slane %v1831_v11, 5  ;;  %v109_v36 = vld [vmem:[#allocation2 + $0x150] sm:$0x1] }
  0xd9   :  { %v1810_v18 = vsel %vm8911_vm11, %v1805_v9, %v1809_v59  ;;  %v696_v21 = vrot.slane %v694_v37, 7  ;;  %v1818_v26 = vor.u32 %v1817_v16, %v1814_v15  ;;  %v705_v28 = vrot.slane %v703_v55, 7  ;;  %v207_v38 = vld [vmem:[#allocation2 + $0x158] sm:$0x1]  ;;  %v1104_v44 = vld [vmem:[#allocation2 + $0x144] sm:$0xf] }
  0xda   :  { %v1800_v24 = vsel %vm8911_vm11, %v1795_v14, %v1799_v51  ;;  %v706_v29 = vshll.u32 %v9428_v32, 16  ;;  %v1828_v31 = vor.u32 %v1827_v19, %v1823_v17  ;;  %v711_v43 = vshrl.u32 %v277_v23, 16  ;;  %v278_v40 = vld [vmem:[%s12912_s0 + $0xc8] sm:$0xf]  ;;  %v279_v55 = vld [vmem:[%s12912_s0 + $0xcc] sm:$0xf] }
  0xdb   :  { %v8104_v30 = vcombine.low %v1800_v24, %v1810_v18  ;;  %v699_v33 = vor.u32 %v697_v53, %v696_v21  ;;  %v701_v34 = vrot.slane %v696_v21, 4  ;;  %v1819_v39 = vrot.slane %v1818_v26, 4  ;;  %v112_v61 = vld [vmem:[#allocation2 + $0x15c] sm:$0x1]  ;;  %v1108_v5 = vld [vmem:[#allocation2 + $0x14c] sm:$0x1] }
  0xdc   :  { %v708_v37 = vor.u32 %v706_v29, %v705_v28  ;;  %v709_v41 = vrot.slane %v705_v28, 4  ;;  %v1829_v45 = vrot.slane %v1828_v31, 4  ;;  %v714_v48 = vshll.u32 %v277_v23, 16  ;;  %v210_v6 = vld [vmem:[#allocation2 + $0x164] sm:$0x1] }
  0xdd   :  { %5083 = vrot.lane.b32.xlu0 %v8104_v30, %s8811_s26  ;;  %v700_v46 = vsel %vm8886_vm9, %v692_v13, %v699_v33  ;;  %v1102_v32 = vsel %vm8845_vm3, %v701_v34, %v1101_v27  ;;  %v1208_v47 = vld [vmem:[#allocation2 + $0x138] sm:$0xf]  ;;  %v1824_v50 = vsel %vm8911_vm11, %v1819_v39, %v1823_v17  ;;  %v713_v53 = vrot.slane %v711_v43, 7  ;;  %v280_v11 = vld [vmem:[%s12912_s0 + $0xd0] sm:$0xf] }
  0xde   :  { %1100 = vst.msk [vmem:[#allocation2 + $0x13c] sm:$0xf] %vm12943_vm0, %v700_v46  ;;  %1103 = vst [vmem:[#allocation2 + $0x140] sm:$0x1] %v1102_v32  ;;  %v1836_v51 = vshrl.u32 %v1208_v47, 16  ;;  %v1839_v52 = vshll.u32 %v1208_v47, 16  ;;  %v1834_v56 = vsel %vm8911_vm11, %v1829_v45, %v1833_v20  ;;  %v1105_v57 = vsel %vm8892_vm10, %v708_v37, %v1104_v44 }
  0xdf   :  { %v110_v58 = vsel %vm8845_vm3, 0, %v109_v36  ;;  %v208_v59 = vsel %vm8860_vm5, 0, %v207_v38  ;;  %v8105_v62 = vcombine.low %v1824_v50, %v1834_v56  ;;  %v716_v4 = vor.u32 %v714_v48, %v713_v53  ;;  %1106 = vst [vmem:[#allocation2 + $0x144] sm:$0xf] %v1105_v57  ;;  %v281_v21 = vld [vmem:[%s12912_s0 + $0xd4] sm:$0xf] }
  0xe0   :  { %v1838_v63 = vrot.slane %v1836_v51, 4  ;;  %v1841_v0 = vrot.slane %v1839_v52, 5  ;;  %111 = vst [vmem:[#allocation2 + $0x150] sm:$0x1] %v110_v58  ;;  %209 = vst [vmem:[#allocation2 + $0x158] sm:$0x1] %v208_v59 }
  0xe1   :  { %v718_v7 = vrot.slane %v713_v53, 4  ;;  %v720_v8 = vshrl.u32 %v278_v40, 16  ;;  %v723_v9 = vshll.u32 %v278_v40, 16  ;;  %v728_v10 = vshrl.u32 %v279_v55, 16  ;;  %5085 = vrot.lane.b32.xlu1 %v8105_v62, %s8811_s26  ;;  %v2040_v3 = vld [vmem:[#allocation2 + $0x9c] sm:$0xe] }
  0xe2   :  { %v1842_v13 = vor.u32 %v1841_v0, %v1838_v63  ;;  %v717_v14 = vsel %vm8886_vm9, %v709_v41, %v716_v4  ;;  %v731_v15 = vshll.u32 %v279_v55, 16  ;;  %v113_v16 = vsel %vm8845_vm3, 0, %v112_v61  ;;  %v2043_v54 = vld [vmem:[#allocation2 + $0xd8] sm:$0xe] }
  0xe3   :  { %1107 = vst.msk [vmem:[#allocation2 + $0x148] sm:$0xf] %vm12943_vm0, %v717_v14  ;;  %v1109_v17 = vsel %vm8845_vm3, %v718_v7, %v1108_v5  ;;  %v722_v18 = vrot.slane %v720_v8, 7  ;;  %v730_v19 = vrot.slane %v728_v10, 7  ;;  %114 = vst [vmem:[#allocation2 + $0x15c] sm:$0x1] %v113_v16 }
  0xe4   :  { %v211_v20 = vsel %vm8860_vm5, 0, %v210_v6  ;;  %v1843_v23 = vrot.slane %v1842_v13, 4  ;;  %1110 = vst [vmem:[#allocation2 + $0x14c] sm:$0x1] %v1109_v17  ;;  %v737_v24 = vshrl.u32 %v280_v11, 16  ;;  %v740_v26 = vshll.u32 %v280_v11, 16 }
  0xe5   :  { %212 = vst [vmem:[#allocation2 + $0x164] sm:$0x1] %v211_v20  ;;  %v1209_v27 = vld [vmem:[#allocation2 + $0x13c] sm:$0xf]  ;;  %v9496_v28 = vld [vmem:[#allocation2 + $0x140] sm:$0x1]  ;;  %v725_v29 = vor.u32 %v723_v9, %v722_v18  ;;  %v733_v31 = vor.u32 %v731_v15, %v730_v19 }
  0xe6   :  { %12964 = vst [vmem:[#allocation16_spill] sm:$0xff] %v9496_v28  ;;  %v726_v30 = vrot.slane %v722_v18, 4  ;;  %v735_v33 = vrot.slane %v730_v19, 4  ;;  %v1845_v34 = vshll.u32 %v1209_v27, 16  ;;  %v1849_v36 = vshrl.u32 %v1209_v27, 16 }
  0xe7   :  { %v1855_v38 = vshll.u32 %v9496_v28, 16  ;;  %v745_v39 = vshrl.u32 %v281_v21, 16  ;;  %v1210_v37 = vld [vmem:[#allocation2 + $0x144] sm:$0xf]  ;;  %v1111_v43 = vld [vmem:[#allocation2 + $0x150] sm:$0xf] }
  0xe8   :  { %v734_v41 = vsel %vm8886_vm9, %v726_v30, %v733_v31  ;;  %v1115_v44 = vld [vmem:[#allocation2 + $0x158] sm:$0x1]  ;;  %v1847_v45 = vrot.slane %v1845_v34, 5  ;;  %v1851_v46 = vrot.slane %v1849_v36, 4  ;;  %v1860_v47 = vshrl.u32 %v1210_v37, 16 }
  0xe9   :  { %v1857_v32 = vrot.slane %v1855_v38, 5  ;;  %1114 = vst.msk [vmem:[#allocation2 + $0x154] sm:$0xf] %vm12943_vm0, %v734_v41  ;;  %v1863_v48 = vshll.u32 %v1210_v37, 16  ;;  %v1112_v40 = vsel %vm8892_vm10, %v725_v29, %v1111_v43  ;;  %v1116_v50 = vsel %vm8845_vm3, %v735_v33, %v1115_v44  ;;  %v115_v7 = vld [vmem:[#allocation2 + $0x168] sm:$0x1] }
  0xea   :  { %v739_v51 = vrot.slane %v737_v24, 7  ;;  %v1852_v52 = vor.u32 %v1851_v46, %v1847_v45  ;;  %v1211_v53 = vld [vmem:[#allocation2 + $0x148] sm:$0xf]  ;;  %v1862_v55 = vrot.slane %v1860_v47, 4  ;;  %1113 = vst [vmem:[#allocation2 + $0x150] sm:$0xf] %v1112_v40  ;;  %v1848_v0 = vsel %vm8911_vm11, %v1843_v23, %v1847_v45 }
  0xeb   :  { %1117 = vst [vmem:[#allocation2 + $0x158] sm:$0x1] %v1116_v50  ;;  %v747_v56 = vrot.slane %v745_v39, 7  ;;  %v1118_v57 = vld [vmem:[#allocation2 + $0x15c] sm:$0xf]  ;;  %v1865_v59 = vrot.slane %v1863_v48, 5 }
  0xec   :  { %v9506_v58 = vld [vmem:[#allocation2 + $0x14c] sm:$0x1]  ;;  %v1869_v61 = vshll.u32 %v1211_v53, 16  ;;  %v1873_v62 = vshrl.u32 %v1211_v53, 16  ;;  %v742_v63 = vor.u32 %v740_v26, %v739_v51  ;;  %v1853_v4 = vrot.slane %v1852_v52, 4 }
  0xed   :  { %12965 = vst [vmem:[#allocation17_spill] sm:$0xff] %v9506_v58  ;;  %v1879_v5 = vshll.u32 %v9506_v58, 16  ;;  %v743_v6 = vrot.slane %v739_v51, 4  ;;  %v1866_v8 = vor.u32 %v1865_v59, %v1862_v55  ;;  %v748_v11 = vshll.u32 %v281_v21, 16  ;;  %v1122_v13 = vld [vmem:[#allocation2 + $0x164] sm:$0x1] }
  0xee   :  { %v1871_v9 = vrot.slane %v1869_v61, 5  ;;  %v1875_v10 = vrot.slane %v1873_v62, 4  ;;  %v1858_v14 = vsel %vm8911_vm11, %v1853_v4, %v1857_v32  ;;  %v752_v16 = vrot.slane %v747_v56, 4  ;;  %v213_v18 = vld [vmem:[#allocation2 + $0x170] sm:$0x1] }
  0xef   :  { %v1881_v15 = vrot.slane %v1879_v5, 5  ;;  %v1119_v17 = vsel %vm8892_vm10, %v742_v63, %v1118_v57  ;;  %v8106_v19 = vcombine.low %v1848_v0, %v1858_v14  ;;  %v1867_v20 = vrot.slane %v1866_v8, 4  ;;  %v282_v31 = vld [vmem:[%s12912_s0 + $0xd8] sm:$0xf]  ;;  %v283_v46 = vld [vmem:[%s12912_s0 + $0xdc] sm:$0xf] }
  0xf0   :  { %v1876_v23 = vor.u32 %v1875_v10, %v1871_v9  ;;  %v1213_v24 = vld [vmem:[#allocation2 + $0x154] sm:$0xf]  ;;  %v750_v26 = vor.u32 %v748_v11, %v747_v56  ;;  %1120 = vst [vmem:[#allocation2 + $0x15c] sm:$0xf] %v1119_v17  ;;  %v1123_v21 = vsel %vm8845_vm3, %v752_v16, %v1122_v13  ;;  %v116_v30 = vsel %vm8845_vm3, 0, %v115_v7 }
  0xf1   :  { %v1893_v27 = vshll.u32 %v1213_v24, 16  ;;  %v1897_v29 = vshrl.u32 %v1213_v24, 16  ;;  %5087 = vrot.lane.b32.xlu0 %v8106_v19, %s8811_s26  ;;  %v1872_v33 = vsel %vm8911_vm11, %v1867_v20, %v1871_v9  ;;  %v1212_v36 = vld [vmem:[#allocation2 + $0x150] sm:$0xf]  ;;  %1124 = vst [vmem:[#allocation2 + $0x164] sm:$0x1] %v1123_v21 }
  0xf2   :  { %v1877_v34 = vrot.slane %v1876_v23, 4  ;;  %v9525_v38 = vld [vmem:[#allocation2 + $0x158] sm:$0x1]  ;;  %v751_v39 = vsel %vm8886_vm9, %v743_v6, %v750_v26  ;;  %117 = vst [vmem:[#allocation2 + $0x168] sm:$0x1] %v116_v30  ;;  %v214_v37 = vsel %vm8860_vm5, 0, %v213_v18 }
  0xf3   :  { %12966 = vst [vmem:[#allocation18_spill] sm:$0xff] %v9525_v38  ;;  %v1884_v41 = vshrl.u32 %v1212_v36, 16  ;;  %v1887_v43 = vshll.u32 %v1212_v36, 16  ;;  %v1895_v44 = vrot.slane %v1893_v27, 5  ;;  %v1899_v45 = vrot.slane %v1897_v29, 4 }
  0xf4   :  { %1121 = vst.msk [vmem:[#allocation2 + $0x160] sm:$0xf] %vm12943_vm0, %v751_v39  ;;  %215 = vst [vmem:[#allocation2 + $0x170] sm:$0x1] %v214_v37  ;;  %v1882_v32 = vsel %vm8911_vm11, %v1877_v34, %v1881_v15  ;;  %v1903_v47 = vshll.u32 %v9525_v38, 16  ;;  %v754_v48 = vshrl.u32 %v282_v31, 16 }
  0xf5   :  { %v118_v40 = vld [vmem:[#allocation2 + $0x174] sm:$0x1]  ;;  %v8107_v50 = vcombine.low %v1872_v33, %v1882_v32  ;;  %v1886_v51 = vrot.slane %v1884_v41, 4  ;;  %v1889_v52 = vrot.slane %v1887_v43, 5  ;;  %v1900_v53 = vor.u32 %v1899_v45, %v1895_v44  ;;  %v216_v16 = vld [vmem:[#allocation2 + $0x17c] sm:$0x1] }
  0xf6   :  { %v1905_v55 = vrot.slane %v1903_v47, 5  ;;  %v756_v56 = vrot.slane %v754_v48, 7  ;;  %v757_v57 = vshll.u32 %v282_v31, 16  ;;  %v762_v59 = vshrl.u32 %v283_v46, 16  ;;  %v284_v30 = vld [vmem:[%s12912_s0 + $0xe0] sm:$0xf] }
  0xf7   :  { %5089 = vrot.lane.b32.xlu1 %v8107_v50, %s8811_s26  ;;  %v1890_v61 = vor.u32 %v1889_v52, %v1886_v51  ;;  %v1901_v62 = vrot.slane %v1900_v53, 4  ;;  %v1214_v63 = vld [vmem:[#allocation2 + $0x15c] sm:$0xf]  ;;  %v765_v0 = vshll.u32 %v283_v46, 16  ;;  %v119_v4 = vsel %vm8845_vm3, 0, %v118_v40 }
  0xf8   :  { %v1908_v6 = vshrl.u32 %v1214_v63, 16  ;;  %v1911_v7 = vshll.u32 %v1214_v63, 16  ;;  %v760_v8 = vrot.slane %v756_v56, 4  ;;  %120 = vst [vmem:[#allocation2 + $0x174] sm:$0x1] %v119_v4  ;;  %v759_v13 = vor.u32 %v757_v57, %v756_v56 }
  0xf9   :  { %v1891_v9 = vrot.slane %v1890_v61, 4  ;;  %v1906_v10 = vsel %vm8911_vm11, %v1901_v62, %v1905_v55  ;;  %v9544_v11 = vld [vmem:[#allocation2 + $0x164] sm:$0x1]  ;;  %v764_v14 = vrot.slane %v762_v59, 7  ;;  %v1125_v15 = vld [vmem:[#allocation2 + $0x168] sm:$0xf] }
  0xfa   :  { %v1910_v19 = vrot.slane %v1908_v6, 4  ;;  %v1913_v20 = vrot.slane %v1911_v7, 5  ;;  %v1927_v23 = vshll.u32 %v9544_v11, 16  ;;  %v285_v39 = vld [vmem:[%s12912_s0 + $0xe4] sm:$0xf]  ;;  %v217_v48 = vsel %vm8860_vm5, 0, %v216_v16 }
  0xfb   :  { %v1215_v18 = vld [vmem:[#allocation2 + $0x160] sm:$0xf]  ;;  %v1896_v24 = vsel %vm8911_vm11, %v1891_v9, %v1895_v44  ;;  %v767_v29 = vor.u32 %v765_v0, %v764_v14  ;;  %v1129_v21 = vld [vmem:[#allocation2 + $0x170] sm:$0x1]  ;;  %v769_v36 = vrot.slane %v764_v14, 4  ;;  %v1126_v44 = vsel %vm8892_vm10, %v759_v13, %v1125_v15 }
  0xfc   :  { %v1917_v26 = vshll.u32 %v1215_v18, 16  ;;  %v1921_v27 = vshrl.u32 %v1215_v18, 16  ;;  %v8108_v31 = vcombine.low %v1896_v24, %v1906_v10  ;;  %v1914_v33 = vor.u32 %v1913_v20, %v1910_v19  ;;  %v121_v45 = vld [vmem:[#allocation2 + $0x180] sm:$0x1]  ;;  %v219_v46 = vld [vmem:[#allocation2 + $0x188] sm:$0x1] }
  0xfd   :  { %v1929_v34 = vrot.slane %v1927_v23, 5  ;;  %v768_v43 = vsel %vm8886_vm9, %v760_v8, %v767_v29  ;;  %1127 = vst [vmem:[#allocation2 + $0x168] sm:$0xf] %v1126_v44  ;;  %v1130_v47 = vsel %vm8845_vm3, %v769_v36, %v1129_v21  ;;  %v771_v40 = vshrl.u32 %v284_v30, 16  ;;  %v286_v50 = vld [vmem:[%s12912_s0 + $0xe8] sm:$0xf] }
  0xfe   :  { %v1919_v37 = vrot.slane %v1917_v26, 5  ;;  %v1923_v41 = vrot.slane %v1921_v27, 4  ;;  %5091 = vrot.lane.b32.xlu0 %v8108_v31, %s8811_s26  ;;  %v1915_v32 = vrot.slane %v1914_v33, 4  ;;  %1128 = vst.msk [vmem:[#allocation2 + $0x16c] sm:$0xf] %vm12943_vm0, %v768_v43  ;;  %v774_v52 = vshll.u32 %v284_v30, 16 }
  0xff   :  { %1131 = vst [vmem:[#allocation2 + $0x170] sm:$0x1] %v1130_v47  ;;  %218 = vst [vmem:[#allocation2 + $0x17c] sm:$0x1] %v217_v48  ;;  %v779_v53 = vshrl.u32 %v285_v39, 16  ;;  %v782_v55 = vshll.u32 %v285_v39, 16 }
 0x100   :  { %v1924_v51 = vor.u32 %v1923_v41, %v1919_v37  ;;  %v287_v56 = vld [vmem:[%s12912_s0 + $0xec] sm:$0xf]  ;;  %v1920_v57 = vsel %vm8911_vm11, %v1915_v32, %v1919_v37  ;;  %v773_v59 = vrot.slane %v771_v40, 7  ;;  %v122_v61 = vsel %vm8845_vm3, 0, %v121_v45  ;;  %v1132_v6 = vld [vmem:[#allocation2 + $0x174] sm:$0xf] }
 0x101   :  { %v220_v62 = vsel %vm8860_vm5, 0, %v219_v46  ;;  %v124_v63 = vld [vmem:[#allocation2 + $0x18c] sm:$0x1]  ;;  %v781_v4 = vrot.slane %v779_v53, 7  ;;  %123 = vst [vmem:[#allocation2 + $0x180] sm:$0x1] %v122_v61 }
 0x102   :  { %v1925_v0 = vrot.slane %v1924_v51, 4  ;;  %221 = vst [vmem:[#allocation2 + $0x188] sm:$0x1] %v220_v62  ;;  %v788_v7 = vshrl.u32 %v286_v50, 16  ;;  %v791_v8 = vshll.u32 %v286_v50, 16  ;;  %v776_v9 = vor.u32 %v774_v52, %v773_v59 }
 0x103   :  { %v777_v10 = vrot.slane %v773_v59, 4  ;;  %v796_v13 = vshrl.u32 %v287_v56, 16  ;;  %v799_v14 = vshll.u32 %v287_v56, 16  ;;  %v222_v15 = vld [vmem:[#allocation2 + $0x194] sm:$0x1]  ;;  %v784_v18 = vor.u32 %v782_v55, %v781_v4 }
 0x104   :  { %v1930_v16 = vsel %vm8911_vm11, %v1925_v0, %v1929_v34  ;;  %v786_v19 = vrot.slane %v781_v4, 4  ;;  %v790_v20 = vrot.slane %v788_v7, 7  ;;  %v1133_v24 = vsel %vm8892_vm10, %v776_v9, %v1132_v6  ;;  %v1216_v29 = vld [vmem:[#allocation2 + $0x168] sm:$0xf]  ;;  %v288_v36 = vld [vmem:[%s12912_s0 + $0xf0] sm:$0xf] }
 0x105   :  { %v8109_v23 = vcombine.low %v1920_v57, %v1930_v16  ;;  %v798_v26 = vrot.slane %v796_v13, 7  ;;  %v125_v27 = vsel %vm8845_vm3, 0, %v124_v63  ;;  %v1217_v21 = vld [vmem:[#allocation2 + $0x16c] sm:$0xf]  ;;  %v785_v30 = vsel %vm8886_vm9, %v777_v10, %v784_v18  ;;  %1134 = vst [vmem:[#allocation2 + $0x174] sm:$0xf] %v1133_v24 }
 0x106   :  { %v793_v31 = vor.u32 %v791_v8, %v790_v20  ;;  %v794_v33 = vrot.slane %v790_v20, 4  ;;  %126 = vst [vmem:[#allocation2 + $0x18c] sm:$0x1] %v125_v27  ;;  %v223_v34 = vsel %vm8860_vm5, 0, %v222_v15  ;;  %v9592_v39 = vld [vmem:[#allocation2 + $0x170] sm:$0x1] }
 0x107   :  { %5093 = vrot.lane.b32.xlu1 %v8109_v23, %s8811_s26  ;;  %12967 = vst [vmem:[#allocation19_spill] sm:$0xff] %v9592_v39  ;;  %v1932_v37 = vshrl.u32 %v1216_v29, 16  ;;  %v1935_v41 = vshll.u32 %v1216_v29, 16  ;;  %v1941_v43 = vshll.u32 %v1217_v21, 16  ;;  %v1945_v44 = vshrl.u32 %v1217_v21, 16 }
 0x108   :  { %1135 = vst.msk [vmem:[#allocation2 + $0x178] sm:$0xf] %vm12943_vm0, %v785_v30  ;;  %224 = vst [vmem:[#allocation2 + $0x194] sm:$0x1] %v223_v34  ;;  %v9598_v45 = vld [vmem:[%s12912_s0 + $0xf4] sm:$0xf]  ;;  %v801_v48 = vor.u32 %v799_v14, %v798_v26 }
 0x109   :  { %v1951_v32 = vshll.u32 %v9592_v39, 16  ;;  %v1136_v47 = vld [vmem:[#allocation2 + $0x17c] sm:$0x1]  ;;  %v803_v40 = vrot.slane %v798_v26, 4  ;;  %v1934_v50 = vrot.slane %v1932_v37, 4  ;;  %v1937_v51 = vrot.slane %v1935_v41, 5 }
 0x10a   :  { %v1943_v52 = vrot.slane %v1941_v43, 5  ;;  %v1947_v53 = vrot.slane %v1945_v44, 4  ;;  %v1139_v55 = vld [vmem:[#allocation2 + $0x180] sm:$0xf]  ;;  %v1137_v57 = vsel %vm8845_vm3, %v786_v19, %v1136_v47  ;;  %v802_v59 = vsel %vm8886_vm9, %v794_v33, %v801_v48  ;;  %v1143_v62 = vld [vmem:[#allocation2 + $0x188] sm:$0x1] }
 0x10b   :  { %v1953_v56 = vrot.slane %v1951_v32, 5  ;;  %v1140_v61 = vsel %vm8892_vm10, %v793_v31, %v1139_v55  ;;  %v1938_v63 = vor.u32 %v1937_v51, %v1934_v50  ;;  %1138 = vst [vmem:[#allocation2 + $0x17c] sm:$0x1] %v1137_v57  ;;  %1142 = vst.msk [vmem:[#allocation2 + $0x184] sm:$0xf] %vm12943_vm0, %v802_v59  ;;  %v1144_v4 = vsel %vm8845_vm3, %v803_v40, %v1143_v62 }
 0x10c   :  { %v1948_v0 = vor.u32 %v1947_v53, %v1943_v52  ;;  %1141 = vst [vmem:[#allocation2 + $0x180] sm:$0xf] %v1140_v61  ;;  %v805_v6 = vshrl.u32 %v288_v36, 16  ;;  %1145 = vst [vmem:[#allocation2 + $0x188] sm:$0x1] %v1144_v4  ;;  %v808_v9 = vshll.u32 %v288_v36, 16 }
 0x10d   :  { %v813_v10 = vshrl.u32 %v9598_v45, 16  ;;  %v1939_v13 = vrot.slane %v1938_v63, 4  ;;  %v1218_v15 = vld [vmem:[#allocation2 + $0x174] sm:$0xf]  ;;  %v816_v18 = vshll.u32 %v9598_v45, 16  ;;  %vm2155_vm12 = vcmask 1042432  }
 0x10e   :  { %v1949_v14 = vrot.slane %v1948_v0, 4  ;;  %v807_v16 = vrot.slane %v805_v6, 7  ;;  %v1956_v20 = vshrl.u32 %v1218_v15, 16  ;;  %v1959_v23 = vshll.u32 %v1218_v15, 16  ;;  %v1146_v30 = vld [vmem:[#allocation2 + $0x18c] sm:$0xf] }
 0x10f   :  { %v1219_v19 = vld [vmem:[#allocation2 + $0x178] sm:$0xf]  ;;  %v9615_v24 = vrot.slane %v813_v10, 7  ;;  %v1944_v26 = vsel %vm8911_vm11, %v1939_v13, %v1943_v52  ;;  %v9621_v31 = vld [vmem:[#allocation2 + $0xc] sm:$0xf]  ;;  %vm2156_vm13 = vcmask 1046532  }
 0x110   :  { %v1954_v27 = vsel %vm8911_vm11, %v1949_v14, %v1953_v56  ;;  %v1965_v29 = vshll.u32 %v1219_v19, 16  ;;  %v1969_v21 = vshrl.u32 %v1219_v19, 16  ;;  %v1958_v34 = vrot.slane %v1956_v20, 4  ;;  %v9623_v41 = vld [vmem:[#allocation2 + $0x10] sm:$0xf]  ;;  %vm9657_vm14 = vmor %vm2155_vm12, %vm2156_vm13 }
 0x111   :  { %v8110_v33 = vcombine.low %v1944_v26, %v1954_v27  ;;  %v1961_v36 = vrot.slane %v1959_v23, 5  ;;  %v810_v37 = vor.u32 %v808_v9, %v807_v16  ;;  %v9625_v43 = vld [vmem:[#allocation2 + $0x18] sm:$0xf]  ;;  %v811_v32 = vrot.slane %v807_v16, 4  ;;  %v9627_v47 = vld [vmem:[#allocation2 + $0x1c] sm:$0xf] }
 0x112   :  { %v1967_v44 = vrot.slane %v1965_v29, 5  ;;  %v1971_v45 = vrot.slane %v1969_v21, 4  ;;  %v9630_v48 = vld [vmem:[#allocation2 + $0x17c] sm:$0x1]  ;;  %v1221_v51 = vld [vmem:[#allocation2 + $0x184] sm:$0xf]  ;;  %v818_v62 = vor.u32 %v816_v18, %v9615_v24 }
 0x113   :  { %5095 = vrot.lane.b32.xlu0 %v8110_v33, %s8811_s26  ;;  %v1962_v40 = vor.u32 %v1961_v36, %v1958_v34  ;;  %v1220_v50 = vld [vmem:[#allocation2 + $0x180] sm:$0xf]  ;;  %v1147_v52 = vsel %vm8892_vm10, %v810_v37, %v1146_v30  ;;  %v1975_v57 = vshll.u32 %v9630_v48, 16  ;;  %v9639_v59 = vld [vmem:[#allocation2 + $0x188] sm:$0x1]  ;;  %v1989_v4 = vshll.u32 %v1221_v51, 16 }
 0x114   :  { %v1972_v56 = vor.u32 %v1971_v45, %v1967_v44  ;;  %12968 = vst [vmem:[#allocation20_spill] sm:$0xff] %v9639_v59  ;;  %v1980_v61 = vshrl.u32 %v1220_v50, 16  ;;  %1148 = vst [vmem:[#allocation2 + $0x18c] sm:$0xf] %v1147_v52  ;;  %v1983_v0 = vshll.u32 %v1220_v50, 16  ;;  %v1993_v6 = vshrl.u32 %v1221_v51, 16 }
 0x115   :  { %v1963_v63 = vrot.slane %v1962_v40, 4  ;;  %v2027_v9 = vld [vmem:[#allocation2] sm:$0xe]  ;;  %v1977_v13 = vrot.slane %v1975_v57, 5  ;;  %v1999_v15 = vshll.u32 %v9639_v59, 16  ;;  %v1991_v20 = vrot.slane %v1989_v4, 5 }
 0x116   :  { %v1973_v10 = vrot.slane %v1972_v56, 4  ;;  %v1982_v14 = vrot.slane %v1980_v61, 4  ;;  %v1985_v19 = vrot.slane %v1983_v0, 5  ;;  %v1995_v23 = vrot.slane %v1993_v6, 4  ;;  %v1150_v29 = vld [vmem:[#allocation2 + $0x194] sm:$0x1] }
 0x117   :  { %v1968_v16 = vsel %vm8911_vm11, %v1963_v63, %v1967_v44  ;;  %v2001_v26 = vrot.slane %v1999_v15, 5  ;;  %v819_v27 = vsel %vm8886_vm9, %v811_v32, %v818_v62  ;;  %v7954_v21 = vrot.slane %v2027_v9, 9  ;;  %v9651_v37 = vld [vmem:[#allocation2 + $0x18] sm:$0xf]  ;;  %v9661_v32 = vld [vmem:[#allocation2 + $0x4] sm:$0xf] }
 0x118   :  { %v1978_v18 = vsel %vm8911_vm11, %v1973_v10, %v1977_v13  ;;  %v1986_v33 = vor.u32 %v1985_v19, %v1982_v14  ;;  %v1996_v34 = vor.u32 %v1995_v23, %v1991_v20  ;;  %v820_v36 = vrot.slane %v9615_v24, 4  ;;  %1149 = vst.msk [vmem:[#allocation2 + $0x190] sm:$0xf] %vm12943_vm0, %v819_v27  ;;  %v8693_v51 = vld [vmem:[#allocation2 + $0x8] sm:$0x1] }
 0x119   :  { %v8111_v30 = vcombine.low %v1968_v16, %v1978_v18  ;;  %v2160_v50 = vrot.slane %v9661_v32, 5  ;;  %v2163_v24 = vrot.slane %v8693_v51, 5  ;;  %v9664_v52 = vld [vmem:[#allocation2 + $0x1c] sm:$0xf]  ;;  %v2028_v63 = vld [vmem:[#allocation2 + $0xc] sm:$0xe] }
 0x11a   :  { %v1987_v56 = vrot.slane %v1986_v33, 4  ;;  %v1997_v57 = vrot.slane %v1996_v34, 4  ;;  %v1151_v61 = vsel %vm8845_vm3, %v820_v36, %v1150_v29  ;;  %v9671_v10 = vld [vmem:[#allocation2 + $0x10] sm:$0xf]  ;;  %v2029_v14 = vld [vmem:[#allocation2 + $0x18] sm:$0xe] }
 0x11b   :  { %5097 = vrot.lane.b32.xlu1 %v8111_v30, %s8811_s26  ;;  %v1222_v62 = vld [vmem:[#allocation2 + $0x18c] sm:$0xf]  ;;  %1152 = vst [vmem:[#allocation2 + $0x194] sm:$0x1] %v1151_v61  ;;  %v2162_v9 = vrot.slane %v2160_v50, 4  ;;  %v2167_v13 = vrot.slane %v9671_v10, 5  ;;  %v2161_v19 = vsel %vm9657_vm14, %v7954_v21, %v2160_v50 }
 0x11c   :  { %v2004_v4 = vshrl.u32 %v1222_v62, 16  ;;  %v2007_v6 = vshll.u32 %v1222_v62, 16  ;;  %v1992_v15 = vsel %vm8911_vm11, %v1987_v56, %v1991_v20  ;;  %v2002_v16 = vsel %vm8911_vm11, %v1997_v57, %v2001_v26  ;;  %v9680_v23 = vld [vmem:[#allocation2] sm:$0xf]  ;;  %v8696_v36 = vld [vmem:[#allocation2 + $0x14] sm:$0x1] }
 0x11d   :  { %v8112_v27 = vcombine.low %v1992_v15, %v2002_v16  ;;  %v2164_v33 = vsel %vm9657_vm14, %v2162_v9, %v2163_v24  ;;  %v7955_v34 = vrot.slane %v2028_v63, 9  ;;  %v2170_v20 = vrot.slane %v8696_v36, 5  ;;  %v9686_v56 = vld [vmem:[#allocation2 + $0x1c] sm:$0xf]  ;;  %v2031_v21 = vld [vmem:[#allocation2 + $0x30] sm:$0xe] }
 0x11e   :  { %v2006_v29 = vrot.slane %v2004_v4, 4  ;;  %v2009_v30 = vrot.slane %v2007_v6, 5  ;;  %v7956_v51 = vrot.slane %v2029_v14, 9  ;;  %v2174_v26 = vrot.slane %v9686_v56, 5  ;;  %v8698_v4 = vld [vmem:[#allocation2 + $0x20] sm:$0x1] }
 0x11f   :  { %5099 = vrot.lane.b32.xlu0 %v8112_v27, %s8811_s26  ;;  %v1223_v50 = vld [vmem:[#allocation2 + $0x190] sm:$0xf]  ;;  %v8114_v61 = vcombine.low %v2161_v19, %v2164_v33  ;;  %v2169_v62 = vrot.slane %v2167_v13, 4  ;;  %v2177_v6 = vrot.slane %v8698_v4, 5  ;;  %v9690_v15 = vld [vmem:[#allocation2 + $0x24] sm:$0xf] }
 0x120   :  { %v2010_v57 = vor.u32 %v2009_v30, %v2006_v29  ;;  %v2013_v24 = vshll.u32 %v1223_v50, 16  ;;  %v2017_v63 = vshrl.u32 %v1223_v50, 16  ;;  %v2175_v9 = vsel %vm9657_vm14, %v7956_v51, %v2174_v26  ;;  %v9694_v16 = vld [vmem:[#allocation2 + $0x28] sm:$0xf]  ;;  %v2030_v45 = vld [vmem:[#allocation2 + $0x24] sm:$0xe] }
 0x121   :  { %v2176_v14 = vrot.slane %v2174_v26, 4  ;;  %v9696_v44 = vld [vmem:[#allocation2 + $0x28] sm:$0xf]  ;;  %v7958_v19 = vrot.slane %v2031_v21, 9  ;;  %v9705_v26 = vld [vmem:[#allocation2 + $0x34] sm:$0xf]  ;;  %v9713_v21 = vsel %vm9657_vm14, %v7955_v34, %v2167_v13 }
 0x122   :  { %v2011_v36 = vrot.slane %v2010_v57, 4  ;;  %v2181_v27 = vrot.slane %v9696_v44, 5  ;;  %v9701_v30 = vld [vmem:[#allocation2 + $0x194] sm:$0x1]  ;;  %v2015_v33 = vrot.slane %v2013_v24, 5  ;;  %v2019_v50 = vrot.slane %v2017_v63, 4 }
 0x123   :  { %12971 = vst [vmem:[#allocation21_spill] sm:$0xff] %v9701_v30  ;;  %v2178_v51 = vsel %vm9657_vm14, %v2176_v14, %v2177_v6  ;;  %v2188_v57 = vrot.slane %v9705_v26, 5  ;;  %v2023_v8 = vshll.u32 %v9701_v30, 16  ;;  %5199 = vrot.lane.b32.xlu0 %v8114_v61, %s8812_s29  ;;  %v9717_v6 = vsel %vm9657_vm14, %v2169_v62, %v2170_v20  ;;  %v8701_v7 = vld [vmem:[#allocation2 + $0x2c] sm:$0x1] }
 0x124   :  { %v8116_v24 = vcombine.low %v2175_v9, %v2178_v51  ;;  %v2020_v63 = vor.u32 %v2019_v50, %v2015_v33  ;;  %v7957_v14 = vrot.slane %v2030_v45, 9  ;;  %v2184_v46 = vrot.slane %v8701_v7, 5  ;;  %v2032_v17 = vld [vmem:[#allocation2 + $0x3c] sm:$0xe]  ;;  %v2033_v4 = vld [vmem:[#allocation2 + $0x48] sm:$0xe] }
 0x125   :  { %v2025_v5 = vrot.slane %v2023_v8, 5  ;;  %v2189_v29 = vsel %vm9657_vm14, %v7958_v19, %v2188_v57  ;;  %v2190_v61 = vrot.slane %v2188_v57, 4  ;;  %v8702_v18 = vld [vmem:[#allocation2 + $0x38] sm:$0x1]  ;;  %v2016_v13 = vsel %vm8911_vm11, %v2011_v36, %v2015_v33  ;;  %v9723_v50 = vld [vmem:[#allocation2 + $0x40] sm:$0xf] }
 0x126   :  { %v2191_v0 = vrot.slane %v8702_v18, 5  ;;  %v2021_v34 = vrot.slane %v2020_v63, 4  ;;  %v2183_v9 = vrot.slane %v2181_v27, 4  ;;  %v2195_v45 = vrot.slane %v9723_v50, 5  ;;  %v9729_v62 = vld [vmem:[#allocation2 + $0x4c] sm:$0xf] }
 0x127   :  { %5203 = vrot.lane.b32.xlu0 %v8116_v24, %s8812_s29  ;;  %v7959_v8 = vrot.slane %v2032_v17, 9  ;;  %v7960_v20 = vrot.slane %v2033_v4, 9  ;;  %v2202_v18 = vrot.slane %v9729_v62, 5  ;;  %v8705_v51 = vld [vmem:[#allocation2 + $0x44] sm:$0x1]  ;;  %v2182_v58 = vsel %vm9657_vm14, %v7957_v14, %v2181_v27 }
 0x128   :  { %v2192_v7 = vsel %vm9657_vm14, %v2190_v61, %v2191_v0  ;;  %v2026_v36 = vsel %vm8911_vm11, %v2021_v34, %v2025_v5  ;;  %v2197_v33 = vrot.slane %v2195_v45, 4  ;;  %v2198_v57 = vrot.slane %v8705_v51, 5  ;;  %v2034_v63 = vld [vmem:[#allocation2 + $0x54] sm:$0xe]  ;;  %v2035_v55 = vld [vmem:[#allocation2 + $0x60] sm:$0xe] }
 0x129   :  { %v8118_v19 = vcombine.low %v2189_v29, %v2192_v7  ;;  %v8113_v53 = vcombine.low %v2016_v13, %v2026_v36  ;;  %v2203_v24 = vsel %vm9657_vm14, %v7960_v20, %v2202_v18  ;;  %v2204_v0 = vrot.slane %v2202_v18, 4  ;;  %v8706_v17 = vld [vmem:[#allocation2 + $0x50] sm:$0x1]  ;;  %v9742_v29 = vld [vmem:[#allocation2 + $0x58] sm:$0xf] }
 0x12a   :  { %v2205_v4 = vrot.slane %v8706_v17, 5  ;;  %v8115_v61 = vcombine.low %v9713_v21, %v9717_v6  ;;  %v2185_v5 = vsel %vm9657_vm14, %v2183_v9, %v2184_v46  ;;  %v2209_v34 = vrot.slane %v9742_v29, 5  ;;  %v9749_v21 = vld [vmem:[#allocation2 + $0x64] sm:$0xf]  ;;  %v2037_v6 = vld [vmem:[#allocation2 + $0x78] sm:$0xe] }
 0x12b   :  { %5101 = vrot.lane.b32.xlu1 %v8113_v53, %s8811_s26  ;;  %5207 = vrot.lane.b32.xlu0 %v8118_v19, %s8812_s29  ;;  %v7961_v7 = vrot.slane %v2034_v63, 9  ;;  %v7962_v20 = vrot.slane %v2035_v55, 9  ;;  %v2216_v27 = vrot.slane %v9749_v21, 5  ;;  %v9754_v46 = vsel %vm9657_vm14, %v7959_v8, %v2195_v45  ;;  %v8709_v9 = vld [vmem:[#allocation2 + $0x68] sm:$0x1]  ;;  %s8813_s26 = smov 12  }
 0x12c   :  { %v2206_v13 = vsel %vm9657_vm14, %v2204_v0, %v2205_v4  ;;  %v9758_v14 = vsel %vm9657_vm14, %v2197_v33, %v2198_v57  ;;  %v2219_v18 = vrot.slane %v8709_v9, 5  ;;  %v2211_v36 = vrot.slane %v2209_v34, 4  ;;  %v8710_v19 = vld [vmem:[#allocation2 + $0x5c] sm:$0x1]  ;;  %v2036_v17 = vld [vmem:[#allocation2 + $0x6c] sm:$0xe] }
 0x12d   :  { %v8120_v53 = vcombine.low %v2203_v24, %v2206_v13  ;;  %v2212_v51 = vrot.slane %v8710_v19, 5  ;;  %v2217_v55 = vsel %vm9657_vm14, %v7962_v20, %v2216_v27  ;;  %v2218_v63 = vrot.slane %v2216_v27, 4  ;;  %v9762_v4 = vld [vmem:[#allocation2 + $0x70] sm:$0xf]  ;;  %v9765_v28 = vld [vmem:[#allocation2 + $0x7c] sm:$0xf] }
 0x12e   :  { %v8117_v0 = vcombine.low %v2182_v58, %v2185_v5  ;;  %v2223_v45 = vrot.slane %v9762_v4, 5  ;;  %v7964_v8 = vrot.slane %v2037_v6, 9  ;;  %v2230_v33 = vrot.slane %v9765_v28, 5  ;;  %v2039_v13 = vld [vmem:[#allocation2 + $0x90] sm:$0xe] }
 0x12f   :  { %5201 = vrot.lane.b32.xlu1 %v8115_v61, %s8812_s29  ;;  %v8119_v24 = vcombine.low %v9754_v46, %v9758_v14  ;;  %5211 = vrot.lane.b32.xlu0 %v8120_v53, %s8812_s29  ;;  %v9775_v58 = vsel %vm9657_vm14, %v7961_v7, %v2209_v34  ;;  %v2220_v5 = vsel %vm9657_vm14, %v2218_v63, %v2219_v18  ;;  %v8713_v9 = vld [vmem:[#allocation2 + $0x80] sm:$0x1]  ;;  %v2038_v19 = vld [vmem:[#allocation2 + $0x84] sm:$0xe]  ;;  %v7963_v14 = vrot.slane %v2036_v17, 9 }
 0x130   :  { %v8122_v20 = vcombine.low %v2217_v55, %v2220_v5  ;;  %v2231_v27 = vsel %vm9657_vm14, %v7964_v8, %v2230_v33  ;;  %v2232_v6 = vrot.slane %v2230_v33, 4  ;;  %v2233_v61 = vrot.slane %v8713_v9, 5  ;;  %v8714_v53 = vld [vmem:[#allocation2 + $0x74] sm:$0x1]  ;;  %v9783_v34 = vld [vmem:[#allocation2 + $0x88] sm:$0xf] }
 0x131   :  { %v2213_v46 = vsel %vm9657_vm14, %v2211_v36, %v2212_v51  ;;  %v2226_v57 = vrot.slane %v8714_v53, 5  ;;  %v2237_v7 = vrot.slane %v9783_v34, 5  ;;  %v2225_v18 = vrot.slane %v2223_v45, 4  ;;  %v9788_v8 = vld [vmem:[#allocation2 + $0x94] sm:$0xf] }
 0x132   :  { %v2234_v55 = vsel %vm9657_vm14, %v2232_v6, %v2233_v61  ;;  %v7966_v63 = vrot.slane %v2039_v13, 9  ;;  %v2244_v33 = vrot.slane %v9788_v8, 5  ;;  %v2041_v5 = vld [vmem:[#allocation2 + $0xa8] sm:$0xe]  ;;  %v7965_v51 = vrot.slane %v2038_v19, 9 }
 0x133   :  { %5205 = vrot.lane.b32.xlu1 %v8117_v0, %s8812_s29  ;;  %5215 = vrot.lane.b32.xlu0 %v8122_v20, %s8812_s29  ;;  %v8124_v36 = vcombine.low %v2231_v27, %v2234_v55  ;;  %v8717_v17 = vld [vmem:[#allocation2 + $0x8c] sm:$0x1]  ;;  %v8718_v53 = vld [vmem:[#allocation2 + $0x98] sm:$0x1]  ;;  %v2239_v42 = vrot.slane %v2237_v7, 4  ;;  %v8121_v0 = vcombine.low %v9775_v58, %v2213_v46  ;;  %v2224_v20 = vsel %vm9657_vm14, %v7963_v14, %v2223_v45 }
 0x134   :  { %v2240_v9 = vrot.slane %v8717_v17, 5  ;;  %v2247_v38 = vrot.slane %v8718_v53, 5  ;;  %v2245_v13 = vsel %vm9657_vm14, %v7966_v63, %v2244_v33  ;;  %v2246_v6 = vrot.slane %v2244_v33, 4  ;;  %v9795_v61 = vld [vmem:[#allocation2 + $0xa0] sm:$0xf] }
 0x135   :  { %v2251_v12 = vrot.slane %v9795_v61, 5  ;;  %v7968_v27 = vrot.slane %v2041_v5, 9  ;;  %v9801_v19 = vld [vmem:[#allocation2 + $0xac] sm:$0xf]  ;;  %v2042_v17 = vld [vmem:[#allocation2 + $0xb4] sm:$0xe]  ;;  %v2227_v58 = vsel %vm9657_vm14, %v2225_v18, %v2226_v57 }
 0x136   :  { %12972 = vst [vmem:[#allocation22_spill] sm:$0xff] %v9801_v19  ;;  %v2258_v55 = vrot.slane %v9801_v19, 5  ;;  %v2248_v53 = vsel %vm9657_vm14, %v2246_v6, %v2247_v38  ;;  %v7967_v63 = vrot.slane %v2040_v3, 9  ;;  %v2254_v25 = vrot.slane %v8721_v49, 5  ;;  %v8722_v14 = vld [vmem:[#allocation2 + $0xb0] sm:$0x1] }
 0x137   :  { %v2253_v33 = vrot.slane %v2251_v12, 4  ;;  %5209 = vrot.lane.b32.xlu1 %v8119_v24, %s8812_s29  ;;  %5219 = vrot.lane.b32.xlu0 %v8124_v36, %s8812_s29  ;;  %v8126_v45 = vcombine.low %v2245_v13, %v2248_v53  ;;  %v2261_v5 = vrot.slane %v8722_v14, 5  ;;  %v2238_v3 = vsel %vm9657_vm14, %v7965_v51, %v2237_v7  ;;  %v9820_v18 = vld [vmem:[#allocation2 + $0xb8] sm:$0xf]  ;;  %v9823_v6 = vld [vmem:[#allocation2 + $0xdc] sm:$0xf] }
 0x138   :  { %v2260_v46 = vrot.slane %v2258_v55, 4  ;;  %v2241_v49 = vsel %vm9657_vm14, %v2239_v42, %v2240_v9  ;;  %v2259_v38 = vsel %vm9657_vm14, %v7968_v27, %v2258_v55  ;;  %v7969_v24 = vrot.slane %v2042_v17, 9  ;;  %12973 = vst [vmem:[#allocation23_spill] sm:$0xff] %v9820_v18  ;;  %12974 = vst [vmem:[#allocation24_spill] sm:$0xff] %v9823_v6  ;;  %v8725_v51 = vld [vmem:[#allocation2 + $0xe0] sm:$0x1] }
 0x139   :  { %v2265_v36 = vrot.slane %v9820_v18, 5  ;;  %v7970_v13 = vrot.slane %v2043_v54, 9  ;;  %v2272_v53 = vrot.slane %v9823_v6, 5  ;;  %v9828_v7 = vsel %vm9657_vm14, %v7967_v63, %v2251_v12  ;;  %v9834_v27 = vld [vmem:[#allocation2 + $0x18] sm:$0xf] }
 0x13a   :  { %v2262_v57 = vsel %vm9657_vm14, %v2260_v46, %v2261_v5  ;;  %v9832_v42 = vsel %vm9657_vm14, %v2253_v33, %v2254_v25  ;;  %v2275_v9 = vrot.slane %v8725_v51, 5  ;;  %v8123_v54 = vcombine.low %v2224_v20, %v2227_v58  ;;  %v8727_v63 = vld [vmem:[#allocation2 + $0xbc] sm:$0x1]  ;;  %v9865_v18 = vld [vmem:[#allocation2 + $0x20] sm:$0x1] }
 0x13b   :  { %5213 = vrot.lane.b32.xlu1 %v8121_v0, %s8812_s29  ;;  %v8125_v17 = vcombine.low %v2238_v3, %v2241_v49  ;;  %5223 = vrot.lane.b32.xlu0 %v8126_v45, %s8812_s29  ;;  %v8128_v46 = vcombine.low %v2259_v38, %v2262_v57  ;;  %v2274_v12 = vrot.slane %v2272_v53, 4  ;;  %v2268_v14 = vrot.slane %v8727_v63, 5  ;;  %v2044_v45 = vld [vmem:[#allocation2 + $0xe4] sm:$0xe]  ;;  %v9852_v3 = vpop.permute.xlu0 %5041  ;;  %v9854_v49 = vld [vmem:[#allocation2 + $0xe8] sm:$0xf] }
 0x13c   :  { %v2273_v25 = vsel %vm9657_vm14, %v7970_v13, %v2272_v53  ;;  %v2479_v33 = vshrl.u32 %v9621_v31, 16  ;;  %v2482_v5 = vshll.u32 %v9621_v31, 16  ;;  %v8127_v51 = vcombine.low %v9828_v7, %v9832_v42  ;;  %12975 = vst [vmem:[#allocation25_spill] sm:$0xff] %v9854_v49  ;;  %v2446_v7 = vld [vmem:[#allocation2 + $0x14] sm:$0x1] }
 0x13d   :  { %v9848_v0 = vsel %vm9657_vm14, %v7969_v24, %v2265_v36  ;;  %v2267_v20 = vrot.slane %v2265_v36, 4  ;;  %v2276_v58 = vsel %vm9657_vm14, %v2274_v12, %v2275_v9  ;;  %v2279_v38 = vrot.slane %v9854_v49, 5  ;;  %v3248_v30 = vld [vmem:[#allocation2 + $0x24] sm:$0xe] }
 0x13e   :  { %v2481_v57 = vrot.slane %v2479_v33, 4  ;;  %v2484_v13 = vrot.slane %v2482_v5, 5  ;;  %v2492_v53 = vshrl.u32 %v9623_v41, 16  ;;  %v8130_v24 = vcombine.low %v2273_v25, %v2276_v58 }
 0x13f   :  { %5217 = vrot.lane.b32.xlu1 %v8123_v54, %s8812_s29  ;;  %5227 = vrot.lane.b32.xlu0 %v8128_v46, %s8812_s29  ;;  %v2503_v36 = vshrl.u32 %v9625_v43, 16  ;;  %v2506_v42 = vshll.u32 %v9625_v43, 16  ;;  %v2516_v9 = vshrl.u32 %v9627_v47, 16  ;;  %v7971_v12 = vrot.slane %v2044_v45, 9  ;;  %v3246_v54 = vld [vmem:[#allocation2 + $0xc] sm:$0xe] }
 0x140   :  { %v2485_v63 = vor.u32 %v2484_v13, %v2481_v57  ;;  %v2488_v55 = vshll.u32 %v9623_v41, 16  ;;  %v2494_v33 = vrot.slane %v2492_v53, 4  ;;  %v2498_v2 = vshll.u32 %v2446_v7, 16  ;;  %v8729_v46 = vld [vmem:[#allocation2 + $0xec] sm:$0x1] }
 0x141   :  { %v2505_v5 = vrot.slane %v2503_v36, 4  ;;  %v2508_v22 = vrot.slane %v2506_v42, 5  ;;  %v2512_v1 = vshll.u32 %v9627_v47, 16  ;;  %v2281_v49 = vrot.slane %v2279_v38, 4  ;;  %v9873_v36 = vpop.permute.xlu1 %5043  ;;  %v9875_v42 = vpop.permute.xlu0 %5047 }
 0x142   :  { %v2282_v25 = vrot.slane %v8729_v46, 5  ;;  %v2486_v58 = vrot.slane %v2485_v63, 4  ;;  %v2490_v6 = vrot.slane %v2488_v55, 5  ;;  %v2269_v45 = vsel %vm9657_vm14, %v2267_v20, %v2268_v14 }
 0x143   :  { %5221 = vrot.lane.b32.xlu1 %v8125_v17, %s8812_s29  ;;  %5231 = vrot.lane.b32.xlu0 %v8130_v24, %s8812_s29  ;;  %v2500_v57 = vrot.slane %v2498_v2, 5  ;;  %v9871_v13 = vrot.slane %v2512_v1, 5  ;;  %v2518_v53 = vrot.slane %v2516_v9, 4  ;;  %v2509_v63 = vor.u32 %v2508_v22, %v2505_v5  ;;  %v9886_v22 = vld [vmem:[#allocation2 + $0x18] sm:$0xe] }
 0x144   :  { %v2495_v46 = vor.u32 %v2494_v33, %v2490_v6  ;;  %v7986_v55 = vrot.slane %v3246_v54, 9  ;;  %v3376_v19 = vrot.slane %v9623_v41, 5  ;;  %v2280_v14 = vsel %vm9657_vm14, %v7971_v12, %v2279_v38 }
 0x145   :  { %v2522_v20 = vshll.u32 %v9865_v18, 16  ;;  %v3379_v2 = vrot.slane %v2446_v7, 5  ;;  %v2283_v1 = vsel %vm9657_vm14, %v2281_v49, %v2282_v25  ;;  %v2491_v24 = vsel %vm8911_vm11, %v2486_v58, %v2490_v6 }
 0x146   :  { %v2496_v9 = vrot.slane %v2495_v46, 4  ;;  %v3378_v33 = vrot.slane %v3376_v19, 4  ;;  %v8129_v54 = vcombine.low %v9848_v0, %v2269_v45  ;;  %v12976_v38 = vcombine.low %v9621_v31, %v9623_v41  ;;  %v9904_v41 = vpop.permute.xlu1 %5045 }
 0x147   :  { %5225 = vrot.lane.b32.xlu1 %v8127_v51, %s8812_s29  ;;  %v2519_v49 = vor.u32 %v2518_v53, %v9871_v13  ;;  %v3696_v6 = vshrl.u32 %v9651_v37, 16  ;;  %v2510_v12 = vrot.slane %v2509_v63, 4  ;;  %v3377_v25 = vsel %vm9657_vm14, %v7986_v55, %v3376_v19  ;;  %v9906_v53 = vpop.permute.xlu0 %5051  ;;  %v3663_v19 = vld [vmem:[#allocation2 + $0x20] sm:$0x1] }
 0x148   :  { %5391 = vrot.lane.b32.xlu0 %v12976_v38, %s8813_s26  ;;  %v2501_v7 = vsel %vm8911_vm11, %v2496_v9, %v2500_v57  ;;  %v3380_v51 = vsel %vm9657_vm14, %v3378_v33, %v3379_v2  ;;  %v8131_v0 = vcombine.low %v2280_v14, %v2283_v1  ;;  %v2524_v45 = vrot.slane %v2522_v20, 5 }
 0x149   :  { %v8178_v58 = vcombine.low %v2491_v24, %v2501_v7  ;;  %v7987_v31 = vrot.slane %v9886_v22, 9  ;;  %v3383_v46 = vrot.slane %v9627_v47, 5  ;;  %v3698_v38 = vrot.slane %v3696_v6, 4 }
 0x14a   :  { %v3699_v57 = vshll.u32 %v9651_v37, 16  ;;  %v3709_v63 = vshrl.u32 %v9664_v52, 16  ;;  %v2520_v55 = vrot.slane %v2519_v49, 4  ;;  %v8210_v14 = vcombine.low %v3377_v25, %v3380_v51 }
 0x14b   :  { %5229 = vrot.lane.b32.xlu1 %v8129_v54, %s8812_s29  ;;  %v3720_v20 = vshrl.u32 %v9690_v15, 16  ;;  %v3723_v2 = vshll.u32 %v9690_v15, 16  ;;  %v2515_v1 = vsel %vm8911_vm11, %v2510_v12, %v9871_v13  ;;  %v3733_v9 = vshrl.u32 %v9694_v16, 16  ;;  %v9930_v17 = vpop.permute.xlu0 %5055 }
 0x14c   :  { %5551 = vrot.lane.b32.xlu0 %v8178_v58, %s8814_s30  ;;  %v3701_v24 = vrot.slane %v3699_v57, 5  ;;  %v3705_v33 = vshll.u32 %v9664_v52, 16  ;;  %v3711_v6 = vrot.slane %v3709_v63, 4  ;;  %v3715_v7 = vshll.u32 %v3663_v19, 16  ;;  %v4463_v58 = vld [vmem:[#allocation2 + $0x18] sm:$0xe] }
 0x14d   :  { %v3722_v22 = vrot.slane %v3720_v20, 4  ;;  %v3725_v54 = vrot.slane %v3723_v2, 5  ;;  %v3385_v49 = vrot.slane %v3383_v46, 4  ;;  %v3386_v25 = vrot.slane %v9865_v18, 5  ;;  %v9925_v57 = vld [vmem:[#allocation2 + $0x2c] sm:$0x1]  ;;  %v9928_v2 = vpop.permute.xlu1 %5049 }
 0x14e   :  { %v3702_v51 = vor.u32 %v3701_v24, %v3698_v38  ;;  %v3707_v5 = vrot.slane %v3705_v33, 5  ;;  %v2525_v13 = vsel %vm8911_vm11, %v2520_v55, %v2524_v45  ;;  %v3717_v12 = vrot.slane %v3715_v7, 5  ;;  %v9932_v33 = vld [vmem:[#allocation2 + $0xc] sm:$0xf] }
 0x14f   :  { %5233 = vrot.lane.b32.xlu1 %v8131_v0, %s8812_s29  ;;  %v3729_v63 = vshll.u32 %v9694_v16, 16  ;;  %v3735_v20 = vrot.slane %v3733_v9, 4  ;;  %v3726_v24 = vor.u32 %v3725_v54, %v3722_v22  ;;  %v8018_v0 = vrot.slane %v4463_v58, 9 }
 0x150   :  { %5711 = vrot.lane.b32.xlu0 %v8210_v14, %s8815_s4  ;;  %v3703_v18 = vrot.slane %v3702_v51, 4  ;;  %v3712_v38 = vor.u32 %v3711_v6, %v3707_v5  ;;  %v4593_v14 = vrot.slane %v9664_v52, 5  ;;  %v4596_v7 = vrot.slane %v3663_v19, 5 }
 0x151   :  { %v9936_v55 = vrot.slane %v3729_v63, 5  ;;  %v3384_v9 = vsel %vm9657_vm14, %v7987_v31, %v3383_v46  ;;  %v3739_v22 = vshll.u32 %v9925_v57, 16  ;;  %v12977_v54 = vcombine.low %v9625_v43, %v9627_v47  ;;  %v9961_v47 = vld [vmem:[#allocation2 + $0x24] sm:$0xf] }
 0x152   :  { %v3708_v39 = vsel %vm8911_vm11, %v3703_v18, %v3707_v5  ;;  %v3713_v51 = vrot.slane %v3712_v38, 4  ;;  %v8179_v6 = vcombine.low %v2515_v1, %v2525_v13  ;;  %v3387_v58 = vsel %vm9657_vm14, %v3385_v49, %v3386_v25  ;;  %v2386_v49 = vld [vmem:[#allocation2 + $0x24] sm:$0xf]  ;;  %v9972_v18 = vpop.permute.xlu0 %5059 }
 0x153   :  { %5393 = vrot.lane.b32.xlu1 %v12977_v54, %s8813_s26  ;;  %v12978_v31 = vcombine.low %v9651_v37, %v9664_v52  ;;  %v3736_v5 = vor.u32 %v3735_v20, %v9936_v55  ;;  %v4595_v46 = vrot.slane %v4593_v14, 4  ;;  %v9957_v63 = vrot.slane %v3726_v24, 4  ;;  %v4464_v13 = vld [vmem:[#allocation2 + $0x24] sm:$0xe]  ;;  %v9970_v20 = vpop.permute.xlu1 %5053 }
 0x154   :  { %v3718_v19 = vsel %vm8911_vm11, %v3713_v51, %v3717_v12  ;;  %v4594_v43 = vsel %vm9657_vm14, %v8018_v0, %v4593_v14  ;;  %vm6287_vm15 = vcmask 31744   ;;  %v9968_v12 = vld [vmem:[#allocation2 + $0x28] sm:$0xf]  ;;  %v8211_v24 = vcombine.low %v3384_v9, %v3387_v58  ;;  %v9976_v51 = vld [vmem:[#allocation2 + $0x30] sm:$0xf] }
 0x155   :  { %5903 = vrot.lane.b32.xlu0 %v12978_v31, %s8816_s5  ;;  %v8274_v52 = vcombine.low %v3708_v39, %v3718_v19  ;;  %v4597_v25 = vsel %vm9657_vm14, %v4595_v46, %v4596_v7  ;;  %v3741_v0 = vrot.slane %v3739_v22, 5  ;;  %v4600_v14 = vrot.slane %v9694_v16, 5  ;;  %v9980_v46 = vld [vmem:[#allocation2 + $0x34] sm:$0xf]  ;;  %v2448_v19 = vld [vmem:[#allocation2 + $0x2c] sm:$0x1] }
 0x156   :  { %v3737_v39 = vrot.slane %v3736_v5, 4  ;;  %v8306_v7 = vcombine.low %v4594_v43, %v4597_v25  ;;  %v2527_v54 = vshrl.u32 %v2386_v49, 16  ;;  %v2530_v31 = vshll.u32 %v2386_v49, 16 }
 0x157   :  { %5553 = vrot.lane.b32.xlu1 %v8179_v6, %s8814_s30  ;;  %v12979_v9 = vcombine.low %v9680_v23, %v9661_v32  ;;  %v3732_v6 = vsel %vm8911_vm11, %v9957_v63, %v9936_v55  ;;  %v2540_v58 = vshrl.u32 %v9968_v12, 16  ;;  %v8019_v5 = vrot.slane %v4464_v13, 9  ;;  %v10005_v13 = vpop.permute.xlu1 %5057 }
 0x158   :  { %v4603_v43 = vrot.slane %v9925_v57, 5  ;;  %v2532_v25 = vrot.slane %v2530_v31, 5  ;;  %v4602_v38 = vrot.slane %v4600_v14, 4  ;;  %v2551_v37 = vshrl.u32 %v9976_v51, 16 }
 0x159   :  { %6063 = vrot.lane.b32.xlu0 %v8274_v52, %s8817_s6  ;;  %v9988_v22 = vsel %vm6287_vm15, %v12979_v9, %v9810_v35  ;;  %v2529_v52 = vrot.slane %v2527_v54, 4  ;;  %v2554_v32 = vshll.u32 %v9976_v51, 16  ;;  %v2564_v35 = vshrl.u32 %v9980_v46, 16  ;;  %v10007_v54 = vpop.permute.xlu0 %5063 }
 0x15a   :  { %v3742_v23 = vsel %vm8911_vm11, %v3737_v39, %v3741_v0  ;;  %v8148_v57 = vcombine.low %v2386_v49, %v9968_v12  ;;  %v2536_v63 = vshll.u32 %v9968_v12, 16  ;;  %v2553_v31 = vrot.slane %v2551_v37, 4  ;;  %v8732_v49 = vld [vmem:[#allocation2 + $0x30] sm:$0xf] }
 0x15b   :  { %5713 = vrot.lane.b32.xlu1 %v8211_v24, %s8815_s4  ;;  %v2533_v55 = vor.u32 %v2532_v25, %v2529_v52  ;;  %v2556_v9 = vrot.slane %v2554_v32, 5  ;;  %v2542_v1 = vrot.slane %v2540_v58, 4  ;;  %v2546_v45 = vshll.u32 %v2448_v19, 16  ;;  %v10009_v24 = vld [vmem:[#allocation2 + $0x38] sm:$0x1] }
 0x15c   :  { %v12980_v0 = vcombine.low %v9834_v27, %v9686_v56  ;;  %v2538_v25 = vrot.slane %v2536_v63, 5  ;;  %v4601_v37 = vsel %vm9657_vm14, %v8019_v5, %v4600_v14  ;;  %v2560_v32 = vshll.u32 %v9980_v46, 16 }
 0x15d   :  { %6223 = vrot.lane.b32.xlu0 %v8306_v7, %s8818_s7  ;;  %v8054_v7 = vcombine.low %v8732_v49, %v9705_v26  ;;  %v2534_v52 = vrot.slane %v2533_v55, 4  ;;  %v2557_v58 = vor.u32 %v2556_v9, %v2553_v31  ;;  %v2566_v59 = vrot.slane %v2564_v35, 4 }
 0x15e   :  { %v10016_v39 = vsel %vm6287_vm15, %v12980_v0, %v9873_v36  ;;  %v12981_v56 = vcombine.low %v9690_v15, %v9694_v16  ;;  %v8275_v27 = vcombine.low %v3732_v6, %v3742_v23  ;;  %v2543_v36 = vor.u32 %v2542_v1, %v2538_v25  ;;  %v10033_v6 = vpop.permute.xlu1 %5061  ;;  %v10035_v23 = vpop.permute.xlu0 %5067 }
 0x15f   :  { %v2548_v26 = vrot.slane %v2546_v45, 5  ;;  %v2570_v55 = vshll.u32 %v10009_v24, 16  ;;  %v4604_v63 = vsel %vm9657_vm14, %v4602_v38, %v4603_v43  ;;  %v2558_v14 = vrot.slane %v2557_v58, 4  ;;  %v3249_v43 = vld [vmem:[#allocation2 + $0x30] sm:$0xe] }
 0x160   :  { %5905 = vrot.lane.b32.xlu1 %v12981_v56, %s8816_s5  ;;  %v2562_v5 = vrot.slane %v2560_v32, 5  ;;  %v7988_v31 = vrot.slane %v3248_v30, 9  ;;  %v2539_v35 = vsel %vm8911_vm11, %v2534_v52, %v2538_v25  ;;  %v2544_v9 = vrot.slane %v2543_v36, 4  ;;  %v8733_v36 = vld [vmem:[#allocation2 + $0x3c] sm:$0xf] }
 0x161   :  { %5395 = vrot.lane.b32.xlu0 %v8148_v57, %s8813_s26  ;;  %v3390_v15 = vrot.slane %v9968_v12, 5  ;;  %v3393_v16 = vrot.slane %v2448_v19, 5  ;;  %v12982_v45 = vcombine.low %v9932_v33, %v9671_v10  ;;  %v12983_v30 = vcombine.low %v9961_v47, %v9696_v44  ;;  %v10051_v57 = vld [vmem:[#allocation2 + $0x30] sm:$0xf] }
 0x162   :  { %v2567_v12 = vor.u32 %v2566_v59, %v2562_v5  ;;  %v2572_v19 = vrot.slane %v2570_v55, 5  ;;  %v8307_v0 = vcombine.low %v4601_v37, %v4604_v63  ;;  %v2549_v10 = vsel %vm8911_vm11, %v2544_v9, %v2548_v26  ;;  %v10067_v37 = vld [vmem:[#allocation2 + $0x34] sm:$0xf] }
 0x163   :  { %v10042_v1 = vsel %vm6287_vm15, %v12982_v45, %v9852_v3  ;;  %v10049_v38 = vsel %vm6287_vm15, %v12983_v30, %v9904_v41  ;;  %v3391_v3 = vsel %vm9657_vm14, %v7988_v31, %v3390_v15  ;;  %v3392_v33 = vrot.slane %v3390_v15, 4  ;;  %v10083_v31 = vpop.permute.xlu1 %5065  ;;  %v8735_v15 = vld [vmem:[#allocation2 + $0x54] sm:$0xf]  ;;  %v8736_v30 = vld [vmem:[#allocation2 + $0x60] sm:$0xf] }
 0x164   :  { %6065 = vrot.lane.b32.xlu1 %v8275_v27, %s8817_s6  ;;  %v10060_v44 = vsel %vm6287_vm15, %v8054_v7, %v9875_v42  ;;  %v8180_v41 = vcombine.low %v2539_v35, %v2549_v10  ;;  %v2563_v59 = vsel %vm8911_vm11, %v2558_v14, %v2562_v5  ;;  %v2568_v47 = vrot.slane %v2567_v12, 4  ;;  %v10075_v27 = vld [vmem:[#allocation2 + $0x3c] sm:$0xf]  ;;  %v10081_v5 = vld [vmem:[#allocation2 + $0x40] sm:$0xf]  ;;  %v10085_v35 = vpop.permute.xlu0 %5071 }
 0x165   :  { %v3394_v49 = vsel %vm9657_vm14, %v3392_v33, %v3393_v16  ;;  %v7989_v52 = vrot.slane %v3249_v43, 9  ;;  %v3397_v25 = vrot.slane %v9980_v46, 5  ;;  %v3744_v58 = vshrl.u32 %v10051_v57, 16  ;;  %v3665_v43 = vld [vmem:[#allocation2 + $0x38] sm:$0x1] }
 0x166   :  { %5555 = vrot.lane.b32.xlu0 %v8180_v41, %s8814_s30  ;;  %v2573_v42 = vsel %vm8911_vm11, %v2568_v47, %v2572_v19  ;;  %v8212_v7 = vcombine.low %v3391_v3, %v3394_v49  ;;  %v3400_v32 = vrot.slane %v10009_v24, 5  ;;  %v3747_v56 = vshll.u32 %v10051_v57, 16  ;;  %v8734_v24 = vld [vmem:[#allocation2 + $0x48] sm:$0xf] }
 0x167   :  { %v8055_v26 = vcombine.low %v8733_v36, %v9723_v50  ;;  %v8149_v55 = vcombine.low %v9976_v51, %v9980_v46  ;;  %v3399_v63 = vrot.slane %v3397_v25, 4  ;;  %v3746_v14 = vrot.slane %v3744_v58, 4 }
 0x168   :  { %6225 = vrot.lane.b32.xlu1 %v8307_v0, %s8818_s7  ;;  %v8056_v9 = vcombine.low %v8734_v24, %v9729_v62  ;;  %v8057_v16 = vcombine.low %v8735_v15, %v9742_v29  ;;  %v3749_v45 = vrot.slane %v3747_v56, 5  ;;  %v3757_v50 = vshrl.u32 %v10067_v37, 16  ;;  %v10114_v56 = vpop.permute.xlu1 %5069  ;;  %v10116_v36 = vpop.permute.xlu0 %5075 }
 0x169   :  { %v8058_v51 = vcombine.low %v8736_v30, %v9749_v21  ;;  %v8181_v46 = vcombine.low %v2563_v59, %v2573_v42  ;;  %v3768_v12 = vshrl.u32 %v10075_v27, 16  ;;  %v3771_v19 = vshll.u32 %v10075_v27, 16  ;;  %v8737_v30 = vld [vmem:[#allocation2 + $0x6c] sm:$0xf] }
 0x16a   :  { %5715 = vrot.lane.b32.xlu0 %v8212_v7, %s8815_s4  ;;  %v3398_v62 = vsel %vm9657_vm14, %v7989_v52, %v3397_v25  ;;  %v3401_v29 = vsel %vm9657_vm14, %v3399_v63, %v3400_v32  ;;  %v8244_v0 = vcombine.low %v10051_v57, %v10067_v37  ;;  %v3781_v10 = vshrl.u32 %v10081_v5, 16  ;;  %v10111_v57 = vld [vmem:[#allocation2 + $0x44] sm:$0x1]  ;;  %v4465_v32 = vld [vmem:[#allocation2 + $0x30] sm:$0xe] }
 0x16b   :  { %v3770_v21 = vrot.slane %v3768_v12, 4  ;;  %v3773_v3 = vrot.slane %v3771_v19, 5  ;;  %v3750_v33 = vor.u32 %v3749_v45, %v3746_v14  ;;  %v3753_v41 = vshll.u32 %v10067_v37, 16 }
 0x16c   :  { %5397 = vrot.lane.b32.xlu1 %v8149_v55, %s8813_s26  ;;  %v10105_v59 = vsel %vm6287_vm15, %v8055_v26, %v9928_v2  ;;  %v10109_v47 = vsel %vm6287_vm15, %v8056_v9, %v9906_v53  ;;  %v3759_v49 = vrot.slane %v3757_v50, 4  ;;  %v3763_v52 = vshll.u32 %v3665_v43, 16  ;;  %v4466_v50 = vld [vmem:[#allocation2 + $0x3c] sm:$0xe] }
 0x16d   :  { %v3751_v25 = vrot.slane %v3750_v33, 4  ;;  %v3755_v58 = vrot.slane %v3753_v41, 5  ;;  %v3774_v42 = vor.u32 %v3773_v3, %v3770_v21  ;;  %v3777_v7 = vshll.u32 %v10081_v5, 16  ;;  %v10136_v21 = vld [vmem:[#allocation2 + $0x3c] sm:$0xf]  ;;  %v10143_v33 = vpop.permute.xlu1 %5073 }
 0x16e   :  { %v10120_v2 = vsel %vm6287_vm15, %v8057_v16, %v9970_v20  ;;  %v10124_v53 = vsel %vm6287_vm15, %v8058_v51, %v9930_v17  ;;  %v8213_v26 = vcombine.low %v3398_v62, %v3401_v29  ;;  %5907 = vrot.lane.b32.xlu0 %v8244_v0, %s8816_s5  ;;  %v3783_v55 = vrot.slane %v3781_v10, 4 }
 0x16f   :  { %v3760_v63 = vor.u32 %v3759_v49, %v3755_v58  ;;  %v3765_v14 = vrot.slane %v3763_v52, 5  ;;  %v3775_v24 = vrot.slane %v3774_v42, 4  ;;  %v3779_v9 = vrot.slane %v3777_v7, 5 }
 0x170   :  { %5557 = vrot.lane.b32.xlu1 %v8181_v46, %s8814_s30  ;;  %v3787_v15 = vshll.u32 %v10111_v57, 16  ;;  %v8020_v45 = vrot.slane %v4465_v32, 9  ;;  %v4607_v20 = vrot.slane %v10067_v37, 5  ;;  %v4610_v16 = vrot.slane %v3665_v43, 5  ;;  %v8738_v46 = vld [vmem:[#allocation2 + $0x78] sm:$0xf] }
 0x171   :  { %v8059_v17 = vcombine.low %v8737_v30, %v9762_v4  ;;  %v3756_v51 = vsel %vm8911_vm11, %v3751_v25, %v3755_v58  ;;  %v3761_v12 = vrot.slane %v3760_v63, 4  ;;  %v3784_v19 = vor.u32 %v3783_v55, %v3779_v9  ;;  %v10152_v25 = vld [vmem:[#allocation2 + $0x40] sm:$0xf]  ;;  %v8739_v55 = vld [vmem:[#allocation2 + $0x84] sm:$0xf] }
 0x172   :  { %v8060_v62 = vcombine.low %v8738_v46, %v9765_v28  ;;  %v8245_v29 = vcombine.low %v10075_v27, %v10081_v5  ;;  %v3789_v0 = vrot.slane %v3787_v15, 5  ;;  %v4609_v10 = vrot.slane %v4607_v20, 4  ;;  %v10145_v28 = vpop.permute.xlu0 %5079 }
 0x173   :  { %v3766_v4 = vsel %vm8911_vm11, %v3761_v12, %v3765_v14  ;;  %v3785_v37 = vrot.slane %v3784_v19, 4  ;;  %v4608_v43 = vsel %vm9657_vm14, %v8020_v45, %v4607_v20  ;;  %v8021_v3 = vrot.slane %v4466_v50, 9  ;;  %v8740_v20 = vld [vmem:[#allocation2 + $0x90] sm:$0xf]  ;;  %v8741_v12 = vld [vmem:[#allocation2 + $0x9c] sm:$0xf] }
 0x174   :  { %5717 = vrot.lane.b32.xlu1 %v8213_v26, %s8815_s4  ;;  %v8276_v41 = vcombine.low %v3756_v51, %v3766_v4  ;;  %v3780_v27 = vsel %vm8911_vm11, %v3775_v24, %v3779_v9  ;;  %v4611_v49 = vsel %vm9657_vm14, %v4609_v10, %v4610_v16  ;;  %v4614_v52 = vrot.slane %v10081_v5, 5  ;;  %v10162_v26 = vld [vmem:[#allocation2 + $0x48] sm:$0xf] }
 0x175   :  { %v10156_v58 = vsel %vm6287_vm15, %v8059_v17, %v10005_v13  ;;  %v3790_v42 = vsel %vm8911_vm11, %v3785_v37, %v3789_v0  ;;  %v4617_v7 = vrot.slane %v10111_v57, 5  ;;  %v2575_v32 = vshrl.u32 %v10136_v21, 16  ;;  %v10167_v13 = vld [vmem:[#allocation2 + $0x4c] sm:$0xf]  ;;  %v10177_v17 = vld [vmem:[#allocation2 + $0x44] sm:$0x1] }
 0x176   :  { %v8061_v63 = vcombine.low %v8739_v55, %v9783_v34  ;;  %6067 = vrot.lane.b32.xlu0 %v8276_v41, %s8817_s6  ;;  %v8308_v5 = vcombine.low %v4608_v43, %v4611_v49  ;;  %v4616_v14 = vrot.slane %v4614_v52, 4  ;;  %v2578_v24 = vshll.u32 %v10136_v21, 16  ;;  %v10188_v0 = vpop.permute.xlu0 %5083  ;;  %v10196_v41 = vld [vmem:[#allocation2 + $0x50] sm:$0x1] }
 0x177   :  { %v8277_v9 = vcombine.low %v3780_v27, %v3790_v42  ;;  %v4615_v57 = vsel %vm9657_vm14, %v8021_v3, %v4614_v52  ;;  %v2577_v15 = vrot.slane %v2575_v32, 4  ;;  %v2588_v45 = vshrl.u32 %v10152_v25, 16  ;;  %v12984_v52 = vld [vmem:[#allocation22_spill] sm:$0xff]  ;;  %v3250_v32 = vld [vmem:[#allocation2 + $0x3c] sm:$0xe] }
 0x178   :  { %5909 = vrot.lane.b32.xlu1 %v8245_v29, %s8816_s5  ;;  %v8062_v34 = vcombine.low %v8740_v20, %v9788_v8  ;;  %v4618_v16 = vsel %vm9657_vm14, %v4616_v14, %v4617_v7  ;;  %v2580_v50 = vrot.slane %v2578_v24, 5  ;;  %v2599_v30 = vshrl.u32 %v10162_v26, 16  ;;  %v10186_v8 = vpop.permute.xlu1 %5077 }
 0x179   :  { %v10181_v51 = vsel %vm6287_vm15, %v8060_v62, %v9972_v18  ;;  %v8063_v19 = vcombine.low %v8741_v12, %v9795_v61  ;;  %v2602_v46 = vshll.u32 %v10162_v26, 16  ;;  %v2612_v29 = vshrl.u32 %v10167_v13, 16 }
 0x17a   :  { %6227 = vrot.lane.b32.xlu0 %v8308_v5, %s8818_s7  ;;  %v8309_v10 = vcombine.low %v4615_v57, %v4618_v16  ;;  %v8150_v4 = vcombine.low %v10136_v21, %v10152_v25  ;;  %v2601_v37 = vrot.slane %v2599_v30, 4  ;;  %v2581_v18 = vor.u32 %v2580_v50, %v2577_v15  ;;  %v8742_v21 = vld [vmem:[#allocation2 + $0xa8] sm:$0xf]  ;;  %v10219_v50 = vpop.permute.xlu0 %5087 }
 0x17b   :  { %v2604_v62 = vrot.slane %v2602_v46, 5  ;;  %v2584_v61 = vshll.u32 %v10152_v25, 16  ;;  %v2590_v43 = vrot.slane %v2588_v45, 4  ;;  %v2594_v3 = vshll.u32 %v10177_v17, 16  ;;  %v3251_v16 = vld [vmem:[#allocation2 + $0x48] sm:$0xe] }
 0x17c   :  { %6069 = vrot.lane.b32.xlu1 %v8277_v9, %s8817_s6  ;;  %v10200_v27 = vsel %vm6287_vm15, %v8061_v63, %v10033_v6  ;;  %v10204_v49 = vsel %vm6287_vm15, %v8062_v34, %v10007_v54  ;;  %v8064_v42 = vcombine.low %v8742_v21, %v12984_v52  ;;  %v2608_v7 = vshll.u32 %v10167_v13, 16  ;;  %v10217_v34 = vpop.permute.xlu1 %5081  ;;  %v12985_v46 = vld [vmem:[#allocation23_spill] sm:$0xff] }
 0x17d   :  { %v2582_v55 = vrot.slane %v2581_v18, 4  ;;  %v2586_v5 = vrot.slane %v2584_v61, 5  ;;  %v2605_v14 = vor.u32 %v2604_v62, %v2601_v37  ;;  %v2614_v24 = vrot.slane %v2612_v29, 4 }
 0x17e   :  { %v10210_v9 = vsel %vm6287_vm15, %v8063_v19, %v10083_v31  ;;  %5399 = vrot.lane.b32.xlu0 %v8150_v4, %s8813_s26  ;;  %v8151_v54 = vcombine.low %v10162_v26, %v10167_v13  ;;  %v2610_v6 = vrot.slane %v2608_v7, 5  ;;  %v2618_v63 = vshll.u32 %v10196_v41, 16  ;;  %v8743_v19 = vld [vmem:[#allocation2 + $0xb4] sm:$0xf]  ;;  %v8744_v4 = vld [vmem:[#allocation2 + $0xd8] sm:$0xf] }
 0x17f   :  { %v2591_v57 = vor.u32 %v2590_v43, %v2586_v5  ;;  %v2596_v15 = vrot.slane %v2594_v3, 5  ;;  %v2606_v45 = vrot.slane %v2605_v14, 4  ;;  %v7990_v20 = vrot.slane %v3250_v32, 9  ;;  %v3607_v32 = vld [vmem:[#allocation2 + $0x48] sm:$0xf] }
 0x180   :  { %6229 = vrot.lane.b32.xlu1 %v8309_v10, %s8818_s7  ;;  %v2615_v31 = vor.u32 %v2614_v24, %v2610_v6  ;;  %v2620_v30 = vrot.slane %v2618_v63, 5  ;;  %v3404_v12 = vrot.slane %v10152_v25, 5  ;;  %v3407_v26 = vrot.slane %v10177_v17, 5  ;;  %v12986_v10 = vld [vmem:[#allocation24_spill] sm:$0xff]  ;;  %v3609_v24 = vld [vmem:[#allocation2 + $0x54] sm:$0xf] }
 0x181   :  { %v8065_v29 = vcombine.low %v8743_v19, %v12985_v46  ;;  %v8066_v37 = vcombine.low %v8744_v4, %v12986_v10  ;;  %v2587_v18 = vsel %vm8911_vm11, %v2582_v55, %v2586_v5  ;;  %v2592_v62 = vrot.slane %v2591_v57, 4  ;;  %v10252_v57 = vpop.permute.xlu1 %5085 }
 0x182   :  { %v2611_v61 = vsel %vm8911_vm11, %v2606_v45, %v2610_v6  ;;  %v2616_v43 = vrot.slane %v2615_v31, 4  ;;  %v3406_v3 = vrot.slane %v3404_v12, 4  ;;  %v7991_v21 = vrot.slane %v3251_v16, 9  ;;  %v8745_v31 = vld [vmem:[#allocation2 + $0xe4] sm:$0xf] }
 0x183   :  { %v10231_v25 = vsel %vm6287_vm15, %v8064_v42, %v10035_v23  ;;  %v2597_v17 = vsel %vm8911_vm11, %v2592_v62, %v2596_v15  ;;  %v3405_v52 = vsel %vm9657_vm14, %v7990_v20, %v3404_v12  ;;  %v3411_v7 = vrot.slane %v10167_v13, 5  ;;  %v10244_v42 = vld [vmem:[#allocation2 + $0x4c] sm:$0xf]  ;;  %v10254_v15 = vpop.permute.xlu0 %5091  ;;  %v8747_v62 = vld [vmem:[#allocation2 + $0xf4] sm:$0xf] }
 0x184   :  { %5401 = vrot.lane.b32.xlu1 %v8151_v54, %s8813_s26  ;;  %v8182_v55 = vcombine.low %v2587_v18, %v2597_v17  ;;  %v2621_v5 = vsel %vm8911_vm11, %v2616_v43, %v2620_v30  ;;  %v3408_v14 = vsel %vm9657_vm14, %v3406_v3, %v3407_v26  ;;  %v3414_v23 = vrot.slane %v10196_v41, 5  ;;  %12987 = vst [vmem:[#allocation22_spill] sm:$0xff] %v10254_v15  ;;  %v12988_v30 = vld [vmem:[#allocation25_spill] sm:$0xff]  ;;  %v8748_v43 = vld [vmem:[#allocation2 + $0x100] sm:$0xf] }
 0x185   :  { %v10248_v54 = vsel %vm6287_vm15, %v8065_v29, %v10114_v56  ;;  %v8183_v6 = vcombine.low %v2611_v61, %v2621_v5  ;;  %v3412_v13 = vsel %vm9657_vm14, %v7991_v21, %v3411_v7  ;;  %v3413_v63 = vrot.slane %v3411_v7, 4  ;;  %v10261_v56 = vld [vmem:[#allocation2 + $0x58] sm:$0xf]  ;;  %v8746_v18 = vld [vmem:[#allocation2 + $0xf0] sm:$0xf] }
 0x186   :  { %v10258_v45 = vsel %vm6287_vm15, %v8066_v37, %v10085_v35  ;;  %5559 = vrot.lane.b32.xlu0 %v8182_v55, %s8814_s30  ;;  %v8214_v41 = vcombine.low %v3405_v52, %v3408_v14  ;;  %v3792_v20 = vshrl.u32 %v3607_v32, 16  ;;  %v3795_v16 = vshll.u32 %v3607_v32, 16  ;;  %v10268_v37 = vld [vmem:[#allocation2 + $0x50] sm:$0x1]  ;;  %v8749_v3 = vld [vmem:[#allocation2 + $0xfc] sm:$0xf] }
 0x187   :  { %v8067_v12 = vcombine.low %v8745_v31, %v12988_v30  ;;  %v3415_v26 = vsel %vm9657_vm14, %v3413_v63, %v3414_v23  ;;  %v3805_v19 = vshrl.u32 %v10244_v42, 16  ;;  %v3816_v46 = vshrl.u32 %v3609_v24, 16 }
 0x188   :  { %5561 = vrot.lane.b32.xlu1 %v8183_v6, %s8814_s30  ;;  %v8215_v35 = vcombine.low %v3412_v13, %v3415_v26  ;;  %v3794_v29 = vrot.slane %v3792_v20, 4  ;;  %v3797_v4 = vrot.slane %v3795_v16, 5  ;;  %v3819_v10 = vshll.u32 %v3609_v24, 16  ;;  %v10281_v20 = vpop.permute.xlu1 %5089 }
 0x189   :  { %v8068_v61 = vcombine.low %v8746_v18, %v8747_v62  ;;  %v8069_v21 = vcombine.low %v8749_v3, %v8748_v43  ;;  %v3818_v17 = vrot.slane %v3816_v46, 4  ;;  %v3829_v52 = vshrl.u32 %v10261_v56, 16  ;;  %v8751_v46 = vld [vmem:[#allocation2 + $0x108] sm:$0xf]  ;;  %v4468_v3 = vld [vmem:[#allocation2 + $0x54] sm:$0xe] }
 0x18a   :  { %5719 = vrot.lane.b32.xlu0 %v8214_v41, %s8815_s4  ;;  %v8246_v7 = vcombine.low %v3607_v32, %v10244_v42  ;;  %v3821_v55 = vrot.slane %v3819_v10, 5  ;;  %v3798_v5 = vor.u32 %v3797_v4, %v3794_v29  ;;  %v3801_v14 = vshll.u32 %v10244_v42, 16  ;;  %v10283_v41 = vld [vmem:[#allocation2 + $0x5c] sm:$0x1]  ;;  %v10285_v32 = vpop.permute.xlu0 %5095 }
 0x18b   :  { %v10276_v23 = vsel %vm6287_vm15, %v8067_v12, %v10143_v33  ;;  %v8247_v6 = vcombine.low %v3609_v24, %v10261_v56  ;;  %v3807_v13 = vrot.slane %v3805_v19, 4  ;;  %v3811_v63 = vshll.u32 %v10268_v37, 16  ;;  %12989 = vst [vmem:[#allocation23_spill] sm:$0xff] %v10285_v32  ;;  %v4467_v33 = vld [vmem:[#allocation2 + $0x48] sm:$0xe] }
 0x18c   :  { %5721 = vrot.lane.b32.xlu1 %v8215_v35, %s8815_s4  ;;  %v3799_v16 = vrot.slane %v3798_v5, 4  ;;  %v3803_v31 = vrot.slane %v3801_v14, 5  ;;  %v3822_v30 = vor.u32 %v3821_v55, %v3818_v17  ;;  %v3825_v26 = vshll.u32 %v10261_v56, 16  ;;  %v8750_v19 = vld [vmem:[#allocation2 + $0x10c] sm:$0xf] }
 0x18d   :  { %v10290_v12 = vsel %vm6287_vm15, %v8068_v61, %v10116_v36  ;;  %v10294_v24 = vsel %vm6287_vm15, %v8069_v21, %v10186_v8  ;;  %v8070_v35 = vcombine.low %v8751_v46, %v8750_v19  ;;  %v3831_v29 = vrot.slane %v3829_v52, 4  ;;  %v8752_v21 = vld [vmem:[#allocation2 + $0x114] sm:$0xf]  ;;  %v8753_v17 = vld [vmem:[#allocation2 + $0x118] sm:$0xf] }
 0x18e   :  { %5911 = vrot.lane.b32.xlu0 %v8246_v7, %s8816_s5  ;;  %v3808_v4 = vor.u32 %v3807_v13, %v3803_v31  ;;  %v3813_v10 = vrot.slane %v3811_v63, 5  ;;  %v3823_v18 = vrot.slane %v3822_v30, 4  ;;  %v3827_v62 = vrot.slane %v3825_v26, 5  ;;  %v8754_v14 = vld [vmem:[#allocation2 + $0x124] sm:$0xf] }
 0x18f   :  { %v3835_v43 = vshll.u32 %v10283_v41, 16  ;;  %v8022_v36 = vrot.slane %v4467_v33, 9  ;;  %v4621_v61 = vrot.slane %v10244_v42, 5  ;;  %v4624_v8 = vrot.slane %v10268_v37, 5  ;;  %v8755_v13 = vld [vmem:[#allocation2 + $0x120] sm:$0xf]  ;;  %v10305_v42 = vpop.permute.xlu1 %5093 }
 0x190   :  { %5913 = vrot.lane.b32.xlu1 %v8247_v6, %s8816_s5  ;;  %v8071_v55 = vcombine.low %v8752_v21, %v8753_v17  ;;  %v3804_v52 = vsel %vm8911_vm11, %v3799_v16, %v3803_v31  ;;  %v3809_v7 = vrot.slane %v3808_v4, 4  ;;  %v3832_v5 = vor.u32 %v3831_v29, %v3827_v62  ;;  %12990 = vst [vmem:[#allocation24_spill] sm:$0xff] %v10305_v42  ;;  %v10307_v37 = vld [vmem:[#allocation2 + $0x54] sm:$0xf]  ;;  %v8756_v29 = vld [vmem:[#allocation2 + $0x12c] sm:$0xf] }
 0x191   :  { %v8072_v63 = vcombine.low %v8755_v13, %v8754_v14  ;;  %v3837_v6 = vrot.slane %v3835_v43, 5  ;;  %v4622_v30 = vsel %vm9657_vm14, %v8022_v36, %v4621_v61  ;;  %v4623_v26 = vrot.slane %v4621_v61, 4  ;;  %v10309_v33 = vpop.permute.xlu0 %5099  ;;  %v8757_v4 = vld [vmem:[#allocation2 + $0x130] sm:$0xf]  ;;  %v10318_v17 = vld [vmem:[#allocation2 + $0x58] sm:$0xf] }
 0x192   :  { %12991 = vst [vmem:[#allocation25_spill] sm:$0xff] %v10309_v33  ;;  %v3814_v19 = vsel %vm8911_vm11, %v3809_v7, %v3813_v10  ;;  %v3828_v16 = vsel %vm8911_vm11, %v3823_v18, %v3827_v62  ;;  %v3833_v31 = vrot.slane %v3832_v5, 4  ;;  %v8023_v46 = vrot.slane %v4468_v3, 9  ;;  %v2396_v62 = vld [vmem:[#allocation2 + $0x60] sm:$0xf] }
 0x193   :  { %v8073_v43 = vcombine.low %v8756_v29, %v8757_v4  ;;  %v8278_v21 = vcombine.low %v3804_v52, %v3814_v19  ;;  %v4625_v36 = vsel %vm9657_vm14, %v4623_v26, %v4624_v8  ;;  %v4628_v61 = vrot.slane %v10261_v56, 5  ;;  %v10337_v26 = vld [vmem:[#allocation2 + $0x64] sm:$0xf]  ;;  %v8758_v19 = vld [vmem:[#allocation2 + $0x138] sm:$0xf] }
 0x194   :  { %v3838_v14 = vsel %vm8911_vm11, %v3833_v31, %v3837_v6  ;;  %v8310_v10 = vcombine.low %v4622_v30, %v4625_v36  ;;  %v4631_v7 = vrot.slane %v10283_v41, 5  ;;  %v2623_v18 = vshrl.u32 %v10307_v37, 16  ;;  %v10344_v4 = vld [vmem:[#allocation2 + $0x5c] sm:$0x1] }
 0x195   :  { %6071 = vrot.lane.b32.xlu0 %v8278_v21, %s8817_s6  ;;  %v8279_v3 = vcombine.low %v3828_v16, %v3838_v14  ;;  %v4629_v52 = vsel %vm9657_vm14, %v8023_v46, %v4628_v61  ;;  %v4630_v8 = vrot.slane %v4628_v61, 4  ;;  %v2626_v56 = vshll.u32 %v10307_v37, 16  ;;  %v5200_v5 = vpop.permute.xlu0 %5199  ;;  %v8759_v16 = vld [vmem:[#allocation2 + $0x13c] sm:$0xf] }
 0x196   :  { %v10330_v13 = vsel %vm6287_vm15, %v8070_v35, %v10145_v28  ;;  %v10334_v41 = vsel %vm6287_vm15, %v8071_v55, %v10217_v34  ;;  %v2625_v6 = vrot.slane %v2623_v18, 4  ;;  %v2636_v30 = vshrl.u32 %v10318_v17, 16  ;;  %v10342_v28 = vpop.permute.xlu1 %5097 }
 0x197   :  { %v8074_v31 = vcombine.low %v8758_v19, %v8759_v16  ;;  %6073 = vrot.lane.b32.xlu1 %v8279_v3, %s8817_s6  ;;  %v4632_v46 = vsel %vm9657_vm14, %v4630_v8, %v4631_v7  ;;  %v2628_v29 = vrot.slane %v2626_v56, 5  ;;  %12992 = vst [vmem:[#allocation26_spill] sm:$0xff] %v10342_v28  ;;  %v2647_v35 = vshrl.u32 %v2396_v62, 16  ;;  %v10358_v3 = vld [vmem:[#allocation2 + $0x68] sm:$0x1] }
 0x198   :  { %v10348_v34 = vsel %vm6287_vm15, %v8072_v63, %v10188_v0  ;;  %v10352_v55 = vsel %vm6287_vm15, %v8073_v43, %v10252_v57  ;;  %v8311_v21 = vcombine.low %v4629_v52, %v4632_v46  ;;  %v2650_v36 = vshll.u32 %v2396_v62, 16  ;;  %v3252_v43 = vld [vmem:[#allocation2 + $0x54] sm:$0xe]  ;;  %v10371_v19 = vld [vmem:[#allocation2 + $0x148] sm:$0xf] }
 0x199   :  { %12993 = vst [vmem:[#allocation27_spill] sm:$0xff] %v10348_v34  ;;  %12994 = vst [vmem:[#allocation28_spill] sm:$0xff] %v10352_v55  ;;  %6231 = vrot.lane.b32.xlu0 %v8310_v10, %s8818_s7  ;;  %v8152_v61 = vcombine.low %v10307_v37, %v10318_v17  ;;  %v2649_v14 = vrot.slane %v2647_v35, 4  ;;  %v2660_v7 = vshrl.u32 %v10337_v26, 16  ;;  %v2629_v18 = vor.u32 %v2628_v29, %v2625_v6  ;;  %v5204_v8 = vpop.permute.xlu0 %5203  ;;  %v10369_v6 = vld [vmem:[#allocation2 + $0x144] sm:$0xf] }
 0x19a   :  { %v2652_v0 = vrot.slane %v2650_v36, 5  ;;  %v2632_v63 = vshll.u32 %v10318_v17, 16  ;;  %v2638_v56 = vrot.slane %v2636_v30, 4  ;;  %v2642_v57 = vshll.u32 %v10344_v4, 16  ;;  %12996 = vst [vmem:[#allocation30_spill] sm:$0xff] %v10371_v19 }
 0x19b   :  { %v10364_v10 = vsel %vm6287_vm15, %v8074_v31, %v10219_v50  ;;  %6233 = vrot.lane.b32.xlu1 %v8311_v21, %s8818_s7  ;;  %v8153_v37 = vcombine.low %v2396_v62, %v10337_v26  ;;  %vm6384_vm1 = vcmask 64512   ;;  %v2656_v52 = vshll.u32 %v10337_v26, 16  ;;  %v3253_v36 = vld [vmem:[#allocation2 + $0x60] sm:$0xe]  ;;  %v11057_v19 = vld [vmem:[#allocation2 + $0xf4] sm:$0xf] }
 0x19c   :  { %12995 = vst [vmem:[#allocation29_spill] sm:$0xff] %v10364_v10  ;;  %v2630_v16 = vrot.slane %v2629_v18, 4  ;;  %v2634_v46 = vrot.slane %v2632_v63, 5  ;;  %v2653_v29 = vor.u32 %v2652_v0, %v2649_v14  ;;  %v2662_v35 = vrot.slane %v2660_v7, 4  ;;  %v10386_v63 = vld [vmem:[#allocation2 + $0x60] sm:$0xf] }
 0x19d   :  { %5403 = vrot.lane.b32.xlu0 %v8152_v61, %s8813_s26  ;;  %v10376_v50 = vpop.permute.xlu1 %5101  ;;  %v2658_v31 = vrot.slane %v2656_v52, 5  ;;  %v2666_v62 = vshll.u32 %v10358_v3, 16  ;;  %v7992_v21 = vrot.slane %v3252_v43, 9  ;;  %v5208_v33 = vpop.permute.xlu0 %5207  ;;  %v2644_v32 = vrot.slane %v2642_v57, 5  ;;  %v4470_v10 = vld [vmem:[#allocation2 + $0x6c] sm:$0xe] }
 0x19e   :  { %12997 = vst [vmem:[#allocation31_spill] sm:$0xff] %v10376_v50  ;;  %v2639_v28 = vor.u32 %v2638_v56, %v2634_v46  ;;  %v10381_v42 = vsel %vm6384_vm1, %v9988_v22, %v5200_v5  ;;  %v2654_v18 = vrot.slane %v2653_v29, 4  ;;  %v3418_v0 = vrot.slane %v10318_v17, 5 }
 0x19f   :  { %5405 = vrot.lane.b32.xlu1 %v8153_v37, %s8813_s26  ;;  %v2663_v14 = vor.u32 %v2662_v35, %v2658_v31  ;;  %v2668_v61 = vrot.slane %v2666_v62, 5  ;;  %v3421_v7 = vrot.slane %v10344_v4, 5  ;;  %v2635_v43 = vsel %vm8911_vm11, %v2630_v16, %v2634_v46  ;;  %v10402_v46 = vld [vmem:[#allocation2 + $0x64] sm:$0xf] }
 0x1a0   :  { %v2640_v56 = vrot.slane %v2639_v28, 4  ;;  %v2659_v57 = vsel %vm8911_vm11, %v2654_v18, %v2658_v31  ;;  %v7993_v22 = vrot.slane %v3253_v36, 9  ;;  %v3419_v37 = vsel %vm9657_vm14, %v7992_v21, %v3418_v0  ;;  %v3613_v36 = vld [vmem:[#allocation2 + $0x6c] sm:$0xf] }
 0x1a1   :  { %v2664_v5 = vrot.slane %v2663_v14, 4  ;;  %v3420_v52 = vrot.slane %v3418_v0, 4  ;;  %v5202_v29 = vpop.permute.xlu1 %5201  ;;  %v3425_v17 = vrot.slane %v10337_v26, 5  ;;  %v5212_v35 = vpop.permute.xlu0 %5211  ;;  %v10399_v16 = vsel %vm6384_vm1, %v10016_v39, %v5204_v8  ;;  %v10415_v14 = vld [vmem:[#allocation2 + $0x70] sm:$0xf] }
 0x1a2   :  { %v2645_v4 = vsel %vm8911_vm11, %v2640_v56, %v2644_v32  ;;  %v3428_v28 = vrot.slane %v10358_v3, 5  ;;  %v3840_v31 = vshrl.u32 %v10386_v63, 16  ;;  %v10411_v32 = vsel %vm6384_vm1, %v10042_v1, %v5202_v29 }
 0x1a3   :  { %v8184_v62 = vcombine.low %v2635_v43, %v2645_v4  ;;  %v2669_v21 = vsel %vm8911_vm11, %v2664_v5, %v2668_v61  ;;  %v3422_v26 = vsel %vm9657_vm14, %v3420_v52, %v3421_v7  ;;  %v3426_v3 = vsel %vm9657_vm14, %v7993_v22, %v3425_v17  ;;  %v3669_v52 = vld [vmem:[#allocation2 + $0x68] sm:$0x1] }
 0x1a4   :  { %v8185_v39 = vcombine.low %v2659_v57, %v2669_v21  ;;  %v8216_v8 = vcombine.low %v3419_v37, %v3422_v26  ;;  %v3427_v18 = vrot.slane %v3425_v17, 4  ;;  %v3842_v0 = vrot.slane %v3840_v31, 4  ;;  %v10437_v26 = vld [vmem:[#allocation2 + $0x74] sm:$0x1] }
 0x1a5   :  { %5563 = vrot.lane.b32.xlu0 %v8184_v62, %s8814_s30  ;;  %v3843_v61 = vshll.u32 %v10386_v63, 16  ;;  %v3853_v7 = vshrl.u32 %v10402_v46, 16  ;;  %v8248_v1 = vcombine.low %v10386_v63, %v10402_v46  ;;  %v5206_v43 = vpop.permute.xlu1 %5205  ;;  %v10422_v56 = vpop.permute.xlu0 %5215  ;;  %v10429_v22 = vsel %vm6384_vm1, %v10060_v44, %v5208_v33 }
 0x1a6   :  { %5565 = vrot.lane.b32.xlu1 %v8185_v39, %s8814_s30  ;;  %v3429_v57 = vsel %vm9657_vm14, %v3427_v18, %v3428_v28  ;;  %v3864_v5 = vshrl.u32 %v3613_v36, 16  ;;  %v3867_v37 = vshll.u32 %v3613_v36, 16  ;;  %v10433_v63 = vsel %vm6384_vm1, %v10049_v38, %v5206_v43  ;;  %v4469_v38 = vld [vmem:[#allocation2 + $0x60] sm:$0xe] }
 0x1a7   :  { %v8217_v29 = vcombine.low %v3426_v3, %v3429_v57  ;;  %v3845_v17 = vrot.slane %v3843_v61, 5  ;;  %v3877_v4 = vshrl.u32 %v10415_v14, 16  ;;  %v3849_v21 = vshll.u32 %v10402_v46, 16 }
 0x1a8   :  { %v3866_v31 = vrot.slane %v3864_v5, 4  ;;  %v3869_v62 = vrot.slane %v3867_v37, 5  ;;  %v3855_v28 = vrot.slane %v3853_v7, 4  ;;  %v8249_v44 = vcombine.low %v3613_v36, %v10415_v14 }
 0x1a9   :  { %5723 = vrot.lane.b32.xlu0 %v8216_v8, %s8815_s4  ;;  %v3846_v33 = vor.u32 %v3845_v17, %v3842_v0  ;;  %v3859_v39 = vshll.u32 %v3669_v52, 16  ;;  %v5210_v3 = vpop.permute.xlu1 %5209  ;;  %v3873_v18 = vshll.u32 %v10415_v14, 16  ;;  %v5220_v61 = vpop.permute.xlu0 %5219  ;;  %v3851_v43 = vrot.slane %v3849_v21, 5 }
 0x1aa   :  { %5725 = vrot.lane.b32.xlu1 %v8217_v29, %s8815_s4  ;;  %v10445_v57 = vsel %vm6384_vm1, %v10109_v47, %v5212_v35  ;;  %v3870_v7 = vor.u32 %v3869_v62, %v3866_v31  ;;  %v3879_v5 = vrot.slane %v3877_v4, 4  ;;  %v3883_v36 = vshll.u32 %v10437_v26, 16 }
 0x1ab   :  { %v3847_v37 = vrot.slane %v3846_v33, 4  ;;  %v3861_v8 = vrot.slane %v3859_v39, 5  ;;  %v3875_v30 = vrot.slane %v3873_v18, 5  ;;  %v3856_v0 = vor.u32 %v3855_v28, %v3851_v43 }
 0x1ac   :  { %v3871_v17 = vrot.slane %v3870_v7, 4  ;;  %v8024_v50 = vrot.slane %v4469_v38, 9  ;;  %v4635_v15 = vrot.slane %v10402_v46, 5  ;;  %v10452_v29 = vsel %vm6384_vm1, %v10105_v59, %v5210_v3 }
 0x1ad   :  { %5915 = vrot.lane.b32.xlu0 %v8248_v1, %s8816_s5  ;;  %v3880_v47 = vor.u32 %v3879_v5, %v3875_v30  ;;  %v3885_v35 = vrot.slane %v3883_v36, 5  ;;  %v4638_v4 = vrot.slane %v3669_v52, 5  ;;  %v5214_v31 = vpop.permute.xlu1 %5213  ;;  %v5224_v62 = vpop.permute.xlu0 %5223  ;;  %v3852_v21 = vsel %vm8911_vm11, %v3847_v37, %v3851_v43  ;;  %v10459_v1 = vld [vmem:[#allocation2 + $0x6c] sm:$0xf]  ;;  %v10473_v43 = vld [vmem:[#allocation2 + $0x70] sm:$0xf] }
 0x1ae   :  { %5917 = vrot.lane.b32.xlu1 %v8249_v44, %s8816_s5  ;;  %v3857_v28 = vrot.slane %v3856_v0, 4  ;;  %v3876_v46 = vsel %vm8911_vm11, %v3871_v17, %v3875_v30  ;;  %v4637_v33 = vrot.slane %v4635_v15, 4  ;;  %v4636_v59 = vsel %vm9657_vm14, %v8024_v50, %v4635_v15  ;;  %v2400_v5 = vld [vmem:[#allocation2 + $0x78] sm:$0xf]  ;;  %v10488_v0 = vld [vmem:[#allocation2 + $0x7c] sm:$0xf] }
 0x1af   :  { %v3881_v39 = vrot.slane %v3880_v47, 4  ;;  %v10465_v52 = vsel %vm6384_vm1, %v10120_v2, %v5214_v31  ;;  %v8025_v3 = vrot.slane %v4470_v10, 9  ;;  %v4642_v30 = vrot.slane %v10415_v14, 5 }
 0x1b0   :  { %v3862_v44 = vsel %vm8911_vm11, %v3857_v28, %v3861_v8  ;;  %v4639_v18 = vsel %vm9657_vm14, %v4637_v33, %v4638_v4  ;;  %v4645_v38 = vrot.slane %v10437_v26, 5  ;;  %v10480_v2 = vsel %vm6384_vm1, %v10124_v53, %v10422_v56  ;;  %v2454_v28 = vld [vmem:[#allocation2 + $0x74] sm:$0x1] }
 0x1b1   :  { %v8280_v7 = vcombine.low %v3852_v21, %v3862_v44  ;;  %v3886_v15 = vsel %vm8911_vm11, %v3881_v39, %v3885_v35  ;;  %v2671_v10 = vshrl.u32 %v10459_v1, 16  ;;  %v5218_v50 = vpop.permute.xlu1 %5217  ;;  %v10483_v37 = vpop.permute.xlu0 %5227  ;;  %v4643_v26 = vsel %vm9657_vm14, %v8025_v3, %v4642_v30  ;;  %v10506_v3 = vld [vmem:[#allocation2 + $0x80] sm:$0x1] }
 0x1b2   :  { %v8281_v14 = vcombine.low %v3876_v46, %v3886_v15  ;;  %v4644_v8 = vrot.slane %v4642_v30, 4  ;;  %v2674_v36 = vshll.u32 %v10459_v1, 16  ;;  %v8312_v17 = vcombine.low %v4636_v59, %v4639_v18 }
 0x1b3   :  { %6075 = vrot.lane.b32.xlu0 %v8280_v7, %s8817_s6  ;;  %v2673_v53 = vrot.slane %v2671_v10, 4  ;;  %v2684_v56 = vshrl.u32 %v10473_v43, 16  ;;  %v8154_v47 = vcombine.low %v10459_v1, %v10473_v43  ;;  %v10499_v31 = vsel %vm6384_vm1, %v10156_v58, %v5218_v50  ;;  %v3254_v7 = vld [vmem:[#allocation2 + $0x6c] sm:$0xe] }
 0x1b4   :  { %6077 = vrot.lane.b32.xlu1 %v8281_v14, %s8817_s6  ;;  %v4646_v35 = vsel %vm9657_vm14, %v4644_v8, %v4645_v38  ;;  %v2676_v4 = vrot.slane %v2674_v36, 5  ;;  %v2695_v21 = vshrl.u32 %v2400_v5, 16  ;;  %v10503_v33 = vsel %vm6384_vm1, %v10181_v51, %v5220_v61 }
 0x1b5   :  { %v8313_v46 = vcombine.low %v4643_v26, %v4646_v35  ;;  %v2698_v39 = vshll.u32 %v2400_v5, 16  ;;  %v2708_v1 = vshrl.u32 %v10488_v0, 16  ;;  %v5222_v59 = vpop.permute.xlu1 %5221  ;;  %v10508_v44 = vpop.permute.xlu0 %5231  ;;  %v2680_v58 = vshll.u32 %v10473_v43, 16 }
 0x1b6   :  { %v2697_v18 = vrot.slane %v2695_v21, 4  ;;  %v2677_v30 = vor.u32 %v2676_v4, %v2673_v53  ;;  %v2686_v38 = vrot.slane %v2684_v56, 4  ;;  %v8155_v51 = vcombine.low %v2400_v5, %v10488_v0 }
 0x1b7   :  { %6235 = vrot.lane.b32.xlu0 %v8312_v17, %s8818_s7  ;;  %v2700_v15 = vrot.slane %v2698_v39, 5  ;;  %v2690_v61 = vshll.u32 %v2454_v28, 16  ;;  %v10515_v10 = vsel %vm6384_vm1, %v10200_v27, %v5222_v59  ;;  %v2682_v14 = vrot.slane %v2680_v58, 5  ;;  %v3255_v39 = vld [vmem:[#allocation2 + $0x78] sm:$0xe] }
 0x1b8   :  { %6237 = vrot.lane.b32.xlu1 %v8313_v46, %s8818_s7  ;;  %v2678_v50 = vrot.slane %v2677_v30, 4  ;;  %v2704_v26 = vshll.u32 %v10488_v0, 16  ;;  %v2710_v8 = vrot.slane %v2708_v1, 4  ;;  %v10521_v36 = vsel %vm6384_vm1, %v10204_v49, %v5224_v62 }
 0x1b9   :  { %v2701_v17 = vor.u32 %v2700_v15, %v2697_v18  ;;  %v2714_v53 = vshll.u32 %v10506_v3, 16  ;;  %v7994_v5 = vrot.slane %v3254_v7, 9  ;;  %v5226_v56 = vpop.permute.xlu1 %5225  ;;  %v2687_v27 = vor.u32 %v2686_v38, %v2682_v14 }
 0x1ba   :  { %v10524_v35 = vpop.permute.xlu0 %5391  ;;  %v2692_v4 = vrot.slane %v2690_v61, 5  ;;  %v2706_v21 = vrot.slane %v2704_v26, 5  ;;  %v3432_v46 = vrot.slane %v10473_v43, 5  ;;  %v2683_v1 = vsel %vm8911_vm11, %v2678_v50, %v2682_v14  ;;  %v3615_v61 = vld [vmem:[#allocation2 + $0x78] sm:$0xf] }
 0x1bb   :  { %5407 = vrot.lane.b32.xlu0 %v8154_v47, %s8813_s26  ;;  %v2702_v49 = vrot.slane %v2701_v17, 4  ;;  %v2716_v62 = vrot.slane %v2714_v53, 5  ;;  %v3435_v59 = vrot.slane %v2454_v28, 5  ;;  %v2688_v18 = vrot.slane %v2687_v27, 4  ;;  %v10540_v28 = vld [vmem:[#allocation2 + $0x7c] sm:$0xf] }
 0x1bc   :  { %5409 = vrot.lane.b32.xlu1 %v8155_v51, %s8813_s26  ;;  %v2711_v30 = vor.u32 %v2710_v8, %v2706_v21  ;;  %v3434_v58 = vrot.slane %v3432_v46, 4  ;;  %v10533_v38 = vsel %vm6384_vm1, %v10210_v9, %v5226_v56  ;;  %v3433_v47 = vsel %vm9657_vm14, %v7994_v5, %v3432_v46  ;;  %v3617_v56 = vld [vmem:[#allocation2 + $0x84] sm:$0xf] }
 0x1bd   :  { %v2707_v43 = vsel %vm8911_vm11, %v2702_v49, %v2706_v21  ;;  %v7995_v7 = vrot.slane %v3255_v39, 9  ;;  %v3439_v15 = vrot.slane %v10488_v0, 5  ;;  %v5230_v51 = vpop.permute.xlu1 %5229  ;;  %v2693_v14 = vsel %vm8911_vm11, %v2688_v18, %v2692_v4  ;;  %v10559_v39 = vld [vmem:[#allocation2 + $0x88] sm:$0xf]  ;;  %v3671_v49 = vld [vmem:[#allocation2 + $0x80] sm:$0x1] }
 0x1be   :  { %v10542_v50 = vpop.permute.xlu0 %5551  ;;  %v2712_v9 = vrot.slane %v2711_v30, 4  ;;  %v3436_v26 = vsel %vm9657_vm14, %v3434_v58, %v3435_v59  ;;  %v3442_v8 = vrot.slane %v10506_v3, 5  ;;  %v8186_v17 = vcombine.low %v2683_v1, %v2693_v14 }
 0x1bf   :  { %v10552_v0 = vsel %vm6384_vm1, %v10231_v25, %v10483_v37  ;;  %v3440_v53 = vsel %vm9657_vm14, %v7995_v7, %v3439_v15  ;;  %v3441_v5 = vrot.slane %v3439_v15, 4  ;;  %v3888_v4 = vshrl.u32 %v3615_v61, 16 }
 0x1c0   :  { %v2717_v27 = vsel %vm8911_vm11, %v2712_v9, %v2716_v62  ;;  %v3891_v21 = vshll.u32 %v3615_v61, 16  ;;  %v3901_v46 = vshrl.u32 %v10540_v28, 16  ;;  %5567 = vrot.lane.b32.xlu0 %v8186_v17, %s8814_s30  ;;  %v8218_v1 = vcombine.low %v3433_v47, %v3436_v26  ;;  %v10579_v17 = vld [vmem:[#allocation2 + $0x8c] sm:$0x1] }
 0x1c1   :  { %v8187_v3 = vcombine.low %v2707_v43, %v2717_v27  ;;  %v3443_v25 = vsel %vm9657_vm14, %v3441_v5, %v3442_v8  ;;  %v8250_v37 = vcombine.low %v3615_v61, %v10540_v28  ;;  %v5234_v59 = vpop.permute.xlu1 %5233  ;;  %v3890_v30 = vrot.slane %v3888_v4, 4 }
 0x1c2   :  { %v10565_v18 = vpop.permute.xlu0 %5711  ;;  %v8219_v62 = vcombine.low %v3440_v53, %v3443_v25  ;;  %v3893_v58 = vrot.slane %v3891_v21, 5  ;;  %v10569_v7 = vsel %vm6384_vm1, %v10248_v54, %v5230_v51  ;;  %v10575_v43 = vsel %vm6384_vm1, %v10258_v45, %v10508_v44  ;;  %v4471_v45 = vld [vmem:[#allocation2 + $0x78] sm:$0xe] }
 0x1c3   :  { %5569 = vrot.lane.b32.xlu1 %v8187_v3, %s8814_s30  ;;  %v3912_v47 = vshrl.u32 %v3617_v56, 16  ;;  %v3915_v15 = vshll.u32 %v3617_v56, 16  ;;  %v3925_v61 = vshrl.u32 %v10559_v39, 16  ;;  %v3897_v9 = vshll.u32 %v10540_v28, 16 }
 0x1c4   :  { %v3894_v14 = vor.u32 %v3893_v58, %v3890_v30  ;;  %v3903_v26 = vrot.slane %v3901_v46, 4  ;;  %v3907_v8 = vshll.u32 %v3671_v49, 16  ;;  %5727 = vrot.lane.b32.xlu0 %v8218_v1, %s8815_s4  ;;  %v8251_v53 = vcombine.low %v3617_v56, %v10559_v39 }
 0x1c5   :  { %v3914_v54 = vrot.slane %v3912_v47, 4  ;;  %v3917_v51 = vrot.slane %v3915_v15, 5  ;;  %vm6449_vm2 = vcmask 97280   ;;  %v5394_v44 = vpop.permute.xlu1 %5393  ;;  %v3899_v4 = vrot.slane %v3897_v9, 5 }
 0x1c6   :  { %v3895_v27 = vrot.slane %v3894_v14, 4  ;;  %v3909_v21 = vrot.slane %v3907_v8, 5  ;;  %v10587_v46 = vsel %vm6384_vm1, %v10276_v23, %v5234_v59  ;;  %v3921_v1 = vshll.u32 %v10559_v39, 16  ;;  %v4472_v14 = vld [vmem:[#allocation2 + $0x84] sm:$0xe] }
 0x1c7   :  { %v10583_v5 = vpop.permute.xlu0 %5903  ;;  %5729 = vrot.lane.b32.xlu1 %v8219_v62, %s8815_s4  ;;  %v3918_v3 = vor.u32 %v3917_v51, %v3914_v54  ;;  %v3927_v25 = vrot.slane %v3925_v61, 4  ;;  %v3931_v56 = vshll.u32 %v10579_v17, 16  ;;  %v3904_v30 = vor.u32 %v3903_v26, %v3899_v4 }
 0x1c8   :  { %v6451_v58 = vsel %vm6449_vm2, %v10381_v42, %v10524_v35  ;;  %v8026_v47 = vrot.slane %v4471_v45, 9  ;;  %v4649_v15 = vrot.slane %v10540_v28, 5  ;;  %5919 = vrot.lane.b32.xlu0 %v8250_v37, %s8816_s5  ;;  %v3900_v23 = vsel %vm8911_vm11, %v3895_v27, %v3899_v4  ;;  %v2402_v45 = vld [vmem:[#allocation2 + $0x84] sm:$0xf] }
 0x1c9   :  { %v3919_v59 = vrot.slane %v3918_v3, 4  ;;  %v3923_v62 = vrot.slane %v3921_v1, 5  ;;  %v4652_v9 = vrot.slane %v3671_v49, 5  ;;  %v5554_v61 = vpop.permute.xlu1 %5553  ;;  %v3905_v26 = vrot.slane %v3904_v30, 4  ;;  %v10613_v1 = vld [vmem:[#allocation2 + $0x88] sm:$0xf] }
 0x1ca   :  { %v3933_v54 = vrot.slane %v3931_v56, 5  ;;  %v4650_v42 = vsel %vm9657_vm14, %v8026_v47, %v4649_v15  ;;  %v4651_v35 = vrot.slane %v4649_v15, 4  ;;  %v6453_v37 = vsel %vm6449_vm2, %v10411_v32, %v5394_v44 }
 0x1cb   :  { %v10599_v8 = vpop.permute.xlu0 %6063  ;;  %5921 = vrot.lane.b32.xlu1 %v8251_v53, %s8816_s5  ;;  %v3928_v28 = vor.u32 %v3927_v25, %v3923_v62  ;;  %vm6514_vm4 = vcmask 130048   ;;  %v8027_v51 = vrot.slane %v4472_v14, 9  ;;  %v3910_v49 = vsel %vm8911_vm11, %v3905_v26, %v3909_v21 }
 0x1cc   :  { %v3924_v27 = vsel %vm8911_vm11, %v3919_v59, %v3923_v62  ;;  %v4653_v4 = vsel %vm9657_vm14, %v4651_v35, %v4652_v9  ;;  %v4656_v3 = vrot.slane %v10559_v39, 5  ;;  %v8282_v53 = vcombine.low %v3900_v23, %v3910_v49  ;;  %v10620_v59 = vld [vmem:[#allocation2 + $0x90] sm:$0xf] }
 0x1cd   :  { %v3929_v25 = vrot.slane %v3928_v28, 4  ;;  %v6516_v32 = vsel %vm6514_vm4, %v6451_v58, %v10542_v50  ;;  %v4659_v44 = vrot.slane %v10579_v17, 5  ;;  %v5714_v56 = vpop.permute.xlu1 %5713  ;;  %v8314_v21 = vcombine.low %v4650_v42, %v4653_v4  ;;  %v10629_v58 = vld [vmem:[#allocation2 + $0x94] sm:$0xf] }
 0x1ce   :  { %v4658_v47 = vrot.slane %v4656_v3, 4  ;;  %v2719_v15 = vshrl.u32 %v2402_v45, 16  ;;  %v2722_v14 = vshll.u32 %v2402_v45, 16  ;;  %6079 = vrot.lane.b32.xlu0 %v8282_v53, %s8817_s6  ;;  %v4657_v23 = vsel %vm9657_vm14, %v8027_v51, %v4656_v3  ;;  %v10636_v51 = vld [vmem:[#allocation2 + $0x8c] sm:$0x1] }
 0x1cf   :  { %v10618_v30 = vpop.permute.xlu0 %6223  ;;  %v3934_v39 = vsel %vm8911_vm11, %v3929_v25, %v3933_v54  ;;  %v2732_v50 = vshrl.u32 %v10613_v1, 16  ;;  %v8156_v17 = vcombine.low %v2402_v45, %v10613_v1  ;;  %v6518_v35 = vsel %vm6514_vm4, %v6453_v37, %v5554_v61  ;;  %v8647_v61 = vld [vmem:[%s12913_s1 + $0x10] ss:$0 sps:$4 sm:$0x33]  }
 0x1d0   :  { %v8283_v62 = vcombine.low %v3924_v27, %v3934_v39  ;;  %v4660_v9 = vsel %vm9657_vm14, %v4658_v47, %v4659_v44  ;;  %v2721_v26 = vrot.slane %v2719_v15, 4  ;;  %v2724_v42 = vrot.slane %v2722_v14, 5  ;;  %v10649_v15 = vld [vmem:[#allocation2 + $0x98] sm:$0x1]  ;;  %v3256_v39 = vld [vmem:[#allocation2 + $0x84] sm:$0xe] }
 0x1d1   :  { %vm6579_vm6 = vcmask 162816   ;;  %v2743_v54 = vshrl.u32 %v10620_v59, 16  ;;  %v2746_v28 = vshll.u32 %v10620_v59, 16  ;;  %v8315_v45 = vcombine.low %v4657_v23, %v4660_v9 }
 0x1d2   :  { %v5906_v49 = vpop.permute.xlu1 %5905  ;;  %6081 = vrot.lane.b32.xlu1 %v8283_v62, %s8817_s6  ;;  %v6581_v27 = vsel %vm6579_vm6, %v6516_v32, %v10565_v18  ;;  %v2756_v4 = vshrl.u32 %v10629_v58, 16  ;;  %v2725_v3 = vor.u32 %v2724_v42, %v2721_v26  ;;  %6239 = vrot.lane.b32.xlu0 %v8314_v21, %s8818_s7  ;;  %v2728_v44 = vshll.u32 %v10613_v1, 16 }
 0x1d3   :  { %v10645_v37 = vpop.permute.xlu0 %5395  ;;  %v2745_v53 = vrot.slane %v2743_v54, 4  ;;  %v2748_v25 = vrot.slane %v2746_v28, 5  ;;  %v2734_v47 = vrot.slane %v2732_v50, 4  ;;  %v8157_v18 = vcombine.low %v10620_v59, %v10629_v58 }
 0x1d4   :  { %v2726_v32 = vrot.slane %v2725_v3, 4  ;;  %v2738_v14 = vshll.u32 %v10636_v51, 16  ;;  %vm6644_vm7 = vcmask 195584   ;;  %v2730_v23 = vrot.slane %v2728_v44, 5 }
 0x1d5   :  { %v6583_v62 = vsel %vm6579_vm6, %v6518_v35, %v5714_v56  ;;  %vm6924_vm8 = vcmask 1041408   ;;  %v2749_v21 = vor.u32 %v2748_v25, %v2745_v53  ;;  %v6646_v50 = vsel %vm6644_vm7, %v6581_v27, %v10583_v5  ;;  %v3257_v53 = vld [vmem:[#allocation2 + $0x90] sm:$0xe] }
 0x1d6   :  { %v10655_v9 = vpop.permute.xlu1 %6065  ;;  %6241 = vrot.lane.b32.xlu1 %v8315_v45, %s8818_s7  ;;  %8612 = vmatprep.subr.msk.bf16.mxu0 %vm6924_vm8, %v8647_v61  ;;  %v2752_v59 = vshll.u32 %v10629_v58, 16  ;;  %v2758_v26 = vrot.slane %v2756_v4, 4  ;;  %v2762_v42 = vshll.u32 %v10649_v15, 16  ;;  %v2735_v54 = vor.u32 %v2734_v47, %v2730_v23  ;;  %v8648_v45 = vld [vmem:[%s12913_s1 + $0x8] sm:$0xff]  }
 0x1d7   :  { %5411 = vrot.lane.b32.xlu0 %v8156_v17, %s8813_s26  ;;  %v2740_v56 = vrot.slane %v2738_v14, 5  ;;  %v2750_v35 = vrot.slane %v2749_v21, 4  ;;  %v7996_v28 = vrot.slane %v3256_v39, 9  ;;  %8613 = vmatprep.subr.msk.bf16.mxu1 %vm6924_vm8, %v8647_v61  ;;  %v2731_v5 = vsel %vm8911_vm11, %v2726_v32, %v2730_v23 }
 0x1d8   :  { %v2754_v27 = vrot.slane %v2752_v59, 5  ;;  %v3446_v4 = vrot.slane %v10613_v1, 5  ;;  %v3449_v3 = vrot.slane %v10636_v51, 5  ;;  %v10672_v17 = vpop.permute.xlu0 %5555  ;;  %v2736_v25 = vrot.slane %v2735_v54, 4  ;;  %v10681_v51 = vld [vmem:[#allocation2 + $0x90] sm:$0xf] }
 0x1d9   :  { %v2764_v44 = vrot.slane %v2762_v42, 5  ;;  %v6926_v47 = vsel %vm6924_vm8, %v8647_v61, 0  ;;  %v6648_v14 = vsel %vm6644_vm7, %v6583_v62, %v5906_v49  ;;  %vm6709_vm12 = vcmask 228352   ;;  %v8650_v59 = vld [vmem:[%s12913_s1] sm:$0xff]  }
 0x1da   :  { %v10676_v39 = vpop.permute.xlu1 %6225  ;;  %5413 = vrot.lane.b32.xlu1 %v8157_v18, %s8813_s26  ;;  %v2759_v21 = vor.u32 %v2758_v26, %v2754_v27  ;;  %v3447_v32 = vsel %vm9657_vm14, %v7996_v28, %v3446_v4  ;;  %v3448_v1 = vrot.slane %v3446_v4, 4  ;;  %8537 = vmatpush3.bf16.msra.mxu0 %v6926_v47  ;;  %v2741_v23 = vsel %vm8911_vm11, %v2736_v25, %v2740_v56  ;;  %v10688_v18 = vld [vmem:[#allocation2 + $0x94] sm:$0xf] }
 0x1db   :  { %v2755_v61 = vsel %vm8911_vm11, %v2750_v35, %v2754_v27  ;;  %8538 = vmatprep.subr.bf16.mxu0 %v8648_v45  ;;  %v7997_v49 = vrot.slane %v3257_v53, 9  ;;  %v3453_v62 = vrot.slane %v10629_v58, 5  ;;  %8609 = vmatpush3.bf16.msra.mxu1 %v6926_v47  ;;  %v8188_v26 = vcombine.low %v2731_v5, %v2741_v23  ;;  %v10701_v53 = vld [vmem:[#allocation2 + $0x9c] sm:$0xf] }
 0x1dc   :  { %v2760_v42 = vrot.slane %v2759_v21, 4  ;;  %v3450_v54 = vsel %vm9657_vm14, %v3448_v1, %v3449_v3  ;;  %v3456_v56 = vrot.slane %v10649_v15, 5  ;;  %v10696_v28 = vpop.permute.xlu0 %5715  ;;  %8607 = vmatprep.subr.bf16.mxu1 %v8648_v45  ;;  %v6711_v58 = vsel %vm6709_vm12, %v6646_v50, %v10599_v8  ;;  %v10712_v8 = vld [vmem:[#allocation2 + $0xa0] sm:$0xf] }
 0x1dd   :  { %v8220_v35 = vcombine.low %v3447_v32, %v3450_v54  ;;  %v3455_v27 = vrot.slane %v3453_v62, 4  ;;  %v3936_v4 = vshrl.u32 %v10681_v51, 16  ;;  %5571 = vrot.lane.b32.xlu0 %v8188_v26, %s8814_s30  ;;  %v3454_v15 = vsel %vm9657_vm14, %v7997_v49, %v3453_v62 }
 0x1de   :  { %v10703_v25 = vpop.permute.xlu1 %5397  ;;  %v2765_v5 = vsel %vm8911_vm11, %v2760_v42, %v2764_v44  ;;  %v3939_v3 = vshll.u32 %v10681_v51, 16  ;;  %v3949_v47 = vshrl.u32 %v10688_v18, 16  ;;  %8539 = vmatpush3.bf16.msra.mxu0 %v8648_v45  ;;  %v8252_v1 = vcombine.low %v10681_v51, %v10688_v18  ;;  %v10718_v44 = vld [vmem:[#allocation2 + $0x98] sm:$0x1] }
 0x1df   :  { %v8189_v50 = vcombine.low %v2755_v61, %v2765_v5  ;;  %v3457_v21 = vsel %vm9657_vm14, %v3455_v27, %v3456_v56  ;;  %v3938_v32 = vrot.slane %v3936_v4, 4  ;;  %8540 = vmatprep.subr.bf16.mxu0 %v8650_v59  ;;  %8610 = vmatpush3.bf16.msra.mxu1 %v8648_v45  ;;  %v6713_v49 = vsel %vm6709_vm12, %v6648_v14, %v10655_v9  ;;  %v10731_v4 = vld [vmem:[#allocation2 + $0xa4] sm:$0x1] }
 0x1e0   :  { %v3941_v23 = vrot.slane %v3939_v3, 5  ;;  %v3960_v62 = vshrl.u32 %v10701_v53, 16  ;;  %v3963_v26 = vshll.u32 %v10701_v53, 16  ;;  %8608 = vmatprep.subr.bf16.mxu1 %v8650_v59  ;;  %v8221_v61 = vcombine.low %v3454_v15, %v3457_v21  ;;  %v10733_v5 = vpop.permute.xlu0 %5907 }
 0x1e1   :  { %5573 = vrot.lane.b32.xlu1 %v8189_v50, %s8814_s30  ;;  %v3973_v42 = vshrl.u32 %v10712_v8, 16  ;;  %v3945_v51 = vshll.u32 %v10688_v18, 16  ;;  %v3951_v54 = vrot.slane %v3949_v47, 4  ;;  %5731 = vrot.lane.b32.xlu0 %v8220_v35, %s8815_s4  ;;  %v3955_v14 = vshll.u32 %v10718_v44, 16  ;;  %v4473_v47 = vld [vmem:[#allocation2 + $0x90] sm:$0xe] }
 0x1e2   :  { %v10727_v56 = vpop.permute.xlu1 %5557  ;;  %v3962_v45 = vrot.slane %v3960_v62, 4  ;;  %v3965_v27 = vrot.slane %v3963_v26, 5  ;;  %v3942_v9 = vor.u32 %v3941_v23, %v3938_v32  ;;  %8541 = vmatpush3.bf16.msra.mxu0 %v8650_v59  ;;  %v8253_v15 = vcombine.low %v10701_v53, %v10712_v8 }
 0x1e3   :  { %v3947_v3 = vrot.slane %v3945_v51, 5  ;;  %vm6774_vm13 = vcmask 261120   ;;  %vm6859_vm8 = vcmask 293888   ;;  %8611 = vmatpush3.bf16.msra.mxu1 %v8650_v59  ;;  %v3957_v35 = vrot.slane %v3955_v14, 5 }
 0x1e4   :  { %v3943_v50 = vrot.slane %v3942_v9, 4  ;;  %v6776_v21 = vsel %vm6774_vm13, %v6711_v58, %v10618_v30  ;;  %v6778_v32 = vsel %vm6774_vm13, %v6713_v49, %v10676_v39  ;;  %v3966_v62 = vor.u32 %v3965_v27, %v3962_v45 }
 0x1e5   :  { %5733 = vrot.lane.b32.xlu1 %v8221_v61, %s8815_s4  ;;  %v3952_v23 = vor.u32 %v3951_v54, %v3947_v3  ;;  %8542 = vmatprep.mubr.msk.bf16.mxu0 %vm6859_vm8, %v6776_v21  ;;  %v3969_v53 = vshll.u32 %v10712_v8, 16  ;;  %v3975_v26 = vrot.slane %v3973_v42, 4  ;;  %v3979_v30 = vshll.u32 %v10731_v4, 16  ;;  %v4474_v42 = vld [vmem:[#allocation2 + $0x9c] sm:$0xe] }
 0x1e6   :  { %v10744_v51 = vpop.permute.xlu1 %5717  ;;  %5923 = vrot.lane.b32.xlu0 %v8252_v1, %s8816_s5  ;;  %v3948_v59 = vsel %vm8911_vm11, %v3943_v50, %v3947_v3  ;;  %v8028_v58 = vrot.slane %v4473_v47, 9  ;;  %v4663_v39 = vrot.slane %v10688_v18, 5  ;;  %8543 = vmatmul.mubr.msk.bf16.vlgmr.msra.gmra.mxu0 %vm6859_vm8, %v6778_v32  ;;  %v3967_v61 = vrot.slane %v3966_v62, 4  ;;  %v2406_v3 = vld [vmem:[#allocation2 + $0x9c] sm:$0xf] }
 0x1e7   :  { %v3953_v49 = vrot.slane %v3952_v23, 4  ;;  %v3971_v54 = vrot.slane %v3969_v53, 5  ;;  %v4666_v45 = vrot.slane %v10718_v44, 5  ;;  %v6455_v1 = vsel %vm6449_vm2, %v10399_v16, %v10645_v37  ;;  %v10768_v37 = vld [vmem:[#allocation2 + $0xa0] sm:$0xf] }
 0x1e8   :  { %v3981_v27 = vrot.slane %v3979_v30, 5  ;;  %v4664_v9 = vsel %vm9657_vm14, %v8028_v58, %v4663_v39  ;;  %v4665_v14 = vrot.slane %v4663_v39, 4  ;;  %v10758_v47 = vpop.permute.xlu0 %6067  ;;  %v6457_v16 = vsel %vm6449_vm2, %v10433_v63, %v10703_v25  ;;  %v10778_v58 = vld [vmem:[#allocation2 + $0xa8] sm:$0xf] }
 0x1e9   :  { %5925 = vrot.lane.b32.xlu1 %v8253_v15, %s8816_s5  ;;  %v3958_v18 = vsel %vm8911_vm11, %v3953_v49, %v3957_v35  ;;  %v3972_v44 = vsel %vm8911_vm11, %v3967_v61, %v3971_v54  ;;  %v3976_v50 = vor.u32 %v3975_v26, %v3971_v54  ;;  %v8029_v15 = vrot.slane %v4474_v42, 9  ;;  %v10782_v49 = vld [vmem:[#allocation2 + $0xac] sm:$0xf] }
 0x1ea   :  { %v10770_v21 = vpop.permute.xlu1 %5909  ;;  %v8284_v32 = vcombine.low %v3948_v59, %v3958_v18  ;;  %v4667_v23 = vsel %vm9657_vm14, %v4665_v14, %v4666_v45  ;;  %v4670_v62 = vrot.slane %v10712_v8, 5  ;;  %v6520_v53 = vsel %vm6514_vm4, %v6455_v1, %v10672_v17  ;;  %v2458_v18 = vld [vmem:[#allocation2 + $0xa4] sm:$0x1] }
 0x1eb   :  { %v3977_v35 = vrot.slane %v3976_v50, 4  ;;  %v4673_v26 = vrot.slane %v10731_v4, 5  ;;  %v2767_v30 = vshrl.u32 %v2406_v3, 16  ;;  %v8316_v63 = vcombine.low %v4664_v9, %v4667_v23 }
 0x1ec   :  { %6083 = vrot.lane.b32.xlu0 %v8284_v32, %s8817_s6  ;;  %v4672_v25 = vrot.slane %v4670_v62, 4  ;;  %v2770_v59 = vshll.u32 %v2406_v3, 16  ;;  %v2780_v39 = vshrl.u32 %v10768_v37, 16  ;;  %v10784_v61 = vpop.permute.xlu0 %6227  ;;  %v4671_v17 = vsel %vm9657_vm14, %v8029_v15, %v4670_v62 }
 0x1ed   :  { %v3982_v8 = vsel %vm8911_vm11, %v3977_v35, %v3981_v27  ;;  %v2769_v4 = vrot.slane %v2767_v30, 4  ;;  %v8158_v54 = vcombine.low %v2406_v3, %v10768_v37  ;;  %v6522_v14 = vsel %vm6514_vm4, %v6457_v16, %v10727_v56  ;;  %v10805_v56 = vld [vmem:[#allocation2 + $0xb0] sm:$0x1] }
 0x1ee   :  { %v10791_v45 = vpop.permute.xlu1 %6069  ;;  %v8285_v42 = vcombine.low %v3972_v44, %v3982_v8  ;;  %v4674_v1 = vsel %vm9657_vm14, %v4672_v25, %v4673_v26  ;;  %v2772_v9 = vrot.slane %v2770_v59, 5  ;;  %v6585_v27 = vsel %vm6579_vm6, %v6520_v53, %v10696_v28  ;;  %v3258_v26 = vld [vmem:[#allocation2 + $0x9c] sm:$0xe] }
 0x1ef   :  { %v2791_v50 = vshrl.u32 %v10778_v58, 16  ;;  %v2794_v32 = vshll.u32 %v10778_v58, 16  ;;  %v2804_v3 = vshrl.u32 %v10782_v49, 16  ;;  %v8317_v44 = vcombine.low %v4671_v17, %v4674_v1 }
 0x1f0   :  { %6085 = vrot.lane.b32.xlu1 %v8285_v42, %s8817_s6  ;;  %6243 = vrot.lane.b32.xlu0 %v8316_v63, %s8818_s7  ;;  %v2773_v23 = vor.u32 %v2772_v9, %v2769_v4  ;;  %v2776_v15 = vshll.u32 %v10768_v37, 16  ;;  %v2782_v62 = vrot.slane %v2780_v39, 4  ;;  %v8159_v28 = vcombine.low %v10778_v58, %v10782_v49  ;;  %v10814_v17 = vpop.permute.xlu0 %5399 }
 0x1f1   :  { %v2793_v16 = vrot.slane %v2791_v50, 4  ;;  %v2796_v35 = vrot.slane %v2794_v32, 5  ;;  %v2786_v53 = vshll.u32 %v2458_v18, 16  ;;  %v6587_v63 = vsel %vm6579_vm6, %v6522_v14, %v10744_v51  ;;  %v3259_v51 = vld [vmem:[#allocation2 + $0xa8] sm:$0xe] }
 0x1f2   :  { %v10809_v30 = vpop.permute.xlu1 %6229  ;;  %v2774_v25 = vrot.slane %v2773_v23, 4  ;;  %v2778_v59 = vrot.slane %v2776_v15, 5  ;;  %v2800_v8 = vshll.u32 %v10782_v49, 16  ;;  %v6650_v39 = vsel %vm6644_vm7, %v6585_v27, %v10733_v5 }
 0x1f3   :  { %v2797_v4 = vor.u32 %v2796_v35, %v2793_v16  ;;  %v2806_v42 = vrot.slane %v2804_v3, 4  ;;  %v2810_v58 = vshll.u32 %v10805_v56, 16  ;;  %v2788_v9 = vrot.slane %v2786_v53, 5 }
 0x1f4   :  { %6245 = vrot.lane.b32.xlu1 %v8317_v44, %s8818_s7  ;;  %5415 = vrot.lane.b32.xlu0 %v8158_v54, %s8813_s26  ;;  %v2783_v1 = vor.u32 %v2782_v62, %v2778_v59  ;;  %v2802_v50 = vrot.slane %v2800_v8, 5  ;;  %v7998_v32 = vrot.slane %v3258_v26, 9  ;;  %v2779_v14 = vsel %vm8911_vm11, %v2774_v25, %v2778_v59  ;;  %v10828_v44 = vld [vmem:[#allocation2 + $0xa8] sm:$0xf]  ;;  %v10839_v8 = vld [vmem:[#allocation2 + $0xac] sm:$0xf] }
 0x1f5   :  { %v2798_v23 = vrot.slane %v2797_v4, 4  ;;  %v3460_v15 = vrot.slane %v10768_v37, 5  ;;  %v3463_v5 = vrot.slane %v2458_v18, 5  ;;  %v2812_v35 = vrot.slane %v2810_v58, 5 }
 0x1f6   :  { %v10824_v27 = vpop.permute.xlu1 %5401  ;;  %v2784_v3 = vrot.slane %v2783_v1, 4  ;;  %v2807_v16 = vor.u32 %v2806_v42, %v2802_v50  ;;  %v6715_v54 = vsel %vm6709_vm12, %v6650_v39, %v10758_v47  ;;  %v7999_v25 = vrot.slane %v3259_v51, 9  ;;  %v10853_v51 = vld [vmem:[#allocation2 + $0xb8] sm:$0xf] }
 0x1f7   :  { %v2803_v62 = vsel %vm8911_vm11, %v2798_v23, %v2802_v50  ;;  %v3461_v53 = vsel %vm9657_vm14, %v7998_v32, %v3460_v15  ;;  %v3462_v26 = vrot.slane %v3460_v15, 4  ;;  %v3467_v59 = vrot.slane %v10782_v49, 5  ;;  %v3625_v32 = vld [vmem:[#allocation2 + $0xb4] sm:$0xf] }
 0x1f8   :  { %5417 = vrot.lane.b32.xlu1 %v8159_v28, %s8813_s26  ;;  %v2789_v37 = vsel %vm8911_vm11, %v2784_v3, %v2788_v9  ;;  %v2808_v18 = vrot.slane %v2807_v16, 4  ;;  %v3470_v47 = vrot.slane %v10805_v56, 5  ;;  %v10841_v39 = vpop.permute.xlu0 %5559  ;;  %v3984_v58 = vshrl.u32 %v10828_v44, 16 }
 0x1f9   :  { %v8190_v4 = vcombine.low %v2779_v14, %v2789_v37  ;;  %v3464_v42 = vsel %vm9657_vm14, %v3462_v26, %v3463_v5  ;;  %v3987_v28 = vshll.u32 %v10828_v44, 16  ;;  %v3468_v56 = vsel %vm9657_vm14, %v7999_v25, %v3467_v59  ;;  %v3675_v26 = vld [vmem:[#allocation2 + $0xb0] sm:$0x1] }
 0x1fa   :  { %v10847_v1 = vpop.permute.xlu1 %5561  ;;  %v2813_v9 = vsel %vm8911_vm11, %v2808_v18, %v2812_v35  ;;  %v8222_v49 = vcombine.low %v3461_v53, %v3464_v42  ;;  %v3469_v50 = vrot.slane %v3467_v59, 4  ;;  %v3986_v23 = vrot.slane %v3984_v58, 4 }
 0x1fb   :  { %5575 = vrot.lane.b32.xlu0 %v8190_v4, %s8814_s30  ;;  %v8191_v14 = vcombine.low %v2803_v62, %v2813_v9  ;;  %v3989_v15 = vrot.slane %v3987_v28, 5  ;;  %v3997_v5 = vshrl.u32 %v10839_v8, 16  ;;  %v6652_v3 = vsel %vm6644_vm7, %v6587_v63, %v10770_v21  ;;  %v4475_v9 = vld [vmem:[#allocation2 + $0xa8] sm:$0xe] }
 0x1fc   :  { %v3471_v16 = vsel %vm9657_vm14, %v3469_v50, %v3470_v47  ;;  %v8254_v35 = vcombine.low %v10828_v44, %v10839_v8  ;;  %v6780_v53 = vsel %vm6774_vm13, %v6715_v54, %v10784_v61  ;;  %v10865_v25 = vpop.permute.xlu0 %5719  ;;  %v4008_v37 = vshrl.u32 %v3625_v32, 16  ;;  %v10875_v47 = vld [vmem:[#allocation2 + $0xbc] sm:$0x1] }
 0x1fd   :  { %5577 = vrot.lane.b32.xlu1 %v8191_v14, %s8814_s30  ;;  %v8223_v62 = vcombine.low %v3468_v56, %v3471_v16  ;;  %v4011_v18 = vshll.u32 %v3625_v32, 16  ;;  %v4021_v59 = vshrl.u32 %v10853_v51, 16  ;;  %8546 = vmatprep.mubr.msk.bf16.mxu0 %vm6859_vm8, %v6780_v53  ;;  %v6717_v63 = vsel %vm6709_vm12, %v6652_v3, %v10791_v45 }
 0x1fe   :  { %v10870_v21 = vpop.permute.xlu1 %5721  ;;  %v3990_v44 = vor.u32 %v3989_v15, %v3986_v23  ;;  %v3993_v61 = vshll.u32 %v10839_v8, 16  ;;  %v3999_v54 = vrot.slane %v3997_v5, 4  ;;  %v4010_v4 = vrot.slane %v4008_v37, 4  ;;  %v4476_v37 = vld [vmem:[#allocation2 + $0xb4] sm:$0xe] }
 0x1ff   :  { %5735 = vrot.lane.b32.xlu0 %v8222_v49, %s8815_s4  ;;  %v4013_v42 = vrot.slane %v4011_v18, 5  ;;  %v4003_v58 = vshll.u32 %v3675_v26, 16  ;;  %v6782_v28 = vsel %vm6774_vm13, %v6717_v63, %v10809_v30  ;;  %v8255_v56 = vcombine.low %v3625_v32, %v10853_v51 }
 0x200   :  { %v3991_v50 = vrot.slane %v3990_v44, 4  ;;  %v3995_v14 = vrot.slane %v3993_v61, 5  ;;  %v4017_v45 = vshll.u32 %v10853_v51, 16  ;;  %8547 = vmatmul.mubr.msk.bf16.gmra.mxu0 %vm6859_vm8, %v6782_v28  ;;  %v6459_v49 = vsel %vm6449_vm2, %v10429_v22, %v10814_v17  ;;  %v10888_v30 = vpop.permute.xlu0 %5911 }
 0x201   :  { %5737 = vrot.lane.b32.xlu1 %v8223_v62, %s8815_s4  ;;  %v4014_v23 = vor.u32 %v4013_v42, %v4010_v4  ;;  %v4023_v15 = vrot.slane %v4021_v59, 4  ;;  %v4027_v5 = vshll.u32 %v10875_v47, 16  ;;  %v4005_v32 = vrot.slane %v4003_v58, 5  ;;  %v10899_v4 = vld [vmem:[#allocation2 + $0xb4] sm:$0xf] }
 0x202   :  { %v4000_v3 = vor.u32 %v3999_v54, %v3995_v14  ;;  %v4019_v16 = vrot.slane %v4017_v45, 5  ;;  %v8030_v53 = vrot.slane %v4475_v9, 9  ;;  %v3996_v62 = vsel %vm8911_vm11, %v3991_v50, %v3995_v14  ;;  %v10894_v17 = vpop.permute.xlu1 %5913 }
 0x203   :  { %5927 = vrot.lane.b32.xlu0 %v8254_v35, %s8816_s5  ;;  %v4015_v18 = vrot.slane %v4014_v23, 4  ;;  %v4677_v63 = vrot.slane %v10839_v8, 5  ;;  %v4680_v22 = vrot.slane %v3675_v26, 5  ;;  %v4029_v61 = vrot.slane %v4027_v5, 5 }
 0x204   :  { %v4001_v59 = vrot.slane %v4000_v3, 4  ;;  %v4024_v44 = vor.u32 %v4023_v15, %v4019_v16  ;;  %v6461_v54 = vsel %vm6449_vm2, %v10452_v29, %v10824_v27  ;;  %v8031_v42 = vrot.slane %v4476_v37, 9  ;;  %v10910_v27 = vld [vmem:[#allocation2 + $0xb8] sm:$0xf]  ;;  %v79_v3 = vld [vmem:[#allocation2 + $0xc0] sm:$0x1] }
 0x205   :  { %5929 = vrot.lane.b32.xlu1 %v8255_v56, %s8816_s5  ;;  %v4020_v35 = vsel %vm8911_vm11, %v4015_v18, %v4019_v16  ;;  %v4678_v8 = vsel %vm9657_vm14, %v8030_v53, %v4677_v63  ;;  %v4679_v26 = vrot.slane %v4677_v63, 4  ;;  %v4684_v9 = vrot.slane %v10853_v51, 5  ;;  %v259_v18 = vld [vmem:[%s12912_s0 + $0x7c] sm:$0xf] }
 0x206   :  { %v4006_v58 = vsel %vm8911_vm11, %v4001_v59, %v4005_v32  ;;  %v4025_v28 = vrot.slane %v4024_v44, 4  ;;  %v4687_v29 = vrot.slane %v10875_v47, 5  ;;  %v2815_v14 = vshrl.u32 %v10899_v4, 16  ;;  %v258_v32 = vld [vmem:[%s12912_s0 + $0x78] sm:$0xf] }
 0x207   :  { %v8286_v50 = vcombine.low %v3996_v62, %v4006_v58  ;;  %v4681_v56 = vsel %vm9657_vm14, %v4679_v26, %v4680_v22  ;;  %v2818_v45 = vshll.u32 %v10899_v4, 16  ;;  %v10916_v23 = vpop.permute.xlu0 %6071  ;;  %v4685_v51 = vsel %vm9657_vm14, %v8031_v42, %v4684_v9 }
 0x208   :  { %v4030_v15 = vsel %vm8911_vm11, %v4025_v28, %v4029_v61  ;;  %v8318_v5 = vcombine.low %v4678_v8, %v4681_v56  ;;  %v4686_v47 = vrot.slane %v4684_v9, 4  ;;  %v2817_v53 = vrot.slane %v2815_v14, 4 }
 0x209   :  { %6087 = vrot.lane.b32.xlu0 %v8286_v50, %s8817_s6  ;;  %v8287_v16 = vcombine.low %v4020_v35, %v4030_v15  ;;  %v2820_v37 = vrot.slane %v2818_v45, 5  ;;  %v2828_v62 = vshrl.u32 %v10910_v27, 16  ;;  %v6074_v63 = vpop.permute.xlu1 %6073  ;;  %v6524_v22 = vsel %vm6514_vm4, %v6459_v49, %v10841_v39  ;;  %v10938_v35 = vld [vmem:[#allocation2 + $0xbc] sm:$0x1]  ;;  %v177_v50 = vld [vmem:[#allocation2 + $0xc8] sm:$0x1] }
 0x20a   :  { %v4688_v59 = vsel %vm9657_vm14, %v4686_v47, %v4687_v29  ;;  %v8160_v44 = vcombine.low %v10899_v4, %v10910_v27  ;;  %v6526_v61 = vsel %vm6514_vm4, %v6461_v54, %v10847_v1  ;;  %v80_v42 = vsel %vm8845_vm3, 0, %v79_v3 }
 0x20b   :  { %6089 = vrot.lane.b32.xlu1 %v8287_v16, %s8817_s6  ;;  %v8319_v8 = vcombine.low %v4685_v51, %v4688_v59  ;;  %v550_v58 = vshrl.u32 %v258_v32, 16  ;;  %v553_v28 = vshll.u32 %v258_v32, 16  ;;  %v6232_v39 = vpop.permute.xlu0 %6231  ;;  %81 = vst [vmem:[#allocation2 + $0xc0] sm:$0x1] %v80_v42  ;;  %v558_v49 = vshrl.u32 %v259_v18, 16 }
 0x20c   :  { %v561_v9 = vshll.u32 %v259_v18, 16  ;;  %v2821_v29 = vor.u32 %v2820_v37, %v2817_v53  ;;  %v2824_v4 = vshll.u32 %v10910_v27, 16  ;;  %v6589_v1 = vsel %vm6579_vm6, %v6524_v22, %v10865_v25  ;;  %v3260_v32 = vld [vmem:[#allocation2 + $0xb4] sm:$0xe]  ;;  %v10955_v42 = vld [vmem:[#allocation2 + $0xd0] sm:$0xf] }
 0x20d   :  { %6247 = vrot.lane.b32.xlu0 %v8318_v5, %s8818_s7  ;;  %v552_v54 = vrot.slane %v550_v58, 7  ;;  %v2830_v56 = vrot.slane %v2828_v62, 4  ;;  %v2834_v14 = vshll.u32 %v10938_v35, 16  ;;  %v6234_v45 = vpop.permute.xlu1 %6233  ;;  %v560_v15 = vrot.slane %v558_v49, 7  ;;  %v10962_v58 = vld [vmem:[#allocation2 + $0xcc] sm:$0xf] }
 0x20e   :  { %v2822_v51 = vrot.slane %v2821_v29, 4  ;;  %v2826_v47 = vrot.slane %v2824_v4, 5  ;;  %v6591_v3 = vsel %vm6579_vm6, %v6526_v61, %v10870_v21  ;;  %v6654_v5 = vsel %vm6644_vm7, %v6589_v1, %v10888_v30 }
 0x20f   :  { %6249 = vrot.lane.b32.xlu1 %v8319_v8, %s8818_s7  ;;  %v555_v16 = vor.u32 %v553_v28, %v552_v54  ;;  %v556_v53 = vrot.slane %v552_v54, 4  ;;  %v178_v37 = vsel %vm8860_vm5, 0, %v177_v50  ;;  %v563_v62 = vor.u32 %v561_v9, %v560_v15  ;;  %v5404_v28 = vpop.permute.xlu0 %5403 }
 0x210   :  { %v565_v18 = vrot.slane %v560_v15, 4  ;;  %v2831_v22 = vor.u32 %v2830_v56, %v2826_v47  ;;  %v2836_v59 = vrot.slane %v2834_v14, 5  ;;  %179 = vst [vmem:[#allocation2 + $0xc8] sm:$0x1] %v178_v37  ;;  %v2827_v21 = vsel %vm8911_vm11, %v2822_v51, %v2826_v47  ;;  %v10982_v47 = vld [vmem:[#allocation2 + $0xd4] sm:$0x1] }
 0x211   :  { %5419 = vrot.lane.b32.xlu0 %v8160_v44, %s8813_s26  ;;  %v8000_v61 = vrot.slane %v3260_v32, 9  ;;  %v3474_v8 = vrot.slane %v10910_v27, 5  ;;  %v3477_v30 = vrot.slane %v10938_v35, 5  ;;  %v564_v9 = vsel %vm8886_vm9, %v556_v53, %v563_v62  ;;  %v5406_v50 = vpop.permute.xlu1 %5405  ;;  %v4478_v53 = vld [vmem:[#allocation2 + $0xcc] sm:$0xe] }
 0x212   :  { %v2832_v29 = vrot.slane %v2831_v22, 4  ;;  %v6656_v4 = vsel %vm6644_vm7, %v6591_v3, %v10894_v17  ;;  %v6719_v44 = vsel %vm6709_vm12, %v6654_v5, %v10916_v23  ;;  %v1041_v1 = vld [vmem:[#allocation2 + $0xc0] sm:$0xf]  ;;  %1044 = vst.msk [vmem:[#allocation2 + $0xc4] sm:$0xf] %vm12943_vm0, %v564_v9  ;;  %v4069_v56 = vshrl.u32 %v10955_v42, 16 }
 0x213   :  { %v3475_v27 = vsel %vm9657_vm14, %v8000_v61, %v3474_v8  ;;  %v3476_v35 = vrot.slane %v3474_v8, 4  ;;  %v6784_v54 = vsel %vm6774_vm13, %v6719_v44, %v6232_v39  ;;  %v1042_v15 = vsel %vm8892_vm10, %v555_v16, %v1041_v1  ;;  %v10994_v22 = vld [vmem:[#allocation2 + $0xe4] sm:$0xf] }
 0x214   :  { %v2837_v17 = vsel %vm8911_vm11, %v2832_v29, %v2836_v59  ;;  %v6721_v23 = vsel %vm6709_vm12, %v6656_v4, %v6074_v63  ;;  %v4056_v51 = vshrl.u32 %v10962_v58, 16  ;;  %8550 = vmatprep.mubr.msk.bf16.mxu0 %vm6859_vm8, %v6784_v54  ;;  %1043 = vst [vmem:[#allocation2 + $0xc0] sm:$0xf] %v1042_v15  ;;  %v4059_v32 = vshll.u32 %v10962_v58, 16 }
 0x215   :  { %v8192_v3 = vcombine.low %v2827_v21, %v2837_v17  ;;  %v3478_v39 = vsel %vm9657_vm14, %v3476_v35, %v3477_v30  ;;  %v6786_v16 = vsel %vm6774_vm13, %v6721_v23, %v6234_v45  ;;  %v4065_v62 = vshll.u32 %v10955_v42, 16 }
 0x216   :  { %v8224_v5 = vcombine.low %v3475_v27, %v3478_v39  ;;  %v10990_v37 = vrot.slane %v4056_v51, 4  ;;  %8551 = vmatmul.mubr.msk.bf16.gmra.mxu0 %vm6859_vm8, %v6786_v16  ;;  %v10997_v21 = vrot.slane %v4059_v32, 5  ;;  %v6463_v45 = vsel %vm6449_vm2, %v10445_v57, %v5404_v28  ;;  %v11025_v39 = vld [vmem:[#allocation2 + $0xe8] sm:$0xf] }
 0x217   :  { %5579 = vrot.lane.b32.xlu0 %v8192_v3, %s8814_s30  ;;  %v1045_v59 = vld [vmem:[#allocation2 + $0xc8] sm:$0x1]  ;;  %v11001_v61 = vrot.slane %v4069_v56, 4  ;;  %v4075_v8 = vshll.u32 %v10982_v47, 16  ;;  %v5564_v30 = vpop.permute.xlu0 %5563  ;;  %v11006_v29 = vrot.slane %v4065_v62, 5  ;;  %v6465_v4 = vsel %vm6449_vm2, %v10465_v52, %v5406_v50 }
 0x218   :  { %v1046_v9 = vsel %vm8845_vm3, %v565_v18, %v1045_v59  ;;  %v8033_v44 = vrot.slane %v4478_v53, 9  ;;  %v5566_v1 = vpop.permute.xlu1 %5565  ;;  %v6528_v57 = vsel %vm6514_vm4, %v6463_v45, %v5564_v30  ;;  %v12940_v28 = vrot.slane %v10955_v42, 5 }
 0x219   :  { %1047 = vst [vmem:[#allocation2 + $0xc8] sm:$0x1] %v1046_v9  ;;  %v11010_v27 = vrot.slane %v4075_v8, 5  ;;  %v2413_v54 = vld [vmem:[#allocation2 + $0xc4] sm:$0xf]  ;;  %v4062_v18 = vor.u32 %v10997_v21, %v10990_v37  ;;  %v4072_v52 = vor.u32 %v11001_v61, %v11006_v29  ;;  %vm7473_vm0 = vcmask 60416  }
 0x21a   :  { %v11015_v56 = vld [vmem:[#allocation2 + $0xc4] sm:$0xf]  ;;  %v2852_v17 = vshrl.u32 %v2413_v54, 16  ;;  %v2848_v23 = vshll.u32 %v2413_v54, 16  ;;  %v3481_v51 = vrot.slane %v2413_v54, 5  ;;  %v11031_v62 = vsel %vm9657_vm14, %v8033_v44, %v12940_v28 }
 0x21b   :  { %5739 = vrot.lane.b32.xlu0 %v8224_v5, %s8815_s4  ;;  %v4045_v3 = vshrl.u32 %v11015_v56, 16  ;;  %v5724_v32 = vpop.permute.xlu0 %5723  ;;  %v2412_v16 = vld [vmem:[#allocation2 + $0xc0] sm:$0xf]  ;;  %v11036_v5 = vsel %vm6514_vm4, %v6465_v4, %v5566_v1 }
 0x21c   :  { %v3261_v53 = vld [vmem:[#allocation2 + $0xc0] sm:$0xe]  ;;  %v11039_v21 = vsel %vm6579_vm6, %v6528_v57, %v5724_v32  ;;  %v11041_v45 = vpop.permute.xlu1 %5725  ;;  %v2839_v61 = vshrl.u32 %v2412_v16, 16  ;;  %v2842_v8 = vshll.u32 %v2412_v16, 16  ;;  %v8161_v30 = vcombine.low %v2412_v16, %v2413_v54 }
 0x21d   :  { %v3627_v37 = vld [vmem:[#allocation2 + $0xc0] sm:$0xf]  ;;  %v2850_v9 = vrot.slane %v2848_v23, 5  ;;  %v2854_v63 = vrot.slane %v2852_v17, 4  ;;  %v8001_v35 = vrot.slane %v3261_v53, 9  ;;  %v3483_v15 = vrot.slane %v3481_v51, 4 }
 0x21e   :  { %v4032_v44 = vshrl.u32 %v3627_v37, 16  ;;  %v2841_v50 = vrot.slane %v2839_v61, 4  ;;  %v2844_v28 = vrot.slane %v2842_v8, 5  ;;  %5421 = vrot.lane.b32.xlu1 %v8161_v30, %s8813_s26  ;;  %v4035_v59 = vshll.u32 %v3627_v37, 16  ;;  %v4477_v34 = vld [vmem:[#allocation2 + $0xc0] sm:$0xe] }
 0x21f   :  { %v8256_v4 = vcombine.low %v3627_v37, %v11015_v56  ;;  %v11045_v1 = vpop.permute.xlu0 %5915  ;;  %v2855_v32 = vor.u32 %v2854_v63, %v2850_v9  ;;  %v3482_v14 = vsel %vm9657_vm14, %v8001_v35, %v3481_v51  ;;  %v4041_v17 = vshll.u32 %v11015_v56, 16  ;;  %v11053_v63 = vld [vmem:[#allocation2 + $0xf0] sm:$0xf] }
 0x220   :  { %v2461_v57 = vld [vmem:[#allocation2 + $0xc8] sm:$0x1]  ;;  %v4034_v54 = vrot.slane %v4032_v44, 4  ;;  %v11050_v16 = vpop.permute.xlu1 %5917  ;;  %v2845_v53 = vor.u32 %v2844_v28, %v2841_v50  ;;  %v4037_v30 = vrot.slane %v4035_v59, 5  ;;  %v4047_v25 = vrot.slane %v4045_v3, 4 }
 0x221   :  { %v3677_v23 = vld [vmem:[#allocation2 + $0xc8] sm:$0x1]  ;;  %v2858_v61 = vshll.u32 %v2461_v57, 16  ;;  %v3484_v8 = vrot.slane %v2461_v57, 5  ;;  %5931 = vrot.lane.b32.xlu0 %v8256_v4, %s8816_s5  ;;  %v2856_v37 = vrot.slane %v2855_v32, 4  ;;  %v4043_v49 = vrot.slane %v4041_v17, 5 }
 0x222   :  { %v4051_v55 = vshll.u32 %v3677_v23, 16  ;;  %v2846_v26 = vrot.slane %v2845_v53, 4  ;;  %v4038_v44 = vor.u32 %v4037_v30, %v4034_v54  ;;  %v4063_v59 = vrot.slane %v4062_v18, 4 }
 0x223   :  { %v2860_v35 = vrot.slane %v2858_v61, 5  ;;  %v3485_v51 = vsel %vm9657_vm14, %v3483_v15, %v3484_v8  ;;  %v4048_v28 = vor.u32 %v4047_v25, %v4043_v49  ;;  %v8163_v4 = vcombine.low %v11053_v63, %v11057_v19 }
 0x224   :  { %v4053_v50 = vrot.slane %v4051_v55, 5  ;;  %v2851_v3 = vsel %vm8911_vm11, %v2846_v26, %v2850_v9  ;;  %v4039_v32 = vrot.slane %v4038_v44, 4  ;;  %v4073_v17 = vrot.slane %v4072_v52, 4 }
 0x225   :  { %v2861_v57 = vsel %vm8911_vm11, %v2856_v37, %v2860_v35  ;;  %v11065_v53 = vpop.permute.xlu0 %6075  ;;  %v8225_v54 = vcombine.low %v3482_v14, %v3485_v51  ;;  %v4049_v61 = vrot.slane %v4048_v28, 4  ;;  %v8032_v8 = vrot.slane %v4477_v34, 9 }
 0x226   :  { %v8193_v15 = vcombine.low %v2851_v3, %v2861_v57  ;;  %v11067_v25 = vpop.permute.xlu1 %6077  ;;  %v4044_v55 = vsel %vm8911_vm11, %v4039_v32, %v4043_v49  ;;  %v4068_v26 = vsel %vm8911_vm11, %v4063_v59, %v11006_v29  ;;  %v4691_v18 = vrot.slane %v11015_v56, 5  ;;  %v2462_v57 = vld [vmem:[#allocation2 + $0xec] sm:$0x1] }
 0x227   :  { %v4694_v9 = vrot.slane %v3677_v23, 5  ;;  %v4054_v52 = vsel %vm8911_vm11, %v4049_v61, %v4053_v50  ;;  %v4078_v34 = vsel %vm8911_vm11, %v4073_v17, %v11010_v27  ;;  %v13002_v14 = vrot.slane %v10955_v42, 5 }
 0x228   :  { %5581 = vrot.lane.b32.xlu1 %v8193_v15, %s8814_s30  ;;  %v13003_v49 = vshrl.u32 %v10994_v22, 16  ;;  %v8288_v35 = vcombine.low %v4044_v55, %v4054_v52  ;;  %v4692_v29 = vsel %vm9657_vm14, %v8032_v8, %v4691_v18  ;;  %v4693_v56 = vrot.slane %v4691_v18, 4  ;;  %v11106_v8 = vld [vmem:[#allocation2 + $0xf8] sm:$0x1] }
 0x229   :  { %v4700_v30 = vrot.slane %v13002_v14, 4  ;;  %v13004_v23 = vshll.u32 %v10994_v22, 16  ;;  %v11089_v44 = vpop.permute.xlu0 %6235  ;;  %v13005_v28 = vrot.slane %v10982_v47, 5  ;;  %v2876_v50 = vshrl.u32 %v11025_v39, 16 }
 0x22a   :  { %v2865_v37 = vrot.slane %v13003_v49, 4  ;;  %v2887_v59 = vshrl.u32 %v11053_v63, 16  ;;  %v2890_v3 = vshll.u32 %v11053_v63, 16  ;;  %v11100_v32 = vpop.permute.xlu1 %6237  ;;  %6091 = vrot.lane.b32.xlu0 %v8288_v35, %s8817_s6  ;;  %v8289_v17 = vcombine.low %v4068_v26, %v4078_v34  ;;  %v4480_v63 = vld [vmem:[#allocation2 + $0xfc] sm:$0xe] }
 0x22b   :  { %v2868_v51 = vrot.slane %v13004_v23, 5  ;;  %v11095_v27 = vsel %vm9657_vm14, %v4700_v30, %v13005_v28  ;;  %v4695_v15 = vsel %vm9657_vm14, %v4693_v56, %v4694_v9  ;;  %v2900_v47 = vshrl.u32 %v11057_v19, 16  ;;  %v3262_v30 = vld [vmem:[#allocation2 + $0xe4] sm:$0xe] }
 0x22c   :  { %5741 = vrot.lane.b32.xlu1 %v8225_v54, %s8815_s4  ;;  %v8320_v55 = vcombine.low %v4692_v29, %v4695_v15  ;;  %v2889_v18 = vrot.slane %v2887_v59, 4  ;;  %v2892_v52 = vrot.slane %v2890_v3, 5  ;;  %v2872_v14 = vshll.u32 %v11025_v39, 16  ;;  %v3263_v15 = vld [vmem:[#allocation2 + $0xf0] sm:$0xe] }
 0x22d   :  { %v2869_v61 = vor.u32 %v2868_v51, %v2865_v37  ;;  %v8321_v49 = vcombine.low %v11031_v62, %v11095_v27  ;;  %v2878_v34 = vrot.slane %v2876_v50, 4  ;;  %v2882_v35 = vshll.u32 %v2462_v57, 16  ;;  %v11112_v9 = vpop.permute.xlu0 %5407 }
 0x22e   :  { %v2874_v56 = vrot.slane %v2872_v14, 5  ;;  %v6595_v37 = vsel %vm6579_vm6, %v11036_v5, %v11041_v45  ;;  %v2893_v54 = vor.u32 %v2892_v52, %v2889_v18  ;;  %v2896_v29 = vshll.u32 %v11057_v19, 16  ;;  %6251 = vrot.lane.b32.xlu0 %v8320_v55, %s8818_s7  ;;  %v11123_v27 = vpop.permute.xlu1 %5409  ;;  %v11132_v55 = vld [vmem:[#allocation2 + $0xf0] sm:$0xf] }
 0x22f   :  { %v2870_v26 = vrot.slane %v2869_v61, 4  ;;  %v6658_v23 = vsel %vm6644_vm7, %v11039_v21, %v11045_v1  ;;  %v2902_v62 = vrot.slane %v2900_v47, 4  ;;  %v2906_v51 = vshll.u32 %v11106_v8, 16 }
 0x230   :  { %v8002_v28 = vrot.slane %v3262_v30, 9  ;;  %v13006_v50 = vcombine.low %v10962_v58, %v10955_v42  ;;  %v2879_v5 = vor.u32 %v2878_v34, %v2874_v56  ;;  %v2884_v45 = vrot.slane %v2882_v35, 5 }
 0x231   :  { %v2894_v59 = vrot.slane %v2893_v54, 4  ;;  %v2898_v3 = vrot.slane %v2896_v29, 5  ;;  %v2875_v61 = vsel %vm8911_vm11, %v2870_v26, %v2874_v56  ;;  %v2908_v21 = vrot.slane %v2906_v51, 5  ;;  %v11151_v54 = vld [vmem:[#allocation2 + $0xf4] sm:$0xf] }
 0x232   :  { %5933 = vrot.lane.b32.xlu1 %v13006_v50, %s8816_s5  ;;  %v3488_v1 = vrot.slane %v11025_v39, 5  ;;  %v3491_v47 = vrot.slane %v2462_v57, 5  ;;  %v2880_v18 = vrot.slane %v2879_v5, 4  ;;  %v6660_v58 = vsel %vm6644_vm7, %v6595_v37, %v11050_v16  ;;  %v11145_v35 = vpop.permute.xlu0 %5567 }
 0x233   :  { %v2899_v52 = vsel %vm8911_vm11, %v2894_v59, %v2898_v3  ;;  %v2903_v42 = vor.u32 %v2902_v62, %v2898_v3  ;;  %v13007_v14 = vcombine.low %v10994_v22, %v11025_v39  ;;  %v8003_v57 = vrot.slane %v3263_v15, 9  ;;  %v11169_v59 = vld [vmem:[#allocation2 + $0x100] sm:$0xf] }
 0x234   :  { %v3489_v30 = vsel %vm9657_vm14, %v8002_v28, %v3488_v1  ;;  %v3490_v26 = vrot.slane %v3488_v1, 4  ;;  %v3495_v34 = vrot.slane %v11057_v19, 5  ;;  %v2885_v56 = vsel %vm8911_vm11, %v2880_v18, %v2884_v45  ;;  %v11167_v45 = vld [vmem:[#allocation2 + $0xfc] sm:$0xf]  ;;  %v3679_v1 = vld [vmem:[#allocation2 + $0xf8] sm:$0x1] }
 0x235   :  { %5423 = vrot.lane.b32.xlu0 %v13007_v14, %s8813_s26  ;;  %v2904_v16 = vrot.slane %v2903_v42, 4  ;;  %v3498_v37 = vrot.slane %v11106_v8, 5  ;;  %v4080_v22 = vshrl.u32 %v11132_v55, 16  ;;  %v8194_v39 = vcombine.low %v2875_v61, %v2885_v56 }
 0x236   :  { %6093 = vrot.lane.b32.xlu1 %v8289_v17, %s8817_s6  ;;  %v3492_v29 = vsel %vm9657_vm14, %v3490_v26, %v3491_v47  ;;  %v11158_v62 = vsel %vm9657_vm14, %v8003_v57, %v3495_v34  ;;  %v3497_v51 = vrot.slane %v3495_v34, 4  ;;  %v11160_v17 = vpop.permute.xlu1 %5569  ;;  %v6723_v8 = vsel %vm6709_vm12, %v6658_v23, %v11065_v53  ;;  %v11177_v47 = vpop.permute.xlu0 %5727 }
 0x237   :  { %v2909_v28 = vsel %vm8911_vm11, %v2904_v16, %v2908_v21  ;;  %v4082_v50 = vrot.slane %v4080_v22, 4  ;;  %v4083_v5 = vshll.u32 %v11132_v55, 16  ;;  %v8226_v15 = vcombine.low %v3489_v30, %v3492_v29  ;;  %v4479_v16 = vld [vmem:[#allocation2 + $0xf0] sm:$0xe] }
 0x238   :  { %v8195_v3 = vcombine.low %v2899_v52, %v2909_v28  ;;  %v11174_v61 = vsel %vm9657_vm14, %v3497_v51, %v3498_v37  ;;  %v4093_v21 = vshrl.u32 %v11151_v54, 16  ;;  %v8258_v18 = vcombine.low %v11132_v55, %v11151_v54 }
 0x239   :  { %5583 = vrot.lane.b32.xlu0 %v8194_v39, %s8814_s30  ;;  %v8227_v53 = vcombine.low %v11158_v62, %v11174_v61  ;;  %v4085_v23 = vrot.slane %v4083_v5, 5  ;;  %v6788_v52 = vsel %vm6774_vm13, %v6723_v8, %v11089_v44  ;;  %v6725_v42 = vsel %vm6709_vm12, %v6660_v58, %v11067_v25 }
 0x23a   :  { %6253 = vrot.lane.b32.xlu1 %v8321_v49, %s8818_s7  ;;  %v4104_v14 = vshrl.u32 %v11167_v45, 16  ;;  %v4107_v30 = vshll.u32 %v11167_v45, 16  ;;  %v4117_v26 = vshrl.u32 %v11169_v59, 16  ;;  %8554 = vmatprep.mubr.msk.bf16.mxu0 %vm6859_vm8, %v6788_v52  ;;  %v11192_v49 = vld [vmem:[#allocation2 + $0x104] sm:$0x1]  ;;  %v11194_v57 = vpop.permute.xlu1 %5729  ;;  %v4089_v55 = vshll.u32 %v11151_v54, 16  ;;  %v11202_v39 = vpop.permute.xlu0 %5919 }
 0x23b   :  { %v4086_v34 = vor.u32 %v4085_v23, %v4082_v50  ;;  %v4095_v56 = vrot.slane %v4093_v21, 4  ;;  %v4099_v44 = vshll.u32 %v3679_v1, 16  ;;  %v8259_v37 = vcombine.low %v11167_v45, %v11169_v59 }
 0x23c   :  { %v4106_v25 = vrot.slane %v4104_v14, 4  ;;  %v4109_v58 = vrot.slane %v4107_v30, 5  ;;  %v6790_v22 = vsel %vm6774_vm13, %v6725_v42, %v11100_v32  ;;  %v4091_v51 = vrot.slane %v4089_v55, 5 }
 0x23d   :  { %5743 = vrot.lane.b32.xlu0 %v8226_v15, %s8815_s4  ;;  %v4087_v29 = vrot.slane %v4086_v34, 4  ;;  %v6467_v28 = vsel %vm6449_vm2, %v10480_v2, %v11112_v9  ;;  %v4113_v8 = vshll.u32 %v11169_v59, 16  ;;  %8555 = vmatmul.mubr.msk.bf16.gmra.mxu0 %vm6859_vm8, %v6790_v22  ;;  %v4119_v5 = vrot.slane %v4117_v26, 4 }
 0x23e   :  { %5425 = vrot.lane.b32.xlu1 %v8163_v4, %s8813_s26  ;;  %v4110_v50 = vor.u32 %v4109_v58, %v4106_v25  ;;  %v4123_v32 = vshll.u32 %v11192_v49, 16  ;;  %v8034_v15 = vrot.slane %v4479_v16, 9  ;;  %v4096_v21 = vor.u32 %v4095_v56, %v4091_v51  ;;  %v11215_v4 = vpop.permute.xlu1 %5921  ;;  %v2045_v16 = vld [vmem:[#allocation2 + $0xf0] sm:$0xe] }
 0x23f   :  { %v4101_v23 = vrot.slane %v4099_v44, 5  ;;  %v4115_v52 = vrot.slane %v4113_v8, 5  ;;  %v4705_v19 = vrot.slane %v11151_v54, 5  ;;  %v4092_v2 = vsel %vm8911_vm11, %v4087_v29, %v4091_v51  ;;  %v2046_v29 = vld [vmem:[#allocation2 + $0xfc] sm:$0xe] }
 0x240   :  { %v4111_v9 = vrot.slane %v4110_v50, 4  ;;  %v4125_v42 = vrot.slane %v4123_v32, 5  ;;  %v4708_v14 = vrot.slane %v3679_v1, 5  ;;  %v4097_v30 = vrot.slane %v4096_v21, 4  ;;  %v11229_v1 = vpop.permute.xlu0 %6079  ;;  %v8762_v32 = vld [vmem:[#allocation2 + $0xf4] sm:$0xf] }
 0x241   :  { %5935 = vrot.lane.b32.xlu0 %v8258_v18, %s8816_s5  ;;  %v4120_v26 = vor.u32 %v4119_v5, %v4115_v52  ;;  %v4706_v34 = vsel %vm9657_vm14, %v8034_v15, %v4705_v19  ;;  %v4707_v55 = vrot.slane %v4705_v19, 4  ;;  %v6469_v18 = vsel %vm6449_vm2, %v10499_v31, %v11123_v27  ;;  %v11248_v21 = vld [vmem:[#allocation2 + $0xfc] sm:$0xf] }
 0x242   :  { %5585 = vrot.lane.b32.xlu1 %v8195_v3, %s8814_s30  ;;  %v4116_v54 = vsel %vm8911_vm11, %v4111_v9, %v4115_v52  ;;  %v8035_v56 = vrot.slane %v4480_v63, 9  ;;  %v4712_v44 = vrot.slane %v11169_v59, 5  ;;  %v4102_v3 = vsel %vm8911_vm11, %v4097_v30, %v4101_v23  ;;  %v11250_v23 = vld [vmem:[#allocation2 + $0x100] sm:$0xf] }
 0x243   :  { %v4121_v25 = vrot.slane %v4120_v26, 4  ;;  %v4709_v58 = vsel %vm9657_vm14, %v4707_v55, %v4708_v14  ;;  %v4715_v22 = vrot.slane %v11192_v49, 5  ;;  %v8290_v51 = vcombine.low %v4092_v2, %v4102_v3  ;;  %v8763_v9 = vld [vmem:[#allocation2 + $0x100] sm:$0xf]  ;;  %v11265_v14 = vld [vmem:[#allocation2 + $0x108] sm:$0xf] }
 0x244   :  { %v8322_v8 = vcombine.low %v4706_v34, %v4709_v58  ;;  %v6532_v31 = vsel %vm6514_vm4, %v6467_v28, %v11145_v35  ;;  %v4714_v27 = vrot.slane %v4712_v44, 4  ;;  %v11246_v5 = vsel %vm9657_vm14, %v8035_v56, %v4712_v44  ;;  %v11252_v35 = vpop.permute.xlu1 %6081  ;;  %v11259_v52 = vpop.permute.xlu0 %6239  ;;  %v11271_v55 = vld [vmem:[#allocation2 + $0x10c] sm:$0xf]  ;;  %v2464_v58 = vld [vmem:[#allocation2 + $0x104] sm:$0x1] }
 0x245   :  { %v4126_v50 = vsel %vm8911_vm11, %v4121_v25, %v4125_v42  ;;  %v7972_v49 = vrot.slane %v2045_v16, 9  ;;  %v2286_v15 = vrot.slane %v8762_v32, 5  ;;  %6095 = vrot.lane.b32.xlu0 %v8290_v51, %s8817_s6  ;;  %v7973_v28 = vrot.slane %v2046_v29, 9 }
 0x246   :  { %5745 = vrot.lane.b32.xlu1 %v8227_v53, %s8815_s4  ;;  %v8291_v62 = vcombine.low %v4116_v54, %v4126_v50  ;;  %v4716_v61 = vsel %vm9657_vm14, %v4714_v27, %v4715_v22  ;;  %v6534_v53 = vsel %vm6514_vm4, %v6469_v18, %v11160_v17  ;;  %v6597_v2 = vsel %vm6579_vm6, %v6532_v31, %v11177_v47  ;;  %v13008_v47 = vld [vmem:[#allocation10_spill] sm:$0xff]  ;;  %v13010_v22 = vld [vmem:[#allocation11_spill] sm:$0xff] }
 0x247   :  { %v2287_v19 = vsel %vm9657_vm14, %v7972_v49, %v2286_v15  ;;  %v2288_v63 = vrot.slane %v2286_v15, 4  ;;  %v2293_v42 = vrot.slane %v8763_v9, 5  ;;  %v8323_v30 = vcombine.low %v11246_v5, %v4716_v61  ;;  %v11305_v15 = vld [vmem:[#allocation2 + $0x110] sm:$0x1] }
 0x248   :  { %v2911_v26 = vshrl.u32 %v11248_v21, 16  ;;  %v2914_v17 = vshll.u32 %v11248_v21, 16  ;;  %v2924_v34 = vshrl.u32 %v11250_v23, 16  ;;  %v13009_v54 = vrot.slane %v13008_v47, 5  ;;  %v11287_v3 = vpop.permute.xlu1 %6241 }
 0x249   :  { %v11283_v56 = vsel %vm9657_vm14, %v7973_v28, %v2293_v42  ;;  %v2295_v44 = vrot.slane %v2293_v42, 4  ;;  %v8164_v16 = vcombine.low %v11248_v21, %v11250_v23  ;;  %6255 = vrot.lane.b32.xlu0 %v8322_v8, %s8818_s7  ;;  %v13011_v29 = vrot.slane %v13010_v22, 5  ;;  %v11299_v5 = vpop.permute.xlu0 %5411 }
 0x24a   :  { %5937 = vrot.lane.b32.xlu1 %v8259_v37, %s8816_s5  ;;  %v2290_v18 = vsel %vm9657_vm14, %v2288_v63, %v13009_v54  ;;  %v2913_v45 = vrot.slane %v2911_v26, 4  ;;  %v2916_v59 = vrot.slane %v2914_v17, 5  ;;  %v6599_v37 = vsel %vm6579_vm6, %v6534_v53, %v11194_v57 }
 0x24b   :  { %v8132_v25 = vcombine.low %v2287_v19, %v2290_v18  ;;  %v2297_v51 = vsel %vm9657_vm14, %v2295_v44, %v13011_v29  ;;  %v2935_v31 = vshrl.u32 %v11265_v14, 16  ;;  %v2938_v27 = vshll.u32 %v11265_v14, 16  ;;  %v3264_v19 = vld [vmem:[#allocation2 + $0xfc] sm:$0xe] }
 0x24c   :  { %v2948_v50 = vshrl.u32 %v11271_v55, 16  ;;  %v8133_v8 = vcombine.low %v11283_v56, %v2297_v51  ;;  %v6662_v49 = vsel %vm6644_vm7, %v6597_v2, %v11202_v39  ;;  %v2917_v57 = vor.u32 %v2916_v59, %v2913_v45  ;;  %v11313_v2 = vpop.permute.xlu1 %5413  ;;  %v3265_v45 = vld [vmem:[#allocation2 + $0x108] sm:$0xe] }
 0x24d   :  { %v2920_v32 = vshll.u32 %v11250_v23, 16  ;;  %v2937_v21 = vrot.slane %v2935_v31, 4  ;;  %v2940_v61 = vrot.slane %v2938_v27, 5  ;;  %v2926_v53 = vrot.slane %v2924_v34, 4  ;;  %5235 = vrot.lane.b32.xlu0 %v8132_v25, %s8812_s29  ;;  %v11328_v51 = vld [vmem:[#allocation2 + $0x108] sm:$0xf] }
 0x24e   :  { %6097 = vrot.lane.b32.xlu1 %v8291_v62, %s8817_s6  ;;  %v2930_v28 = vshll.u32 %v2464_v58, 16  ;;  %v8165_v63 = vcombine.low %v11265_v14, %v11271_v55  ;;  %v2918_v9 = vrot.slane %v2917_v57, 4  ;;  %v6664_v39 = vsel %vm6644_vm7, %v6599_v37, %v11215_v4 }
 0x24f   :  { %v2922_v42 = vrot.slane %v2920_v32, 5  ;;  %v6727_v62 = vsel %vm6709_vm12, %v6662_v49, %v11229_v1  ;;  %v2941_v26 = vor.u32 %v2940_v61, %v2937_v21  ;;  %v2944_v17 = vshll.u32 %v11271_v55, 16  ;;  %v11323_v1 = vpop.permute.xlu0 %5571  ;;  %v11339_v49 = vld [vmem:[#allocation2 + $0x10c] sm:$0xf] }
 0x250   :  { %v2950_v34 = vrot.slane %v2948_v50, 4  ;;  %v2932_v54 = vrot.slane %v2930_v28, 5  ;;  %v2954_v18 = vshll.u32 %v11305_v15, 16  ;;  %v8004_v56 = vrot.slane %v3264_v19, 9 }
 0x251   :  { %v2927_v47 = vor.u32 %v2926_v53, %v2922_v42  ;;  %v2923_v14 = vsel %vm8911_vm11, %v2918_v9, %v2922_v42  ;;  %v2946_v4 = vrot.slane %v2944_v17, 5  ;;  %v3502_v44 = vrot.slane %v11250_v23, 5  ;;  %5427 = vrot.lane.b32.xlu0 %v8164_v16, %s8813_s26  ;;  %v11354_v9 = vld [vmem:[#allocation2 + $0x114] sm:$0xf] }
 0x252   :  { %6257 = vrot.lane.b32.xlu1 %v8323_v30, %s8818_s7  ;;  %v3505_v25 = vrot.slane %v2464_v58, 5  ;;  %v2942_v37 = vrot.slane %v2941_v26, 4  ;;  %v2956_v22 = vrot.slane %v2954_v18, 5  ;;  %v6792_v29 = vsel %vm6774_vm13, %v6727_v62, %v11259_v52  ;;  %v11360_v26 = vld [vmem:[#allocation2 + $0x118] sm:$0xf] }
 0x253   :  { %v2928_v59 = vrot.slane %v2927_v47, 4  ;;  %v2951_v30 = vor.u32 %v2950_v34, %v2946_v4  ;;  %v3503_v31 = vsel %vm9657_vm14, %v8004_v56, %v3502_v44  ;;  %v3504_v27 = vrot.slane %v3502_v44, 4  ;;  %8558 = vmatprep.mubr.msk.bf16.mxu0 %vm6859_vm8, %v6792_v29  ;;  %v11341_v57 = vpop.permute.xlu1 %5573  ;;  %v11347_v53 = vpop.permute.xlu0 %5731  ;;  %v3681_v18 = vld [vmem:[#allocation2 + $0x110] sm:$0x1] }
 0x254   :  { %v6729_v23 = vsel %vm6709_vm12, %v6664_v39, %v11252_v35  ;;  %v8005_v58 = vrot.slane %v3265_v45, 9  ;;  %v3509_v50 = vrot.slane %v11271_v55, 5  ;;  %v3512_v52 = vrot.slane %v11305_v15, 5 }
 0x255   :  { %v2933_v16 = vsel %vm8911_vm11, %v2928_v59, %v2932_v54  ;;  %v2952_v21 = vrot.slane %v2951_v30, 4  ;;  %v3506_v35 = vsel %vm9657_vm14, %v3504_v27, %v3505_v25  ;;  %v4128_v61 = vshrl.u32 %v11328_v51, 16  ;;  %v4481_v27 = vld [vmem:[#allocation2 + $0x108] sm:$0xe] }
 0x256   :  { %5237 = vrot.lane.b32.xlu1 %v8133_v8, %s8812_s29  ;;  %v8196_v32 = vcombine.low %v2923_v14, %v2933_v16  ;;  %v2947_v55 = vsel %vm8911_vm11, %v2942_v37, %v2946_v4  ;;  %v3510_v15 = vsel %vm9657_vm14, %v8005_v58, %v3509_v50  ;;  %v3511_v28 = vrot.slane %v3509_v50, 4 }
 0x257   :  { %v4131_v19 = vshll.u32 %v11328_v51, 16  ;;  %v2957_v8 = vsel %vm8911_vm11, %v2952_v21, %v2956_v22  ;;  %v8228_v42 = vcombine.low %v3503_v31, %v3506_v35  ;;  %v4130_v39 = vrot.slane %v4128_v61, 4  ;;  %v11368_v56 = vpop.permute.xlu1 %5733 }
 0x258   :  { %5587 = vrot.lane.b32.xlu0 %v8196_v32, %s8814_s30  ;;  %v4141_v62 = vshrl.u32 %v11339_v49, 16  ;;  %v3513_v17 = vsel %vm9657_vm14, %v3511_v28, %v3512_v52  ;;  %v8260_v47 = vcombine.low %v11328_v51, %v11339_v49  ;;  %v6794_v54 = vsel %vm6774_vm13, %v6729_v23, %v11287_v3  ;;  %v11374_v45 = vpop.permute.xlu0 %5923 }
 0x259   :  { %v4133_v34 = vrot.slane %v4131_v19, 5  ;;  %v8197_v14 = vcombine.low %v2947_v55, %v2957_v8  ;;  %v8229_v4 = vcombine.low %v3510_v15, %v3513_v17  ;;  %v4152_v44 = vshrl.u32 %v11354_v9, 16  ;;  %8559 = vmatmul.mubr.msk.bf16.gmra.mxu0 %vm6859_vm8, %v6794_v54  ;;  %v2047_v17 = vld [vmem:[#allocation2 + $0x108] sm:$0xe] }
 0x25a   :  { %5429 = vrot.lane.b32.xlu1 %v8165_v63, %s8813_s26  ;;  %v4155_v25 = vshll.u32 %v11354_v9, 16  ;;  %v6471_v59 = vsel %vm6449_vm2, %v10503_v33, %v11299_v5  ;;  %v4165_v3 = vshrl.u32 %v11360_v26, 16  ;;  %v4137_v22 = vshll.u32 %v11339_v49, 16  ;;  %v11381_v63 = vld [vmem:[#allocation2 + $0x11c] sm:$0x1] }
 0x25b   :  { %v4134_v37 = vor.u32 %v4133_v34, %v4130_v39  ;;  %v4154_v29 = vrot.slane %v4152_v44, 4  ;;  %v4143_v30 = vrot.slane %v4141_v62, 4  ;;  %v4147_v31 = vshll.u32 %v3681_v18, 16  ;;  %v11393_v21 = vpop.permute.xlu1 %5925 }
 0x25c   :  { %5747 = vrot.lane.b32.xlu0 %v8228_v42, %s8815_s4  ;;  %v4157_v51 = vrot.slane %v4155_v25, 5  ;;  %v8261_v23 = vcombine.low %v11354_v9, %v11360_v26  ;;  %v4139_v58 = vrot.slane %v4137_v22, 5  ;;  %v6473_v33 = vsel %vm6449_vm2, %v10515_v10, %v11313_v2  ;;  %v4482_v9 = vld [vmem:[#allocation2 + $0x114] sm:$0xe] }
 0x25d   :  { %v4135_v16 = vrot.slane %v4134_v37, 4  ;;  %v6536_v5 = vsel %vm6514_vm4, %v6471_v59, %v11323_v1  ;;  %v4161_v52 = vshll.u32 %v11360_v26, 16  ;;  %v4167_v32 = vrot.slane %v4165_v3, 4 }
 0x25e   :  { %5589 = vrot.lane.b32.xlu1 %v8197_v14, %s8814_s30  ;;  %v4158_v50 = vor.u32 %v4157_v51, %v4154_v29  ;;  %v4144_v35 = vor.u32 %v4143_v30, %v4139_v58  ;;  %v4149_v61 = vrot.slane %v4147_v31, 5  ;;  %v4171_v55 = vshll.u32 %v11381_v63, 16  ;;  %v11398_v1 = vpop.permute.xlu0 %6083 }
 0x25f   :  { %v8036_v15 = vrot.slane %v4481_v27, 9  ;;  %v4163_v10 = vrot.slane %v4161_v52, 5  ;;  %v4719_v2 = vrot.slane %v11339_v49, 5  ;;  %v4722_v19 = vrot.slane %v3681_v18, 5  ;;  %v8764_v27 = vld [vmem:[#allocation2 + $0x10c] sm:$0xf] }
 0x260   :  { %5939 = vrot.lane.b32.xlu0 %v8260_v47, %s8816_s5  ;;  %v4159_v28 = vrot.slane %v4158_v50, 4  ;;  %v4140_v8 = vsel %vm8911_vm11, %v4135_v16, %v4139_v58  ;;  %v4145_v42 = vrot.slane %v4144_v35, 4  ;;  %v4173_v39 = vrot.slane %v4171_v55, 5 }
 0x261   :  { %v6538_v62 = vsel %vm6514_vm4, %v6473_v33, %v11341_v57  ;;  %v4168_v47 = vor.u32 %v4167_v32, %v4163_v10  ;;  %v4720_v49 = vsel %vm9657_vm14, %v8036_v15, %v4719_v2  ;;  %v4721_v54 = vrot.slane %v4719_v2, 4  ;;  %v2048_v57 = vld [vmem:[#allocation2 + $0x114] sm:$0xe] }
 0x262   :  { %5749 = vrot.lane.b32.xlu1 %v8229_v4, %s8815_s4  ;;  %v4164_v34 = vsel %vm8911_vm11, %v4159_v28, %v4163_v10  ;;  %v4150_v18 = vsel %vm8911_vm11, %v4145_v42, %v4149_v61  ;;  %v8037_v14 = vrot.slane %v4482_v9, 9  ;;  %v4726_v44 = vrot.slane %v11360_v26, 5  ;;  %v11415_v22 = vpop.permute.xlu1 %6085  ;;  %v6244_v29 = vpop.permute.xlu0 %6243  ;;  %v11419_v26 = vld [vmem:[#allocation2 + $0x114] sm:$0xf]  ;;  %v8765_v61 = vld [vmem:[#allocation2 + $0x118] sm:$0xf] }
 0x263   :  { %v4729_v25 = vrot.slane %v11381_v63, 5  ;;  %v8292_v59 = vcombine.low %v4140_v8, %v4150_v18  ;;  %v4169_v3 = vrot.slane %v4168_v47, 4  ;;  %v4723_v4 = vsel %vm9657_vm14, %v4721_v54, %v4722_v19  ;;  %v11439_v28 = vld [vmem:[#allocation2 + $0x120] sm:$0xf] }
 0x264   :  { %v7974_v37 = vrot.slane %v2047_v17, 9  ;;  %v8324_v51 = vcombine.low %v4720_v49, %v4723_v4  ;;  %v6601_v30 = vsel %vm6579_vm6, %v6536_v5, %v11347_v53  ;;  %v4728_v31 = vrot.slane %v4726_v44, 4  ;;  %v11429_v53 = vld [vmem:[#allocation2 + $0x118] sm:$0xf]  ;;  %v13012_v19 = vld [vmem:[#allocation12_spill] sm:$0xff] }
 0x265   :  { %v2300_v16 = vrot.slane %v8764_v27, 5  ;;  %6099 = vrot.lane.b32.xlu0 %v8292_v59, %s8817_s6  ;;  %v4174_v63 = vsel %vm8911_vm11, %v4169_v3, %v4173_v39  ;;  %v4727_v58 = vsel %vm9657_vm14, %v8037_v14, %v4726_v44  ;;  %v6603_v33 = vsel %vm6579_vm6, %v6538_v62, %v11368_v56  ;;  %v11448_v39 = vld [vmem:[#allocation2 + $0x124] sm:$0xf] }
 0x266   :  { %5941 = vrot.lane.b32.xlu1 %v8261_v23, %s8816_s5  ;;  %v7975_v50 = vrot.slane %v2048_v57, 9  ;;  %v8293_v5 = vcombine.low %v4164_v34, %v4174_v63  ;;  %v4730_v52 = vsel %vm9657_vm14, %v4728_v31, %v4729_v25  ;;  %v6666_v35 = vsel %vm6644_vm7, %v6601_v30, %v11374_v45  ;;  %v6246_v10 = vpop.permute.xlu1 %6245  ;;  %v11450_v62 = vpop.permute.xlu0 %5415  ;;  %v2466_v25 = vld [vmem:[#allocation2 + $0x11c] sm:$0x1]  ;;  %v13014_v57 = vld [vmem:[#allocation13_spill] sm:$0xff] }
 0x267   :  { %v2301_v23 = vsel %vm9657_vm14, %v7974_v37, %v2300_v16  ;;  %v2302_v32 = vrot.slane %v2300_v16, 4  ;;  %v2307_v55 = vrot.slane %v8765_v61, 5  ;;  %v2959_v15 = vshrl.u32 %v11419_v26, 16  ;;  %v11470_v16 = vld [vmem:[#allocation2 + $0x128] sm:$0x1] }
 0x268   :  { %v2962_v56 = vshll.u32 %v11419_v26, 16  ;;  %v8325_v2 = vcombine.low %v4727_v58, %v4730_v52  ;;  %v13013_v9 = vrot.slane %v13012_v19, 5  ;;  %v2972_v42 = vshrl.u32 %v11429_v53, 16 }
 0x269   :  { %v8166_v45 = vcombine.low %v11419_v26, %v11429_v53  ;;  %6259 = vrot.lane.b32.xlu0 %v8324_v51, %s8818_s7  ;;  %v2309_v34 = vrot.slane %v2307_v55, 4  ;;  %v2961_v47 = vrot.slane %v2959_v15, 4  ;;  %v6668_v49 = vsel %vm6644_vm7, %v6603_v33, %v11393_v21 }
 0x26a   :  { %v2304_v8 = vsel %vm9657_vm14, %v2302_v32, %v13013_v9  ;;  %6101 = vrot.lane.b32.xlu1 %v8293_v5, %s8817_s6  ;;  %v2308_v54 = vsel %vm9657_vm14, %v7975_v50, %v2307_v55  ;;  %v2964_v18 = vrot.slane %v2962_v56, 5  ;;  %v2983_v14 = vshrl.u32 %v11439_v28, 16  ;;  %v11472_v26 = vpop.permute.xlu1 %5417  ;;  %v3266_v50 = vld [vmem:[#allocation2 + $0x114] sm:$0xe] }
 0x26b   :  { %v8134_v17 = vcombine.low %v2301_v23, %v2304_v8  ;;  %v2986_v44 = vshll.u32 %v11439_v28, 16  ;;  %v13015_v59 = vrot.slane %v13014_v57, 5  ;;  %v6731_v4 = vsel %vm6709_vm12, %v6666_v35, %v11398_v1  ;;  %v3267_v8 = vld [vmem:[#allocation2 + $0x120] sm:$0xe] }
 0x26c   :  { %v2996_v37 = vshrl.u32 %v11448_v39, 16  ;;  %v2968_v21 = vshll.u32 %v11429_v53, 16  ;;  %v2985_v51 = vrot.slane %v2983_v14, 4  ;;  %v8167_v31 = vcombine.low %v11439_v28, %v11448_v39  ;;  %v11490_v14 = vld [vmem:[#allocation2 + $0x124] sm:$0xf] }
 0x26d   :  { %v2311_v3 = vsel %vm9657_vm14, %v2309_v34, %v13015_v59  ;;  %v2988_v30 = vrot.slane %v2986_v44, 5  ;;  %v2965_v27 = vor.u32 %v2964_v18, %v2961_v47  ;;  %5239 = vrot.lane.b32.xlu0 %v8134_v17, %s8812_s29  ;;  %v2974_v58 = vrot.slane %v2972_v42, 4  ;;  %v5576_v35 = vpop.permute.xlu0 %5575  ;;  %v3639_v18 = vld [vmem:[#allocation2 + $0x120] sm:$0xf] }
 0x26e   :  { %6261 = vrot.lane.b32.xlu1 %v8325_v2, %s8818_s7  ;;  %v8135_v63 = vcombine.low %v2308_v54, %v2311_v3  ;;  %v2970_v1 = vrot.slane %v2968_v21, 5  ;;  %v2978_v33 = vshll.u32 %v2466_v25, 16  ;;  %v6796_v52 = vsel %vm6774_vm13, %v6731_v4, %v6244_v29 }
 0x26f   :  { %v2966_v5 = vrot.slane %v2965_v27, 4  ;;  %v2989_v23 = vor.u32 %v2988_v30, %v2985_v51  ;;  %v2992_v32 = vshll.u32 %v11448_v39, 16  ;;  %v2998_v15 = vrot.slane %v2996_v37, 4  ;;  %8562 = vmatprep.mubr.msk.bf16.mxu0 %vm6859_vm8, %v6796_v52  ;;  %v5578_v44 = vpop.permute.xlu1 %5577 }
 0x270   :  { %v2975_v61 = vor.u32 %v2974_v58, %v2970_v1  ;;  %v2980_v55 = vrot.slane %v2978_v33, 5  ;;  %v3002_v56 = vshll.u32 %v11470_v16, 16  ;;  %v6733_v28 = vsel %vm6709_vm12, %v6668_v49, %v11415_v22  ;;  %v11508_v33 = vld [vmem:[#allocation2 + $0x130] sm:$0xf] }
 0x271   :  { %v2990_v2 = vrot.slane %v2989_v23, 4  ;;  %v2994_v19 = vrot.slane %v2992_v32, 5  ;;  %v8006_v9 = vrot.slane %v3266_v50, 9  ;;  %5431 = vrot.lane.b32.xlu0 %v8166_v45, %s8813_s26  ;;  %v2971_v29 = vsel %vm8911_vm11, %v2966_v5, %v2970_v1  ;;  %v5736_v57 = vpop.permute.xlu0 %5735 }
 0x272   :  { %5241 = vrot.lane.b32.xlu1 %v8135_v63, %s8812_s29  ;;  %v2976_v42 = vrot.slane %v2975_v61, 4  ;;  %v3516_v17 = vrot.slane %v11429_v53, 5  ;;  %v3519_v34 = vrot.slane %v2466_v25, 5  ;;  %v3004_v22 = vrot.slane %v3002_v56, 5  ;;  %v3641_v63 = vld [vmem:[#allocation2 + $0x12c] sm:$0xf] }
 0x273   :  { %v2995_v47 = vsel %vm8911_vm11, %v2990_v2, %v2994_v19  ;;  %v2999_v54 = vor.u32 %v2998_v15, %v2994_v19  ;;  %v6798_v49 = vsel %vm6774_vm13, %v6733_v28, %v6246_v10  ;;  %v8007_v25 = vrot.slane %v3267_v8, 9  ;;  %v3683_v56 = vld [vmem:[#allocation2 + $0x128] sm:$0x1]  ;;  %v5738_v28 = vpop.permute.xlu1 %5737 }
 0x274   :  { %v2981_v45 = vsel %vm8911_vm11, %v2976_v42, %v2980_v55  ;;  %v3517_v59 = vsel %vm9657_vm14, %v8006_v9, %v3516_v17  ;;  %v3518_v53 = vrot.slane %v3516_v17, 4  ;;  %8563 = vmatmul.mubr.msk.bf16.gmra.mxu0 %vm6859_vm8, %v6798_v49  ;;  %v3523_v37 = vrot.slane %v11448_v39, 5  ;;  %v11524_v9 = vld [vmem:[#allocation2 + $0x134] sm:$0x1] }
 0x275   :  { %v8198_v3 = vcombine.low %v2971_v29, %v2981_v45  ;;  %v3000_v4 = vrot.slane %v2999_v54, 4  ;;  %v3526_v10 = vrot.slane %v11470_v16, 5  ;;  %v4176_v51 = vshrl.u32 %v3639_v18, 16 }
 0x276   :  { %5433 = vrot.lane.b32.xlu1 %v8167_v31, %s8813_s26  ;;  %v3520_v21 = vsel %vm9657_vm14, %v3518_v53, %v3519_v34  ;;  %v4179_v30 = vshll.u32 %v3639_v18, 16  ;;  %v4189_v27 = vshrl.u32 %v11490_v14, 16  ;;  %v3524_v39 = vsel %vm9657_vm14, %v8007_v25, %v3523_v37  ;;  %v11510_v31 = vpop.permute.xlu0 %5927 }
 0x277   :  { %5591 = vrot.lane.b32.xlu0 %v8198_v3, %s8814_s30  ;;  %v3005_v1 = vsel %vm8911_vm11, %v3000_v4, %v3004_v22  ;;  %v8230_v58 = vcombine.low %v3517_v59, %v3520_v21  ;;  %v3525_v16 = vrot.slane %v3523_v37, 4  ;;  %v6475_v5 = vsel %vm6449_vm2, %v10521_v36, %v11450_v62  ;;  %v4484_v21 = vld [vmem:[#allocation2 + $0x12c] sm:$0xe] }
 0x278   :  { %v8199_v50 = vcombine.low %v2995_v47, %v3005_v1  ;;  %v4178_v52 = vrot.slane %v4176_v51, 4  ;;  %v4181_v23 = vrot.slane %v4179_v30, 5  ;;  %v8262_v61 = vcombine.low %v3639_v18, %v11490_v14  ;;  %v5930_v51 = vpop.permute.xlu1 %5929 }
 0x279   :  { %v3527_v32 = vsel %vm9657_vm14, %v3525_v16, %v3526_v10  ;;  %v6477_v55 = vsel %vm6449_vm2, %v10533_v38, %v11472_v26  ;;  %v4200_v15 = vshrl.u32 %v3641_v63, 16  ;;  %v6540_v19 = vsel %vm6514_vm4, %v6475_v5, %v5576_v35  ;;  %v4483_v26 = vld [vmem:[#allocation2 + $0x120] sm:$0xe] }
 0x27a   :  { %5593 = vrot.lane.b32.xlu1 %v8199_v50, %s8814_s30  ;;  %v8231_v2 = vcombine.low %v3524_v39, %v3527_v32  ;;  %v4203_v36 = vshll.u32 %v3641_v63, 16  ;;  %v4213_v62 = vshrl.u32 %v11508_v33, 16  ;;  %v4182_v29 = vor.u32 %v4181_v23, %v4178_v52  ;;  %v2049_v32 = vld [vmem:[#allocation2 + $0x120] sm:$0xe] }
 0x27b   :  { %5751 = vrot.lane.b32.xlu0 %v8230_v58, %s8815_s4  ;;  %v4202_v8 = vrot.slane %v4200_v15, 4  ;;  %v4185_v42 = vshll.u32 %v11490_v14, 16  ;;  %v4191_v38 = vrot.slane %v4189_v27, 4  ;;  %v8263_v34 = vcombine.low %v3641_v63, %v11508_v33  ;;  %v6088_v45 = vpop.permute.xlu0 %6087 }
 0x27c   :  { %v4205_v17 = vrot.slane %v4203_v36, 5  ;;  %v4195_v47 = vshll.u32 %v3683_v56, 16  ;;  %v6542_v54 = vsel %vm6514_vm4, %v6477_v55, %v5578_v44  ;;  %v4183_v35 = vrot.slane %v4182_v29, 4 }
 0x27d   :  { %v4187_v22 = vrot.slane %v4185_v42, 5  ;;  %v4209_v49 = vshll.u32 %v11508_v33, 16  ;;  %v4215_v18 = vrot.slane %v4213_v62, 4  ;;  %v6605_v59 = vsel %vm6579_vm6, %v6540_v19, %v5736_v57  ;;  %v8766_v42 = vld [vmem:[#allocation2 + $0x124] sm:$0xf] }
 0x27e   :  { %5753 = vrot.lane.b32.xlu1 %v8231_v2, %s8815_s4  ;;  %v4206_v53 = vor.u32 %v4205_v17, %v4202_v8  ;;  %v4219_v25 = vshll.u32 %v11524_v9, 16  ;;  %v8038_v3 = vrot.slane %v4483_v26, 9  ;;  %v4197_v37 = vrot.slane %v4195_v47, 5  ;;  %v2050_v2 = vld [vmem:[#allocation2 + $0x12c] sm:$0xe] }
 0x27f   :  { %5943 = vrot.lane.b32.xlu0 %v8262_v61, %s8816_s5  ;;  %v4192_v4 = vor.u32 %v4191_v38, %v4187_v22  ;;  %v4211_v10 = vrot.slane %v4209_v49, 5  ;;  %v4733_v44 = vrot.slane %v11490_v14, 5  ;;  %v4188_v30 = vsel %vm8911_vm11, %v4183_v35, %v4187_v22  ;;  %v6248_v50 = vpop.permute.xlu0 %6247  ;;  %v11556_v26 = vld [vmem:[#allocation2 + $0x12c] sm:$0xf]  ;;  %v11558_v17 = vld [vmem:[#allocation2 + $0x130] sm:$0xf] }
 0x280   :  { %v4207_v27 = vrot.slane %v4206_v53, 4  ;;  %v4221_v63 = vrot.slane %v4219_v25, 5  ;;  %v4736_v1 = vrot.slane %v3683_v56, 5  ;;  %v6607_v5 = vsel %vm6579_vm6, %v6542_v54, %v5738_v28  ;;  %v11567_v53 = vld [vmem:[#allocation2 + $0x138] sm:$0xf] }
 0x281   :  { %v4193_v57 = vrot.slane %v4192_v4, 4  ;;  %v4216_v58 = vor.u32 %v4215_v18, %v4211_v10  ;;  %v4734_v39 = vsel %vm9657_vm14, %v8038_v3, %v4733_v44  ;;  %v4735_v16 = vrot.slane %v4733_v44, 4  ;;  %v8767_v18 = vld [vmem:[#allocation2 + $0x130] sm:$0xf]  ;;  %v11573_v44 = vld [vmem:[#allocation2 + $0x13c] sm:$0xf] }
 0x282   :  { %5945 = vrot.lane.b32.xlu1 %v8263_v34, %s8816_s5  ;;  %v4212_v14 = vsel %vm8911_vm11, %v4207_v27, %v4211_v10  ;;  %v8039_v52 = vrot.slane %v4484_v21, 9  ;;  %v4740_v23 = vrot.slane %v11508_v33, 5  ;;  %v4743_v56 = vrot.slane %v11524_v9, 5  ;;  %v6090_v9 = vpop.permute.xlu1 %6089  ;;  %v13016_v21 = vld [vmem:[#allocation14_spill] sm:$0xff] }
 0x283   :  { %v4198_v61 = vsel %vm8911_vm11, %v4193_v57, %v4197_v37  ;;  %v4217_v55 = vrot.slane %v4216_v58, 4  ;;  %v4737_v15 = vsel %vm9657_vm14, %v4735_v16, %v4736_v1  ;;  %v6670_v62 = vsel %vm6644_vm7, %v6605_v59, %v11510_v31  ;;  %v5420_v25 = vpop.permute.xlu0 %5419  ;;  %v2468_v16 = vld [vmem:[#allocation2 + $0x134] sm:$0x1] }
 0x284   :  { %v8294_v19 = vcombine.low %v4188_v30, %v4198_v61  ;;  %v8326_v36 = vcombine.low %v4734_v39, %v4737_v15  ;;  %v4742_v28 = vrot.slane %v4740_v23, 4  ;;  %v4741_v8 = vsel %vm9657_vm14, %v8039_v52, %v4740_v23 }
 0x285   :  { %v4222_v33 = vsel %vm8911_vm11, %v4217_v55, %v4221_v63  ;;  %v7976_v29 = vrot.slane %v2049_v32, 9  ;;  %v2314_v38 = vrot.slane %v8766_v42, 5  ;;  %v6672_v47 = vsel %vm6644_vm7, %v6607_v5, %v5930_v51 }
 0x286   :  { %6103 = vrot.lane.b32.xlu0 %v8294_v19, %s8817_s6  ;;  %v8295_v34 = vcombine.low %v4212_v14, %v4222_v33  ;;  %v4744_v31 = vsel %vm9657_vm14, %v4742_v28, %v4743_v56  ;;  %v7977_v54 = vrot.slane %v2050_v2, 9  ;;  %v6735_v49 = vsel %vm6709_vm12, %v6670_v62, %v6088_v45  ;;  %v13018_v14 = vld [vmem:[#allocation15_spill] sm:$0xff]  ;;  %v6250_v55 = vpop.permute.xlu1 %6249 }
 0x287   :  { %v2315_v35 = vsel %vm9657_vm14, %v7976_v29, %v2314_v38  ;;  %v2316_v22 = vrot.slane %v2314_v38, 4  ;;  %v2321_v59 = vrot.slane %v8767_v18, 5  ;;  %v8327_v3 = vcombine.low %v4741_v8, %v4744_v31  ;;  %v11596_v19 = vld [vmem:[#allocation2 + $0x140] sm:$0x1]  ;;  %v3268_v8 = vld [vmem:[#allocation2 + $0x12c] sm:$0xe] }
 0x288   :  { %6105 = vrot.lane.b32.xlu1 %v8295_v34, %s8817_s6  ;;  %v3007_v4 = vshrl.u32 %v11556_v26, 16  ;;  %v3010_v37 = vshll.u32 %v11556_v26, 16  ;;  %v3020_v10 = vshrl.u32 %v11558_v17, 16  ;;  %v13017_v51 = vrot.slane %v13016_v21, 5 }
 0x289   :  { %v2322_v30 = vsel %vm9657_vm14, %v7977_v54, %v2321_v59  ;;  %v2323_v27 = vrot.slane %v2321_v59, 4  ;;  %v8168_v63 = vcombine.low %v11556_v26, %v11558_v17  ;;  %v6800_v39 = vsel %vm6774_vm13, %v6735_v49, %v6248_v50  ;;  %v5580_v29 = vpop.permute.xlu0 %5579  ;;  %v3269_v59 = vld [vmem:[#allocation2 + $0x138] sm:$0xe] }
 0x28a   :  { %v2318_v45 = vsel %vm9657_vm14, %v2316_v22, %v13017_v51  ;;  %6263 = vrot.lane.b32.xlu0 %v8326_v36, %s8818_s7  ;;  %v3009_v57 = vrot.slane %v3007_v4, 4  ;;  %v3012_v58 = vrot.slane %v3010_v37, 5  ;;  %v13019_v5 = vrot.slane %v13018_v14, 5  ;;  %8566 = vmatprep.mubr.msk.bf16.mxu0 %vm6859_vm8, %v6800_v39  ;;  %v11613_v51 = vld [vmem:[#allocation2 + $0x138] sm:$0xf] }
 0x28b   :  { %v8136_v1 = vcombine.low %v2315_v35, %v2318_v45  ;;  %v3031_v23 = vshrl.u32 %v11567_v53, 16  ;;  %v3034_v32 = vshll.u32 %v11567_v53, 16  ;;  %v3044_v61 = vshrl.u32 %v11573_v44, 16  ;;  %v11624_v14 = vld [vmem:[#allocation2 + $0x13c] sm:$0xf] }
 0x28c   :  { %v2325_v52 = vsel %vm9657_vm14, %v2323_v27, %v13019_v5  ;;  %6265 = vrot.lane.b32.xlu1 %v8327_v3, %s8818_s7  ;;  %v6737_v50 = vsel %vm6709_vm12, %v6672_v47, %v6090_v9  ;;  %v3013_v56 = vor.u32 %v3012_v58, %v3009_v57  ;;  %v3016_v2 = vshll.u32 %v11558_v17, 16 }
 0x28d   :  { %v8137_v15 = vcombine.low %v2322_v30, %v2325_v52  ;;  %v3033_v36 = vrot.slane %v3031_v23, 4  ;;  %v3036_v62 = vrot.slane %v3034_v32, 5  ;;  %v3022_v28 = vrot.slane %v3020_v10, 4 }
 0x28e   :  { %v3026_v33 = vshll.u32 %v2468_v16, 16  ;;  %5243 = vrot.lane.b32.xlu0 %v8136_v1, %s8812_s29  ;;  %v8169_v42 = vcombine.low %v11567_v53, %v11573_v44  ;;  %v3014_v38 = vrot.slane %v3013_v56, 4  ;;  %v3018_v26 = vrot.slane %v3016_v2, 5  ;;  %v3645_v56 = vld [vmem:[#allocation2 + $0x144] sm:$0xf] }
 0x28f   :  { %v6802_v9 = vsel %vm6774_vm13, %v6737_v50, %v6250_v55  ;;  %v6479_v34 = vsel %vm6449_vm2, %v10552_v0, %v5420_v25  ;;  %v3037_v31 = vor.u32 %v3036_v62, %v3033_v36  ;;  %v3040_v47 = vshll.u32 %v11573_v44, 16 }
 0x290   :  { %v3046_v54 = vrot.slane %v3044_v61, 4  ;;  %8567 = vmatmul.mubr.msk.bf16.gmra.mxu0 %vm6859_vm8, %v6802_v9  ;;  %5245 = vrot.lane.b32.xlu1 %v8137_v15, %s8812_s29  ;;  %v3023_v35 = vor.u32 %v3022_v28, %v3018_v26  ;;  %v3028_v22 = vrot.slane %v3026_v33, 5  ;;  %v3050_v49 = vshll.u32 %v11596_v19, 16  ;;  %v5422_v1 = vpop.permute.xlu1 %5421 }
 0x291   :  { %v8008_v18 = vrot.slane %v3268_v8, 9  ;;  %v3038_v53 = vrot.slane %v3037_v31, 4  ;;  %v3042_v3 = vrot.slane %v3040_v47, 5  ;;  %v3530_v4 = vrot.slane %v11558_v17, 5  ;;  %v5740_v17 = vpop.permute.xlu0 %5739 }
 0x292   :  { %v3533_v37 = vrot.slane %v2468_v16, 5  ;;  %5435 = vrot.lane.b32.xlu0 %v8168_v63, %s8813_s26  ;;  %v3019_v0 = vsel %vm8911_vm11, %v3014_v38, %v3018_v26  ;;  %v3024_v25 = vrot.slane %v3023_v35, 4  ;;  %v3052_v10 = vrot.slane %v3050_v49, 5 }
 0x293   :  { %v6544_v21 = vsel %vm6514_vm4, %v6479_v34, %v5580_v29  ;;  %v3047_v45 = vor.u32 %v3046_v54, %v3042_v3  ;;  %v3531_v30 = vsel %vm9657_vm14, %v8008_v18, %v3530_v4  ;;  %v3532_v27 = vrot.slane %v3530_v4, 4  ;;  %v3685_v29 = vld [vmem:[#allocation2 + $0x140] sm:$0x1] }
 0x294   :  { %v8009_v57 = vrot.slane %v3269_v59, 9  ;;  %5437 = vrot.lane.b32.xlu1 %v8169_v42, %s8813_s26  ;;  %v3029_v63 = vsel %vm8911_vm11, %v3024_v25, %v3028_v22  ;;  %v3043_v58 = vsel %vm8911_vm11, %v3038_v53, %v3042_v3  ;;  %v3537_v39 = vrot.slane %v11573_v44, 5  ;;  %v11632_v44 = vld [vmem:[#allocation2 + $0x148] sm:$0xf]  ;;  %v11648_v22 = vld [vmem:[#allocation2 + $0x14c] sm:$0x1] }
 0x295   :  { %v3540_v16 = vrot.slane %v11596_v19, 5  ;;  %v8200_v5 = vcombine.low %v3019_v0, %v3029_v63  ;;  %v3048_v52 = vrot.slane %v3047_v45, 4  ;;  %v3534_v23 = vsel %vm9657_vm14, %v3532_v27, %v3533_v37  ;;  %v5932_v34 = vpop.permute.xlu0 %5931  ;;  %v4485_v3 = vld [vmem:[#allocation2 + $0x138] sm:$0xe]  ;;  %v4486_v27 = vld [vmem:[#allocation2 + $0x144] sm:$0xe] }
 0x296   :  { %v4224_v32 = vshrl.u32 %v11613_v51, 16  ;;  %v8232_v61 = vcombine.low %v3531_v30, %v3534_v23  ;;  %v6481_v55 = vsel %vm6449_vm2, %v10569_v7, %v5422_v1  ;;  %v3539_v15 = vrot.slane %v3537_v39, 4 }
 0x297   :  { %v4227_v50 = vshll.u32 %v11613_v51, 16  ;;  %5595 = vrot.lane.b32.xlu0 %v8200_v5, %s8814_s30  ;;  %v3053_v2 = vsel %vm8911_vm11, %v3048_v52, %v3052_v10  ;;  %v3538_v19 = vsel %vm9657_vm14, %v8009_v57, %v3537_v39  ;;  %v4237_v62 = vshrl.u32 %v11624_v14, 16 }
 0x298   :  { %v4226_v36 = vrot.slane %v4224_v32, 4  ;;  %v8201_v28 = vcombine.low %v3043_v58, %v3053_v2  ;;  %v3541_v7 = vsel %vm9657_vm14, %v3539_v15, %v3540_v16  ;;  %v8264_v8 = vcombine.low %v11613_v51, %v11624_v14 }
 0x299   :  { %v4229_v33 = vrot.slane %v4227_v50, 5  ;;  %v6609_v42 = vsel %vm6579_vm6, %v6544_v21, %v5740_v17  ;;  %v4248_v38 = vshrl.u32 %v3645_v56, 16  ;;  %v4251_v26 = vshll.u32 %v3645_v56, 16  ;;  %v2051_v50 = vld [vmem:[#allocation2 + $0x138] sm:$0xe] }
 0x29a   :  { %v4261_v9 = vshrl.u32 %v11632_v44, 16  ;;  %5597 = vrot.lane.b32.xlu1 %v8201_v28, %s8814_s30  ;;  %v8233_v31 = vcombine.low %v3538_v19, %v3541_v7  ;;  %v4233_v54 = vshll.u32 %v11624_v14, 16  ;;  %v4239_v35 = vrot.slane %v4237_v62, 4  ;;  %v5582_v4 = vpop.permute.xlu1 %5581 }
 0x29b   :  { %v4230_v47 = vor.u32 %v4229_v33, %v4226_v36  ;;  %5755 = vrot.lane.b32.xlu0 %v8232_v61, %s8815_s4  ;;  %v4250_v49 = vrot.slane %v4248_v38, 4  ;;  %v4253_v18 = vrot.slane %v4251_v26, 5  ;;  %v8265_v59 = vcombine.low %v3645_v56, %v11632_v44 }
 0x29c   :  { %v4243_v53 = vshll.u32 %v3685_v29, 16  ;;  %v4235_v0 = vrot.slane %v4233_v54, 5  ;;  %v4257_v25 = vshll.u32 %v11632_v44, 16  ;;  %v4263_v10 = vrot.slane %v4261_v9, 4  ;;  %v6092_v52 = vpop.permute.xlu0 %6091  ;;  %v2052_v9 = vld [vmem:[#allocation2 + $0x144] sm:$0xe] }
 0x29d   :  { %v4231_v37 = vrot.slane %v4230_v47, 4  ;;  %v6546_v21 = vsel %vm6514_vm4, %v6481_v55, %v5582_v4  ;;  %v6674_v51 = vsel %vm6644_vm7, %v6609_v42, %v5932_v34  ;;  %v4254_v45 = vor.u32 %v4253_v18, %v4250_v49  ;;  %v8768_v42 = vld [vmem:[#allocation2 + $0x13c] sm:$0xf] }
 0x29e   :  { %v4267_v30 = vshll.u32 %v11648_v22, 16  ;;  %5757 = vrot.lane.b32.xlu1 %v8233_v31, %s8815_s4  ;;  %v4240_v1 = vor.u32 %v4239_v35, %v4235_v0  ;;  %v4245_v57 = vrot.slane %v4243_v53, 5  ;;  %v4259_v17 = vrot.slane %v4257_v25, 5  ;;  %v5742_v32 = vpop.permute.xlu1 %5741  ;;  %v11678_v35 = vld [vmem:[#allocation2 + $0x144] sm:$0xf] }
 0x29f   :  { %v8040_v63 = vrot.slane %v4485_v3, 9  ;;  %5947 = vrot.lane.b32.xlu0 %v8264_v8, %s8816_s5  ;;  %v4236_v58 = vsel %vm8911_vm11, %v4231_v37, %v4235_v0  ;;  %v4255_v39 = vrot.slane %v4254_v45, 4  ;;  %v4747_v16 = vrot.slane %v11624_v14, 5  ;;  %v11683_v53 = vld [vmem:[#allocation2 + $0x148] sm:$0xf] }
 0x2a0   :  { %v4750_v5 = vrot.slane %v3685_v29, 5  ;;  %v4241_v23 = vrot.slane %v4240_v1, 4  ;;  %v4264_v61 = vor.u32 %v4263_v10, %v4259_v17  ;;  %v4269_v55 = vrot.slane %v4267_v30, 5  ;;  %v6252_v26 = vpop.permute.xlu0 %6251  ;;  %v8769_v0 = vld [vmem:[#allocation2 + $0x148] sm:$0xf] }
 0x2a1   :  { %v8041_v15 = vrot.slane %v4486_v27, 9  ;;  %v4260_v56 = vsel %vm8911_vm11, %v4255_v39, %v4259_v17  ;;  %v4748_v2 = vsel %vm9657_vm14, %v8040_v63, %v4747_v16  ;;  %v4749_v19 = vrot.slane %v4747_v16, 4 }
 0x2a2   :  { %v6739_v36 = vsel %vm6709_vm12, %v6674_v51, %v6092_v52  ;;  %5949 = vrot.lane.b32.xlu1 %v8265_v59, %s8816_s5  ;;  %v4246_v14 = vsel %vm8911_vm11, %v4241_v23, %v4245_v57  ;;  %v4265_v62 = vrot.slane %v4264_v61, 4  ;;  %v4754_v28 = vrot.slane %v11632_v44, 5  ;;  %v2432_v57 = vld [vmem:[#allocation2 + $0x150] sm:$0xf] }
 0x2a3   :  { %v4757_v7 = vrot.slane %v11648_v22, 5  ;;  %v8296_v33 = vcombine.low %v4236_v58, %v4246_v14  ;;  %v4751_v8 = vsel %vm9657_vm14, %v4749_v19, %v4750_v5  ;;  %v7978_v29 = vrot.slane %v2051_v50, 9  ;;  %v11700_v5 = vld [vmem:[#allocation2 + $0x154] sm:$0xf] }
 0x2a4   :  { %v2328_v38 = vrot.slane %v8768_v42, 5  ;;  %v6611_v34 = vsel %vm6579_vm6, %v6546_v21, %v5742_v32  ;;  %v4270_v31 = vsel %vm8911_vm11, %v4265_v62, %v4269_v55  ;;  %v5934_v47 = vpop.permute.xlu1 %5933  ;;  %v4755_v44 = vsel %vm9657_vm14, %v8041_v15, %v4754_v28  ;;  %v13020_v21 = vld [vmem:[#allocation16_spill] sm:$0xff]  ;;  %v13022_v55 = vld [vmem:[#allocation17_spill] sm:$0xff] }
 0x2a5   :  { %v4756_v54 = vrot.slane %v4754_v28, 4  ;;  %6107 = vrot.lane.b32.xlu0 %v8296_v33, %s8817_s6  ;;  %v8297_v22 = vcombine.low %v4260_v56, %v4270_v31  ;;  %v8328_v49 = vcombine.low %v4748_v2, %v4751_v8  ;;  %v6804_v4 = vsel %vm6774_vm13, %v6739_v36, %v6252_v26  ;;  %v2470_v36 = vld [vmem:[#allocation2 + $0x14c] sm:$0x1]  ;;  %v11714_v8 = vld [vmem:[#allocation2 + $0x158] sm:$0x1] }
 0x2a6   :  { %v2329_v18 = vsel %vm9657_vm14, %v7978_v29, %v2328_v38  ;;  %v2330_v59 = vrot.slane %v2328_v38, 4  ;;  %v7979_v37 = vrot.slane %v2052_v9, 9  ;;  %v2335_v25 = vrot.slane %v8769_v0, 5  ;;  %8570 = vmatprep.mubr.msk.bf16.mxu0 %vm6859_vm8, %v6804_v4 }
 0x2a7   :  { %v4758_v3 = vsel %vm9657_vm14, %v4756_v54, %v4757_v7  ;;  %6109 = vrot.lane.b32.xlu1 %v8297_v22, %s8817_s6  ;;  %v13021_v51 = vrot.slane %v13020_v21, 5  ;;  %v3055_v30 = vshrl.u32 %v11678_v35, 16  ;;  %v3058_v27 = vshll.u32 %v11678_v35, 16  ;;  %v5424_v1 = vpop.permute.xlu0 %5423 }
 0x2a8   :  { %v8329_v10 = vcombine.low %v4755_v44, %v4758_v3  ;;  %v6676_v17 = vsel %vm6644_vm7, %v6611_v34, %v5934_v47  ;;  %v6094_v63 = vpop.permute.xlu1 %6093  ;;  %v2336_v58 = vsel %vm9657_vm14, %v7979_v37, %v2335_v25  ;;  %v2337_v39 = vrot.slane %v2335_v25, 4  ;;  %v3270_v34 = vld [vmem:[#allocation2 + $0x144] sm:$0xe] }
 0x2a9   :  { %v2332_v45 = vsel %vm9657_vm14, %v2330_v59, %v13021_v51  ;;  %v3068_v16 = vshrl.u32 %v11683_v53, 16  ;;  %6267 = vrot.lane.b32.xlu0 %v8328_v49, %s8818_s7  ;;  %v6741_v23 = vsel %vm6709_vm12, %v6676_v17, %v6094_v63  ;;  %v3057_v32 = vrot.slane %v3055_v30, 4  ;;  %v11731_v17 = vld [vmem:[#allocation2 + $0x150] sm:$0xf] }
 0x2aa   :  { %v8138_v52 = vcombine.low %v2329_v18, %v2332_v45  ;;  %v3060_v61 = vrot.slane %v3058_v27, 5  ;;  %v13023_v15 = vrot.slane %v13022_v55, 5  ;;  %v8170_v56 = vcombine.low %v11678_v35, %v11683_v53  ;;  %v3271_v45 = vld [vmem:[#allocation2 + $0x150] sm:$0xe] }
 0x2ab   :  { %v3079_v2 = vshrl.u32 %v2432_v57, 16  ;;  %v3082_v19 = vshll.u32 %v2432_v57, 16  ;;  %6269 = vrot.lane.b32.xlu1 %v8329_v10, %s8818_s7  ;;  %v6483_v62 = vsel %vm6449_vm2, %v10575_v43, %v5424_v1  ;;  %v3092_v28 = vshrl.u32 %v11700_v5, 16  ;;  %v5584_v33 = vpop.permute.xlu0 %5583 }
 0x2ac   :  { %v2339_v50 = vsel %vm9657_vm14, %v2337_v39, %v13023_v15  ;;  %v3061_v7 = vor.u32 %v3060_v61, %v3057_v32  ;;  %v6254_v29 = vpop.permute.xlu1 %6253  ;;  %v3064_v26 = vshll.u32 %v11683_v53, 16  ;;  %v3070_v9 = vrot.slane %v3068_v16, 4 }
 0x2ad   :  { %v8139_v14 = vcombine.low %v2336_v58, %v2339_v50  ;;  %v3081_v42 = vrot.slane %v3079_v2, 4  ;;  %v3084_v38 = vrot.slane %v3082_v19, 5  ;;  %5247 = vrot.lane.b32.xlu0 %v8138_v52, %s8812_s29  ;;  %v6806_v31 = vsel %vm6774_vm13, %v6741_v23, %v6254_v29  ;;  %v11753_v29 = vld [vmem:[#allocation2 + $0x160] sm:$0xf] }
 0x2ae   :  { %v8171_v47 = vcombine.low %v2432_v57, %v11700_v5  ;;  %v3062_v43 = vrot.slane %v3061_v7, 4  ;;  %v3074_v44 = vshll.u32 %v2470_v36, 16  ;;  %v3066_v54 = vrot.slane %v3064_v26, 5  ;;  %8571 = vmatmul.mubr.msk.bf16.gmra.mxu0 %vm6859_vm8, %v6806_v31 }
 0x2af   :  { %v3085_v35 = vor.u32 %v3084_v38, %v3081_v42  ;;  %v3088_v22 = vshll.u32 %v11700_v5, 16  ;;  %v3094_v49 = vrot.slane %v3092_v28, 4  ;;  %5249 = vrot.lane.b32.xlu1 %v8139_v14, %s8812_s29  ;;  %v6548_v18 = vsel %vm6514_vm4, %v6483_v62, %v5584_v33  ;;  %v5744_v37 = vpop.permute.xlu0 %5743  ;;  %v3649_v62 = vld [vmem:[#allocation2 + $0x15c] sm:$0xf] }
 0x2b0   :  { %v3098_v59 = vshll.u32 %v11714_v8, 16  ;;  %v8010_v3 = vrot.slane %v3270_v34, 9  ;;  %v3544_v4 = vrot.slane %v11683_v53, 5  ;;  %v3071_v0 = vor.u32 %v3070_v9, %v3066_v54  ;;  %v5426_v10 = vpop.permute.xlu1 %5425 }
 0x2b1   :  { %v3076_v25 = vrot.slane %v3074_v44, 5  ;;  %v3086_v21 = vrot.slane %v3085_v35, 4  ;;  %v3090_v51 = vrot.slane %v3088_v22, 5  ;;  %5439 = vrot.lane.b32.xlu0 %v8170_v56, %s8813_s26  ;;  %v3067_v30 = vsel %vm8911_vm11, %v3062_v43, %v3066_v54  ;;  %v11744_v56 = vld [vmem:[#allocation2 + $0x154] sm:$0xf] }
 0x2b2   :  { %v6485_v27 = vsel %vm6449_vm2, %v10587_v46, %v5426_v10  ;;  %v3100_v1 = vrot.slane %v3098_v59, 5  ;;  %v3546_v57 = vrot.slane %v3544_v4, 4  ;;  %v3072_v53 = vrot.slane %v3071_v0, 4  ;;  %v3687_v54 = vld [vmem:[#allocation2 + $0x158] sm:$0x1] }
 0x2b3   :  { %v3095_v63 = vor.u32 %v3094_v49, %v3090_v51  ;;  %v3545_v58 = vsel %vm9657_vm14, %v8010_v3, %v3544_v4  ;;  %v3547_v39 = vrot.slane %v2470_v36, 5  ;;  %5441 = vrot.lane.b32.xlu1 %v8171_v47, %s8813_s26  ;;  %v3091_v16 = vsel %vm8911_vm11, %v3086_v21, %v3090_v51  ;;  %v5936_v32 = vpop.permute.xlu0 %5935 }
 0x2b4   :  { %v8011_v52 = vrot.slane %v3271_v45, 9  ;;  %v3551_v23 = vrot.slane %v11700_v5, 5  ;;  %v3554_v46 = vrot.slane %v11714_v8, 5  ;;  %v3077_v61 = vsel %vm8911_vm11, %v3072_v53, %v3076_v25  ;;  %v5586_v50 = vpop.permute.xlu1 %5585  ;;  %v3688_v25 = vld [vmem:[#allocation2 + $0x164] sm:$0x1] }
 0x2b5   :  { %v3096_v55 = vrot.slane %v3095_v63, 4  ;;  %v3548_v15 = vsel %vm9657_vm14, %v3546_v57, %v3547_v39  ;;  %v4272_v2 = vshrl.u32 %v11731_v17, 16  ;;  %v8202_v19 = vcombine.low %v3067_v30, %v3077_v61  ;;  %v4487_v30 = vld [vmem:[#allocation2 + $0x150] sm:$0xe] }
 0x2b6   :  { %v8234_v36 = vcombine.low %v3545_v58, %v3548_v15  ;;  %v6613_v14 = vsel %vm6579_vm6, %v6548_v18, %v5744_v37  ;;  %v3552_v5 = vsel %vm9657_vm14, %v8011_v52, %v3551_v23  ;;  %v3553_v7 = vrot.slane %v3551_v23, 4  ;;  %v4488_v23 = vld [vmem:[#allocation2 + $0x15c] sm:$0xe] }
 0x2b7   :  { %v3101_v28 = vsel %vm8911_vm11, %v3096_v55, %v3100_v1  ;;  %v4274_v33 = vrot.slane %v4272_v2, 4  ;;  %v4275_v8 = vshll.u32 %v11731_v17, 16  ;;  %5599 = vrot.lane.b32.xlu0 %v8202_v19, %s8814_s30  ;;  %v6550_v38 = vsel %vm6514_vm4, %v6485_v27, %v5586_v50  ;;  %v6096_v59 = vpop.permute.xlu0 %6095 }
 0x2b8   :  { %v8203_v42 = vcombine.low %v3091_v16, %v3101_v28  ;;  %v4285_v26 = vshrl.u32 %v11744_v56, 16  ;;  %v8266_v9 = vcombine.low %v11731_v17, %v11744_v56  ;;  %v3555_v34 = vsel %vm9657_vm14, %v3553_v7, %v3554_v46  ;;  %v5746_v47 = vpop.permute.xlu1 %5745  ;;  %v2053_v7 = vld [vmem:[#allocation2 + $0x150] sm:$0xe] }
 0x2b9   :  { %v4277_v31 = vrot.slane %v4275_v8, 5  ;;  %v4296_v43 = vshrl.u32 %v3649_v62, 16  ;;  %v4299_v44 = vshll.u32 %v3649_v62, 16  ;;  %v8235_v35 = vcombine.low %v3552_v5, %v3555_v34 }
 0x2ba   :  { %5601 = vrot.lane.b32.xlu1 %v8203_v42, %s8814_s30  ;;  %v6615_v22 = vsel %vm6579_vm6, %v6550_v38, %v5746_v47  ;;  %v6678_v49 = vsel %vm6644_vm7, %v6613_v14, %v5936_v32  ;;  %v4309_v18 = vshrl.u32 %v11753_v29, 16  ;;  %v4281_v0 = vshll.u32 %v11744_v56, 16 }
 0x2bb   :  { %v4298_v3 = vrot.slane %v4296_v43, 4  ;;  %v4301_v4 = vrot.slane %v4299_v44, 5  ;;  %v4278_v37 = vor.u32 %v4277_v31, %v4274_v33  ;;  %5759 = vrot.lane.b32.xlu0 %v8234_v36, %s8815_s4  ;;  %v8267_v10 = vcombine.low %v3649_v62, %v11753_v29  ;;  %v6256_v52 = vpop.permute.xlu0 %6255  ;;  %v11778_v33 = vpop.f32.mrf.mxu0 }
 0x2bc   :  { %v4287_v21 = vrot.slane %v4285_v26, 4  ;;  %v4291_v51 = vshll.u32 %v3687_v54, 16  ;;  %v4305_v45 = vshll.u32 %v11753_v29, 16  ;;  %v4283_v1 = vrot.slane %v4281_v0, 5  ;;  %v5938_v57 = vpop.permute.xlu1 %5937 }
 0x2bd   :  { %v4279_v27 = vrot.slane %v4278_v37, 4  ;;  %v4302_v17 = vor.u32 %v4301_v4, %v4298_v3  ;;  %v4311_v53 = vrot.slane %v4309_v18, 4  ;;  %v6743_v58 = vsel %vm6709_vm12, %v6678_v49, %v6096_v59  ;;  %v8770_v59 = vld [vmem:[#allocation2 + $0x154] sm:$0xf]  ;;  %v11796_v37 = vld [vmem:[#allocation2 + $0x15c] sm:$0xf]  ;;  %v11798_v0 = vpop.f32.mrf.mxu0 }
 0x2be   :  { %5761 = vrot.lane.b32.xlu1 %v8235_v35, %s8815_s4  ;;  %v4293_v63 = vrot.slane %v4291_v51, 5  ;;  %v4307_v39 = vrot.slane %v4305_v45, 5  ;;  %v4315_v16 = vshll.u32 %v3688_v25, 16  ;;  %v4288_v46 = vor.u32 %v4287_v21, %v4283_v1  ;;  %v2054_v35 = vld [vmem:[#allocation2 + $0x15c] sm:$0xe] }
 0x2bf   :  { %v6680_v32 = vsel %vm6644_vm7, %v6615_v22, %v5938_v57  ;;  %v4303_v61 = vrot.slane %v4302_v17, 4  ;;  %v8042_v55 = vrot.slane %v4487_v30, 9  ;;  %5951 = vrot.lane.b32.xlu0 %v8266_v9, %s8816_s5  ;;  %v4761_v2 = vrot.slane %v11744_v56, 5  ;;  %v5236_v26 = vpop.permute.xlu0 %5235  ;;  %v8771_v57 = vld [vmem:[#allocation2 + $0x160] sm:$0xf] }
 0x2c0   :  { %v4312_v15 = vor.u32 %v4311_v53, %v4307_v39  ;;  %v4317_v50 = vrot.slane %v4315_v16, 5  ;;  %v4764_v19 = vrot.slane %v3687_v54, 5  ;;  %v4284_v36 = vsel %vm8911_vm11, %v4279_v27, %v4283_v1  ;;  %v6098_v5 = vpop.permute.xlu1 %6097  ;;  %v11807_v53 = vld [vmem:[#allocation2 + $0x160] sm:$0xf]  ;;  %v13024_v16 = vld [vmem:[#allocation18_spill] sm:$0xff] }
 0x2c1   :  { %v4289_v14 = vrot.slane %v4288_v46, 4  ;;  %v8043_v62 = vrot.slane %v4488_v23, 9  ;;  %v4768_v28 = vrot.slane %v11753_v29, 5  ;;  %v4308_v8 = vsel %vm8911_vm11, %v4303_v61, %v4307_v39 }
 0x2c2   :  { %5953 = vrot.lane.b32.xlu1 %v8267_v10, %s8816_s5  ;;  %v4313_v42 = vrot.slane %v4312_v15, 4  ;;  %v4762_v56 = vsel %vm9657_vm14, %v8042_v55, %v4761_v2  ;;  %v4763_v38 = vrot.slane %v4761_v2, 4  ;;  %v4771_v31 = vrot.slane %v3688_v25, 5  ;;  %v2436_v15 = vld [vmem:[#allocation2 + $0x168] sm:$0xf] }
 0x2c3   :  { %v4294_v9 = vsel %vm8911_vm11, %v4289_v14, %v4293_v63  ;;  %v4769_v29 = vsel %vm9657_vm14, %v8043_v62, %v4768_v28  ;;  %v4770_v34 = vrot.slane %v4768_v28, 4  ;;  %v7980_v54 = vrot.slane %v2053_v7, 9  ;;  %v5428_v45 = vpop.permute.xlu0 %5427 }
 0x2c4   :  { %v8298_v47 = vcombine.low %v4284_v36, %v4294_v9  ;;  %v4318_v43 = vsel %vm8911_vm11, %v4313_v42, %v4317_v50  ;;  %v4765_v44 = vsel %vm9657_vm14, %v4763_v38, %v4764_v19  ;;  %v6745_v49 = vsel %vm6709_vm12, %v6680_v32, %v6098_v5  ;;  %v6258_v4 = vpop.permute.xlu1 %6257  ;;  %v8545_v50 = vpop.f32.mrf.mxu0 }
 0x2c5   :  { %v8299_v22 = vcombine.low %v4308_v8, %v4318_v43  ;;  %v4772_v18 = vsel %vm9657_vm14, %v4770_v34, %v4771_v31  ;;  %v2342_v3 = vrot.slane %v8770_v59, 5  ;;  %v8330_v25 = vcombine.low %v4762_v56, %v4765_v44 }
 0x2c6   :  { %6111 = vrot.lane.b32.xlu0 %v8298_v47, %s8817_s6  ;;  %v8331_v10 = vcombine.low %v4769_v29, %v4772_v18  ;;  %v6808_v21 = vsel %vm6774_vm13, %v6743_v58, %v6256_v52  ;;  %v6810_v51 = vsel %vm6774_vm13, %v6745_v49, %v6258_v4  ;;  %v7981_v1 = vrot.slane %v2054_v35, 9  ;;  %v11842_v29 = vld [vmem:[#allocation2 + $0x164] sm:$0x1]  ;;  %v6965_v43 = vpop.f32.mrf.mxu0 }
 0x2c7   :  { %6113 = vrot.lane.b32.xlu1 %v8299_v22, %s8817_s6  ;;  %v2343_v30 = vsel %vm9657_vm14, %v7980_v54, %v2342_v3  ;;  %v2344_v27 = vrot.slane %v2342_v3, 4  ;;  %8574 = vmatprep.mubr.msk.bf16.mxu1 %vm6859_vm8, %v6808_v21  ;;  %v2349_v17 = vrot.slane %v8771_v57, 5  ;;  %v8439_v63 = vpack.c.bf16 %v11778_v33, %v11778_v33 }
 0x2c8   :  { %v3103_v58 = vshrl.u32 %v11796_v37, 16  ;;  %v3106_v39 = vshll.u32 %v11796_v37, 16  ;;  %8575 = vmatmul.mubr.msk.bf16.vlgmr.msra.gmra.mxu1 %vm6859_vm8, %v6810_v51  ;;  %v13025_v52 = vrot.slane %v13024_v16, 5  ;;  %v6422_v46 = vsel %vm6384_vm1, %v10290_v12, %v5236_v26  ;;  %v5238_v55 = vpop.permute.xlu1 %5237  ;;  %v11828_v12 = vld [vmem:[#allocation2 + $0x16c] sm:$0xf] }
 0x2c9   :  { %v2350_v32 = vsel %vm9657_vm14, %v7981_v1, %v2349_v17  ;;  %v2351_v61 = vrot.slane %v2349_v17, 4  ;;  %7476 = vst.msk [vmem:[%s12914_s2 + $0x8] sm:$0xf] %vm7473_vm0, %v8439_v63  ;;  %v3116_v14 = vshrl.u32 %v11807_v53, 16  ;;  %v13026_v5 = vrot.slane %v9544_v11, 5 }
 0x2ca   :  { %v2346_v23 = vsel %vm9657_vm14, %v2344_v27, %v13025_v52  ;;  %6271 = vrot.lane.b32.xlu0 %v8330_v25, %s8818_s7  ;;  %v3105_v19 = vrot.slane %v3103_v58, 4  ;;  %v3108_v36 = vrot.slane %v3106_v39, 5  ;;  %v8172_v28 = vcombine.low %v11796_v37, %v11807_v53  ;;  %v5588_v42 = vpop.permute.xlu0 %5587 }
 0x2cb   :  { %v8140_v2 = vcombine.low %v2343_v30, %v2346_v23  ;;  %6273 = vrot.lane.b32.xlu1 %v8331_v10, %s8818_s7  ;;  %v2353_v62 = vsel %vm9657_vm14, %v2351_v61, %v13026_v5  ;;  %v6424_v7 = vsel %vm6384_vm1, %v10294_v24, %v5238_v55  ;;  %v8437_v8 = vpack.c.bf16 %v11798_v0, %v11798_v0  ;;  %v2473_v61 = vld [vmem:[#allocation2 + $0x170] sm:$0x1] }
 0x2cc   :  { %v8141_v56 = vcombine.low %v2350_v32, %v2353_v62  ;;  %v6487_v38 = vsel %vm6449_vm2, %v6422_v46, %v5428_v45  ;;  %v3127_v26 = vshrl.u32 %v2436_v15, 16  ;;  %v3130_v9 = vshll.u32 %v2436_v15, 16  ;;  %v5430_v47 = vpop.permute.xlu1 %5429 }
 0x2cd   :  { %7474 = vst.msk [vmem:[%s12914_s2] sm:$0xf] %vm7473_vm0, %v8437_v8  ;;  %v3140_v11 = vshrl.u32 %v11828_v12, 16  ;;  %v7218_v24 = vpack.c.bf16 %v8545_v50, %v11778_v33  ;;  %v8440_v34 = vpack.c.bf16 %v8545_v50, %v8545_v50  ;;  %v3109_v31 = vor.u32 %v3108_v36, %v3105_v19  ;;  %v3272_v36 = vld [vmem:[#allocation2 + $0x15c] sm:$0xe] }
 0x2ce   :  { %5251 = vrot.lane.b32.xlu0 %v8140_v2, %s8812_s29  ;;  %v3129_v44 = vrot.slane %v3127_v26, 4  ;;  %v8173_v54 = vcombine.low %v2436_v15, %v11828_v12  ;;  %v3112_v35 = vshll.u32 %v11807_v53, 16  ;;  %v3118_v22 = vrot.slane %v3116_v14, 4  ;;  %v5748_v3 = vpop.permute.xlu0 %5747 }
 0x2cf   :  { %5253 = vrot.lane.b32.xlu1 %v8141_v56, %s8812_s29  ;;  %7477 = vst.msk [vmem:[%s12914_s2 + $0xc] sm:$0xf] %vm7473_vm0, %v8440_v34  ;;  %v7540_v33 = vunpack.c.l.bf16 %v7218_v24  ;;  %v7541_v49 = vunpack.c.h.bf16 %v7218_v24  ;;  %v3110_v18 = vrot.slane %v3109_v31, 4  ;;  %v3122_v59 = vshll.u32 %v11842_v29, 16  ;;  %v3273_v34 = vld [vmem:[#allocation2 + $0x168] sm:$0xe] }
 0x2d0   :  { %v3132_v4 = vrot.slane %v3130_v9, 5  ;;  %v3114_v37 = vrot.slane %v3112_v35, 5  ;;  %v7217_v25 = vpack.c.bf16 %v6965_v43, %v11798_v0  ;;  %v8438_v10 = vpack.c.bf16 %v6965_v43, %v6965_v43  ;;  %v5590_v27 = vpop.permute.xlu1 %5589 }
 0x2d1   :  { %v7605_v21 = vsel %vm6384_vm1, %v7540_v33, 0.0  ;;  %v11862_v51 = vsel %vm6384_vm1, %v7541_v49, 0.0  ;;  %v7737_v45 = vmul.f32 %v7540_v33, %v7540_v33  ;;  %v6489_v30 = vsel %vm6449_vm2, %v6424_v7, %v5430_v47 }
 0x2d2   :  { %5443 = vrot.lane.b32.xlu0 %v8172_v28, %s8813_s26  ;;  %v11866_v1 = vmul.f32 %v7541_v49, %v7541_v49  ;;  %v3119_v57 = vor.u32 %v3118_v22, %v3114_v37  ;;  %v3124_v17 = vrot.slane %v3122_v59, 5  ;;  %7475 = vst.msk [vmem:[%s12914_s2 + $0x4] sm:$0xf] %vm7473_vm0, %v8438_v10  ;;  %v7538_v0 = vunpack.c.l.bf16 %v7217_v25  ;;  %v11877_v52 = vpop.permute.xlu0 %5939  ;;  %v11900_v10 = vld [vmem:[#allocation2 + $0x16c] sm:$0xf] }
 0x2d3   :  { %5445 = vrot.lane.b32.xlu1 %v8173_v54, %s8813_s26  ;;  %v7802_v63 = vsel %vm6384_vm1, %v7737_v45, 0.0  ;;  %v3115_v58 = vsel %vm8911_vm11, %v3110_v18, %v3114_v37  ;;  %v7539_v39 = vunpack.c.h.bf16 %v7217_v25  ;;  %v6552_v16 = vsel %vm6514_vm4, %v6487_v38, %v5588_v42  ;;  %v3651_v54 = vld [vmem:[#allocation2 + $0x168] sm:$0xf] }
 0x2d4   :  { %v3120_v23 = vrot.slane %v3119_v57, 4  ;;  %v7602_v46 = vsel %vm6384_vm1, %v7538_v0, 0.0  ;;  %v7735_v32 = vmul.f32 %v7538_v0, %v7538_v0  ;;  %v3133_v55 = vor.u32 %v3132_v4, %v3129_v44  ;;  %v5750_v14 = vpop.permute.xlu1 %5749 }
 0x2d5   :  { %v7603_v15 = vsel %vm6384_vm1, %v7539_v39, 0.0  ;;  %v7736_v50 = vmul.f32 %v7539_v39, %v7539_v39  ;;  %v3136_v2 = vshll.u32 %v11828_v12, 16  ;;  %v3142_v19 = vrot.slane %v3140_v11, 4 }
 0x2d6   :  { %v3125_v5 = vsel %vm8911_vm11, %v3120_v23, %v3124_v17  ;;  %v7604_v62 = vadd.f32 %v7603_v15, %v7602_v46  ;;  %v7799_v28 = vsel %vm6384_vm1, %v7735_v32, 0.0  ;;  %v3134_v7 = vrot.slane %v3133_v55, 4 }
 0x2d7   :  { %v8204_v8 = vcombine.low %v3115_v58, %v3125_v5  ;;  %v7800_v42 = vsel %vm6384_vm1, %v7736_v50, 0.0  ;;  %v3138_v56 = vrot.slane %v3136_v2, 5  ;;  %v3146_v38 = vshll.u32 %v2473_v61, 16  ;;  %v6100_v22 = vpop.permute.xlu0 %6099  ;;  %v3689_v50 = vld [vmem:[#allocation2 + $0x170] sm:$0x1] }
 0x2d8   :  { %v11886_v26 = vadd.f32 %v7605_v21, %v7604_v62  ;;  %v7801_v9 = vadd.f32 %v7800_v42, %v7799_v28  ;;  %v8012_v24 = vrot.slane %v3272_v36, 9  ;;  %v3558_v11 = vrot.slane %v11807_v53, 5  ;;  %v5942_v35 = vpop.permute.xlu1 %5941  ;;  %v11922_v42 = vld [vmem:[#allocation2 + $0x17c] sm:$0x1] }
 0x2d9   :  { %5603 = vrot.lane.b32.xlu0 %v8204_v8, %s8814_s30  ;;  %v3139_v31 = vsel %vm8911_vm11, %v3134_v7, %v3138_v56  ;;  %v3143_v47 = vor.u32 %v3142_v19, %v3138_v56  ;;  %v3148_v43 = vrot.slane %v3146_v38, 5  ;;  %v3561_v44 = vrot.slane %v11842_v29, 5 }
 0x2da   :  { %v11893_v33 = vadd.f32 %v7802_v63, %v7801_v9  ;;  %v3559_v49 = vsel %vm9657_vm14, %v8012_v24, %v3558_v11  ;;  %v3560_v18 = vrot.slane %v3558_v11, 4  ;;  %v6554_v53 = vsel %vm6514_vm4, %v6489_v30, %v5590_v27  ;;  %v11908_v63 = vld [vmem:[#allocation2 + $0x178] sm:$0xf]  ;;  %v4489_v11 = vld [vmem:[#allocation2 + $0x168] sm:$0xe] }
 0x2db   :  { %v3144_v59 = vrot.slane %v3143_v47, 4  ;;  %v6617_v4 = vsel %vm6579_vm6, %v6552_v16, %v5748_v3  ;;  %v8013_v37 = vrot.slane %v3273_v34, 9  ;;  %v3565_v25 = vrot.slane %v11828_v12, 5  ;;  %v3653_v3 = vld [vmem:[#allocation2 + $0x174] sm:$0xf]  ;;  %v6260_v58 = vpop.permute.xlu0 %6259 }
 0x2dc   :  { %v3562_v29 = vsel %vm9657_vm14, %v3560_v18, %v3561_v44  ;;  %v3568_v21 = vrot.slane %v2473_v61, 5  ;;  %v4320_v45 = vshrl.u32 %v3651_v54, 16  ;;  %v4323_v57 = vshll.u32 %v3651_v54, 16  ;;  %v6102_v12 = vpop.permute.xlu1 %6101  ;;  %v11932_v44 = vpop.f32.mrf.mxu0 }
 0x2dd   :  { %v3149_v17 = vsel %vm8911_vm11, %v3144_v59, %v3148_v43  ;;  %v8236_v0 = vcombine.low %v3559_v49, %v3562_v29  ;;  %v3566_v30 = vsel %vm9657_vm14, %v8013_v37, %v3565_v25  ;;  %v3567_v27 = vrot.slane %v3565_v25, 4  ;;  %v4490_v25 = vld [vmem:[#allocation2 + $0x174] sm:$0xe] }
 0x2de   :  { %v8205_v39 = vcombine.low %v3139_v31, %v3149_v17  ;;  %v4322_v16 = vrot.slane %v4320_v45, 4  ;;  %v4325_v23 = vrot.slane %v4323_v57, 5  ;;  %v4333_v46 = vshrl.u32 %v11900_v10, 16 }
 0x2df   :  { %5763 = vrot.lane.b32.xlu0 %v8236_v0, %s8815_s4  ;;  %v3569_v32 = vsel %vm9657_vm14, %v3567_v27, %v3568_v21  ;;  %v8268_v61 = vcombine.low %v3651_v54, %v11900_v10  ;;  %v6619_v55 = vsel %vm6579_vm6, %v6554_v53, %v5750_v14  ;;  %v6682_v15 = vsel %vm6644_vm7, %v6617_v4, %v11877_v52  ;;  %v11926_v56 = vpop.permute.xlu0 %5239 }
 0x2e0   :  { %5605 = vrot.lane.b32.xlu1 %v8205_v39, %s8814_s30  ;;  %v8237_v2 = vcombine.low %v3566_v30, %v3569_v32  ;;  %v4344_v19 = vshrl.u32 %v3653_v3, 16  ;;  %v4347_v36 = vshll.u32 %v3653_v3, 16  ;;  %v4357_v5 = vshrl.u32 %v11908_v63, 16  ;;  %v11924_v14 = vpop.permute.xlu1 %6261  ;;  %v2055_v39 = vld [vmem:[#allocation2 + $0x168] sm:$0xe] }
 0x2e1   :  { %v8269_v62 = vcombine.low %v3653_v3, %v11908_v63  ;;  %v4326_v28 = vor.u32 %v4325_v23, %v4322_v16  ;;  %v4329_v7 = vshll.u32 %v11900_v10, 16  ;;  %v4335_v8 = vrot.slane %v4333_v46, 4  ;;  %v11945_v16 = vpop.f32.mrf.mxu0 }
 0x2e2   :  { %v4346_v52 = vrot.slane %v4344_v19, 4  ;;  %v4349_v38 = vrot.slane %v4347_v36, 5  ;;  %v4339_v9 = vshll.u32 %v3689_v50, 16  ;;  %v6684_v24 = vsel %vm6644_vm7, %v6619_v55, %v5942_v35 }
 0x2e3   :  { %5955 = vrot.lane.b32.xlu0 %v8268_v61, %s8816_s5  ;;  %v4327_v34 = vrot.slane %v4326_v28, 4  ;;  %v4331_v31 = vrot.slane %v4329_v7, 5  ;;  %v6747_v47 = vsel %vm6709_vm12, %v6682_v15, %v6100_v22  ;;  %v4353_v43 = vshll.u32 %v11908_v63, 16  ;;  %v11940_v22 = vpop.permute.xlu0 %5431 }
 0x2e4   :  { %5765 = vrot.lane.b32.xlu1 %v8237_v2, %s8815_s4  ;;  %v4341_v54 = vrot.slane %v4339_v9, 5  ;;  %v4350_v49 = vor.u32 %v4349_v38, %v4346_v52  ;;  %v4359_v18 = vrot.slane %v4357_v5, 4  ;;  %v4363_v53 = vshll.u32 %v11922_v42, 16  ;;  %v11938_v29 = vpop.permute.xlu1 %5241  ;;  %v2056_v5 = vld [vmem:[#allocation2 + $0x174] sm:$0xe] }
 0x2e5   :  { %v4332_v35 = vsel %vm8911_vm11, %v4327_v34, %v4331_v31  ;;  %v4336_v59 = vor.u32 %v4335_v8, %v4331_v31  ;;  %v4355_v4 = vrot.slane %v4353_v43, 5  ;;  %v8044_v37 = vrot.slane %v4489_v11, 9  ;;  %v8772_v38 = vld [vmem:[#allocation2 + $0x16c] sm:$0xf]  ;;  %v11978_v34 = vld [vmem:[#allocation2 + $0x174] sm:$0xf] }
 0x2e6   :  { %v4351_v21 = vrot.slane %v4350_v49, 4  ;;  %v4365_v45 = vrot.slane %v4363_v53, 5  ;;  %v4775_v57 = vrot.slane %v11900_v10, 5  ;;  %v4778_v17 = vrot.slane %v3689_v50, 5 }
 0x2e7   :  { %v4337_v0 = vrot.slane %v4336_v59, 4  ;;  %v4360_v30 = vor.u32 %v4359_v18, %v4355_v4  ;;  %v6749_v27 = vsel %vm6709_vm12, %v6684_v24, %v6102_v12  ;;  %v6812_v3 = vsel %vm6774_vm13, %v6747_v47, %v6260_v58 }
 0x2e8   :  { %5957 = vrot.lane.b32.xlu1 %v8269_v62, %s8816_s5  ;;  %v4356_v23 = vsel %vm8911_vm11, %v4351_v21, %v4355_v4  ;;  %v4776_v46 = vsel %vm9657_vm14, %v8044_v37, %v4775_v57  ;;  %v4777_v32 = vrot.slane %v4775_v57, 4  ;;  %v8045_v10 = vrot.slane %v4490_v25, 9  ;;  %8578 = vmatprep.mubr.msk.bf16.mxu1 %vm6859_vm8, %v6812_v3  ;;  %v11957_v15 = vpop.permute.xlu1 %5433  ;;  %v11999_v21 = vld [vmem:[#allocation2 + $0x178] sm:$0xf] }
 0x2e9   :  { %v4342_v12 = vsel %vm8911_vm11, %v4337_v0, %v4341_v54  ;;  %v4361_v61 = vrot.slane %v4360_v30, 4  ;;  %v4782_v58 = vrot.slane %v11908_v63, 5  ;;  %v4785_v55 = vrot.slane %v11922_v42, 5  ;;  %v11963_v62 = vpop.permute.xlu0 %5591  ;;  %v8549_v42 = vpop.f32.mrf.mxu0  ;;  %v8773_v54 = vld [vmem:[#allocation2 + $0x178] sm:$0xf] }
 0x2ea   :  { %v8300_v50 = vcombine.low %v4332_v35, %v4342_v12  ;;  %v4779_v2 = vsel %vm9657_vm14, %v4777_v32, %v4778_v17  ;;  %v8443_v19 = vpack.c.bf16 %v11932_v44, %v11932_v44  ;;  %v7982_v36 = vrot.slane %v2055_v39, 9  ;;  %v13027_v57 = vld [vmem:[#allocation19_spill] sm:$0xff] }
 0x2eb   :  { %v4366_v28 = vsel %vm8911_vm11, %v4361_v61, %v4365_v45  ;;  %v8332_v7 = vcombine.low %v4776_v46, %v4779_v2  ;;  %v4783_v63 = vsel %vm9657_vm14, %v8045_v10, %v4782_v58  ;;  %v4784_v8 = vrot.slane %v4782_v58, 4  ;;  %v6981_v10 = vpop.f32.mrf.mxu0 }
 0x2ec   :  { %6115 = vrot.lane.b32.xlu0 %v8300_v50, %s8817_s6  ;;  %v8301_v52 = vcombine.low %v4356_v23, %v4366_v28  ;;  %7480 = vst.msk [vmem:[%s12914_s2 + $0x18] sm:$0xf] %vm7473_vm0, %v8443_v19  ;;  %v2356_v9 = vrot.slane %v8772_v38, 5  ;;  %v6814_v24 = vsel %vm6774_vm13, %v6749_v27, %v11924_v14  ;;  %v8441_v11 = vpack.c.bf16 %v11945_v16, %v11945_v16  ;;  %v11985_v18 = vpop.permute.xlu1 %5593 }
 0x2ed   :  { %v7804_v31 = vsel %vm6384_vm1, %v11866_v1, 0.0  ;;  %v4786_v47 = vsel %vm9657_vm14, %v4784_v8, %v4785_v55  ;;  %v7983_v43 = vrot.slane %v2056_v5, 9  ;;  %v2363_v49 = vrot.slane %v8773_v54, 5  ;;  %8579 = vmatmul.mubr.msk.bf16.gmra.mxu1 %vm6859_vm8, %v6814_v24  ;;  %v11995_v59 = vpop.permute.xlu0 %5751 }
 0x2ee   :  { %6117 = vrot.lane.b32.xlu1 %v8301_v52, %s8817_s6  ;;  %v8333_v14 = vcombine.low %v4783_v63, %v4786_v47  ;;  %v2357_v53 = vsel %vm9657_vm14, %v7982_v36, %v2356_v9  ;;  %v2358_v35 = vrot.slane %v2356_v9, 4  ;;  %7478 = vst.msk [vmem:[%s12914_s2 + $0x10] sm:$0xf] %vm7473_vm0, %v8441_v11  ;;  %v7220_v1 = vpack.c.bf16 %v8549_v42, %v11932_v44  ;;  %v12031_v36 = vld [vmem:[#allocation2 + $0x184] sm:$0xf] }
 0x2ef   :  { %v2364_v4 = vsel %vm9657_vm14, %v7983_v43, %v2363_v49  ;;  %v2365_v37 = vrot.slane %v2363_v49, 4  ;;  %v8444_v25 = vpack.c.bf16 %v8549_v42, %v8549_v42  ;;  %v3151_v45 = vshrl.u32 %v11978_v34, 16  ;;  %v12055_v11 = vld [vmem:[#allocation2 + $0x17c] sm:$0x1] }
 0x2f0   :  { %6275 = vrot.lane.b32.xlu0 %v8332_v7, %s8818_s7  ;;  %v13028_v17 = vrot.slane %v13027_v57, 5  ;;  %v7544_v30 = vunpack.c.l.bf16 %v7220_v1  ;;  %v7545_v44 = vunpack.c.h.bf16 %v7220_v1  ;;  %v3154_v27 = vshll.u32 %v11978_v34, 16  ;;  %v12019_v12 = vpop.permute.xlu1 %5753 }
 0x2f1   :  { %v6426_v39 = vsel %vm6384_vm1, %v10330_v13, %v11926_v56  ;;  %v13029_v23 = vrot.slane %v9630_v48, 5  ;;  %7481 = vst.msk [vmem:[%s12914_s2 + $0x1c] sm:$0xf] %vm7473_vm0, %v8444_v25  ;;  %v3153_v32 = vrot.slane %v3151_v45, 4  ;;  %v3164_v48 = vshrl.u32 %v11999_v21, 16  ;;  %v12033_v5 = vpop.permute.xlu0 %5943 }
 0x2f2   :  { %v2360_v0 = vsel %vm9657_vm14, %v2358_v35, %v13028_v17  ;;  %6277 = vrot.lane.b32.xlu1 %v8333_v14, %s8818_s7  ;;  %v7613_v58 = vsel %vm6384_vm1, %v7544_v30, 0.0  ;;  %v7741_v13 = vmul.f32 %v7544_v30, %v7544_v30  ;;  %v2440_v56 = vld [vmem:[#allocation2 + $0x180] sm:$0xf]  ;;  %v12025_v55 = vsel %vm6384_vm1, %v7545_v44, 0.0 }
 0x2f3   :  { %v8142_v3 = vcombine.low %v2357_v53, %v2360_v0  ;;  %v2367_v46 = vsel %vm9657_vm14, %v2365_v37, %v13029_v23  ;;  %v12027_v50 = vmul.f32 %v7545_v44, %v7545_v44  ;;  %v3156_v2 = vrot.slane %v3154_v27, 5  ;;  %v2475_v44 = vld [vmem:[#allocation2 + $0x188] sm:$0x1]  ;;  %v3274_v27 = vld [vmem:[#allocation2 + $0x174] sm:$0xe] }
 0x2f4   :  { %v8143_v61 = vcombine.low %v2364_v4, %v2367_v46  ;;  %v8174_v19 = vcombine.low %v11978_v34, %v11999_v21  ;;  %v6428_v28 = vsel %vm6384_vm1, %v10334_v41, %v11938_v29  ;;  %v7219_v7 = vpack.c.bf16 %v6981_v10, %v11945_v16  ;;  %v12046_v24 = vpop.permute.xlu1 %5945 }
 0x2f5   :  { %5255 = vrot.lane.b32.xlu0 %v8142_v3, %s8812_s29  ;;  %v8442_v63 = vpack.c.bf16 %v6981_v10, %v6981_v10  ;;  %v7608_v8 = vadd.f32 %v11862_v51, %v11886_v26  ;;  %v7810_v42 = vsel %vm6384_vm1, %v7741_v13, 0.0  ;;  %v7805_v52 = vadd.f32 %v7804_v31, %v11893_v33 }
 0x2f6   :  { %v6491_v38 = vsel %vm6449_vm2, %v6426_v39, %v11940_v22  ;;  %v3175_v9 = vshrl.u32 %v2440_v56, 16  ;;  %5257 = vrot.lane.b32.xlu1 %v8143_v61, %s8812_s29  ;;  %v7542_v41 = vunpack.c.l.bf16 %v7219_v7  ;;  %v7543_v29 = vunpack.c.h.bf16 %v7219_v7 }
 0x2f7   :  { %7479 = vst.msk [vmem:[%s12914_s2 + $0x14] sm:$0xf] %vm7473_vm0, %v8442_v63  ;;  %v3178_v51 = vshll.u32 %v2440_v56, 16  ;;  %v3188_v26 = vshrl.u32 %v12031_v36, 16  ;;  %v8175_v33 = vcombine.low %v2440_v56, %v12031_v36  ;;  %v3157_v22 = vor.u32 %v3156_v2, %v3153_v32 }
 0x2f8   :  { %v3177_v16 = vrot.slane %v3175_v9, 4  ;;  %v3160_v34 = vshll.u32 %v11999_v21, 16  ;;  %v7609_v31 = vsel %vm6384_vm1, %v7542_v41, 0.0  ;;  %v7611_v47 = vsel %vm6384_vm1, %v7543_v29, 0.0  ;;  %v12061_v1 = vpop.permute.xlu0 %6103 }
 0x2f9   :  { %5447 = vrot.lane.b32.xlu0 %v8174_v19, %s8813_s26  ;;  %v7739_v43 = vmul.f32 %v7542_v41, %v7542_v41  ;;  %v7740_v54 = vmul.f32 %v7543_v29, %v7543_v29  ;;  %v7610_v49 = vadd.f32 %v7609_v31, %v7608_v8  ;;  %v3180_v14 = vrot.slane %v3178_v51, 5  ;;  %v12092_v51 = vld [vmem:[#allocation2 + $0x184] sm:$0xf] }
 0x2fa   :  { %v3158_v53 = vrot.slane %v3157_v22, 4  ;;  %v3162_v35 = vrot.slane %v3160_v34, 5  ;;  %5449 = vrot.lane.b32.xlu1 %v8175_v33, %s8813_s26  ;;  %v3166_v25 = vrot.slane %v3164_v48, 4  ;;  %v3170_v45 = vshll.u32 %v12055_v11, 16  ;;  %v12071_v3 = vpop.permute.xlu1 %6105 }
 0x2fb   :  { %v7806_v4 = vsel %vm6384_vm1, %v7739_v43, 0.0  ;;  %v7808_v37 = vsel %vm6384_vm1, %v7740_v54, 0.0  ;;  %v7612_v57 = vadd.f32 %v7611_v47, %v7610_v49  ;;  %v6493_v30 = vsel %vm6449_vm2, %v6428_v28, %v11957_v15 }
 0x2fc   :  { %v7807_v17 = vadd.f32 %v7806_v4, %v7805_v52  ;;  %v3163_v0 = vsel %vm8911_vm11, %v3158_v53, %v3162_v35  ;;  %v3167_v39 = vor.u32 %v3166_v25, %v3162_v35  ;;  %v3172_v23 = vrot.slane %v3170_v45, 5  ;;  %v12078_v56 = vpop.permute.xlu0 %6263  ;;  %v3275_v52 = vld [vmem:[#allocation2 + $0x180] sm:$0xe] }
 0x2fd   :  { %v6556_v46 = vsel %vm6514_vm4, %v6491_v38, %v11963_v62  ;;  %v3181_v32 = vor.u32 %v3180_v14, %v3177_v16  ;;  %v12075_v10 = vadd.f32 %v7613_v58, %v7612_v57  ;;  %v3184_v13 = vshll.u32 %v12031_v36, 16 }
 0x2fe   :  { %v7809_v61 = vadd.f32 %v7808_v37, %v7807_v17  ;;  %v3190_v48 = vrot.slane %v3188_v26, 4  ;;  %v3168_v2 = vrot.slane %v3167_v39, 4  ;;  %v3194_v19 = vshll.u32 %v2475_v44, 16  ;;  %v12084_v58 = vpop.permute.xlu1 %6265  ;;  %v12112_v37 = vld [vmem:[#allocation2 + $0x190] sm:$0xf] }
 0x2ff   :  { %v3182_v15 = vrot.slane %v3181_v32, 4  ;;  %v8014_v28 = vrot.slane %v3274_v27, 9  ;;  %v3186_v63 = vrot.slane %v3184_v13, 5  ;;  %v3572_v8 = vrot.slane %v11999_v21, 5 }
 0x300   :  { %v12080_v7 = vadd.f32 %v7810_v42, %v7809_v61  ;;  %v3575_v62 = vrot.slane %v12055_v11, 5  ;;  %v3173_v38 = vsel %vm8911_vm11, %v3168_v2, %v3172_v23  ;;  %v3196_v9 = vrot.slane %v3194_v19, 5  ;;  %v3655_v42 = vld [vmem:[#allocation2 + $0x180] sm:$0xf]  ;;  %v12098_v11 = vpop.permute.xlu0 %5243  ;;  %v3691_v23 = vld [vmem:[#allocation2 + $0x188] sm:$0x1] }
 0x301   :  { %v6558_v41 = vsel %vm6514_vm4, %v6493_v30, %v11985_v18  ;;  %v6621_v29 = vsel %vm6579_vm6, %v6556_v46, %v11995_v59  ;;  %v8206_v26 = vcombine.low %v3163_v0, %v3173_v38  ;;  %v3187_v21 = vsel %vm8911_vm11, %v3182_v15, %v3186_v63  ;;  %v12124_v46 = vpop.f32.mrf.mxu0 }
 0x302   :  { %v3191_v16 = vor.u32 %v3190_v48, %v3186_v63  ;;  %v3573_v33 = vsel %vm9657_vm14, %v8014_v28, %v3572_v8  ;;  %v3574_v22 = vrot.slane %v3572_v8, 4  ;;  %v8015_v34 = vrot.slane %v3275_v52, 9  ;;  %v12103_v49 = vpop.permute.xlu1 %5245  ;;  %v12136_v28 = vld [vmem:[#allocation2 + $0x194] sm:$0x1] }
 0x303   :  { %v3579_v18 = vrot.slane %v12031_v36, 5  ;;  %v3582_v31 = vrot.slane %v2475_v44, 5  ;;  %5607 = vrot.lane.b32.xlu0 %v8206_v26, %s8814_s30  ;;  %v4368_v47 = vshrl.u32 %v3655_v42, 16  ;;  %v4371_v43 = vshll.u32 %v3655_v42, 16  ;;  %v12110_v36 = vld [vmem:[#allocation2 + $0x18c] sm:$0xf]  ;;  %v6994_v26 = vpop.f32.mrf.mxu0 }
 0x304   :  { %v3192_v59 = vrot.slane %v3191_v16, 4  ;;  %v4381_v54 = vshrl.u32 %v12092_v51, 16  ;;  %v3576_v14 = vsel %vm9657_vm14, %v3574_v22, %v3575_v62  ;;  %v8270_v4 = vcombine.low %v3655_v42, %v12092_v51  ;;  %v12116_v0 = vpop.permute.xlu0 %5435  ;;  %v4491_v42 = vld [vmem:[#allocation2 + $0x180] sm:$0xe] }
 0x305   :  { %v3580_v53 = vsel %vm9657_vm14, %v8015_v34, %v3579_v18  ;;  %v3581_v35 = vrot.slane %v3579_v18, 4  ;;  %v8238_v45 = vcombine.low %v3573_v33, %v3576_v14  ;;  %v4370_v57 = vrot.slane %v4368_v47, 4  ;;  %v4492_v14 = vld [vmem:[#allocation2 + $0x18c] sm:$0xe] }
 0x306   :  { %v3197_v25 = vsel %vm8911_vm11, %v3192_v59, %v3196_v9  ;;  %v4373_v17 = vrot.slane %v4371_v43, 5  ;;  %v6623_v27 = vsel %vm6579_vm6, %v6558_v41, %v12019_v12  ;;  %v6686_v39 = vsel %vm6644_vm7, %v6621_v29, %v12033_v5  ;;  %v12130_v2 = vpop.permute.xlu1 %5437 }
 0x307   :  { %v8207_v30 = vcombine.low %v3187_v21, %v3197_v25  ;;  %v3583_v44 = vsel %vm9657_vm14, %v3581_v35, %v3582_v31  ;;  %5767 = vrot.lane.b32.xlu0 %v8238_v45, %s8815_s4  ;;  %v4392_v61 = vshrl.u32 %v12110_v36, 16  ;;  %v4395_v13 = vshll.u32 %v12110_v36, 16  ;;  %v8553_v45 = vpop.f32.mrf.mxu0 }
 0x308   :  { %v8239_v32 = vcombine.low %v3580_v53, %v3583_v44  ;;  %v4405_v48 = vshrl.u32 %v12112_v37, 16  ;;  %v8271_v12 = vcombine.low %v12110_v36, %v12112_v37  ;;  %v4374_v5 = vor.u32 %v4373_v17, %v4370_v57 }
 0x309   :  { %5609 = vrot.lane.b32.xlu1 %v8207_v30, %s8814_s30  ;;  %v4377_v15 = vshll.u32 %v12092_v51, 16  ;;  %v4383_v19 = vrot.slane %v4381_v54, 4  ;;  %v4394_v63 = vrot.slane %v4392_v61, 4  ;;  %v4397_v8 = vrot.slane %v4395_v13, 5  ;;  %v12143_v21 = vpop.permute.xlu0 %5595 }
 0x30a   :  { %v4387_v62 = vshll.u32 %v3691_v23, 16  ;;  %v6688_v52 = vsel %vm6644_vm7, %v6623_v27, %v12046_v24  ;;  %v4375_v38 = vrot.slane %v4374_v5, 4  ;;  %v6751_v41 = vsel %vm6709_vm12, %v6686_v39, %v12061_v1 }
 0x30b   :  { %v4379_v9 = vrot.slane %v4377_v15, 5  ;;  %v4401_v29 = vshll.u32 %v12112_v37, 16  ;;  %5959 = vrot.lane.b32.xlu0 %v8270_v4, %s8816_s5  ;;  %v4398_v33 = vor.u32 %v4397_v8, %v4394_v63  ;;  %v4407_v22 = vrot.slane %v4405_v48, 4  ;;  %v6997_v8 = vpop.f32.mrf.mxu0 }
 0x30c   :  { %v4389_v16 = vrot.slane %v4387_v62, 5  ;;  %v4411_v34 = vshll.u32 %v12136_v28, 16  ;;  %v8447_v31 = vpack.c.bf16 %v12124_v46, %v12124_v46  ;;  %v8046_v43 = vrot.slane %v4491_v42, 9  ;;  %v12153_v53 = vpop.permute.xlu1 %5597 }
 0x30d   :  { %5769 = vrot.lane.b32.xlu1 %v8239_v32, %s8815_s4  ;;  %v4380_v24 = vsel %vm8911_vm11, %v4375_v38, %v4379_v9  ;;  %v4384_v18 = vor.u32 %v4383_v19, %v4379_v9  ;;  %v4403_v1 = vrot.slane %v4401_v29, 5  ;;  %v4399_v59 = vrot.slane %v4398_v33, 4  ;;  %v12161_v57 = vpop.permute.xlu0 %5755  ;;  %v2057_v32 = vld [vmem:[#allocation2 + $0x180] sm:$0xe] }
 0x30e   :  { %v4413_v47 = vrot.slane %v4411_v34, 5  ;;  %v4789_v54 = vrot.slane %v12092_v51, 5  ;;  %7484 = vst.msk [vmem:[%s12914_s2 + $0x28] sm:$0xf] %vm7473_vm0, %v8447_v31  ;;  %v4792_v36 = vrot.slane %v3691_v23, 5  ;;  %v6753_v25 = vsel %vm6709_vm12, %v6688_v52, %v12071_v3 }
 0x30f   :  { %v4385_v35 = vrot.slane %v4384_v18, 4  ;;  %v4408_v4 = vor.u32 %v4407_v22, %v4403_v1  ;;  %v4404_v51 = vsel %vm8911_vm11, %v4399_v59, %v4403_v1  ;;  %v8445_v44 = vpack.c.bf16 %v6994_v26, %v6994_v26  ;;  %v13030_v18 = vld [vmem:[#allocation30_spill] sm:$0xff] }
 0x310   :  { %v4790_v17 = vsel %vm9657_vm14, %v8046_v43, %v4789_v54  ;;  %v4791_v30 = vrot.slane %v4789_v54, 4  ;;  %v6816_v3 = vsel %vm6774_vm13, %v6751_v41, %v12078_v56  ;;  %v8047_v23 = vrot.slane %v4492_v14, 9  ;;  %v12181_v5 = vpop.permute.xlu1 %5757  ;;  %v2058_v14 = vld [vmem:[#allocation2 + $0x18c] sm:$0xe] }
 0x311   :  { %5961 = vrot.lane.b32.xlu1 %v8271_v12, %s8816_s5  ;;  %v4390_v27 = vsel %vm8911_vm11, %v4385_v35, %v4389_v16  ;;  %v4409_v39 = vrot.slane %v4408_v4, 4  ;;  %7482 = vst.msk [vmem:[%s12914_s2 + $0x20] sm:$0xf] %vm7473_vm0, %v8445_v44  ;;  %v4796_v48 = vrot.slane %v12112_v37, 5  ;;  %v4799_v12 = vrot.slane %v12136_v28, 5  ;;  %8582 = vmatprep.mubr.msk.bf16.mxu1 %vm6859_vm8, %v6816_v3  ;;  %v12186_v62 = vpop.permute.xlu0 %5947 }
 0x312   :  { %v8302_v61 = vcombine.low %v4380_v24, %v4390_v27  ;;  %v4793_v13 = vsel %vm9657_vm14, %v4791_v30, %v4792_v36  ;;  %v7222_v19 = vpack.c.bf16 %v8553_v45, %v12124_v46  ;;  %v8448_v63 = vpack.c.bf16 %v8553_v45, %v8553_v45  ;;  %v8774_v46 = vld [vmem:[#allocation2 + $0x184] sm:$0xf]  ;;  %v2442_v35 = vld [vmem:[#allocation2 + $0x18c] sm:$0xf]  ;;  %v12236_v3 = vld [vmem:[#allocation2 + $0x190] sm:$0xf] }
 0x313   :  { %v4414_v56 = vsel %vm8911_vm11, %v4409_v39, %v4413_v47  ;;  %v8334_v15 = vcombine.low %v4790_v17, %v4793_v13  ;;  %v4797_v37 = vsel %vm9657_vm14, %v8047_v23, %v4796_v48  ;;  %v4798_v28 = vrot.slane %v4796_v48, 4  ;;  %v8775_v13 = vld [vmem:[#allocation2 + $0x190] sm:$0xf] }
 0x314   :  { %6119 = vrot.lane.b32.xlu0 %v8302_v61, %s8817_s6  ;;  %v8303_v52 = vcombine.low %v4404_v51, %v4414_v56  ;;  %v7984_v38 = vrot.slane %v2057_v32, 9  ;;  %7485 = vst.msk [vmem:[%s12914_s2 + $0x2c] sm:$0xf] %vm7473_vm0, %v8448_v63  ;;  %v7548_v9 = vunpack.c.l.bf16 %v7222_v19  ;;  %v7549_v41 = vunpack.c.h.bf16 %v7222_v19  ;;  %v12202_v24 = vpop.permute.xlu1 %5949 }
 0x315   :  { %v2370_v29 = vrot.slane %v8774_v46, 5  ;;  %v6818_v42 = vsel %vm6774_vm13, %v6753_v25, %v12084_v58  ;;  %v4800_v16 = vsel %vm9657_vm14, %v4798_v28, %v4799_v12  ;;  %v7221_v33 = vpack.c.bf16 %v6997_v8, %v6994_v26  ;;  %v13032_v25 = vld [vmem:[#allocation20_spill] sm:$0xff] }
 0x316   :  { %6121 = vrot.lane.b32.xlu1 %v8303_v52, %s8817_s6  ;;  %v8446_v22 = vpack.c.bf16 %v6997_v8, %v6997_v8  ;;  %v7616_v34 = vadd.f32 %v12025_v55, %v12075_v10  ;;  %v13031_v1 = vcombine.low %v10369_v6, %v13030_v18  ;;  %v7812_v58 = vsel %vm6384_vm1, %v12027_v50, 0.0  ;;  %8583 = vmatmul.mubr.msk.bf16.gmra.mxu1 %vm6859_vm8, %v6818_v42  ;;  %v127_v8 = vld [vmem:[#allocation2 + $0x198] sm:$0x1]  ;;  %v13034_v18 = vld [vmem:[#allocation27_spill] sm:$0xff] }
 0x317   :  { %v8335_v59 = vcombine.low %v4797_v37, %v4800_v16  ;;  %v7745_v47 = vmul.f32 %v7548_v9, %v7548_v9  ;;  %v7621_v55 = vsel %vm6384_vm1, %v7548_v9, 0.0  ;;  %v2371_v10 = vsel %vm9657_vm14, %v7984_v38, %v2370_v29  ;;  %v12226_v4 = vpop.permute.xlu0 %6107 }
 0x318   :  { %v12209_v31 = vsel %vm6287_vm15, %v13031_v1, %v10281_v20  ;;  %6279 = vrot.lane.b32.xlu0 %v8334_v15, %s8818_s7  ;;  %v2372_v26 = vrot.slane %v2370_v29, 4  ;;  %7483 = vst.msk [vmem:[%s12914_s2 + $0x24] sm:$0xf] %vm7473_vm0, %v8446_v22  ;;  %v7546_v20 = vunpack.c.l.bf16 %v7221_v33  ;;  %v12223_v6 = vsel %vm6384_vm1, %v7549_v41, 0.0 }
 0x319   :  { %v7746_v50 = vmul.f32 %v7549_v41, %v7549_v41  ;;  %v7547_v43 = vunpack.c.h.bf16 %v7221_v33  ;;  %v7813_v54 = vadd.f32 %v7812_v58, %v12080_v7  ;;  %v7818_v36 = vsel %vm6384_vm1, %v7745_v47, 0.0  ;;  %v12238_v23 = vpop.permute.xlu1 %6109  ;;  %v290_v41 = vld [vmem:[%s12912_s0 + $0xf8] sm:$0xf]  ;;  %v291_v33 = vld [vmem:[%s12912_s0 + $0xfc] sm:$0xf]  ;;  %v13035_v58 = vld [vmem:[#allocation21_spill] sm:$0xff] }
 0x31a   :  { %6281 = vrot.lane.b32.xlu1 %v8335_v59, %s8818_s7  ;;  %v13033_v45 = vrot.slane %v13032_v25, 5  ;;  %v7617_v17 = vsel %vm6384_vm1, %v7546_v20, 0.0  ;;  %v7743_v30 = vmul.f32 %v7546_v20, %v7546_v20  ;;  %v7985_v61 = vrot.slane %v2058_v14, 9  ;;  %v12271_v20 = vpop.f32.mrf.mxu0 }
 0x31b   :  { %v7618_v27 = vadd.f32 %v7617_v17, %v7616_v34  ;;  %v7619_v7 = vsel %vm6384_vm1, %v7547_v43, 0.0  ;;  %v7744_v39 = vmul.f32 %v7547_v43, %v7547_v43  ;;  %v2377_v48 = vrot.slane %v8775_v13, 5  ;;  %v12243_v52 = vpop.permute.xlu0 %6267  ;;  %v225_v17 = vld [vmem:[#allocation2 + $0x1a0] sm:$0x1] }
 0x31c   :  { %v2374_v51 = vsel %vm9657_vm14, %v2372_v26, %v13033_v45  ;;  %v7814_v32 = vsel %vm6384_vm1, %v7743_v30, 0.0  ;;  %v3199_v12 = vshrl.u32 %v2442_v35, 16  ;;  %v3202_v63 = vshll.u32 %v2442_v35, 16  ;;  %v2476_v26 = vld [vmem:[#allocation2 + $0x194] sm:$0x1]  ;;  %v13038_v30 = vld [vmem:[#allocation28_spill] sm:$0xff] }
 0x31d   :  { %v8144_v44 = vcombine.low %v2371_v10, %v2374_v51  ;;  %v7620_v56 = vadd.f32 %v7619_v7, %v7618_v27  ;;  %v7815_v15 = vadd.f32 %v7814_v32, %v7813_v54  ;;  %v7816_v19 = vsel %vm6384_vm1, %v7744_v39, 0.0  ;;  %v12257_v22 = vpop.permute.xlu1 %6269 }
 0x31e   :  { %v2378_v37 = vsel %vm9657_vm14, %v7985_v61, %v2377_v48  ;;  %v2379_v28 = vrot.slane %v2377_v48, 4  ;;  %v3201_v38 = vrot.slane %v3199_v12, 4  ;;  %v3212_v9 = vshrl.u32 %v12236_v3, 16  ;;  %v3276_v12 = vld [vmem:[#allocation2 + $0x18c] sm:$0xe] }
 0x31f   :  { %5259 = vrot.lane.b32.xlu0 %v8144_v44, %s8812_s29  ;;  %v12251_v46 = vadd.f32 %v7621_v55, %v7620_v56  ;;  %v7817_v29 = vadd.f32 %v7816_v19, %v7815_v15  ;;  %v3204_v42 = vrot.slane %v3202_v63, 5  ;;  %v8176_v16 = vcombine.low %v2442_v35, %v12236_v3  ;;  %v7010_v56 = vpop.f32.mrf.mxu0 }
 0x320   :  { %v12260_v34 = vsel %vm6384_vm1, %v7746_v50, 0.0  ;;  %v6430_v1 = vsel %vm6384_vm1, %v13034_v18, %v12098_v11  ;;  %v13036_v59 = vrot.slane %v13035_v58, 5  ;;  %v128_v10 = vsel %vm8845_vm3, 0, %v127_v8  ;;  %v12276_v11 = vpop.permute.xlu0 %5247 }
 0x321   :  { %v12273_v43 = vadd.f32 %v7818_v36, %v7817_v29  ;;  %129 = vst [vmem:[#allocation2 + $0x198] sm:$0x1] %v128_v10  ;;  %v822_v50 = vshrl.u32 %v290_v41, 16  ;;  %v825_v14 = vshll.u32 %v290_v41, 16  ;;  %v830_v35 = vshrl.u32 %v291_v33, 16  ;;  %v12283_v39 = vpop.permute.xlu1 %5249 }
 0x322   :  { %v2381_v47 = vsel %vm9657_vm14, %v2379_v28, %v13036_v59  ;;  %v833_v25 = vshll.u32 %v291_v33, 16  ;;  %v3205_v45 = vor.u32 %v3204_v42, %v3201_v38  ;;  %v3208_v51 = vshll.u32 %v12236_v3, 16  ;;  %v12295_v41 = vld [vmem:[#allocation2 + $0x1a4] sm:$0xf] }
 0x323   :  { %v8145_v54 = vcombine.low %v2378_v37, %v2381_v47  ;;  %5451 = vrot.lane.b32.xlu0 %v8176_v16, %s8813_s26  ;;  %v6432_v36 = vsel %vm6384_vm1, %v13038_v30, %v12103_v49  ;;  %v824_v44 = vrot.slane %v822_v50, 7  ;;  %v3214_v27 = vrot.slane %v3212_v9, 4 }
 0x324   :  { %v3218_v7 = vshll.u32 %v2476_v26, 16  ;;  %v6495_v32 = vsel %vm6449_vm2, %v6430_v1, %v12116_v0  ;;  %v832_v61 = vrot.slane %v830_v35, 7  ;;  %v3206_v13 = vrot.slane %v3205_v45, 4  ;;  %v12291_v37 = vpop.permute.xlu0 %5439 }
 0x325   :  { %5261 = vrot.lane.b32.xlu1 %v8145_v54, %s8812_s29  ;;  %v3210_v48 = vrot.slane %v3208_v51, 5  ;;  %v827_v15 = vor.u32 %v825_v14, %v824_v44  ;;  %v828_v19 = vrot.slane %v824_v44, 4  ;;  %v6497_v63 = vsel %vm6449_vm2, %v6432_v36, %v12130_v2  ;;  %v12298_v2 = vld [vmem:[#allocation2 + $0x1a8] sm:$0xf]  ;;  %v12300_v18 = vpop.permute.xlu1 %5441  ;;  %v8557_v54 = vpop.f32.mrf.mxu0  ;;  %v12326_v44 = vld [vmem:[#allocation2 + $0x1ac] sm:$0x1] }
 0x326   :  { %v226_v49 = vsel %vm8860_vm5, 0, %v225_v17  ;;  %v835_v28 = vor.u32 %v833_v25, %v832_v61  ;;  %v3220_v9 = vrot.slane %v3218_v7, 5  ;;  %v6560_v0 = vsel %vm6514_vm4, %v6495_v32, %v12143_v21 }
 0x327   :  { %v3215_v38 = vor.u32 %v3214_v27, %v3210_v48  ;;  %227 = vst [vmem:[#allocation2 + $0x1a0] sm:$0x1] %v226_v49  ;;  %v837_v29 = vrot.slane %v832_v61, 4  ;;  %v8016_v42 = vrot.slane %v3276_v12, 9  ;;  %v3586_v16 = vrot.slane %v12236_v3, 5 }
 0x328   :  { %v3589_v33 = vrot.slane %v2476_v26, 5  ;;  %v836_v58 = vsel %vm8886_vm9, %v828_v19, %v835_v28  ;;  %v1153_v59 = vld [vmem:[#allocation2 + $0x198] sm:$0xf]  ;;  %v3211_v47 = vsel %vm8911_vm11, %v3206_v13, %v3210_v48  ;;  %v6562_v10 = vsel %vm6514_vm4, %v6497_v63, %v12153_v53  ;;  %v7013_v48 = vpop.f32.mrf.mxu0 }
 0x329   :  { %v3216_v21 = vrot.slane %v3215_v38, 4  ;;  %v1154_v3 = vsel %vm8892_vm10, %v827_v15, %v1153_v59  ;;  %vm13042_vm5 = vcmask 27648   ;;  %v3587_v26 = vsel %vm9657_vm14, %v8016_v42, %v3586_v16  ;;  %v12328_v27 = vpop.permute.xlu0 %5599 }
 0x32a   :  { %1156 = vst.msk [vmem:[#allocation2 + $0x19c] sm:$0xf] %vm13042_vm5, %v836_v58  ;;  %v3588_v14 = vrot.slane %v3586_v16, 4  ;;  %v6625_v35 = vsel %vm6579_vm6, %v6560_v0, %v12161_v57  ;;  %1155 = vst [vmem:[#allocation2 + $0x198] sm:$0xf] %v1154_v3  ;;  %v4440_v45 = vshrl.u32 %v12295_v41, 16  ;;  %v6627_v36 = vsel %vm6579_vm6, %v6562_v10, %v12181_v5 }
 0x32b   :  { %v3221_v25 = vsel %vm8911_vm11, %v3216_v21, %v3220_v9  ;;  %v4443_v53 = vshll.u32 %v12295_v41, 16  ;;  %v4453_v51 = vshrl.u32 %v12298_v2, 16  ;;  %v8451_v57 = vpack.c.bf16 %v12271_v20, %v12271_v20 }
 0x32c   :  { %v8208_v17 = vcombine.low %v3211_v47, %v3221_v25  ;;  %v3590_v30 = vsel %vm9657_vm14, %v3588_v14, %v3589_v33  ;;  %v6690_v7 = vsel %vm6644_vm7, %v6625_v35, %v12186_v62  ;;  %v4442_v32 = vrot.slane %v4440_v45, 4  ;;  %v12342_v62 = vpop.permute.xlu1 %5601 }
 0x32d   :  { %v4445_v61 = vrot.slane %v4443_v53, 5  ;;  %v8273_v13 = vcombine.low %v12295_v41, %v12298_v2  ;;  %v8240_v5 = vcombine.low %v3587_v26, %v3590_v30  ;;  %7488 = vst.msk [vmem:[%s12914_s2 + $0x38] sm:$0xf] %vm7473_vm0, %v8451_v57  ;;  %v8449_v15 = vpack.c.bf16 %v7010_v56, %v7010_v56 }
 0x32e   :  { %5611 = vrot.lane.b32.xlu0 %v8208_v17, %s8814_s30  ;;  %v1157_v12 = vld [vmem:[#allocation2 + $0x1a0] sm:$0x1]  ;;  %v4449_v19 = vshll.u32 %v12298_v2, 16  ;;  %v12340_v63 = vrot.slane %v4453_v51, 4  ;;  %v4459_v28 = vshll.u32 %v12326_v44, 16  ;;  %v12348_v38 = vpack.c.bf16 %v8557_v54, %v12271_v20 }
 0x32f   :  { %v1158_v8 = vsel %vm8845_vm3, %v837_v29, %v1157_v12  ;;  %v4446_v49 = vor.u32 %v4445_v61, %v4442_v32  ;;  %v6692_v9 = vsel %vm6644_vm7, %v6627_v36, %v12202_v24  ;;  %7486 = vst.msk [vmem:[%s12914_s2 + $0x30] sm:$0xf] %vm7473_vm0, %v8449_v15  ;;  %v8452_v42 = vpack.c.bf16 %v8557_v54, %v8557_v54  ;;  %v12360_v29 = vpop.permute.xlu0 %5759 }
 0x330   :  { %1159 = vst [vmem:[#allocation2 + $0x1a0] sm:$0x1] %v1158_v8  ;;  %v12356_v0 = vrot.slane %v4449_v19, 5  ;;  %v12358_v55 = vpack.c.bf16 %v7013_v48, %v7010_v56  ;;  %v12364_v20 = vsel %vm6709_vm12, %v6690_v7, %v12226_v4  ;;  %v12368_v24 = vrot.slane %v4459_v28, 5  ;;  %v12384_v10 = vpop.permute.xlu1 %5761  ;;  %v12396_v7 = vpop.f32.mrf.mxu0 }
 0x331   :  { %v2445_v16 = vld [vmem:[#allocation2 + $0x19c] sm:$0xf]  ;;  %v12366_v33 = vrot.slane %v4446_v49, 4  ;;  %v12372_v1 = vsel %vm6709_vm12, %v6692_v9, %v12238_v23  ;;  %v2444_v58 = vld [vmem:[#allocation2 + $0x198] sm:$0xf]  ;;  %v12382_v4 = vunpack.c.l.bf16 %v12348_v38  ;;  %v8450_v21 = vpack.c.bf16 %v7013_v48, %v7013_v48 }
 0x332   :  { %v3236_v59 = vshrl.u32 %v2445_v16, 16  ;;  %v3232_v47 = vshll.u32 %v2445_v16, 16  ;;  %5771 = vrot.lane.b32.xlu0 %v8240_v5, %s8815_s4  ;;  %v12375_v56 = vld [vmem:[#allocation2 + $0x19c] sm:$0xf]  ;;  %7489 = vst.msk [vmem:[%s12914_s2 + $0x3c] sm:$0xf] %vm7473_vm0, %v8452_v42  ;;  %v8177_v50 = vcombine.low %v2444_v58, %v2445_v16  ;;  %v4456_v14 = vor.u32 %v12340_v63, %v12356_v0 }
 0x333   :  { %v3223_v23 = vshrl.u32 %v2444_v58, 16  ;;  %v3226_v54 = vshll.u32 %v2444_v58, 16  ;;  %v3277_v3 = vld [vmem:[#allocation2 + $0x198] sm:$0xe]  ;;  %v3593_v45 = vrot.slane %v2445_v16, 5  ;;  %v12392_v51 = vpop.permute.xlu0 %5951  ;;  %v4429_v57 = vshrl.u32 %v12375_v56, 16 }
 0x334   :  { %v3659_v26 = vld [vmem:[#allocation2 + $0x198] sm:$0xf]  ;;  %v3234_v35 = vrot.slane %v3232_v47, 5  ;;  %v3238_v25 = vrot.slane %v3236_v59, 4  ;;  %7487 = vst.msk [vmem:[%s12914_s2 + $0x34] sm:$0xf] %vm7473_vm0, %v8450_v21  ;;  %5453 = vrot.lane.b32.xlu1 %v8177_v50, %s8813_s26  ;;  %v12398_v5 = vpop.permute.xlu1 %5953  ;;  %v7624_v60 = vadd.f32 %v12223_v6, %v12251_v46 }
 0x335   :  { %v4416_v53 = vshrl.u32 %v3659_v26, 16  ;;  %v3225_v17 = vrot.slane %v3223_v23, 4  ;;  %v3228_v30 = vrot.slane %v3226_v54, 5  ;;  %v4419_v36 = vshll.u32 %v3659_v26, 16  ;;  %v12403_v54 = vpop.f32.mrf.mxu0 }
 0x336   :  { %v3239_v32 = vor.u32 %v3238_v25, %v3234_v35  ;;  %v8017_v61 = vrot.slane %v3277_v3, 9  ;;  %v3595_v48 = vrot.slane %v3593_v45, 4  ;;  %v8272_v8 = vcombine.low %v3659_v26, %v12375_v56 }
 0x337   :  { %v4418_v12 = vrot.slane %v4416_v53, 4  ;;  %v2477_v15 = vld [vmem:[#allocation2 + $0x1a0] sm:$0x1]  ;;  %v3229_v19 = vor.u32 %v3228_v30, %v3225_v17  ;;  %v4421_v63 = vrot.slane %v4419_v36, 5  ;;  %v4425_v28 = vshll.u32 %v12375_v56, 16 }
 0x338   :  { %v3693_v49 = vld [vmem:[#allocation2 + $0x1a0] sm:$0x1]  ;;  %v3240_v9 = vrot.slane %v3239_v32, 4  ;;  %v3242_v42 = vshll.u32 %v2477_v15, 16  ;;  %v3596_v16 = vrot.slane %v2477_v15, 5  ;;  %v4431_v58 = vrot.slane %v4429_v57, 4  ;;  %5963 = vrot.lane.b32.xlu0 %v8272_v8, %s8816_s5  ;;  %v12409_v53 = vpop.permute.xlu0 %6111 }
 0x339   :  { %v3230_v59 = vrot.slane %v3229_v19, 4  ;;  %v4422_v47 = vor.u32 %v4421_v63, %v4418_v12  ;;  %v4427_v21 = vrot.slane %v4425_v28, 5  ;;  %v4435_v23 = vshll.u32 %v3693_v49, 16  ;;  %v4493_v32 = vld [vmem:[#allocation2 + $0x198] sm:$0xe]  ;;  %v12423_v12 = vpop.permute.xlu1 %6113 }
 0x33a   :  { %v3244_v50 = vrot.slane %v3242_v42, 5  ;;  %v3594_v3 = vsel %vm9657_vm14, %v8017_v61, %v3593_v45  ;;  %v3597_v26 = vsel %vm9657_vm14, %v3595_v48, %v3596_v16  ;;  %v4457_v25 = vrot.slane %v4456_v14, 4 }
 0x33b   :  { %v3235_v17 = vsel %vm8911_vm11, %v3230_v59, %v3234_v35  ;;  %v4423_v30 = vrot.slane %v4422_v47, 4  ;;  %v4432_v36 = vor.u32 %v4431_v58, %v4427_v21  ;;  %v4452_v57 = vsel %vm8911_vm11, %v12366_v33, %v12356_v0  ;;  %v12427_v0 = vpop.f32.mrf.mxu0 }
 0x33c   :  { %v3245_v45 = vsel %vm8911_vm11, %v3240_v9, %v3244_v50  ;;  %v4437_v61 = vrot.slane %v4435_v23, 5  ;;  %v4462_v14 = vsel %vm8911_vm11, %v4457_v25, %v12368_v24  ;;  %v7553_v48 = vunpack.c.h.bf16 %v12348_v38  ;;  %v12435_v38 = vpop.permute.xlu0 %6271 }
 0x33d   :  { %v8209_v35 = vcombine.low %v3235_v17, %v3245_v45  ;;  %v8241_v15 = vcombine.low %v3594_v3, %v3597_v26  ;;  %v4428_v19 = vsel %vm8911_vm11, %v4423_v30, %v4427_v21  ;;  %v4433_v63 = vrot.slane %v4432_v36, 4  ;;  %v12455_v30 = vpop.permute.xlu1 %6273 }
 0x33e   :  { %v12429_v33 = vcombine.low %v4452_v57, %v4462_v14  ;;  %v7629_v8 = vsel %vm6384_vm1, %v12382_v4, 0.0  ;;  %v7749_v24 = vmul.f32 %v12382_v4, %v12382_v4  ;;  %v8048_v28 = vrot.slane %v4493_v32, 9  ;;  %v4494_v4 = vld [vmem:[#allocation2 + $0x1a4] sm:$0xe] }
 0x33f   :  { %5613 = vrot.lane.b32.xlu1 %v8209_v35, %s8814_s30  ;;  %v4438_v9 = vsel %vm8911_vm11, %v4433_v63, %v4437_v61  ;;  %v4803_v42 = vrot.slane %v12375_v56, 5  ;;  %v4806_v16 = vrot.slane %v3693_v49, 5  ;;  %v7550_v58 = vunpack.c.l.bf16 %v12358_v55  ;;  %v12449_v56 = vpop.f32.mrf.mxu0 }
 0x340   :  { %v8304_v59 = vcombine.low %v4428_v19, %v4438_v9  ;;  %v7631_v47 = vsel %vm6384_vm1, %v7553_v48, 0.0  ;;  %v7750_v21 = vmul.f32 %v7553_v48, %v7553_v48  ;;  %v7551_v23 = vunpack.c.h.bf16 %v12358_v55  ;;  %v12457_v36 = vpop.permute.xlu0 %5251 }
 0x341   :  { %v4804_v50 = vsel %vm9657_vm14, %v8048_v28, %v4803_v42  ;;  %v4805_v3 = vrot.slane %v4803_v42, 4  ;;  %v7625_v26 = vsel %vm6384_vm1, %v7550_v58, 0.0  ;;  %v7826_v49 = vsel %vm6384_vm1, %v7749_v24, 0.0  ;;  %v12469_v14 = vpop.f32.mrf.mxu0 }
 0x342   :  { %6123 = vrot.lane.b32.xlu0 %v8304_v59, %s8817_s6  ;;  %v7747_v25 = vmul.f32 %v7550_v58, %v7550_v58  ;;  %v7748_v17 = vmul.f32 %v7551_v23, %v7551_v23  ;;  %v7821_v55 = vadd.f32 %v12260_v34, %v12273_v43  ;;  %v7626_v46 = vadd.f32 %v7625_v26, %v7624_v60 }
 0x343   :  { %5773 = vrot.lane.b32.xlu1 %v8241_v15, %s8815_s4  ;;  %v4807_v6 = vsel %vm9657_vm14, %v4805_v3, %v4806_v16  ;;  %v6820_v57 = vsel %vm6774_vm13, %v12364_v20, %v12243_v52  ;;  %v8049_v32 = vrot.slane %v4494_v4, 9  ;;  %v7627_v61 = vsel %vm6384_vm1, %v7551_v23, 0.0 }
 0x344   :  { %v8336_v45 = vcombine.low %v4804_v50, %v4807_v6  ;;  %v7822_v34 = vsel %vm6384_vm1, %v7747_v25, 0.0  ;;  %v4810_v43 = vrot.slane %v12298_v2, 5  ;;  %8586 = vmatprep.mubr.msk.bf16.mxu1 %vm6859_vm8, %v6820_v57  ;;  %v7628_v48 = vadd.f32 %v7627_v61, %v7626_v46  ;;  %v12491_v42 = vpop.permute.xlu0 %5443  ;;  %v8778_v57 = vld [vmem:[#allocation2 + $0x15c] sm:$0xf] }
 0x345   :  { %v7823_v35 = vadd.f32 %v7822_v34, %v7821_v55  ;;  %v4813_v15 = vrot.slane %v12326_v44, 5  ;;  %v6822_v52 = vsel %vm6774_vm13, %v12372_v1, %v12257_v22  ;;  %v7828_v20 = vsel %vm6384_vm1, %v7750_v21, 0.0  ;;  %v13043_v22 = vld [vmem:[#allocation29_spill] sm:$0xff] }
 0x346   :  { %6283 = vrot.lane.b32.xlu0 %v8336_v45, %s8818_s7  ;;  %v7824_v19 = vsel %vm6384_vm1, %v7748_v17, 0.0  ;;  %v4811_v63 = vsel %vm9657_vm14, %v8049_v32, %v4810_v43  ;;  %v4812_v24 = vrot.slane %v4810_v43, 4  ;;  %8587 = vmatmul.mubr.msk.bf16.gmra.mxu1 %vm6859_vm8, %v6822_v52  ;;  %v7630_v44 = vadd.f32 %v7629_v8, %v7628_v48  ;;  %v8777_v17 = vld [vmem:[#allocation2 + $0x150] sm:$0xf]  ;;  %v8779_v32 = vld [vmem:[#allocation2 + $0x160] sm:$0xf] }
 0x347   :  { %5965 = vrot.lane.b32.xlu1 %v8273_v13, %s8816_s5  ;;  %v7825_v28 = vadd.f32 %v7824_v19, %v7823_v35  ;;  %v6434_v1 = vsel %vm6384_vm1, %v13043_v22, %v12276_v11  ;;  %v6436_v9 = vsel %vm6384_vm1, %v12209_v31, %v12283_v39  ;;  %v8455_v2 = vpack.c.bf16 %v12396_v7, %v12396_v7  ;;  %v12501_v13 = vpop.permute.xlu1 %5253  ;;  %v12503_v11 = vpop.f32.mrf.mxu0 }
 0x348   :  { %v4814_v16 = vsel %vm9657_vm14, %v4812_v24, %v4813_v15  ;;  %v6499_v58 = vsel %vm6449_vm2, %v6434_v1, %v12291_v37  ;;  %v6501_v41 = vsel %vm6449_vm2, %v6436_v9, %v12300_v18  ;;  %v8453_v18 = vpack.c.bf16 %v12403_v54, %v12403_v54 }
 0x349   :  { %v7827_v8 = vadd.f32 %v7826_v49, %v7825_v28  ;;  %v8337_v31 = vcombine.low %v4811_v63, %v4814_v16  ;;  %v6564_v39 = vsel %vm6514_vm4, %v6499_v58, %v12328_v27  ;;  %v6566_v40 = vsel %vm6514_vm4, %v6501_v41, %v12342_v62  ;;  %7492 = vst.msk [vmem:[%s12914_s2 + $0x48] sm:$0xf] %vm7473_vm0, %v8455_v2 }
 0x34a   :  { %v6629_v37 = vsel %vm6579_vm6, %v6564_v39, %v12360_v29  ;;  %v7226_v59 = vpack.c.bf16 %v12427_v0, %v12396_v7  ;;  %v8456_v27 = vpack.c.bf16 %v12427_v0, %v12427_v0  ;;  %v7225_v29 = vpack.c.bf16 %v12449_v56, %v12403_v54  ;;  %7490 = vst.msk [vmem:[%s12914_s2 + $0x40] sm:$0xf] %vm7473_vm0, %v8453_v18  ;;  %v8565_v54 = vpop.f32.mrf.mxu0  ;;  %v13045_v18 = vld [vmem:[#allocation24_spill] sm:$0xff] }
 0x34b   :  { %6125 = vrot.lane.b32.xlu1 %v12429_v33, %s8817_s6  ;;  %v6694_v62 = vsel %vm6644_vm7, %v6629_v37, %v12392_v51  ;;  %v8454_v21 = vpack.c.bf16 %v12449_v56, %v12449_v56  ;;  %v7632_v23 = vadd.f32 %v7631_v47, %v7630_v44  ;;  %v6631_v4 = vsel %vm6579_vm6, %v6566_v40, %v12384_v10  ;;  %v12547_v50 = vpop.permute.xlu0 %5603  ;;  %v13044_v40 = vld [vmem:[#allocation22_spill] sm:$0xff] }
 0x34c   :  { %7493 = vst.msk [vmem:[%s12914_s2 + $0x4c] sm:$0xf] %vm7473_vm0, %v8456_v27  ;;  %v7829_v51 = vadd.f32 %v7828_v20, %v7827_v8  ;;  %v6759_v7 = vsel %vm6709_vm12, %v6694_v62, %v12409_v53  ;;  %v7556_v0 = vunpack.c.l.bf16 %v7226_v59  ;;  %v7554_v10 = vunpack.c.l.bf16 %v7225_v29  ;;  %v12552_v53 = vpop.permute.xlu1 %5445  ;;  %v7045_v46 = vpop.f32.mrf.mxu0 }
 0x34d   :  { %7491 = vst.msk [vmem:[%s12914_s2 + $0x44] sm:$0xf] %vm7473_vm0, %v8454_v21  ;;  %v7555_v33 = vunpack.c.h.bf16 %v7225_v29  ;;  %v6824_v47 = vsel %vm6774_vm13, %v6759_v7, %v12435_v38  ;;  %v7557_v3 = vunpack.c.h.bf16 %v7226_v59  ;;  %v6696_v60 = vsel %vm6644_vm7, %v6631_v4, %v12398_v5  ;;  %v8776_v38 = vld [vmem:[#allocation2 + $0x154] sm:$0xf] }
 0x34e   :  { %8590 = vmatprep.mubr.msk.bf16.mxu1 %vm6859_vm8, %v6824_v47  ;;  %v7633_v26 = vsel %vm6384_vm1, %v7554_v10, 0.0  ;;  %v7751_v56 = vmul.f32 %v7554_v10, %v7554_v10  ;;  %v6761_v25 = vsel %vm6709_vm12, %v6696_v60, %v12423_v12  ;;  %v8076_v55 = vcombine.low %v8777_v17, %v8776_v38 }
 0x34f   :  { %6285 = vrot.lane.b32.xlu1 %v8337_v31, %s8818_s7  ;;  %v7752_v49 = vmul.f32 %v7555_v33, %v7555_v33  ;;  %v7634_v6 = vadd.f32 %v7633_v26, %v7632_v23  ;;  %v6826_v5 = vsel %vm6774_vm13, %v6761_v25, %v12455_v30  ;;  %v8077_v45 = vcombine.low %v8778_v57, %v8779_v32 }
 0x350   :  { %v7753_v61 = vmul.f32 %v7556_v0, %v7556_v0  ;;  %v7635_v34 = vsel %vm6384_vm1, %v7555_v33, 0.0  ;;  %v7830_v43 = vsel %vm6384_vm1, %v7751_v56, 0.0  ;;  %8591 = vmatmul.mubr.msk.bf16.gmra.mxu1 %vm6859_vm8, %v6826_v5  ;;  %v7637_v12 = vsel %vm6384_vm1, %v7556_v0, 0.0  ;;  %v8568_v52 = vpop.f32.mrf.mxu0 }
 0x351   :  { %v7754_v48 = vmul.f32 %v7557_v3, %v7557_v3  ;;  %v7636_v35 = vadd.f32 %v7635_v34, %v7634_v6  ;;  %v7831_v15 = vadd.f32 %v7830_v43, %v7829_v51  ;;  %v7832_v20 = vsel %vm6384_vm1, %v7752_v49, 0.0  ;;  %v12569_v63 = vpop.permute.xlu0 %5763 }
 0x352   :  { %v8459_v30 = vpack.c.bf16 %v12469_v14, %v12469_v14  ;;  %v8457_v19 = vpack.c.bf16 %v12503_v11, %v12503_v11  ;;  %v7228_v24 = vpack.c.bf16 %v8565_v54, %v12469_v14  ;;  %v12572_v22 = vpop.permute.xlu1 %5605  ;;  %v8460_v1 = vpack.c.bf16 %v8565_v54, %v8565_v54  ;;  %v7058_v9 = vpop.f32.mrf.mxu0 }
 0x353   :  { %v7638_v44 = vadd.f32 %v7637_v12, %v7636_v35  ;;  %v7833_v28 = vadd.f32 %v7832_v20, %v7831_v15  ;;  %v7639_v16 = vsel %vm6384_vm1, %v7557_v3, 0.0  ;;  %v7834_v58 = vsel %vm6384_vm1, %v7753_v61, 0.0 }
 0x354   :  { %7496 = vst.msk [vmem:[%s12914_s2 + $0x58] sm:$0xf] %vm7473_vm0, %v8459_v30  ;;  %7494 = vst.msk [vmem:[%s12914_s2 + $0x50] sm:$0xf] %vm7473_vm0, %v8457_v19  ;;  %v7227_v14 = vpack.c.bf16 %v7045_v46, %v12503_v11  ;;  %v8458_v2 = vpack.c.bf16 %v7045_v46, %v7045_v46  ;;  %v8463_v31 = vpack.c.bf16 %v8568_v52, %v8568_v52  ;;  %v8569_v39 = vpop.f32.mrf.mxu0  ;;  %v7836_v27 = vsel %vm6384_vm1, %v7754_v48, 0.0 }
 0x355   :  { %v7835_v41 = vadd.f32 %v7834_v58, %v7833_v28  ;;  %7497 = vst.msk [vmem:[%s12914_s2 + $0x5c] sm:$0xf] %vm7473_vm0, %v8460_v1  ;;  %v7640_v8 = vadd.f32 %v7639_v16, %v7638_v44  ;;  %v6368_v37 = vsel %vm6287_vm15, %v8076_v55, %v13044_v40  ;;  %v6371_v59 = vsel %vm6287_vm15, %v8077_v45, %v13045_v18  ;;  %v5956_v3 = vpop.permute.xlu0 %5955 }
 0x356   :  { %v7560_v62 = vunpack.c.l.bf16 %v7228_v24  ;;  %v5766_v11 = vpop.permute.xlu1 %5765  ;;  %7495 = vst.msk [vmem:[%s12914_s2 + $0x54] sm:$0xf] %vm7473_vm0, %v8458_v2  ;;  %v7558_v29 = vunpack.c.l.bf16 %v7227_v14  ;;  %v7559_v21 = vunpack.c.h.bf16 %v7227_v14  ;;  %7500 = vst.msk [vmem:[%s12914_s2 + $0x68] sm:$0xf] %vm7473_vm0, %v8463_v31  ;;  %v7061_v4 = vpop.f32.mrf.mxu0  ;;  %v6438_v51 = vsel %vm6384_vm1, %v6368_v37, %v12457_v36 }
 0x357   :  { %v7837_v23 = vadd.f32 %v7836_v27, %v7835_v41  ;;  %v6440_v7 = vsel %vm6384_vm1, %v6371_v59, %v12501_v13  ;;  %v8461_v54 = vpack.c.bf16 %v7058_v9, %v7058_v9  ;;  %v7561_v0 = vunpack.c.h.bf16 %v7228_v24 }
 0x358   :  { %v7641_v10 = vsel %vm6384_vm1, %v7558_v29, 0.0  ;;  %v7755_v33 = vmul.f32 %v7558_v29, %v7558_v29  ;;  %v7756_v47 = vmul.f32 %v7559_v21, %v7559_v21  ;;  %v7230_v26 = vpack.c.bf16 %v8569_v39, %v8568_v52 }
 0x359   :  { %v7642_v60 = vadd.f32 %v7641_v10, %v7640_v8  ;;  %7498 = vst.msk [vmem:[%s12914_s2 + $0x60] sm:$0xf] %vm7473_vm0, %v8461_v54  ;;  %v8464_v56 = vpack.c.bf16 %v8569_v39, %v8569_v39  ;;  %v7229_v49 = vpack.c.bf16 %v7061_v4, %v7058_v9  ;;  %v7757_v36 = vmul.f32 %v7560_v62, %v7560_v62 }
 0x35a   :  { %v7643_v25 = vsel %vm6384_vm1, %v7559_v21, 0.0  ;;  %v7838_v13 = vsel %vm6384_vm1, %v7755_v33, 0.0  ;;  %v5958_v38 = vpop.permute.xlu1 %5957  ;;  %v8462_v17 = vpack.c.bf16 %v7061_v4, %v7061_v4  ;;  %v6503_v55 = vsel %vm6449_vm2, %v6438_v51, %v12491_v42 }
 0x35b   :  { %v7645_v6 = vsel %vm6384_vm1, %v7560_v62, 0.0  ;;  %v7644_v5 = vadd.f32 %v7643_v25, %v7642_v60  ;;  %v7839_v46 = vadd.f32 %v7838_v13, %v7837_v23  ;;  %7501 = vst.msk [vmem:[%s12914_s2 + $0x6c] sm:$0xf] %vm7473_vm0, %v8464_v56  ;;  %v7758_v57 = vmul.f32 %v7561_v0, %v7561_v0 }
 0x35c   :  { %v7840_v32 = vsel %vm6384_vm1, %v7756_v47, 0.0  ;;  %7499 = vst.msk [vmem:[%s12914_s2 + $0x64] sm:$0xf] %vm7473_vm0, %v8462_v17  ;;  %v7562_v45 = vunpack.c.l.bf16 %v7229_v49  ;;  %v7563_v61 = vunpack.c.h.bf16 %v7229_v49  ;;  %v6505_v42 = vsel %vm6449_vm2, %v6440_v7, %v12552_v53 }
 0x35d   :  { %v6568_v34 = vsel %vm6514_vm4, %v6503_v55, %v12547_v50  ;;  %v7646_v43 = vadd.f32 %v7645_v6, %v7644_v5  ;;  %v7841_v12 = vadd.f32 %v7840_v32, %v7839_v46  ;;  %v7647_v48 = vsel %vm6384_vm1, %v7561_v0, 0.0 }
 0x35e   :  { %v7842_v35 = vsel %vm6384_vm1, %v7757_v36, 0.0  ;;  %v6116_v15 = vpop.permute.xlu0 %6115  ;;  %v7564_v52 = vunpack.c.l.bf16 %v7230_v26  ;;  %v7649_v20 = vsel %vm6384_vm1, %v7562_v45, 0.0  ;;  %v6570_v30 = vsel %vm6514_vm4, %v6505_v42, %v12572_v22 }
 0x35f   :  { %v6633_v19 = vsel %vm6579_vm6, %v6568_v34, %v12569_v63  ;;  %v7843_v53 = vadd.f32 %v7842_v35, %v7841_v12  ;;  %v7648_v24 = vadd.f32 %v7647_v48, %v7646_v43  ;;  %v7844_v50 = vsel %vm6384_vm1, %v7758_v57, 0.0 }
 0x360   :  { %v6118_v44 = vpop.permute.xlu1 %6117  ;;  %v7565_v28 = vunpack.c.h.bf16 %v7230_v26  ;;  %v7759_v1 = vmul.f32 %v7562_v45, %v7562_v45  ;;  %v7760_v9 = vmul.f32 %v7563_v61, %v7563_v61  ;;  %v6635_v16 = vsel %vm6579_vm6, %v6570_v30, %v5766_v11 }
 0x361   :  { %v6698_v58 = vsel %vm6644_vm7, %v6633_v19, %v5956_v3  ;;  %v7650_v14 = vadd.f32 %v7649_v20, %v7648_v24  ;;  %v7845_v41 = vadd.f32 %v7844_v50, %v7843_v53  ;;  %v7761_v8 = vmul.f32 %v7564_v52, %v7564_v52  ;;  %v8780_v24 = vld [vmem:[#allocation2 + $0x168] sm:$0xf]  ;;  %v8781_v50 = vld [vmem:[#allocation2 + $0x16c] sm:$0xf] }
 0x362   :  { %v6763_v2 = vsel %vm6709_vm12, %v6698_v58, %v6116_v15  ;;  %v6276_v22 = vpop.permute.xlu0 %6275  ;;  %v7651_v63 = vsel %vm6384_vm1, %v7563_v61, 0.0  ;;  %v7846_v31 = vsel %vm6384_vm1, %v7759_v1, 0.0  ;;  %v6700_v39 = vsel %vm6644_vm7, %v6635_v16, %v5958_v38 }
 0x363   :  { %v6828_v40 = vsel %vm6774_vm13, %v6763_v2, %v6276_v22  ;;  %v7652_v37 = vadd.f32 %v7651_v63, %v7650_v14  ;;  %v7847_v18 = vadd.f32 %v7846_v31, %v7845_v41  ;;  %v6765_v59 = vsel %vm6709_vm12, %v6700_v39, %v6118_v44  ;;  %v8782_v41 = vld [vmem:[#allocation2 + $0x174] sm:$0xf]  ;;  %v8783_v2 = vld [vmem:[#allocation2 + $0x178] sm:$0xf] }
 0x364   :  { %8594 = vmatprep.mubr.msk.bf16.mxu1 %vm6859_vm8, %v6828_v40  ;;  %v6278_v27 = vpop.permute.xlu1 %6277  ;;  %v7653_v62 = vsel %vm6384_vm1, %v7564_v52, 0.0  ;;  %v7762_v11 = vmul.f32 %v7565_v28, %v7565_v28  ;;  %v7848_v29 = vsel %vm6384_vm1, %v7760_v9, 0.0  ;;  %v7655_v51 = vsel %vm6384_vm1, %v7565_v28, 0.0 }
 0x365   :  { %v6830_v21 = vsel %vm6774_vm13, %v6765_v59, %v6278_v27  ;;  %v7654_v23 = vadd.f32 %v7653_v62, %v7652_v37  ;;  %v7849_v4 = vadd.f32 %v7848_v29, %v7847_v18  ;;  %v7850_v7 = vsel %vm6384_vm1, %v7761_v8, 0.0  ;;  %v13046_v37 = vld [vmem:[#allocation23_spill] sm:$0xff] }
 0x366   :  { %8595 = vmatmul.mubr.msk.bf16.gmra.mxu1 %vm6859_vm8, %v6830_v21  ;;  %v7852_v10 = vsel %vm6384_vm1, %v7762_v11, 0.0  ;;  %v8078_v44 = vcombine.low %v8780_v24, %v8781_v50  ;;  %v8079_v22 = vcombine.low %v8782_v41, %v8783_v2  ;;  %v13047_v11 = vld [vmem:[#allocation26_spill] sm:$0xff]  ;;  %vm7934_vm3 = vcmask 58368  }
 0x367   :  { %v7851_v54 = vadd.f32 %v7850_v7, %v7849_v4  ;;  %v7656_v0 = vadd.f32 %v7655_v51, %v7654_v23  ;;  %v5256_v33 = vpop.permute.xlu0 %5255 }
 0x368   :  { %v5258_v3 = vpop.permute.xlu1 %5257  ;;  %v6374_v18 = vsel %vm6287_vm15, %v8078_v44, %v13046_v37  ;;  %v6377_v29 = vsel %vm6287_vm15, %v8079_v22, %v13047_v11  ;;  %v8784_v37 = vld [vmem:[#allocation2 + $0x180] sm:$0xf] }
 0x369   :  { %v7853_v47 = vadd.f32 %v7852_v10, %v7851_v54  ;;  %v6442_v27 = vsel %vm6384_vm1, %v6374_v18, %v5256_v33  ;;  %v6444_v4 = vsel %vm6384_vm1, %v6377_v29, %v5258_v3  ;;  %v8785_v18 = vld [vmem:[#allocation2 + $0x184] sm:$0xf] }
 0x36b   :  { %v5448_v60 = vpop.permute.xlu0 %5447 }
 0x36c   :  { %v5450_v13 = vpop.permute.xlu1 %5449  ;;  %v6507_v21 = vsel %vm6449_vm2, %v6442_v27, %v5448_v60 }
 0x36d   :  { %v6509_v7 = vsel %vm6449_vm2, %v6444_v4, %v5450_v13 }
 0x36e   :  { %v8572_v26 = vpop.f32.mrf.mxu0 }
 0x36f   :  { %v8467_v56 = vpack.c.bf16 %v8572_v26, %v8572_v26 }
 0x370   :  { %v7074_v49 = vpop.f32.mrf.mxu0 }
 0x371   :  { %7504 = vst.msk [vmem:[%s12914_s2 + $0x78] sm:$0xf] %vm7473_vm0, %v8467_v56  ;;  %v8465_v36 = vpack.c.bf16 %v7074_v49, %v7074_v49 }
 0x372   :  { %v8573_v25 = vpop.f32.mrf.mxu0 }
 0x373   :  { %7502 = vst.msk [vmem:[%s12914_s2 + $0x70] sm:$0xf] %vm7473_vm0, %v8465_v36  ;;  %v7232_v38 = vpack.c.bf16 %v8573_v25, %v8572_v26  ;;  %v8468_v17 = vpack.c.bf16 %v8573_v25, %v8573_v25 }
 0x374   :  { %v7077_v6 = vpop.f32.mrf.mxu0 }
 0x375   :  { %v5608_v55 = vpop.permute.xlu0 %5607  ;;  %7505 = vst.msk [vmem:[%s12914_s2 + $0x7c] sm:$0xf] %vm7473_vm0, %v8468_v17  ;;  %v7231_v5 = vpack.c.bf16 %v7077_v6, %v7074_v49  ;;  %v8466_v46 = vpack.c.bf16 %v7077_v6, %v7077_v6  ;;  %v7568_v32 = vunpack.c.l.bf16 %v7232_v38  ;;  %v7569_v34 = vunpack.c.h.bf16 %v7232_v38 }
 0x376   :  { %v6572_v51 = vsel %vm6514_vm4, %v6507_v21, %v5608_v55 }
 0x377   :  { %7503 = vst.msk [vmem:[%s12914_s2 + $0x74] sm:$0xf] %vm7473_vm0, %v8466_v46  ;;  %v7566_v45 = vunpack.c.l.bf16 %v7231_v5  ;;  %v7567_v61 = vunpack.c.h.bf16 %v7231_v5  ;;  %v7765_v15 = vmul.f32 %v7568_v32, %v7568_v32  ;;  %v7661_v1 = vsel %vm6384_vm1, %v7568_v32, 0.0 }
 0x378   :  { %v7766_v9 = vmul.f32 %v7569_v34, %v7569_v34  ;;  %v7663_v8 = vsel %vm6384_vm1, %v7569_v34, 0.0 }
 0x379   :  { %v5768_v57 = vpop.permute.xlu0 %5767  ;;  %v7657_v43 = vsel %vm6384_vm1, %v7566_v45, 0.0  ;;  %v7763_v12 = vmul.f32 %v7566_v45, %v7566_v45  ;;  %v7764_v35 = vmul.f32 %v7567_v61, %v7567_v61  ;;  %v7659_v52 = vsel %vm6384_vm1, %v7567_v61, 0.0 }
 0x37a   :  { %v7658_v48 = vadd.f32 %v7657_v43, %v7656_v0  ;;  %v7858_v63 = vsel %vm6384_vm1, %v7765_v15, 0.0  ;;  %v7860_v59 = vsel %vm6384_vm1, %v7766_v9, 0.0  ;;  %v6637_v54 = vsel %vm6579_vm6, %v6572_v51, %v5768_v57 }
 0x37b   :  { %v5610_v42 = vpop.permute.xlu1 %5609  ;;  %v7854_v20 = vsel %vm6384_vm1, %v7763_v12, 0.0  ;;  %v7856_v16 = vsel %vm6384_vm1, %v7764_v35, 0.0 }
 0x37c   :  { %v7660_v19 = vadd.f32 %v7659_v52, %v7658_v48  ;;  %v7855_v53 = vadd.f32 %v7854_v20, %v7853_v47  ;;  %v6574_v10 = vsel %vm6514_vm4, %v6509_v7, %v5610_v42 }
 0x37d   :  { %v5960_v28 = vpop.permute.xlu0 %5959 }
 0x37e   :  { %v7662_v58 = vadd.f32 %v7661_v1, %v7660_v19  ;;  %v7857_v14 = vadd.f32 %v7856_v16, %v7855_v53  ;;  %v6702_v33 = vsel %vm6644_vm7, %v6637_v54, %v5960_v28 }
 0x37f   :  { %v5770_v30 = vpop.permute.xlu1 %5769 }
 0x380   :  { %v7859_v39 = vadd.f32 %v7858_v63, %v7857_v14  ;;  %v7664_v40 = vadd.f32 %v7663_v8, %v7662_v58  ;;  %v6639_v26 = vsel %vm6579_vm6, %v6574_v10, %v5770_v30 }
 0x382   :  { %v7861_v62 = vadd.f32 %v7860_v59, %v7859_v39  ;;  %v8080_v59 = vcombine.low %v8784_v37, %v8785_v18 }
 0x383   :  { %v5962_v31 = vpop.permute.xlu1 %5961 }
 0x384   :  { %v6704_v3 = vsel %vm6644_vm7, %v6639_v26, %v5962_v31 }
 0x386   :  { %v6120_v23 = vpop.permute.xlu0 %6119 }
 0x387   :  { %v6767_v56 = vsel %vm6709_vm12, %v6702_v33, %v6120_v23  ;;  %v13048_v23 = vld [vmem:[#allocation25_spill] sm:$0xff] }
 0x388   :  { %v6122_v0 = vpop.permute.xlu1 %6121  ;;  %v8576_v47 = vpop.f32.mrf.mxu1  ;;  %v6380_v4 = vsel %vm6287_vm15, %v8080_v59, %v13048_v23 }
 0x389   :  { %v8471_v49 = vpack.c.bf16 %v8576_v47, %v8576_v47  ;;  %v6769_v13 = vsel %vm6709_vm12, %v6704_v3, %v6122_v0  ;;  %v8787_v3 = vld [vmem:[#allocation2 + $0x190] sm:$0xf] }
 0x38a   :  { %v6280_v60 = vpop.permute.xlu0 %6279  ;;  %v7090_v25 = vpop.f32.mrf.mxu1 }
 0x38b   :  { %v6832_v36 = vsel %vm6774_vm13, %v6767_v56, %v6280_v60  ;;  %7508 = vst.msk [vmem:[%s12914_s2 + $0x88] sm:$0xf] %vm7473_vm0, %v8471_v49  ;;  %v8469_v17 = vpack.c.bf16 %v7090_v25, %v7090_v25  ;;  %v8786_v49 = vld [vmem:[#allocation2 + $0x18c] sm:$0xf] }
 0x38c   :  { %8598 = vmatprep.mubr.msk.bf16.mxu1 %vm6859_vm8, %v6832_v36  ;;  %v6282_v38 = vpop.permute.xlu1 %6281  ;;  %v8577_v6 = vpop.f32.mrf.mxu1  ;;  %v8081_v36 = vcombine.low %v8786_v49, %v8787_v3 }
 0x38d   :  { %v6834_v55 = vsel %vm6774_vm13, %v6769_v13, %v6282_v38  ;;  %7506 = vst.msk [vmem:[%s12914_s2 + $0x80] sm:$0xf] %vm7473_vm0, %v8469_v17  ;;  %v7234_v5 = vpack.c.bf16 %v8577_v6, %v8576_v47  ;;  %v8472_v46 = vpack.c.bf16 %v8577_v6, %v8577_v6 }
 0x38e   :  { %8599 = vmatmul.mubr.msk.bf16.gmra.mxu1 %vm6859_vm8, %v6834_v55  ;;  %v7093_v57 = vpop.f32.mrf.mxu1 }
 0x38f   :  { %7509 = vst.msk [vmem:[%s12914_s2 + $0x8c] sm:$0xf] %vm7473_vm0, %v8472_v46  ;;  %v7233_v32 = vpack.c.bf16 %v7093_v57, %v7090_v25  ;;  %v8470_v45 = vpack.c.bf16 %v7093_v57, %v7093_v57  ;;  %v7572_v61 = vunpack.c.l.bf16 %v7234_v5  ;;  %v7573_v12 = vunpack.c.h.bf16 %v7234_v5 }
 0x391   :  { %7507 = vst.msk [vmem:[%s12914_s2 + $0x84] sm:$0xf] %vm7473_vm0, %v8470_v45  ;;  %v7570_v42 = vunpack.c.l.bf16 %v7233_v32  ;;  %v7571_v34 = vunpack.c.h.bf16 %v7233_v32  ;;  %v5260_v43 = vpop.permute.xlu0 %5259  ;;  %v7769_v20 = vmul.f32 %v7572_v61, %v7572_v61  ;;  %v7669_v50 = vsel %vm6384_vm1, %v7572_v61, 0.0  ;;  %v13049_v61 = vld [vmem:[#allocation31_spill] sm:$0xff] }
 0x392   :  { %v7770_v44 = vmul.f32 %v7573_v12, %v7573_v12  ;;  %v7671_v58 = vsel %vm6384_vm1, %v7573_v12, 0.0  ;;  %v6446_v7 = vsel %vm6384_vm1, %v6380_v4, %v5260_v43 }
 0x393   :  { %v7665_v48 = vsel %vm6384_vm1, %v7570_v42, 0.0  ;;  %v7767_v35 = vmul.f32 %v7570_v42, %v7570_v42  ;;  %v7768_v15 = vmul.f32 %v7571_v34, %v7571_v34  ;;  %v7667_v30 = vsel %vm6384_vm1, %v7571_v34, 0.0 }
 0x394   :  { %v7666_v52 = vadd.f32 %v7665_v48, %v7664_v40  ;;  %v7866_v14 = vsel %vm6384_vm1, %v7769_v20, 0.0  ;;  %v7868_v22 = vsel %vm6384_vm1, %v7770_v44, 0.0  ;;  %v6383_v42 = vsel %vm6287_vm15, %v8081_v36, %v13049_v61 }
 0x395   :  { %v7862_v19 = vsel %vm6384_vm1, %v7767_v35, 0.0  ;;  %v7864_v28 = vsel %vm6384_vm1, %v7768_v15, 0.0  ;;  %v5452_v16 = vpop.permute.xlu0 %5451 }
 0x396   :  { %v7668_v53 = vadd.f32 %v7667_v30, %v7666_v52  ;;  %v7863_v24 = vadd.f32 %v7862_v19, %v7861_v62  ;;  %v6511_v0 = vsel %vm6449_vm2, %v6446_v7, %v5452_v16 }
 0x397   :  { %v5262_v31 = vpop.permute.xlu1 %5261 }
 0x398   :  { %v7670_v1 = vadd.f32 %v7669_v50, %v7668_v53  ;;  %v7865_v9 = vadd.f32 %v7864_v28, %v7863_v24  ;;  %v6448_v35 = vsel %vm6384_vm1, %v6383_v42, %v5262_v31 }
 0x39a   :  { %v7867_v41 = vadd.f32 %v7866_v14, %v7865_v9  ;;  %v7672_v2 = vadd.f32 %v7671_v58, %v7670_v1 }
 0x39c   :  { %v7869_v8 = vadd.f32 %v7868_v22, %v7867_v41 }
 0x3a0   :  { %v5612_v63 = vpop.permute.xlu0 %5611 }
 0x3a1   :  { %v6576_v26 = vsel %vm6514_vm4, %v6511_v0, %v5612_v63 }
 0x3a4   :  { %v5772_v39 = vpop.permute.xlu0 %5771 }
 0x3a5   :  { %v6641_v25 = vsel %vm6579_vm6, %v6576_v26, %v5772_v39 }
 0x3a6   :  { %v5454_v40 = vpop.permute.xlu1 %5453 }
 0x3a7   :  { %v6513_v52 = vsel %vm6449_vm2, %v6448_v35, %v5454_v40 }
 0x3aa   :  { %v5964_v27 = vpop.permute.xlu0 %5963 }
 0x3ab   :  { %v6706_v38 = vsel %vm6644_vm7, %v6641_v25, %v5964_v27 }
 0x3ad   :  { %v8580_v62 = vpop.f32.mrf.mxu1 }
 0x3ae   :  { %v8475_v11 = vpack.c.bf16 %v8580_v62, %v8580_v62 }
 0x3af   :  { %v7106_v21 = vpop.f32.mrf.mxu1 }
 0x3b0   :  { %7512 = vst.msk [vmem:[%s12914_s2 + $0x98] sm:$0xf] %vm7473_vm0, %v8475_v11  ;;  %v8473_v51 = vpack.c.bf16 %v7106_v21, %v7106_v21 }
 0x3b1   :  { %v5614_v29 = vpop.permute.xlu1 %5613  ;;  %v8581_v54 = vpop.f32.mrf.mxu1 }
 0x3b2   :  { %7510 = vst.msk [vmem:[%s12914_s2 + $0x90] sm:$0xf] %vm7473_vm0, %v8473_v51  ;;  %v7236_v33 = vpack.c.bf16 %v8581_v54, %v8580_v62  ;;  %v8476_v47 = vpack.c.bf16 %v8581_v54, %v8581_v54  ;;  %v6578_v24 = vsel %vm6514_vm4, %v6513_v52, %v5614_v29 }
 0x3b3   :  { %v7109_v60 = vpop.f32.mrf.mxu1 }
 0x3b4   :  { %v6124_v10 = vpop.permute.xlu0 %6123  ;;  %7513 = vst.msk [vmem:[%s12914_s2 + $0x9c] sm:$0xf] %vm7473_vm0, %v8476_v47  ;;  %v7235_v13 = vpack.c.bf16 %v7109_v60, %v7106_v21  ;;  %v8474_v17 = vpack.c.bf16 %v7109_v60, %v7109_v60  ;;  %v7576_v57 = vunpack.c.l.bf16 %v7236_v33  ;;  %v7577_v34 = vunpack.c.h.bf16 %v7236_v33 }
 0x3b5   :  { %v5774_v56 = vpop.permute.xlu1 %5773  ;;  %v6771_v55 = vsel %vm6709_vm12, %v6706_v38, %v6124_v10 }
 0x3b6   :  { %7511 = vst.msk [vmem:[%s12914_s2 + $0x94] sm:$0xf] %vm7473_vm0, %v8474_v17  ;;  %v7574_v32 = vunpack.c.l.bf16 %v7235_v13  ;;  %v7575_v45 = vunpack.c.h.bf16 %v7235_v13  ;;  %v7773_v30 = vmul.f32 %v7576_v57, %v7576_v57  ;;  %v6643_v28 = vsel %vm6579_vm6, %v6578_v24, %v5774_v56 }
 0x3b7   :  { %v7677_v1 = vsel %vm6384_vm1, %v7576_v57, 0.0  ;;  %v7774_v9 = vmul.f32 %v7577_v34, %v7577_v34  ;;  %v7679_v63 = vsel %vm6384_vm1, %v7577_v34, 0.0 }
 0x3b8   :  { %v6284_v6 = vpop.permute.xlu0 %6283  ;;  %v7673_v43 = vsel %vm6384_vm1, %v7574_v32, 0.0  ;;  %v7771_v12 = vmul.f32 %v7574_v32, %v7574_v32  ;;  %v7772_v48 = vmul.f32 %v7575_v45, %v7575_v45  ;;  %v7675_v19 = vsel %vm6384_vm1, %v7575_v45, 0.0 }
 0x3b9   :  { %v5966_v5 = vpop.permute.xlu1 %5965  ;;  %v6836_v46 = vsel %vm6774_vm13, %v6771_v55, %v6284_v6  ;;  %v7674_v15 = vadd.f32 %v7673_v43, %v7672_v2  ;;  %v7874_v31 = vsel %vm6384_vm1, %v7773_v30, 0.0  ;;  %v7876_v37 = vsel %vm6384_vm1, %v7774_v9, 0.0 }
 0x3ba   :  { %8602 = vmatprep.mubr.msk.bf16.mxu1 %vm6859_vm8, %v6836_v46  ;;  %v7870_v53 = vsel %vm6384_vm1, %v7771_v12, 0.0  ;;  %v7872_v16 = vsel %vm6384_vm1, %v7772_v48, 0.0  ;;  %v6708_v58 = vsel %vm6644_vm7, %v6643_v28, %v5966_v5 }
 0x3bb   :  { %v7676_v50 = vadd.f32 %v7675_v19, %v7674_v15  ;;  %v7871_v44 = vadd.f32 %v7870_v53, %v7869_v8 }
 0x3bd   :  { %v6126_v20 = vpop.permute.xlu1 %6125  ;;  %v7678_v14 = vadd.f32 %v7677_v1, %v7676_v50  ;;  %v7873_v41 = vadd.f32 %v7872_v16, %v7871_v44 }
 0x3be   :  { %v6773_v2 = vsel %vm6709_vm12, %v6708_v58, %v6126_v20 }
 0x3bf   :  { %v7875_v39 = vadd.f32 %v7874_v31, %v7873_v41  ;;  %v7680_v40 = vadd.f32 %v7679_v63, %v7678_v14 }
 0x3c1   :  { %v6286_v22 = vpop.permute.xlu1 %6285  ;;  %v7877_v18 = vadd.f32 %v7876_v37, %v7875_v39 }
 0x3c2   :  { %v6838_v8 = vsel %vm6774_vm13, %v6773_v2, %v6286_v22 }
 0x3c3   :  { %8603 = vmatmul.mubr.msk.bf16.gmra.mxu1 %vm6859_vm8, %v6838_v8 }
 0x3d6   :  { %v8584_v59 = vpop.f32.mrf.mxu1 }
 0x3d7   :  { %v8479_v27 = vpack.c.bf16 %v8584_v59, %v8584_v59 }
 0x3d8   :  { %v7122_v62 = vpop.f32.mrf.mxu1 }
 0x3d9   :  { %7516 = vst.msk [vmem:[%s12914_s2 + $0xa8] sm:$0xf] %vm7473_vm0, %v8479_v27  ;;  %v8477_v11 = vpack.c.bf16 %v7122_v62, %v7122_v62 }
 0x3da   :  { %v8585_v29 = vpop.f32.mrf.mxu1 }
 0x3db   :  { %7514 = vst.msk [vmem:[%s12914_s2 + $0xa0] sm:$0xf] %vm7473_vm0, %v8477_v11  ;;  %v7238_v21 = vpack.c.bf16 %v8585_v29, %v8584_v59  ;;  %v8480_v23 = vpack.c.bf16 %v8585_v29, %v8585_v29 }
 0x3dc   :  { %v7125_v4 = vpop.f32.mrf.mxu1 }
 0x3dd   :  { %7517 = vst.msk [vmem:[%s12914_s2 + $0xac] sm:$0xf] %vm7473_vm0, %v8480_v23  ;;  %v7237_v51 = vpack.c.bf16 %v7125_v4, %v7122_v62  ;;  %v8478_v7 = vpack.c.bf16 %v7125_v4, %v7125_v4  ;;  %v7580_v54 = vunpack.c.l.bf16 %v7238_v21  ;;  %v7581_v33 = vunpack.c.h.bf16 %v7238_v21 }
 0x3df   :  { %7515 = vst.msk [vmem:[%s12914_s2 + $0xa4] sm:$0xf] %vm7473_vm0, %v8478_v7  ;;  %v7578_v0 = vunpack.c.l.bf16 %v7237_v51  ;;  %v7579_v10 = vunpack.c.h.bf16 %v7237_v51  ;;  %v7777_v49 = vmul.f32 %v7580_v54, %v7580_v54  ;;  %v7685_v38 = vsel %vm6384_vm1, %v7580_v54, 0.0 }
 0x3e0   :  { %v7778_v17 = vmul.f32 %v7581_v33, %v7581_v33  ;;  %v7687_v46 = vsel %vm6384_vm1, %v7581_v33, 0.0 }
 0x3e1   :  { %v7681_v47 = vsel %vm6384_vm1, %v7578_v0, 0.0  ;;  %v7775_v26 = vmul.f32 %v7578_v0, %v7578_v0  ;;  %v7776_v56 = vmul.f32 %v7579_v10, %v7579_v10  ;;  %v7683_v3 = vsel %vm6384_vm1, %v7579_v10, 0.0 }
 0x3e2   :  { %v7682_v60 = vadd.f32 %v7681_v47, %v7680_v40  ;;  %v7882_v57 = vsel %vm6384_vm1, %v7777_v49, 0.0  ;;  %v7884_v61 = vsel %vm6384_vm1, %v7778_v17, 0.0 }
 0x3e3   :  { %v7878_v36 = vsel %vm6384_vm1, %v7775_v26, 0.0  ;;  %v7880_v55 = vsel %vm6384_vm1, %v7776_v56, 0.0 }
 0x3e4   :  { %v7684_v25 = vadd.f32 %v7683_v3, %v7682_v60  ;;  %v7879_v13 = vadd.f32 %v7878_v36, %v7877_v18 }
 0x3e6   :  { %v7686_v6 = vadd.f32 %v7685_v38, %v7684_v25  ;;  %v7881_v5 = vadd.f32 %v7880_v55, %v7879_v13 }
 0x3e8   :  { %v7883_v32 = vadd.f32 %v7882_v57, %v7881_v5  ;;  %v7688_v45 = vadd.f32 %v7687_v46, %v7686_v6 }
 0x3ea   :  { %v7885_v42 = vadd.f32 %v7884_v61, %v7883_v32 }
 0x406   :  { %v8588_v34 = vpop.f32.mrf.mxu1 }
 0x407   :  { %v8483_v43 = vpack.c.bf16 %v8588_v34, %v8588_v34 }
 0x408   :  { %v7138_v12 = vpop.f32.mrf.mxu1 }
 0x409   :  { %7520 = vst.msk [vmem:[%s12914_s2 + $0xb8] sm:$0xf] %vm7473_vm0, %v8483_v43  ;;  %v8481_v48 = vpack.c.bf16 %v7138_v12, %v7138_v12 }
 0x40a   :  { %v8589_v35 = vpop.f32.mrf.mxu1 }
 0x40b   :  { %7518 = vst.msk [vmem:[%s12914_s2 + $0xb0] sm:$0xf] %vm7473_vm0, %v8481_v48  ;;  %v7240_v15 = vpack.c.bf16 %v8589_v35, %v8588_v34  ;;  %v8484_v52 = vpack.c.bf16 %v8589_v35, %v8589_v35 }
 0x40c   :  { %v7141_v20 = vpop.f32.mrf.mxu1 }
 0x40d   :  { %7521 = vst.msk [vmem:[%s12914_s2 + $0xbc] sm:$0xf] %vm7473_vm0, %v8484_v52  ;;  %v7239_v30 = vpack.c.bf16 %v7141_v20, %v7138_v12  ;;  %v8482_v19 = vpack.c.bf16 %v7141_v20, %v7141_v20  ;;  %v7584_v53 = vunpack.c.l.bf16 %v7240_v15  ;;  %v7585_v28 = vunpack.c.h.bf16 %v7240_v15 }
 0x40f   :  { %7519 = vst.msk [vmem:[%s12914_s2 + $0xb4] sm:$0xf] %vm7473_vm0, %v8482_v19  ;;  %v7582_v24 = vunpack.c.l.bf16 %v7239_v30  ;;  %v7583_v50 = vunpack.c.h.bf16 %v7239_v30  ;;  %v7781_v2 = vmul.f32 %v7584_v53, %v7584_v53  ;;  %v7693_v8 = vsel %vm6384_vm1, %v7584_v53, 0.0 }
 0x410   :  { %v8592_v44 = vpop.f32.mrf.mxu1  ;;  %v7782_v18 = vmul.f32 %v7585_v28, %v7585_v28  ;;  %v7695_v23 = vsel %vm6384_vm1, %v7585_v28, 0.0 }
 0x411   :  { %v7689_v1 = vsel %vm6384_vm1, %v7582_v24, 0.0  ;;  %v7779_v9 = vmul.f32 %v7582_v24, %v7582_v24  ;;  %v7780_v16 = vmul.f32 %v7583_v50, %v7583_v50  ;;  %v8487_v14 = vpack.c.bf16 %v8592_v44, %v8592_v44 }
 0x412   :  { %v7690_v58 = vadd.f32 %v7689_v1, %v7688_v45  ;;  %v7154_v41 = vpop.f32.mrf.mxu1  ;;  %v7691_v22 = vsel %vm6384_vm1, %v7583_v50, 0.0  ;;  %v7890_v4 = vsel %vm6384_vm1, %v7781_v2, 0.0  ;;  %v7892_v10 = vsel %vm6384_vm1, %v7782_v18, 0.0 }
 0x413   :  { %v7886_v63 = vsel %vm6384_vm1, %v7779_v9, 0.0  ;;  %v8485_v31 = vpack.c.bf16 %v7154_v41, %v7154_v41  ;;  %7524 = vst.msk [vmem:[%s12914_s2 + $0xc8] sm:$0xf] %vm7473_vm0, %v8487_v14  ;;  %v7888_v59 = vsel %vm6384_vm1, %v7780_v16, 0.0 }
 0x414   :  { %v7692_v39 = vadd.f32 %v7691_v22, %v7690_v58  ;;  %v7887_v40 = vadd.f32 %v7886_v63, %v7885_v42  ;;  %v8593_v37 = vpop.f32.mrf.mxu1 }
 0x415   :  { %7522 = vst.msk [vmem:[%s12914_s2 + $0xc0] sm:$0xf] %vm7473_vm0, %v8485_v31  ;;  %v7242_v27 = vpack.c.bf16 %v8593_v37, %v8592_v44  ;;  %v8488_v62 = vpack.c.bf16 %v8593_v37, %v8593_v37 }
 0x416   :  { %v7694_v11 = vadd.f32 %v7693_v8, %v7692_v39  ;;  %v7889_v29 = vadd.f32 %v7888_v59, %v7887_v40  ;;  %v7157_v21 = vpop.f32.mrf.mxu1 }
 0x417   :  { %7525 = vst.msk [vmem:[%s12914_s2 + $0xcc] sm:$0xf] %vm7473_vm0, %v8488_v62  ;;  %v7241_v51 = vpack.c.bf16 %v7157_v21, %v7154_v41  ;;  %v8486_v7 = vpack.c.bf16 %v7157_v21, %v7157_v21  ;;  %v7588_v33 = vunpack.c.l.bf16 %v7242_v27  ;;  %v7589_v60 = vunpack.c.h.bf16 %v7242_v27 }
 0x418   :  { %v7891_v54 = vadd.f32 %v7890_v4, %v7889_v29  ;;  %v7696_v0 = vadd.f32 %v7695_v23, %v7694_v11 }
 0x419   :  { %7523 = vst.msk [vmem:[%s12914_s2 + $0xc4] sm:$0xf] %vm7473_vm0, %v8486_v7  ;;  %v7586_v47 = vunpack.c.l.bf16 %v7241_v51  ;;  %v7587_v26 = vunpack.c.h.bf16 %v7241_v51  ;;  %v7785_v13 = vmul.f32 %v7588_v33, %v7588_v33  ;;  %v7701_v5 = vsel %vm6384_vm1, %v7588_v33, 0.0 }
 0x41a   :  { %v7893_v56 = vadd.f32 %v7892_v10, %v7891_v54  ;;  %v7786_v46 = vmul.f32 %v7589_v60, %v7589_v60  ;;  %v7703_v61 = vsel %vm6384_vm1, %v7589_v60, 0.0 }
 0x41b   :  { %v7697_v49 = vsel %vm6384_vm1, %v7586_v47, 0.0  ;;  %v7783_v3 = vmul.f32 %v7586_v47, %v7586_v47  ;;  %v7784_v36 = vmul.f32 %v7587_v26, %v7587_v26  ;;  %v7699_v38 = vsel %vm6384_vm1, %v7587_v26, 0.0 }
 0x41c   :  { %v7698_v25 = vadd.f32 %v7697_v49, %v7696_v0  ;;  %v7898_v42 = vsel %vm6384_vm1, %v7785_v13, 0.0  ;;  %v7900_v12 = vsel %vm6384_vm1, %v7786_v46, 0.0 }
 0x41d   :  { %v7894_v17 = vsel %vm6384_vm1, %v7783_v3, 0.0  ;;  %v7896_v57 = vsel %vm6384_vm1, %v7784_v36, 0.0 }
 0x41e   :  { %v7700_v55 = vadd.f32 %v7699_v38, %v7698_v25  ;;  %v7895_v6 = vadd.f32 %v7894_v17, %v7893_v56 }
 0x420   :  { %v7702_v32 = vadd.f32 %v7701_v5, %v7700_v55  ;;  %v7897_v45 = vadd.f32 %v7896_v57, %v7895_v6 }
 0x422   :  { %v7899_v34 = vadd.f32 %v7898_v42, %v7897_v45  ;;  %v7704_v43 = vadd.f32 %v7703_v61, %v7702_v32 }
 0x424   :  { %v7901_v48 = vadd.f32 %v7900_v12, %v7899_v34 }
 0x426   :  { %v8596_v35 = vpop.f32.mrf.mxu1 }
 0x427   :  { %v8491_v15 = vpack.c.bf16 %v8596_v35, %v8596_v35 }
 0x428   :  { %v7170_v52 = vpop.f32.mrf.mxu1 }
 0x429   :  { %7528 = vst.msk [vmem:[%s12914_s2 + $0xd8] sm:$0xf] %vm7473_vm0, %v8491_v15  ;;  %v8489_v20 = vpack.c.bf16 %v7170_v52, %v7170_v52 }
 0x42a   :  { %v8597_v30 = vpop.f32.mrf.mxu1 }
 0x42b   :  { %7526 = vst.msk [vmem:[%s12914_s2 + $0xd0] sm:$0xf] %vm7473_vm0, %v8489_v20  ;;  %v7244_v19 = vpack.c.bf16 %v8597_v30, %v8596_v35  ;;  %v8492_v53 = vpack.c.bf16 %v8597_v30, %v8597_v30 }
 0x42c   :  { %v7173_v24 = vpop.f32.mrf.mxu1 }
 0x42d   :  { %7529 = vst.msk [vmem:[%s12914_s2 + $0xdc] sm:$0xf] %vm7473_vm0, %v8492_v53  ;;  %v7243_v50 = vpack.c.bf16 %v7173_v24, %v7170_v52  ;;  %v8490_v44 = vpack.c.bf16 %v7173_v24, %v7173_v24  ;;  %v7592_v28 = vunpack.c.l.bf16 %v7244_v19  ;;  %v7593_v16 = vunpack.c.h.bf16 %v7244_v19 }
 0x42f   :  { %7527 = vst.msk [vmem:[%s12914_s2 + $0xd4] sm:$0xf] %vm7473_vm0, %v8490_v44  ;;  %v7590_v1 = vunpack.c.l.bf16 %v7243_v50  ;;  %v7591_v9 = vunpack.c.h.bf16 %v7243_v50  ;;  %v7789_v22 = vmul.f32 %v7592_v28, %v7592_v28  ;;  %v7709_v40 = vsel %vm6384_vm1, %v7592_v28, 0.0 }
 0x430   :  { %v7790_v37 = vmul.f32 %v7593_v16, %v7593_v16  ;;  %v7711_v62 = vsel %vm6384_vm1, %v7593_v16, 0.0 }
 0x431   :  { %v7705_v58 = vsel %vm6384_vm1, %v7590_v1, 0.0  ;;  %v7787_v14 = vmul.f32 %v7590_v1, %v7590_v1  ;;  %v7788_v41 = vmul.f32 %v7591_v9, %v7591_v9  ;;  %v7707_v63 = vsel %vm6384_vm1, %v7591_v9, 0.0 }
 0x432   :  { %v7706_v2 = vadd.f32 %v7705_v58, %v7704_v43  ;;  %v7906_v11 = vsel %vm6384_vm1, %v7789_v22, 0.0  ;;  %v7908_v23 = vsel %vm6384_vm1, %v7790_v37, 0.0 }
 0x433   :  { %v7902_v31 = vsel %vm6384_vm1, %v7787_v14, 0.0  ;;  %v7904_v18 = vsel %vm6384_vm1, %v7788_v41, 0.0 }
 0x434   :  { %v7708_v8 = vadd.f32 %v7707_v63, %v7706_v2  ;;  %v7903_v39 = vadd.f32 %v7902_v31, %v7901_v48 }
 0x436   :  { %v7710_v59 = vadd.f32 %v7709_v40, %v7708_v8  ;;  %v7905_v27 = vadd.f32 %v7904_v18, %v7903_v39 }
 0x438   :  { %v7907_v29 = vadd.f32 %v7906_v11, %v7905_v27  ;;  %v7712_v21 = vadd.f32 %v7711_v62, %v7710_v59 }
 0x43a   :  { %v7909_v4 = vadd.f32 %v7908_v23, %v7907_v29 }
 0x44e   :  { %v8600_v51 = vpop.f32.mrf.mxu1 }
 0x44f   :  { %v8495_v7 = vpack.c.bf16 %v8600_v51, %v8600_v51 }
 0x450   :  { %v7186_v54 = vpop.f32.mrf.mxu1 }
 0x451   :  { %7532 = vst.msk [vmem:[%s12914_s2 + $0xe8] sm:$0xf] %vm7473_vm0, %v8495_v7  ;;  %v8493_v0 = vpack.c.bf16 %v7186_v54, %v7186_v54 }
 0x452   :  { %v8601_v10 = vpop.f32.mrf.mxu1 }
 0x453   :  { %7530 = vst.msk [vmem:[%s12914_s2 + $0xe0] sm:$0xf] %vm7473_vm0, %v8493_v0  ;;  %v8496_v33 = vpack.c.bf16 %v8601_v10, %v8601_v10  ;;  %v7246_v3 = vpack.c.bf16 %v8601_v10, %v8600_v51 }
 0x454   :  { %v7189_v47 = vpop.f32.mrf.mxu1 }
 0x455   :  { %7533 = vst.msk [vmem:[%s12914_s2 + $0xec] sm:$0xf] %vm7473_vm0, %v8496_v33  ;;  %v8494_v26 = vpack.c.bf16 %v7189_v47, %v7189_v47  ;;  %v7245_v56 = vpack.c.bf16 %v7189_v47, %v7186_v54  ;;  %v7596_v17 = vunpack.c.l.bf16 %v7246_v3  ;;  %v7597_v45 = vunpack.c.h.bf16 %v7246_v3 }
 0x457   :  { %7531 = vst.msk [vmem:[%s12914_s2 + $0xe4] sm:$0xf] %vm7473_vm0, %v8494_v26  ;;  %v7594_v60 = vunpack.c.l.bf16 %v7245_v56  ;;  %v7595_v36 = vunpack.c.h.bf16 %v7245_v56  ;;  %v7793_v34 = vmul.f32 %v7596_v17, %v7596_v17  ;;  %v7717_v15 = vsel %vm6384_vm1, %v7596_v17, 0.0 }
 0x458   :  { %v7794_v30 = vmul.f32 %v7597_v45, %v7597_v45  ;;  %v7719_v28 = vsel %vm6384_vm1, %v7597_v45, 0.0 }
 0x459   :  { %v7791_v49 = vmul.f32 %v7594_v60, %v7594_v60  ;;  %v7713_v25 = vsel %vm6384_vm1, %v7594_v60, 0.0  ;;  %v7792_v55 = vmul.f32 %v7595_v36, %v7595_v36  ;;  %v7715_v57 = vsel %vm6384_vm1, %v7595_v36, 0.0 }
 0x45a   :  { %v7714_v38 = vadd.f32 %v7713_v25, %v7712_v21  ;;  %v7914_v50 = vsel %vm6384_vm1, %v7793_v34, 0.0  ;;  %v7916_v58 = vsel %vm6384_vm1, %v7794_v30, 0.0 }
 0x45b   :  { %v7910_v13 = vsel %vm6384_vm1, %v7791_v49, 0.0  ;;  %v7912_v43 = vsel %vm6384_vm1, %v7792_v55, 0.0 }
 0x45c   :  { %v7911_v5 = vadd.f32 %v7910_v13, %v7909_v4  ;;  %v7716_v61 = vadd.f32 %v7715_v57, %v7714_v38 }
 0x45e   :  { %v7913_v48 = vadd.f32 %v7912_v43, %v7911_v5  ;;  %v7718_v19 = vadd.f32 %v7717_v15, %v7716_v61 }
 0x460   :  { %v7915_v44 = vadd.f32 %v7914_v50, %v7913_v48  ;;  %v7720_v14 = vadd.f32 %v7719_v28, %v7718_v19 }
 0x462   :  { %v7917_v8 = vadd.f32 %v7916_v58, %v7915_v44 }
 0x483   :  { %v8604_v6 = vpop.f32.mrf.mxu1 }
 0x484   :  { %v8499_v46 = vpack.c.bf16 %v8604_v6, %v8604_v6 }
 0x485   :  { %v7202_v32 = vpop.f32.mrf.mxu1 }
 0x486   :  { %7536 = vst.msk [vmem:[%s12914_s2 + $0xf8] sm:$0xf] %vm7473_vm0, %v8499_v46  ;;  %v8497_v42 = vpack.c.bf16 %v7202_v32, %v7202_v32 }
 0x487   :  { %v8605_v12 = vpop.f32.mrf.mxu1 }
 0x488   :  { %7534 = vst.msk [vmem:[%s12914_s2 + $0xf0] sm:$0xf] %vm7473_vm0, %v8497_v42  ;;  %v8500_v35 = vpack.c.bf16 %v8605_v12, %v8605_v12  ;;  %v7248_v52 = vpack.c.bf16 %v8605_v12, %v8604_v6 }
 0x489   :  { %v7205_v20 = vpop.f32.mrf.mxu1 }
 0x48a   :  { %7537 = vst.msk [vmem:[%s12914_s2 + $0xfc] sm:$0xf] %vm7473_vm0, %v8500_v35  ;;  %v7247_v53 = vpack.c.bf16 %v7205_v20, %v7202_v32  ;;  %v8498_v24 = vpack.c.bf16 %v7205_v20, %v7205_v20  ;;  %v7600_v1 = vunpack.c.l.bf16 %v7248_v52  ;;  %v7601_v41 = vunpack.c.h.bf16 %v7248_v52 }
 0x48c   :  { %7535 = vst.msk [vmem:[%s12914_s2 + $0xf4] sm:$0xf] %vm7473_vm0, %v8498_v24  ;;  %v7598_v9 = vunpack.c.l.bf16 %v7247_v53  ;;  %v7599_v16 = vunpack.c.h.bf16 %v7247_v53  ;;  %v7797_v39 = vmul.f32 %v7600_v1, %v7600_v1  ;;  %v7725_v27 = vsel %vm6384_vm1, %v7600_v1, 0.0  ;;  %s8819_s2 = smov [#allocation3]  }
 0x48d   :  { %v7798_v62 = vmul.f32 %v7601_v41, %v7601_v41  ;;  %v7727_v23 = vsel %vm6384_vm1, %v7601_v41, 0.0  ;;  %s7944_s13 = sshll.u32 %s8819_s2, 4  ;;  %vm7932_vm0 = vcmask 1040384   ;;  %s7945_s13 = int_to_ptr.vmem [resolvable:$true] %s7944_s13 }
 0x48e   :  { %v7721_v2 = vsel %vm6384_vm1, %v7598_v9, 0.0  ;;  %v7795_v22 = vmul.f32 %v7598_v9, %v7598_v9  ;;  %v7796_v63 = vmul.f32 %v7599_v16, %v7599_v16  ;;  %v7723_v40 = vsel %vm6384_vm1, %v7599_v16, 0.0  ;;  %s8788_s1 = scalar_lea.vmem %s7945_s13, 32  ;;  %p8793_p1 = scmp.lt.s32.totalorder %s7945_s13, %s7945_s13 }
 0x48f   :  { %v7722_v31 = vadd.f32 %v7721_v2, %v7720_v14  ;;  %v7922_v4 = vsel %vm6384_vm1, %v7797_v39, 0.0  ;;  %v7924_v54 = vsel %vm6384_vm1, %v7798_v62, 0.0  ;;  %p8789_p0 = scmp.ne.s32.totalorder %s7945_s13, %s8788_s1  ;;  %p8794_p2 = scmp.lt.s32.totalorder %s8788_s1, %s8788_s1 }
 0x490   :  { %v7918_v37 = vsel %vm6384_vm1, %v7795_v22, 0.0  ;;  %v7920_v11 = vsel %vm6384_vm1, %v7796_v63, 0.0 }
 0x491   :  { %v7724_v18 = vadd.f32 %v7723_v40, %v7722_v31  ;;  %v7919_v59 = vadd.f32 %v7918_v37, %v7917_v8  ;;  %p8795_p3 = por %p8794_p2, %p8793_p1 }
 0x493   :  { %v7726_v29 = vadd.f32 %v7725_v27, %v7724_v18  ;;  %v7921_v21 = vadd.f32 %v7920_v11, %v7919_v59  ;;  %p8796_p4 = pnand %p8795_p3, %p8789_p0 }
 0x495   :  { %v7728_v51 = vadd.f32 %v7727_v23, %v7726_v29  ;;  %v7923_v7 = vadd.f32 %v7922_v4, %v7921_v21 }
 0x497   :  { %v7729_v0 = vrot.slane %v7728_v51, 4  ;;  %v7925_v10 = vadd.f32 %v7924_v54, %v7923_v7 }
 0x499   :  { %v7730_v33 = vadd.f32 %v7729_v0, %v7728_v51  ;;  %v7926_v47 = vrot.slane %v7925_v10, 4 }
 0x49b   :  { %v7731_v26 = vrot.slane %v7730_v33, 2  ;;  %v7927_v56 = vadd.f32 %v7926_v47, %v7925_v10 }
 0x49d   :  { %v7732_v60 = vadd.f32 %v7731_v26, %v7730_v33  ;;  %v7928_v49 = vrot.slane %v7927_v56, 2 }
 0x49f   :  { %v7733_v3 = vrot.slane %v7732_v60, 1  ;;  %v7929_v36 = vadd.f32 %v7928_v49, %v7927_v56 }
 0x4a1   :  { %v7930_v25 = vrot.slane %v7929_v36, 1  ;;  %v7734_v13 = vadd.f32 %v7733_v3, %v7732_v60 }
 0x4a3   :  { %v7931_v38 = vadd.f32 %v7930_v25, %v7929_v36 }
 0x4a5   :  { %v7933_v17 = vsel %vm7932_vm0, %v7734_v13, %v7931_v38 }
 0x4a6   :  { %7935 = vst.msk [vmem:[#allocation3] sm:$0x3] %vm7934_vm3, %v7933_v17 }
 0x4a7   :  { %8799 = shalt.err (!%p8796_p4)
}
 0x4a8   :  { %7947 = dma.vmem_to_hbm [thread:$0]  %s7945_s13, 32, %s12915_s3, [#allocation4]  }
 0x4a9   :  { %8808 = dma.done.wait [#allocation4], 32  }
 0x4aa   :  { %8809 = vsyncadd [#allocation4], 4294967264 }
 0x4ab   :  { %7953 = vsyncpa [#allocation4], 1 }

</bundles_post_ra>
